<compile_context>
chip_gen: v6e
topology: v6e:2x2x1
jax: 0.10.0
libtpu: 0.0.40
codegen_flags: <defaults>
</compile_context>

<pallas_src>
import jax
import jax.numpy as jnp
from jax.experimental import pallas as pl
from jax.experimental.pallas import tpu as pltpu

C1P = 32      # conv1 out channels padded (real 20)
C2P = 64      # conv2 out channels padded (real 50)
N1P = 512     # fc1 out padded (real 500)
NCP = 128     # classes padded (real 10)
NEG = -1e30   # bias for pad classes -> ignored by log_softmax


# ------------------------------ fused kernel -------------------------------

def _fused_net_kernel(x_ref, k1_ref, b1_ref, k2_ref, b2_ref,
                      wf1_ref, bf1_ref, wf2_ref, bf2_ref, out_ref):
    # x_ref:   [4, bt*8, 28]  x_ref[m, b*8 + t, :] = image row 4t+m of sample b
    #                         (t in 0..6, slot t=7 zero padding)
    # k1_ref:  [5, 28, 768]   conv1 banded matrices, cols = (dj, pw, c1)
    # b1_ref:  [1, 384]       conv1 bias tiled over pw   (cols pw*32 + c1)
    # k2_ref:  [5, 384, 512]  conv2 banded matrices (bf16), rows (pw,c1), cols (dj,pw2,c2)
    # b2_ref:  [1, 256]       conv2 bias tiled over pw2  (cols pw2*64 + c2)
    # wf1_ref: [4, 256, 512]  fc1 weights (bf16), torch flatten order folded in
    # wf2_ref: [512, 128]     fc2 weights (pre-transposed, class-padded)
    bt8 = x_ref.shape[1]
    bt = bt8 // 8
    L1 = bt8 - 2          # conv1/pool1 rows: valid at b*8 + q,   q   in 0..5
    L2 = bt8 - 4          # conv2/pool2 rows: valid at b*8 + ph2, ph2 in 0..3
    LZ = bt8 - 7          # fc rows:          valid at b*8

    # ---- conv1 + bias + ReLU + 2x2 maxpool (whole batch tile at once) ----
    p1 = []                                       # p1[e][b*8+q, pw*32+c1], pool row = 2q+e
    for e in (0, 1):
        hmax = None
        for di in (0, 1):
            acc = None
            for i in range(5):
                r = 2 * e + di + i                # needs image row 4q + r
                lhs = x_ref[r % 4, r // 4:r // 4 + L1, :]            # [L1, 28] f32
                t = jnp.dot(lhs, k1_ref[i], preferred_element_type=jnp.float32)
                acc = t if acc is None else acc + t
            hmax = acc if hmax is None else jnp.maximum(hmax, acc)   # pool over conv-row parity
        wmax = jnp.maximum(hmax[:, 0:384], hmax[:, 384:768])         # pool over conv-col parity
        p1.append(jnp.maximum(wmax + b1_ref[...], 0.0))              # [L1, 384] f32

    # ---- conv2 + bias + ReLU + 2x2 maxpool ----
    hmax2 = None
    for di in (0, 1):
        acc = None
        for i in range(5):
            sh = di + i                           # needs pooled-conv1 row 2*ph2 + sh
            lhs = p1[sh % 2][sh // 2:sh // 2 + L2, :].astype(k2_ref.dtype)   # [L2, 384] bf16
            t = jnp.dot(lhs, k2_ref[i], preferred_element_type=jnp.float32)
            acc = t if acc is None else acc + t
        hmax2 = acc if hmax2 is None else jnp.maximum(hmax2, acc)
    wmax2 = jnp.maximum(hmax2[:, 0:256], hmax2[:, 256:512])
    p2 = jnp.maximum(wmax2 + b2_ref[...], 0.0)                       # [L2, 256] f32

    # ---- fc1 + ReLU (flatten folded into wf1 packing; uniform row shift) ----
    z1 = None
    for hr in range(4):
        lhs = p2[hr:hr + LZ, :].astype(wf1_ref.dtype)                # [LZ, 256] bf16
        t = jnp.dot(lhs, wf1_ref[hr], preferred_element_type=jnp.float32)
        z1 = t if z1 is None else z1 + t
    z1 = jnp.maximum(z1 + bf1_ref[...], 0.0)                         # [LZ, 512]

    # ---- fc2 + log_softmax (pad classes carry bias -1e30 -> exp == 0) ----
    z2 = jnp.dot(z1, wf2_ref[...], preferred_element_type=jnp.float32) + bf2_ref[...]
    zmax = jnp.max(z2, axis=-1, keepdims=True)
    sft = z2 - zmax
    lse = jnp.log(jnp.sum(jnp.exp(sft), axis=-1, keepdims=True))
    ls = sft - lse                                                   # [LZ, 128]

    # valid results live at rows b*8 of the flattened slot layout
    for b in range(bt):
        out_ref[pl.ds(b, 1), :] = ls[8 * b:8 * b + 1, :]


# -------------------------- one-time weight packing -------------------------

def init_params(key):
    # PyTorch-like uniform(-1/sqrt(fan_in), 1/sqrt(fan_in)) init, torch layouts.
    ks = jax.random.split(key, 8)

    def u(k, shape, fan_in):
        bound = 1.0 / float(fan_in) ** 0.5
        return jax.random.uniform(k, shape, jnp.float32, -bound, bound)

    return {
        "conv1_w": u(ks[0], (20, 1, 5, 5), 25),
        "conv1_b": u(ks[1], (20,), 25),
        "conv2_w": u(ks[2], (50, 20, 5, 5), 500),
        "conv2_b": u(ks[3], (50,), 500),
        "fc1_w": u(ks[4], (500, 800), 800),
        "fc1_b": u(ks[5], (500,), 800),
        "fc2_w": u(ks[6], (10, 500), 500),
        "fc2_b": u(ks[7], (10,), 500),
    }


def pack_params(params, matmul_dtype=jnp.bfloat16):
    """Host-side, once-per-model: build banded conv->matmul weights with the 2x2
    pool partners folded into the column ordering, lane-dense padding, and
    pre-transposed / reordered FC weights."""
    f32 = jnp.float32
    w1 = params["conv1_w"].astype(f32)            # [20, 1, 5, 5]
    w2 = params["conv2_w"].astype(f32)            # [50, 20, 5, 5]

    # conv1:  K1[i][w_in, dj*384 + pw*32 + c] = w1[c, 0, i, w_in - (2*pw+dj)]
    w1p = jnp.zeros((5, 5, C1P), f32).at[:, :, :20].set(jnp.transpose(w1[:, 0], (1, 2, 0)))
    wi = jnp.arange(28)[:, None, None]
    dj = jnp.arange(2)[None, :, None]
    pw = jnp.arange(12)[None, None, :]
    j1 = wi - (2 * pw + dj)                       # [28, 2, 12]
    v1 = (j1 >= 0) & (j1 < 5)
    j1c = jnp.clip(j1, 0, 4)
    k1 = jnp.stack([jnp.where(v1[..., None], w1p[i][j1c], 0.0).reshape(28, 768)
                    for i in range(5)])           # [5, 28, 768] f32

    b1p = jnp.zeros((C1P,), f32).at[:20].set(params["conv1_b"].astype(f32))
    b1t = jnp.tile(b1p, 12)[None, :]              # [1, 384]  (applied after W-pool)

    # conv2:  K2[i][pw*32 + c1, dj*256 + pw2*64 + c2] = w2[c2, c1, i, pw - (2*pw2+dj)]
    w2p = jnp.zeros((5, 5, C1P, C2P), f32).at[:, :, :20, :50].set(jnp.transpose(w2, (2, 3, 1, 0)))
    pwa = jnp.arange(12)[:, None, None]
    dja = jnp.arange(2)[None, :, None]
    pw2 = jnp.arange(4)[None, None, :]
    j2 = pwa - (2 * pw2 + dja)                    # [12, 2, 4]
    v2 = (j2 >= 0) & (j2 < 5)
    j2c = jnp.clip(j2, 0, 4)
    k2_list = []
    for i in range(5):
        tap = jnp.where(v2[..., None, None], w2p[i][j2c], 0.0)   # [12, 2, 4, 32, 64]
        k2_list.append(jnp.transpose(tap, (0, 3, 1, 2, 4)).reshape(384, 512))
    k2 = jnp.stack(k2_list).astype(matmul_dtype)                 # [5, 384, 512]

    b2p = jnp.zeros((C2P,), f32).at[:50].set(params["conv2_b"].astype(f32))
    b2t = jnp.tile(b2p, 4)[None, :]               # [1, 256]  (applied after W-pool)

    # fc1: wf1[h, pw2*64 + c2, n] = fc1_w[n, c2*16 + h*4 + pw2]  (torch flatten order)
    fw = params["fc1_w"].astype(f32).reshape(500, 50, 4, 4)       # (n, c2, h, w)
    wf1 = jnp.zeros((4, 4, C2P, N1P), f32).at[:, :, :50, :500].set(jnp.transpose(fw, (2, 3, 1, 0)))
    wf1 = wf1.reshape(4, 4 * C2P, N1P).astype(matmul_dtype)       # [4, 256, 512]
    bf1 = jnp.zeros((1, N1P), f32).at[0, :500].set(params["fc1_b"].astype(f32))

    # fc2: pre-transposed, padded; pad classes get bias -1e30
    wf2 = jnp.zeros((N1P, NCP), f32).at[:500, :10].set(params["fc2_w"].astype(f32).T)
    bf2 = jnp.full((1, NCP), NEG, f32).at[0, :10].set(params["fc2_b"].astype(f32))

    return (k1, b1t, k2, b2t, wf1, bf1, wf2, bf2)


# --------------------------------- forward ----------------------------------

@jax.jit
def net_forward(packed, x):
    """x: [B, 1, 28, 28] float32 (NCHW). Returns [B, 10] log-probabilities."""
    k1, b1t, k2, b2t, wf1, bf1, wf2, bf2 = packed
    B = x.shape[0]
    if B <= 8:
        bp, bt = B, B
    else:
        bp, bt = ((B + 7) // 8) * 8, 8

    # Host-side layout prep (one cheap transpose/pad of the tiny input):
    # xg[m, b*8 + t, :] = image row 4t+m of sample b  (8 row-slots per sample),
    # so every in-kernel conv/pool/fc row access is a contiguous 2D row window.
    xr = x.astype(jnp.float32)[:, 0].reshape(B, 7, 4, 28)     # [b, t, m, w]
    xg = jnp.transpose(xr, (2, 0, 1, 3))                      # [m, b, t, w]
    xg = jnp.pad(xg, ((0, 0), (0, bp - B), (0, 1), (0, 0)))   # batch pad, t: 7 -> 8 slots
    xg = xg.reshape(4, bp * 8, 28)

    def const_spec(a):
        zeros = (0,) * a.ndim
        return pl.BlockSpec(a.shape, lambda n: zeros)

    weights = (k1, b1t, k2, b2t, wf1, bf1, wf2, bf2)
    out = pl.pallas_call(
        _fused_net_kernel,
        grid=(bp // bt,),
        in_specs=[pl.BlockSpec((4, bt * 8, 28), lambda n: (0, n, 0))]
                 + [const_spec(w) for w in weights],
        out_specs=pl.BlockSpec((bt, NCP), lambda n: (n, 0)),
        out_shape=jax.ShapeDtypeStruct((bp, NCP), jnp.float32),
        compiler_params=pltpu.CompilerParams(
            dimension_semantics=("parallel",),          # shard batch tiles over TCs
            vmem_limit_bytes=32 * 1024 * 1024,          # weights (~4 MB) stay resident
        ),
    )(xg, *weights)
    return out[:B, :10]


# ------------------------------ reference (jnp) ------------------------------

def reference_forward(params, x):
    dn = ("NCHW", "OIHW", "NCHW")
    z = jax.lax.conv_general_dilated(x, params["conv1_w"], (1, 1), "VALID", dimension_numbers=dn)
    z = jnp.maximum(z + params["conv1_b"][None, :, None, None], 0.0)
    z = jax.lax.reduce_window(z, -jnp.inf, jax.lax.max, (1, 1, 2, 2), (1, 1, 2, 2), "VALID")
    z = jax.lax.conv_general_dilated(z, params["conv2_w"], (1, 1), "VALID", dimension_numbers=dn)
    z = jnp.maximum(z + params["conv2_b"][None, :, None, None], 0.0)
    z = jax.lax.reduce_window(z, -jnp.inf, jax.lax.max, (1, 1, 2, 2), (1, 1, 2, 2), "VALID")
    z = z.reshape(z.shape[0], 800)
    z = jnp.maximum(z @ params["fc1_w"].T + params["fc1_b"], 0.0)
    z = z @ params["fc2_w"].T + params["fc2_b"]
    return jax.nn.log_softmax(z, axis=-1)


if __name__ == "__main__":
    key = jax.random.PRNGKey(0)
    pkey, xkey = jax.random.split(key)
    params = init_params(pkey)
    packed = pack_params(params)          # one-time repack (banded conv weights, pads, transposes)

    x = jax.random.normal(xkey, (2, 1, 28, 28), jnp.float32)

    out = jax.block_until_ready(net_forward(packed, x))

    assert out.shape == (2, 10)
    # rows of log_softmax must exponentiate-and-sum to ~1
    assert bool(jnp.all(jnp.abs(jnp.sum(jnp.exp(out), axis=1) - 1.0) < 1e-4))

    # cross-check against a plain-JAX reference of the PyTorch forward
    # (loose tolerance: conv2/fc1 use bf16 operands with f32 accumulation)
    ref = reference_forward(params, x)
    err = float(jnp.max(jnp.abs(out - ref)))
    assert err < 2e-1, f"mismatch vs reference: {err}"

    print("KERNEL_OK")
</pallas_src>

<mosaic_0001>
module attributes {stable_mosaic.version = 11 : i64} {
  func.func @_fused_net_kernel(%arg0: i32, %arg1: memref<4x16x28xf32, #tpu.memory_space<vmem>>, %arg2: memref<5x28x768xf32, #tpu.memory_space<vmem>>, %arg3: memref<1x384xf32, #tpu.memory_space<vmem>>, %arg4: memref<5x384x512xbf16, #tpu.memory_space<vmem>>, %arg5: memref<1x256xf32, #tpu.memory_space<vmem>>, %arg6: memref<4x256x512xbf16, #tpu.memory_space<vmem>>, %arg7: memref<1x512xf32, #tpu.memory_space<vmem>>, %arg8: memref<512x128xf32, #tpu.memory_space<vmem>>, %arg9: memref<1x128xf32, #tpu.memory_space<vmem>>, %arg10: memref<2x128xf32, #tpu.memory_space<vmem>>) attributes {dimension_semantics = [#tpu.dimension_semantics<parallel>], iteration_bounds = array<i64: 1>, scalar_prefetch = 0 : i64, scratch_operands = 0 : i64, tpu.core_type = #tpu.core_type<tc>, window_params = [{transform_indices = @transform_0, window_bounds = array<i64: 4, 16, 28>}, {pipeline_mode = #tpu.pipeline_mode<synchronous>, transform_indices = @transform_1, window_bounds = array<i64: 5, 28, 768>}, {pipeline_mode = #tpu.pipeline_mode<synchronous>, transform_indices = @transform_2, window_bounds = array<i64: 1, 384>}, {pipeline_mode = #tpu.pipeline_mode<synchronous>, transform_indices = @transform_3, window_bounds = array<i64: 5, 384, 512>}, {pipeline_mode = #tpu.pipeline_mode<synchronous>, transform_indices = @transform_4, window_bounds = array<i64: 1, 256>}, {pipeline_mode = #tpu.pipeline_mode<synchronous>, transform_indices = @transform_5, window_bounds = array<i64: 4, 256, 512>}, {pipeline_mode = #tpu.pipeline_mode<synchronous>, transform_indices = @transform_6, window_bounds = array<i64: 1, 512>}, {pipeline_mode = #tpu.pipeline_mode<synchronous>, transform_indices = @transform_7, window_bounds = array<i64: 512, 128>}, {pipeline_mode = #tpu.pipeline_mode<synchronous>, transform_indices = @transform_8, window_bounds = array<i64: 1, 128>}, {transform_indices = @transform_9, window_bounds = array<i64: 2, 128>}]} {
    %c0 = arith.constant 0 : index
    %c0_0 = arith.constant 0 : index
    %c0_1 = arith.constant 0 : index
    %0 = vector.load %arg1[%c0, %c0_0, %c0_1] : memref<4x16x28xf32, #tpu.memory_space<vmem>>, vector<1x14x28xf32>
    %1 = vector.shape_cast %0 : vector<1x14x28xf32> to vector<14x28xf32>
    %c0_2 = arith.constant 0 : index
    %c0_3 = arith.constant 0 : index
    %c0_4 = arith.constant 0 : index
    %2 = vector.load %arg2[%c0_2, %c0_3, %c0_4] : memref<5x28x768xf32, #tpu.memory_space<vmem>>, vector<1x28x768xf32>
    %3 = vector.shape_cast %2 : vector<1x28x768xf32> to vector<28x768xf32>
    %cst = arith.constant dense<0.000000e+00> : vector<14x768xf32>
    %4 = tpu.matmul %1, %3, %cst {dimension_numbers = #tpu.dot_dimension_numbers<[1], [0], [0], [1], [0, 0, 1, 1], [], []>} : vector<14x28xf32>, vector<28x768xf32>, vector<14x768xf32> -> vector<14x768xf32>
    %c1 = arith.constant 1 : index
    %c0_5 = arith.constant 0 : index
    %c0_6 = arith.constant 0 : index
    %5 = vector.load %arg1[%c1, %c0_5, %c0_6] : memref<4x16x28xf32, #tpu.memory_space<vmem>>, vector<1x14x28xf32>
    %6 = vector.shape_cast %5 : vector<1x14x28xf32> to vector<14x28xf32>
    %c1_7 = arith.constant 1 : index
    %c0_8 = arith.constant 0 : index
    %c0_9 = arith.constant 0 : index
    %7 = vector.load %arg2[%c1_7, %c0_8, %c0_9] : memref<5x28x768xf32, #tpu.memory_space<vmem>>, vector<1x28x768xf32>
    %8 = vector.shape_cast %7 : vector<1x28x768xf32> to vector<28x768xf32>
    %cst_10 = arith.constant dense<0.000000e+00> : vector<14x768xf32>
    %9 = tpu.matmul %6, %8, %cst_10 {dimension_numbers = #tpu.dot_dimension_numbers<[1], [0], [0], [1], [0, 0, 1, 1], [], []>} : vector<14x28xf32>, vector<28x768xf32>, vector<14x768xf32> -> vector<14x768xf32>
    %10 = arith.addf %4, %9 : vector<14x768xf32>
    %c2 = arith.constant 2 : index
    %c0_11 = arith.constant 0 : index
    %c0_12 = arith.constant 0 : index
    %11 = vector.load %arg1[%c2, %c0_11, %c0_12] : memref<4x16x28xf32, #tpu.memory_space<vmem>>, vector<1x14x28xf32>
    %12 = vector.shape_cast %11 : vector<1x14x28xf32> to vector<14x28xf32>
    %c2_13 = arith.constant 2 : index
    %c0_14 = arith.constant 0 : index
    %c0_15 = arith.constant 0 : index
    %13 = vector.load %arg2[%c2_13, %c0_14, %c0_15] : memref<5x28x768xf32, #tpu.memory_space<vmem>>, vector<1x28x768xf32>
    %14 = vector.shape_cast %13 : vector<1x28x768xf32> to vector<28x768xf32>
    %cst_16 = arith.constant dense<0.000000e+00> : vector<14x768xf32>
    %15 = tpu.matmul %12, %14, %cst_16 {dimension_numbers = #tpu.dot_dimension_numbers<[1], [0], [0], [1], [0, 0, 1, 1], [], []>} : vector<14x28xf32>, vector<28x768xf32>, vector<14x768xf32> -> vector<14x768xf32>
    %16 = arith.addf %10, %15 : vector<14x768xf32>
    %c3 = arith.constant 3 : index
    %c0_17 = arith.constant 0 : index
    %c0_18 = arith.constant 0 : index
    %17 = vector.load %arg1[%c3, %c0_17, %c0_18] : memref<4x16x28xf32, #tpu.memory_space<vmem>>, vector<1x14x28xf32>
    %18 = vector.shape_cast %17 : vector<1x14x28xf32> to vector<14x28xf32>
    %c3_19 = arith.constant 3 : index
    %c0_20 = arith.constant 0 : index
    %c0_21 = arith.constant 0 : index
    %19 = vector.load %arg2[%c3_19, %c0_20, %c0_21] : memref<5x28x768xf32, #tpu.memory_space<vmem>>, vector<1x28x768xf32>
    %20 = vector.shape_cast %19 : vector<1x28x768xf32> to vector<28x768xf32>
    %cst_22 = arith.constant dense<0.000000e+00> : vector<14x768xf32>
    %21 = tpu.matmul %18, %20, %cst_22 {dimension_numbers = #tpu.dot_dimension_numbers<[1], [0], [0], [1], [0, 0, 1, 1], [], []>} : vector<14x28xf32>, vector<28x768xf32>, vector<14x768xf32> -> vector<14x768xf32>
    %22 = arith.addf %16, %21 : vector<14x768xf32>
    %c0_23 = arith.constant 0 : index
    %c1_24 = arith.constant 1 : index
    %c0_25 = arith.constant 0 : index
    %23 = vector.load %arg1[%c0_23, %c1_24, %c0_25] : memref<4x16x28xf32, #tpu.memory_space<vmem>>, vector<1x14x28xf32>
    %24 = vector.shape_cast %23 : vector<1x14x28xf32> to vector<14x28xf32>
    %c4 = arith.constant 4 : index
    %c0_26 = arith.constant 0 : index
    %c0_27 = arith.constant 0 : index
    %25 = vector.load %arg2[%c4, %c0_26, %c0_27] : memref<5x28x768xf32, #tpu.memory_space<vmem>>, vector<1x28x768xf32>
    %26 = vector.shape_cast %25 : vector<1x28x768xf32> to vector<28x768xf32>
    %cst_28 = arith.constant dense<0.000000e+00> : vector<14x768xf32>
    %27 = tpu.matmul %24, %26, %cst_28 {dimension_numbers = #tpu.dot_dimension_numbers<[1], [0], [0], [1], [0, 0, 1, 1], [], []>} : vector<14x28xf32>, vector<28x768xf32>, vector<14x768xf32> -> vector<14x768xf32>
    %28 = arith.addf %22, %27 : vector<14x768xf32>
    %c1_29 = arith.constant 1 : index
    %c0_30 = arith.constant 0 : index
    %c0_31 = arith.constant 0 : index
    %29 = vector.load %arg1[%c1_29, %c0_30, %c0_31] : memref<4x16x28xf32, #tpu.memory_space<vmem>>, vector<1x14x28xf32>
    %30 = vector.shape_cast %29 : vector<1x14x28xf32> to vector<14x28xf32>
    %c0_32 = arith.constant 0 : index
    %c0_33 = arith.constant 0 : index
    %c0_34 = arith.constant 0 : index
    %31 = vector.load %arg2[%c0_32, %c0_33, %c0_34] : memref<5x28x768xf32, #tpu.memory_space<vmem>>, vector<1x28x768xf32>
    %32 = vector.shape_cast %31 : vector<1x28x768xf32> to vector<28x768xf32>
    %cst_35 = arith.constant dense<0.000000e+00> : vector<14x768xf32>
    %33 = tpu.matmul %30, %32, %cst_35 {dimension_numbers = #tpu.dot_dimension_numbers<[1], [0], [0], [1], [0, 0, 1, 1], [], []>} : vector<14x28xf32>, vector<28x768xf32>, vector<14x768xf32> -> vector<14x768xf32>
    %c2_36 = arith.constant 2 : index
    %c0_37 = arith.constant 0 : index
    %c0_38 = arith.constant 0 : index
    %34 = vector.load %arg1[%c2_36, %c0_37, %c0_38] : memref<4x16x28xf32, #tpu.memory_space<vmem>>, vector<1x14x28xf32>
    %35 = vector.shape_cast %34 : vector<1x14x28xf32> to vector<14x28xf32>
    %c1_39 = arith.constant 1 : index
    %c0_40 = arith.constant 0 : index
    %c0_41 = arith.constant 0 : index
    %36 = vector.load %arg2[%c1_39, %c0_40, %c0_41] : memref<5x28x768xf32, #tpu.memory_space<vmem>>, vector<1x28x768xf32>
    %37 = vector.shape_cast %36 : vector<1x28x768xf32> to vector<28x768xf32>
    %cst_42 = arith.constant dense<0.000000e+00> : vector<14x768xf32>
    %38 = tpu.matmul %35, %37, %cst_42 {dimension_numbers = #tpu.dot_dimension_numbers<[1], [0], [0], [1], [0, 0, 1, 1], [], []>} : vector<14x28xf32>, vector<28x768xf32>, vector<14x768xf32> -> vector<14x768xf32>
    %39 = arith.addf %33, %38 : vector<14x768xf32>
    %c3_43 = arith.constant 3 : index
    %c0_44 = arith.constant 0 : index
    %c0_45 = arith.constant 0 : index
    %40 = vector.load %arg1[%c3_43, %c0_44, %c0_45] : memref<4x16x28xf32, #tpu.memory_space<vmem>>, vector<1x14x28xf32>
    %41 = vector.shape_cast %40 : vector<1x14x28xf32> to vector<14x28xf32>
    %c2_46 = arith.constant 2 : index
    %c0_47 = arith.constant 0 : index
    %c0_48 = arith.constant 0 : index
    %42 = vector.load %arg2[%c2_46, %c0_47, %c0_48] : memref<5x28x768xf32, #tpu.memory_space<vmem>>, vector<1x28x768xf32>
    %43 = vector.shape_cast %42 : vector<1x28x768xf32> to vector<28x768xf32>
    %cst_49 = arith.constant dense<0.000000e+00> : vector<14x768xf32>
    %44 = tpu.matmul %41, %43, %cst_49 {dimension_numbers = #tpu.dot_dimension_numbers<[1], [0], [0], [1], [0, 0, 1, 1], [], []>} : vector<14x28xf32>, vector<28x768xf32>, vector<14x768xf32> -> vector<14x768xf32>
    %45 = arith.addf %39, %44 : vector<14x768xf32>
    %c0_50 = arith.constant 0 : index
    %c1_51 = arith.constant 1 : index
    %c0_52 = arith.constant 0 : index
    %46 = vector.load %arg1[%c0_50, %c1_51, %c0_52] : memref<4x16x28xf32, #tpu.memory_space<vmem>>, vector<1x14x28xf32>
    %47 = vector.shape_cast %46 : vector<1x14x28xf32> to vector<14x28xf32>
    %c3_53 = arith.constant 3 : index
    %c0_54 = arith.constant 0 : index
    %c0_55 = arith.constant 0 : index
    %48 = vector.load %arg2[%c3_53, %c0_54, %c0_55] : memref<5x28x768xf32, #tpu.memory_space<vmem>>, vector<1x28x768xf32>
    %49 = vector.shape_cast %48 : vector<1x28x768xf32> to vector<28x768xf32>
    %cst_56 = arith.constant dense<0.000000e+00> : vector<14x768xf32>
    %50 = tpu.matmul %47, %49, %cst_56 {dimension_numbers = #tpu.dot_dimension_numbers<[1], [0], [0], [1], [0, 0, 1, 1], [], []>} : vector<14x28xf32>, vector<28x768xf32>, vector<14x768xf32> -> vector<14x768xf32>
    %51 = arith.addf %45, %50 : vector<14x768xf32>
    %c1_57 = arith.constant 1 : index
    %c1_58 = arith.constant 1 : index
    %c0_59 = arith.constant 0 : index
    %52 = vector.load %arg1[%c1_57, %c1_58, %c0_59] : memref<4x16x28xf32, #tpu.memory_space<vmem>>, vector<1x14x28xf32>
    %53 = vector.shape_cast %52 : vector<1x14x28xf32> to vector<14x28xf32>
    %c4_60 = arith.constant 4 : index
    %c0_61 = arith.constant 0 : index
    %c0_62 = arith.constant 0 : index
    %54 = vector.load %arg2[%c4_60, %c0_61, %c0_62] : memref<5x28x768xf32, #tpu.memory_space<vmem>>, vector<1x28x768xf32>
    %55 = vector.shape_cast %54 : vector<1x28x768xf32> to vector<28x768xf32>
    %cst_63 = arith.constant dense<0.000000e+00> : vector<14x768xf32>
    %56 = tpu.matmul %53, %55, %cst_63 {dimension_numbers = #tpu.dot_dimension_numbers<[1], [0], [0], [1], [0, 0, 1, 1], [], []>} : vector<14x28xf32>, vector<28x768xf32>, vector<14x768xf32> -> vector<14x768xf32>
    %57 = arith.addf %51, %56 : vector<14x768xf32>
    %58 = arith.maximumf %28, %57 : vector<14x768xf32>
    %59 = vector.extract_strided_slice %58 {offsets = [0, 0], sizes = [14, 384], strides = [1, 1]} : vector<14x768xf32> to vector<14x384xf32>
    %60 = vector.extract_strided_slice %58 {offsets = [0, 384], sizes = [14, 384], strides = [1, 1]} : vector<14x768xf32> to vector<14x384xf32>
    %61 = arith.maximumf %59, %60 : vector<14x384xf32>
    %c0_64 = arith.constant 0 : index
    %c0_65 = arith.constant 0 : index
    %62 = vector.load %arg3[%c0_64, %c0_65] : memref<1x384xf32, #tpu.memory_space<vmem>>, vector<1x384xf32>
    %63 = vector.broadcast %62 : vector<1x384xf32> to vector<14x384xf32>
    %64 = arith.addf %61, %63 : vector<14x384xf32>
    %cst_66 = arith.constant 0.000000e+00 : f32
    %65 = vector.broadcast %cst_66 : f32 to vector<14x384xf32>
    %66 = arith.maximumf %64, %65 : vector<14x384xf32>
    %c2_67 = arith.constant 2 : index
    %c0_68 = arith.constant 0 : index
    %c0_69 = arith.constant 0 : index
    %67 = vector.load %arg1[%c2_67, %c0_68, %c0_69] : memref<4x16x28xf32, #tpu.memory_space<vmem>>, vector<1x14x28xf32>
    %68 = vector.shape_cast %67 : vector<1x14x28xf32> to vector<14x28xf32>
    %c0_70 = arith.constant 0 : index
    %c0_71 = arith.constant 0 : index
    %c0_72 = arith.constant 0 : index
    %69 = vector.load %arg2[%c0_70, %c0_71, %c0_72] : memref<5x28x768xf32, #tpu.memory_space<vmem>>, vector<1x28x768xf32>
    %70 = vector.shape_cast %69 : vector<1x28x768xf32> to vector<28x768xf32>
    %cst_73 = arith.constant dense<0.000000e+00> : vector<14x768xf32>
    %71 = tpu.matmul %68, %70, %cst_73 {dimension_numbers = #tpu.dot_dimension_numbers<[1], [0], [0], [1], [0, 0, 1, 1], [], []>} : vector<14x28xf32>, vector<28x768xf32>, vector<14x768xf32> -> vector<14x768xf32>
    %c3_74 = arith.constant 3 : index
    %c0_75 = arith.constant 0 : index
    %c0_76 = arith.constant 0 : index
    %72 = vector.load %arg1[%c3_74, %c0_75, %c0_76] : memref<4x16x28xf32, #tpu.memory_space<vmem>>, vector<1x14x28xf32>
    %73 = vector.shape_cast %72 : vector<1x14x28xf32> to vector<14x28xf32>
    %c1_77 = arith.constant 1 : index
    %c0_78 = arith.constant 0 : index
    %c0_79 = arith.constant 0 : index
    %74 = vector.load %arg2[%c1_77, %c0_78, %c0_79] : memref<5x28x768xf32, #tpu.memory_space<vmem>>, vector<1x28x768xf32>
    %75 = vector.shape_cast %74 : vector<1x28x768xf32> to vector<28x768xf32>
    %cst_80 = arith.constant dense<0.000000e+00> : vector<14x768xf32>
    %76 = tpu.matmul %73, %75, %cst_80 {dimension_numbers = #tpu.dot_dimension_numbers<[1], [0], [0], [1], [0, 0, 1, 1], [], []>} : vector<14x28xf32>, vector<28x768xf32>, vector<14x768xf32> -> vector<14x768xf32>
    %77 = arith.addf %71, %76 : vector<14x768xf32>
    %c0_81 = arith.constant 0 : index
    %c1_82 = arith.constant 1 : index
    %c0_83 = arith.constant 0 : index
    %78 = vector.load %arg1[%c0_81, %c1_82, %c0_83] : memref<4x16x28xf32, #tpu.memory_space<vmem>>, vector<1x14x28xf32>
    %79 = vector.shape_cast %78 : vector<1x14x28xf32> to vector<14x28xf32>
    %c2_84 = arith.constant 2 : index
    %c0_85 = arith.constant 0 : index
    %c0_86 = arith.constant 0 : index
    %80 = vector.load %arg2[%c2_84, %c0_85, %c0_86] : memref<5x28x768xf32, #tpu.memory_space<vmem>>, vector<1x28x768xf32>
    %81 = vector.shape_cast %80 : vector<1x28x768xf32> to vector<28x768xf32>
    %cst_87 = arith.constant dense<0.000000e+00> : vector<14x768xf32>
    %82 = tpu.matmul %79, %81, %cst_87 {dimension_numbers = #tpu.dot_dimension_numbers<[1], [0], [0], [1], [0, 0, 1, 1], [], []>} : vector<14x28xf32>, vector<28x768xf32>, vector<14x768xf32> -> vector<14x768xf32>
    %83 = arith.addf %77, %82 : vector<14x768xf32>
    %c1_88 = arith.constant 1 : index
    %c1_89 = arith.constant 1 : index
    %c0_90 = arith.constant 0 : index
    %84 = vector.load %arg1[%c1_88, %c1_89, %c0_90] : memref<4x16x28xf32, #tpu.memory_space<vmem>>, vector<1x14x28xf32>
    %85 = vector.shape_cast %84 : vector<1x14x28xf32> to vector<14x28xf32>
    %c3_91 = arith.constant 3 : index
    %c0_92 = arith.constant 0 : index
    %c0_93 = arith.constant 0 : index
    %86 = vector.load %arg2[%c3_91, %c0_92, %c0_93] : memref<5x28x768xf32, #tpu.memory_space<vmem>>, vector<1x28x768xf32>
    %87 = vector.shape_cast %86 : vector<1x28x768xf32> to vector<28x768xf32>
    %cst_94 = arith.constant dense<0.000000e+00> : vector<14x768xf32>
    %88 = tpu.matmul %85, %87, %cst_94 {dimension_numbers = #tpu.dot_dimension_numbers<[1], [0], [0], [1], [0, 0, 1, 1], [], []>} : vector<14x28xf32>, vector<28x768xf32>, vector<14x768xf32> -> vector<14x768xf32>
    %89 = arith.addf %83, %88 : vector<14x768xf32>
    %c2_95 = arith.constant 2 : index
    %c1_96 = arith.constant 1 : index
    %c0_97 = arith.constant 0 : index
    %90 = vector.load %arg1[%c2_95, %c1_96, %c0_97] : memref<4x16x28xf32, #tpu.memory_space<vmem>>, vector<1x14x28xf32>
    %91 = vector.shape_cast %90 : vector<1x14x28xf32> to vector<14x28xf32>
    %c4_98 = arith.constant 4 : index
    %c0_99 = arith.constant 0 : index
    %c0_100 = arith.constant 0 : index
    %92 = vector.load %arg2[%c4_98, %c0_99, %c0_100] : memref<5x28x768xf32, #tpu.memory_space<vmem>>, vector<1x28x768xf32>
    %93 = vector.shape_cast %92 : vector<1x28x768xf32> to vector<28x768xf32>
    %cst_101 = arith.constant dense<0.000000e+00> : vector<14x768xf32>
    %94 = tpu.matmul %91, %93, %cst_101 {dimension_numbers = #tpu.dot_dimension_numbers<[1], [0], [0], [1], [0, 0, 1, 1], [], []>} : vector<14x28xf32>, vector<28x768xf32>, vector<14x768xf32> -> vector<14x768xf32>
    %95 = arith.addf %89, %94 : vector<14x768xf32>
    %c3_102 = arith.constant 3 : index
    %c0_103 = arith.constant 0 : index
    %c0_104 = arith.constant 0 : index
    %96 = vector.load %arg1[%c3_102, %c0_103, %c0_104] : memref<4x16x28xf32, #tpu.memory_space<vmem>>, vector<1x14x28xf32>
    %97 = vector.shape_cast %96 : vector<1x14x28xf32> to vector<14x28xf32>
    %c0_105 = arith.constant 0 : index
    %c0_106 = arith.constant 0 : index
    %c0_107 = arith.constant 0 : index
    %98 = vector.load %arg2[%c0_105, %c0_106, %c0_107] : memref<5x28x768xf32, #tpu.memory_space<vmem>>, vector<1x28x768xf32>
    %99 = vector.shape_cast %98 : vector<1x28x768xf32> to vector<28x768xf32>
    %cst_108 = arith.constant dense<0.000000e+00> : vector<14x768xf32>
    %100 = tpu.matmul %97, %99, %cst_108 {dimension_numbers = #tpu.dot_dimension_numbers<[1], [0], [0], [1], [0, 0, 1, 1], [], []>} : vector<14x28xf32>, vector<28x768xf32>, vector<14x768xf32> -> vector<14x768xf32>
    %c0_109 = arith.constant 0 : index
    %c1_110 = arith.constant 1 : index
    %c0_111 = arith.constant 0 : index
    %101 = vector.load %arg1[%c0_109, %c1_110, %c0_111] : memref<4x16x28xf32, #tpu.memory_space<vmem>>, vector<1x14x28xf32>
    %102 = vector.shape_cast %101 : vector<1x14x28xf32> to vector<14x28xf32>
    %c1_112 = arith.constant 1 : index
    %c0_113 = arith.constant 0 : index
    %c0_114 = arith.constant 0 : index
    %103 = vector.load %arg2[%c1_112, %c0_113, %c0_114] : memref<5x28x768xf32, #tpu.memory_space<vmem>>, vector<1x28x768xf32>
    %104 = vector.shape_cast %103 : vector<1x28x768xf32> to vector<28x768xf32>
    %cst_115 = arith.constant dense<0.000000e+00> : vector<14x768xf32>
    %105 = tpu.matmul %102, %104, %cst_115 {dimension_numbers = #tpu.dot_dimension_numbers<[1], [0], [0], [1], [0, 0, 1, 1], [], []>} : vector<14x28xf32>, vector<28x768xf32>, vector<14x768xf32> -> vector<14x768xf32>
    %106 = arith.addf %100, %105 : vector<14x768xf32>
    %c1_116 = arith.constant 1 : index
    %c1_117 = arith.constant 1 : index
    %c0_118 = arith.constant 0 : index
    %107 = vector.load %arg1[%c1_116, %c1_117, %c0_118] : memref<4x16x28xf32, #tpu.memory_space<vmem>>, vector<1x14x28xf32>
    %108 = vector.shape_cast %107 : vector<1x14x28xf32> to vector<14x28xf32>
    %c2_119 = arith.constant 2 : index
    %c0_120 = arith.constant 0 : index
    %c0_121 = arith.constant 0 : index
    %109 = vector.load %arg2[%c2_119, %c0_120, %c0_121] : memref<5x28x768xf32, #tpu.memory_space<vmem>>, vector<1x28x768xf32>
    %110 = vector.shape_cast %109 : vector<1x28x768xf32> to vector<28x768xf32>
    %cst_122 = arith.constant dense<0.000000e+00> : vector<14x768xf32>
    %111 = tpu.matmul %108, %110, %cst_122 {dimension_numbers = #tpu.dot_dimension_numbers<[1], [0], [0], [1], [0, 0, 1, 1], [], []>} : vector<14x28xf32>, vector<28x768xf32>, vector<14x768xf32> -> vector<14x768xf32>
    %112 = arith.addf %106, %111 : vector<14x768xf32>
    %c2_123 = arith.constant 2 : index
    %c1_124 = arith.constant 1 : index
    %c0_125 = arith.constant 0 : index
    %113 = vector.load %arg1[%c2_123, %c1_124, %c0_125] : memref<4x16x28xf32, #tpu.memory_space<vmem>>, vector<1x14x28xf32>
    %114 = vector.shape_cast %113 : vector<1x14x28xf32> to vector<14x28xf32>
    %c3_126 = arith.constant 3 : index
    %c0_127 = arith.constant 0 : index
    %c0_128 = arith.constant 0 : index
    %115 = vector.load %arg2[%c3_126, %c0_127, %c0_128] : memref<5x28x768xf32, #tpu.memory_space<vmem>>, vector<1x28x768xf32>
    %116 = vector.shape_cast %115 : vector<1x28x768xf32> to vector<28x768xf32>
    %cst_129 = arith.constant dense<0.000000e+00> : vector<14x768xf32>
    %117 = tpu.matmul %114, %116, %cst_129 {dimension_numbers = #tpu.dot_dimension_numbers<[1], [0], [0], [1], [0, 0, 1, 1], [], []>} : vector<14x28xf32>, vector<28x768xf32>, vector<14x768xf32> -> vector<14x768xf32>
    %118 = arith.addf %112, %117 : vector<14x768xf32>
    %c3_130 = arith.constant 3 : index
    %c1_131 = arith.constant 1 : index
    %c0_132 = arith.constant 0 : index
    %119 = vector.load %arg1[%c3_130, %c1_131, %c0_132] : memref<4x16x28xf32, #tpu.memory_space<vmem>>, vector<1x14x28xf32>
    %120 = vector.shape_cast %119 : vector<1x14x28xf32> to vector<14x28xf32>
    %c4_133 = arith.constant 4 : index
    %c0_134 = arith.constant 0 : index
    %c0_135 = arith.constant 0 : index
    %121 = vector.load %arg2[%c4_133, %c0_134, %c0_135] : memref<5x28x768xf32, #tpu.memory_space<vmem>>, vector<1x28x768xf32>
    %122 = vector.shape_cast %121 : vector<1x28x768xf32> to vector<28x768xf32>
    %cst_136 = arith.constant dense<0.000000e+00> : vector<14x768xf32>
    %123 = tpu.matmul %120, %122, %cst_136 {dimension_numbers = #tpu.dot_dimension_numbers<[1], [0], [0], [1], [0, 0, 1, 1], [], []>} : vector<14x28xf32>, vector<28x768xf32>, vector<14x768xf32> -> vector<14x768xf32>
    %124 = arith.addf %118, %123 : vector<14x768xf32>
    %125 = arith.maximumf %95, %124 : vector<14x768xf32>
    %126 = vector.extract_strided_slice %125 {offsets = [0, 0], sizes = [14, 384], strides = [1, 1]} : vector<14x768xf32> to vector<14x384xf32>
    %127 = vector.extract_strided_slice %125 {offsets = [0, 384], sizes = [14, 384], strides = [1, 1]} : vector<14x768xf32> to vector<14x384xf32>
    %128 = arith.maximumf %126, %127 : vector<14x384xf32>
    %c0_137 = arith.constant 0 : index
    %c0_138 = arith.constant 0 : index
    %129 = vector.load %arg3[%c0_137, %c0_138] : memref<1x384xf32, #tpu.memory_space<vmem>>, vector<1x384xf32>
    %130 = vector.broadcast %129 : vector<1x384xf32> to vector<14x384xf32>
    %131 = arith.addf %128, %130 : vector<14x384xf32>
    %cst_139 = arith.constant 0.000000e+00 : f32
    %132 = vector.broadcast %cst_139 : f32 to vector<14x384xf32>
    %133 = arith.maximumf %131, %132 : vector<14x384xf32>
    %134 = vector.extract_strided_slice %66 {offsets = [0, 0], sizes = [12, 384], strides = [1, 1]} : vector<14x384xf32> to vector<12x384xf32>
    %135 = arith.truncf %134 : vector<12x384xf32> to vector<12x384xbf16>
    %c0_140 = arith.constant 0 : index
    %c0_141 = arith.constant 0 : index
    %c0_142 = arith.constant 0 : index
    %136 = vector.load %arg4[%c0_140, %c0_141, %c0_142] : memref<5x384x512xbf16, #tpu.memory_space<vmem>>, vector<1x384x512xbf16>
    %137 = vector.shape_cast %136 : vector<1x384x512xbf16> to vector<384x512xbf16>
    %cst_143 = arith.constant dense<0.000000e+00> : vector<12x512xf32>
    %138 = tpu.matmul %135, %137, %cst_143 {dimension_numbers = #tpu.dot_dimension_numbers<[1], [0], [0], [1], [0, 0, 1, 1], [], []>} : vector<12x384xbf16>, vector<384x512xbf16>, vector<12x512xf32> -> vector<12x512xf32>
    %139 = vector.extract_strided_slice %133 {offsets = [0, 0], sizes = [12, 384], strides = [1, 1]} : vector<14x384xf32> to vector<12x384xf32>
    %140 = arith.truncf %139 : vector<12x384xf32> to vector<12x384xbf16>
    %c1_144 = arith.constant 1 : index
    %c0_145 = arith.constant 0 : index
    %c0_146 = arith.constant 0 : index
    %141 = vector.load %arg4[%c1_144, %c0_145, %c0_146] : memref<5x384x512xbf16, #tpu.memory_space<vmem>>, vector<1x384x512xbf16>
    %142 = vector.shape_cast %141 : vector<1x384x512xbf16> to vector<384x512xbf16>
    %cst_147 = arith.constant dense<0.000000e+00> : vector<12x512xf32>
    %143 = tpu.matmul %140, %142, %cst_147 {dimension_numbers = #tpu.dot_dimension_numbers<[1], [0], [0], [1], [0, 0, 1, 1], [], []>} : vector<12x384xbf16>, vector<384x512xbf16>, vector<12x512xf32> -> vector<12x512xf32>
    %144 = arith.addf %138, %143 : vector<12x512xf32>
    %145 = vector.extract_strided_slice %66 {offsets = [1, 0], sizes = [12, 384], strides = [1, 1]} : vector<14x384xf32> to vector<12x384xf32>
    %146 = arith.truncf %145 : vector<12x384xf32> to vector<12x384xbf16>
    %c2_148 = arith.constant 2 : index
    %c0_149 = arith.constant 0 : index
    %c0_150 = arith.constant 0 : index
    %147 = vector.load %arg4[%c2_148, %c0_149, %c0_150] : memref<5x384x512xbf16, #tpu.memory_space<vmem>>, vector<1x384x512xbf16>
    %148 = vector.shape_cast %147 : vector<1x384x512xbf16> to vector<384x512xbf16>
    %cst_151 = arith.constant dense<0.000000e+00> : vector<12x512xf32>
    %149 = tpu.matmul %146, %148, %cst_151 {dimension_numbers = #tpu.dot_dimension_numbers<[1], [0], [0], [1], [0, 0, 1, 1], [], []>} : vector<12x384xbf16>, vector<384x512xbf16>, vector<12x512xf32> -> vector<12x512xf32>
    %150 = arith.addf %144, %149 : vector<12x512xf32>
    %151 = vector.extract_strided_slice %133 {offsets = [1, 0], sizes = [12, 384], strides = [1, 1]} : vector<14x384xf32> to vector<12x384xf32>
    %152 = arith.truncf %151 : vector<12x384xf32> to vector<12x384xbf16>
    %c3_152 = arith.constant 3 : index
    %c0_153 = arith.constant 0 : index
    %c0_154 = arith.constant 0 : index
    %153 = vector.load %arg4[%c3_152, %c0_153, %c0_154] : memref<5x384x512xbf16, #tpu.memory_space<vmem>>, vector<1x384x512xbf16>
    %154 = vector.shape_cast %153 : vector<1x384x512xbf16> to vector<384x512xbf16>
    %cst_155 = arith.constant dense<0.000000e+00> : vector<12x512xf32>
    %155 = tpu.matmul %152, %154, %cst_155 {dimension_numbers = #tpu.dot_dimension_numbers<[1], [0], [0], [1], [0, 0, 1, 1], [], []>} : vector<12x384xbf16>, vector<384x512xbf16>, vector<12x512xf32> -> vector<12x512xf32>
    %156 = arith.addf %150, %155 : vector<12x512xf32>
    %157 = vector.extract_strided_slice %66 {offsets = [2, 0], sizes = [12, 384], strides = [1, 1]} : vector<14x384xf32> to vector<12x384xf32>
    %158 = arith.truncf %157 : vector<12x384xf32> to vector<12x384xbf16>
    %c4_156 = arith.constant 4 : index
    %c0_157 = arith.constant 0 : index
    %c0_158 = arith.constant 0 : index
    %159 = vector.load %arg4[%c4_156, %c0_157, %c0_158] : memref<5x384x512xbf16, #tpu.memory_space<vmem>>, vector<1x384x512xbf16>
    %160 = vector.shape_cast %159 : vector<1x384x512xbf16> to vector<384x512xbf16>
    %cst_159 = arith.constant dense<0.000000e+00> : vector<12x512xf32>
    %161 = tpu.matmul %158, %160, %cst_159 {dimension_numbers = #tpu.dot_dimension_numbers<[1], [0], [0], [1], [0, 0, 1, 1], [], []>} : vector<12x384xbf16>, vector<384x512xbf16>, vector<12x512xf32> -> vector<12x512xf32>
    %162 = arith.addf %156, %161 : vector<12x512xf32>
    %163 = vector.extract_strided_slice %133 {offsets = [0, 0], sizes = [12, 384], strides = [1, 1]} : vector<14x384xf32> to vector<12x384xf32>
    %164 = arith.truncf %163 : vector<12x384xf32> to vector<12x384xbf16>
    %c0_160 = arith.constant 0 : index
    %c0_161 = arith.constant 0 : index
    %c0_162 = arith.constant 0 : index
    %165 = vector.load %arg4[%c0_160, %c0_161, %c0_162] : memref<5x384x512xbf16, #tpu.memory_space<vmem>>, vector<1x384x512xbf16>
    %166 = vector.shape_cast %165 : vector<1x384x512xbf16> to vector<384x512xbf16>
    %cst_163 = arith.constant dense<0.000000e+00> : vector<12x512xf32>
    %167 = tpu.matmul %164, %166, %cst_163 {dimension_numbers = #tpu.dot_dimension_numbers<[1], [0], [0], [1], [0, 0, 1, 1], [], []>} : vector<12x384xbf16>, vector<384x512xbf16>, vector<12x512xf32> -> vector<12x512xf32>
    %168 = vector.extract_strided_slice %66 {offsets = [1, 0], sizes = [12, 384], strides = [1, 1]} : vector<14x384xf32> to vector<12x384xf32>
    %169 = arith.truncf %168 : vector<12x384xf32> to vector<12x384xbf16>
    %c1_164 = arith.constant 1 : index
    %c0_165 = arith.constant 0 : index
    %c0_166 = arith.constant 0 : index
    %170 = vector.load %arg4[%c1_164, %c0_165, %c0_166] : memref<5x384x512xbf16, #tpu.memory_space<vmem>>, vector<1x384x512xbf16>
    %171 = vector.shape_cast %170 : vector<1x384x512xbf16> to vector<384x512xbf16>
    %cst_167 = arith.constant dense<0.000000e+00> : vector<12x512xf32>
    %172 = tpu.matmul %169, %171, %cst_167 {dimension_numbers = #tpu.dot_dimension_numbers<[1], [0], [0], [1], [0, 0, 1, 1], [], []>} : vector<12x384xbf16>, vector<384x512xbf16>, vector<12x512xf32> -> vector<12x512xf32>
    %173 = arith.addf %167, %172 : vector<12x512xf32>
    %174 = vector.extract_strided_slice %133 {offsets = [1, 0], sizes = [12, 384], strides = [1, 1]} : vector<14x384xf32> to vector<12x384xf32>
    %175 = arith.truncf %174 : vector<12x384xf32> to vector<12x384xbf16>
    %c2_168 = arith.constant 2 : index
    %c0_169 = arith.constant 0 : index
    %c0_170 = arith.constant 0 : index
    %176 = vector.load %arg4[%c2_168, %c0_169, %c0_170] : memref<5x384x512xbf16, #tpu.memory_space<vmem>>, vector<1x384x512xbf16>
    %177 = vector.shape_cast %176 : vector<1x384x512xbf16> to vector<384x512xbf16>
    %cst_171 = arith.constant dense<0.000000e+00> : vector<12x512xf32>
    %178 = tpu.matmul %175, %177, %cst_171 {dimension_numbers = #tpu.dot_dimension_numbers<[1], [0], [0], [1], [0, 0, 1, 1], [], []>} : vector<12x384xbf16>, vector<384x512xbf16>, vector<12x512xf32> -> vector<12x512xf32>
    %179 = arith.addf %173, %178 : vector<12x512xf32>
    %180 = vector.extract_strided_slice %66 {offsets = [2, 0], sizes = [12, 384], strides = [1, 1]} : vector<14x384xf32> to vector<12x384xf32>
    %181 = arith.truncf %180 : vector<12x384xf32> to vector<12x384xbf16>
    %c3_172 = arith.constant 3 : index
    %c0_173 = arith.constant 0 : index
    %c0_174 = arith.constant 0 : index
    %182 = vector.load %arg4[%c3_172, %c0_173, %c0_174] : memref<5x384x512xbf16, #tpu.memory_space<vmem>>, vector<1x384x512xbf16>
    %183 = vector.shape_cast %182 : vector<1x384x512xbf16> to vector<384x512xbf16>
    %cst_175 = arith.constant dense<0.000000e+00> : vector<12x512xf32>
    %184 = tpu.matmul %181, %183, %cst_175 {dimension_numbers = #tpu.dot_dimension_numbers<[1], [0], [0], [1], [0, 0, 1, 1], [], []>} : vector<12x384xbf16>, vector<384x512xbf16>, vector<12x512xf32> -> vector<12x512xf32>
    %185 = arith.addf %179, %184 : vector<12x512xf32>
    %186 = vector.extract_strided_slice %133 {offsets = [2, 0], sizes = [12, 384], strides = [1, 1]} : vector<14x384xf32> to vector<12x384xf32>
    %187 = arith.truncf %186 : vector<12x384xf32> to vector<12x384xbf16>
    %c4_176 = arith.constant 4 : index
    %c0_177 = arith.constant 0 : index
    %c0_178 = arith.constant 0 : index
    %188 = vector.load %arg4[%c4_176, %c0_177, %c0_178] : memref<5x384x512xbf16, #tpu.memory_space<vmem>>, vector<1x384x512xbf16>
    %189 = vector.shape_cast %188 : vector<1x384x512xbf16> to vector<384x512xbf16>
    %cst_179 = arith.constant dense<0.000000e+00> : vector<12x512xf32>
    %190 = tpu.matmul %187, %189, %cst_179 {dimension_numbers = #tpu.dot_dimension_numbers<[1], [0], [0], [1], [0, 0, 1, 1], [], []>} : vector<12x384xbf16>, vector<384x512xbf16>, vector<12x512xf32> -> vector<12x512xf32>
    %191 = arith.addf %185, %190 : vector<12x512xf32>
    %192 = arith.maximumf %162, %191 : vector<12x512xf32>
    %193 = vector.extract_strided_slice %192 {offsets = [0, 0], sizes = [12, 256], strides = [1, 1]} : vector<12x512xf32> to vector<12x256xf32>
    %194 = vector.extract_strided_slice %192 {offsets = [0, 256], sizes = [12, 256], strides = [1, 1]} : vector<12x512xf32> to vector<12x256xf32>
    %195 = arith.maximumf %193, %194 : vector<12x256xf32>
    %c0_180 = arith.constant 0 : index
    %c0_181 = arith.constant 0 : index
    %196 = vector.load %arg5[%c0_180, %c0_181] : memref<1x256xf32, #tpu.memory_space<vmem>>, vector<1x256xf32>
    %197 = vector.broadcast %196 : vector<1x256xf32> to vector<12x256xf32>
    %198 = arith.addf %195, %197 : vector<12x256xf32>
    %cst_182 = arith.constant 0.000000e+00 : f32
    %199 = vector.broadcast %cst_182 : f32 to vector<12x256xf32>
    %200 = arith.maximumf %198, %199 : vector<12x256xf32>
    %201 = vector.extract_strided_slice %200 {offsets = [0, 0], sizes = [9, 256], strides = [1, 1]} : vector<12x256xf32> to vector<9x256xf32>
    %202 = arith.truncf %201 : vector<9x256xf32> to vector<9x256xbf16>
    %c0_183 = arith.constant 0 : index
    %c0_184 = arith.constant 0 : index
    %c0_185 = arith.constant 0 : index
    %203 = vector.load %arg6[%c0_183, %c0_184, %c0_185] : memref<4x256x512xbf16, #tpu.memory_space<vmem>>, vector<1x256x512xbf16>
    %204 = vector.shape_cast %203 : vector<1x256x512xbf16> to vector<256x512xbf16>
    %cst_186 = arith.constant dense<0.000000e+00> : vector<9x512xf32>
    %205 = tpu.matmul %202, %204, %cst_186 {dimension_numbers = #tpu.dot_dimension_numbers<[1], [0], [0], [1], [0, 0, 1, 1], [], []>} : vector<9x256xbf16>, vector<256x512xbf16>, vector<9x512xf32> -> vector<9x512xf32>
    %206 = vector.extract_strided_slice %200 {offsets = [1, 0], sizes = [9, 256], strides = [1, 1]} : vector<12x256xf32> to vector<9x256xf32>
    %207 = arith.truncf %206 : vector<9x256xf32> to vector<9x256xbf16>
    %c1_187 = arith.constant 1 : index
    %c0_188 = arith.constant 0 : index
    %c0_189 = arith.constant 0 : index
    %208 = vector.load %arg6[%c1_187, %c0_188, %c0_189] : memref<4x256x512xbf16, #tpu.memory_space<vmem>>, vector<1x256x512xbf16>
    %209 = vector.shape_cast %208 : vector<1x256x512xbf16> to vector<256x512xbf16>
    %cst_190 = arith.constant dense<0.000000e+00> : vector<9x512xf32>
    %210 = tpu.matmul %207, %209, %cst_190 {dimension_numbers = #tpu.dot_dimension_numbers<[1], [0], [0], [1], [0, 0, 1, 1], [], []>} : vector<9x256xbf16>, vector<256x512xbf16>, vector<9x512xf32> -> vector<9x512xf32>
    %211 = arith.addf %205, %210 : vector<9x512xf32>
    %212 = vector.extract_strided_slice %200 {offsets = [2, 0], sizes = [9, 256], strides = [1, 1]} : vector<12x256xf32> to vector<9x256xf32>
    %213 = arith.truncf %212 : vector<9x256xf32> to vector<9x256xbf16>
    %c2_191 = arith.constant 2 : index
    %c0_192 = arith.constant 0 : index
    %c0_193 = arith.constant 0 : index
    %214 = vector.load %arg6[%c2_191, %c0_192, %c0_193] : memref<4x256x512xbf16, #tpu.memory_space<vmem>>, vector<1x256x512xbf16>
    %215 = vector.shape_cast %214 : vector<1x256x512xbf16> to vector<256x512xbf16>
    %cst_194 = arith.constant dense<0.000000e+00> : vector<9x512xf32>
    %216 = tpu.matmul %213, %215, %cst_194 {dimension_numbers = #tpu.dot_dimension_numbers<[1], [0], [0], [1], [0, 0, 1, 1], [], []>} : vector<9x256xbf16>, vector<256x512xbf16>, vector<9x512xf32> -> vector<9x512xf32>
    %217 = arith.addf %211, %216 : vector<9x512xf32>
    %218 = vector.extract_strided_slice %200 {offsets = [3, 0], sizes = [9, 256], strides = [1, 1]} : vector<12x256xf32> to vector<9x256xf32>
    %219 = arith.truncf %218 : vector<9x256xf32> to vector<9x256xbf16>
    %c3_195 = arith.constant 3 : index
    %c0_196 = arith.constant 0 : index
    %c0_197 = arith.constant 0 : index
    %220 = vector.load %arg6[%c3_195, %c0_196, %c0_197] : memref<4x256x512xbf16, #tpu.memory_space<vmem>>, vector<1x256x512xbf16>
    %221 = vector.shape_cast %220 : vector<1x256x512xbf16> to vector<256x512xbf16>
    %cst_198 = arith.constant dense<0.000000e+00> : vector<9x512xf32>
    %222 = tpu.matmul %219, %221, %cst_198 {dimension_numbers = #tpu.dot_dimension_numbers<[1], [0], [0], [1], [0, 0, 1, 1], [], []>} : vector<9x256xbf16>, vector<256x512xbf16>, vector<9x512xf32> -> vector<9x512xf32>
    %223 = arith.addf %217, %222 : vector<9x512xf32>
    %c0_199 = arith.constant 0 : index
    %c0_200 = arith.constant 0 : index
    %224 = vector.load %arg7[%c0_199, %c0_200] : memref<1x512xf32, #tpu.memory_space<vmem>>, vector<1x512xf32>
    %225 = vector.broadcast %224 : vector<1x512xf32> to vector<9x512xf32>
    %226 = arith.addf %223, %225 : vector<9x512xf32>
    %cst_201 = arith.constant 0.000000e+00 : f32
    %227 = vector.broadcast %cst_201 : f32 to vector<9x512xf32>
    %228 = arith.maximumf %226, %227 : vector<9x512xf32>
    %c0_202 = arith.constant 0 : index
    %c0_203 = arith.constant 0 : index
    %229 = vector.load %arg8[%c0_202, %c0_203] : memref<512x128xf32, #tpu.memory_space<vmem>>, vector<512x128xf32>
    %cst_204 = arith.constant dense<0.000000e+00> : vector<9x128xf32>
    %230 = tpu.matmul %228, %229, %cst_204 {dimension_numbers = #tpu.dot_dimension_numbers<[1], [0], [0], [1], [0, 0, 1, 1], [], []>} : vector<9x512xf32>, vector<512x128xf32>, vector<9x128xf32> -> vector<9x128xf32>
    %c0_205 = arith.constant 0 : index
    %c0_206 = arith.constant 0 : index
    %231 = vector.load %arg9[%c0_205, %c0_206] : memref<1x128xf32, #tpu.memory_space<vmem>>, vector<1x128xf32>
    %232 = vector.broadcast %231 : vector<1x128xf32> to vector<9x128xf32>
    %233 = arith.addf %230, %232 : vector<9x128xf32>
    %cst_207 = arith.constant dense<0xFF800000> : vector<9xf32>
    %234 = vector.multi_reduction <maximumf>, %233, %cst_207 [1] : vector<9x128xf32> to vector<9xf32>
    %235 = vector.shape_cast %234 : vector<9xf32> to vector<9x1xf32>
    %236 = vector.broadcast %235 : vector<9x1xf32> to vector<9x128xf32>
    %237 = arith.subf %233, %236 : vector<9x128xf32>
    %238 = math.exp %237 : vector<9x128xf32>
    %cst_208 = arith.constant dense<0.000000e+00> : vector<9xf32>
    %239 = vector.multi_reduction <add>, %238, %cst_208 [1] : vector<9x128xf32> to vector<9xf32>
    %240 = vector.shape_cast %239 : vector<9xf32> to vector<9x1xf32>
    %241 = math.log %240 : vector<9x1xf32>
    %242 = vector.broadcast %241 : vector<9x1xf32> to vector<9x128xf32>
    %243 = arith.subf %237, %242 : vector<9x128xf32>
    %244 = vector.extract_strided_slice %243 {offsets = [0, 0], sizes = [1, 128], strides = [1, 1]} : vector<9x128xf32> to vector<1x128xf32>
    %c0_209 = arith.constant 0 : index
    %c0_210 = arith.constant 0 : index
    %245 = vector.load %arg10[%c0_209, %c0_210] : memref<2x128xf32, #tpu.memory_space<vmem>>, vector<1x128xf32>
    tpu.vector_store %arg10[%c0_209, %c0_210], %244 {strides = array<i32>} : memref<2x128xf32, #tpu.memory_space<vmem>>, vector<1x128xf32>,
    %246 = vector.extract_strided_slice %243 {offsets = [8, 0], sizes = [1, 128], strides = [1, 1]} : vector<9x128xf32> to vector<1x128xf32>
    %c1_211 = arith.constant 1 : index
    %c0_212 = arith.constant 0 : index
    %247 = vector.load %arg10[%c1_211, %c0_212] : memref<2x128xf32, #tpu.memory_space<vmem>>, vector<1x128xf32>
    tpu.vector_store %arg10[%c1_211, %c0_212], %246 {strides = array<i32>} : memref<2x128xf32, #tpu.memory_space<vmem>>, vector<1x128xf32>,
    return
  }
  func.func @transform_0(%arg0: i32) -> (i32, i32, i32) {
    %c0_i32 = arith.constant 0 : i32
    %c0_i32_0 = arith.constant 0 : i32
    %c0_i32_1 = arith.constant 0 : i32
    return %c0_i32, %arg0, %c0_i32_0 : i32, i32, i32
  }
  func.func @transform_1(%arg0: i32) -> (i32, i32, i32) {
    %c0_i32 = arith.constant 0 : i32
    %c0_i32_0 = arith.constant 0 : i32
    %c0_i32_1 = arith.constant 0 : i32
    %c0_i32_2 = arith.constant 0 : i32
    return %c0_i32, %c0_i32_0, %c0_i32_1 : i32, i32, i32
  }
  func.func @transform_2(%arg0: i32) -> (i32, i32) {
    %c0_i32 = arith.constant 0 : i32
    %c0_i32_0 = arith.constant 0 : i32
    %c0_i32_1 = arith.constant 0 : i32
    return %c0_i32, %c0_i32_0 : i32, i32
  }
  func.func @transform_3(%arg0: i32) -> (i32, i32, i32) {
    %c0_i32 = arith.constant 0 : i32
    %c0_i32_0 = arith.constant 0 : i32
    %c0_i32_1 = arith.constant 0 : i32
    %c0_i32_2 = arith.constant 0 : i32
    return %c0_i32, %c0_i32_0, %c0_i32_1 : i32, i32, i32
  }
  func.func @transform_4(%arg0: i32) -> (i32, i32) {
    %c0_i32 = arith.constant 0 : i32
    %c0_i32_0 = arith.constant 0 : i32
    %c0_i32_1 = arith.constant 0 : i32
    return %c0_i32, %c0_i32_0 : i32, i32
  }
  func.func @transform_5(%arg0: i32) -> (i32, i32, i32) {
    %c0_i32 = arith.constant 0 : i32
    %c0_i32_0 = arith.constant 0 : i32
    %c0_i32_1 = arith.constant 0 : i32
    %c0_i32_2 = arith.constant 0 : i32
    return %c0_i32, %c0_i32_0, %c0_i32_1 : i32, i32, i32
  }
  func.func @transform_6(%arg0: i32) -> (i32, i32) {
    %c0_i32 = arith.constant 0 : i32
    %c0_i32_0 = arith.constant 0 : i32
    %c0_i32_1 = arith.constant 0 : i32
    return %c0_i32, %c0_i32_0 : i32, i32
  }
  func.func @transform_7(%arg0: i32) -> (i32, i32) {
    %c0_i32 = arith.constant 0 : i32
    %c0_i32_0 = arith.constant 0 : i32
    %c0_i32_1 = arith.constant 0 : i32
    return %c0_i32, %c0_i32_0 : i32, i32
  }
  func.func @transform_8(%arg0: i32) -> (i32, i32) {
    %c0_i32 = arith.constant 0 : i32
    %c0_i32_0 = arith.constant 0 : i32
    %c0_i32_1 = arith.constant 0 : i32
    return %c0_i32, %c0_i32_0 : i32, i32
  }
  func.func @transform_9(%arg0: i32) -> (i32, i32) {
    %c0_i32 = arith.constant 0 : i32
    %c0_i32_0 = arith.constant 0 : i32
    return %arg0, %c0_i32 : i32, i32
  }
}

</mosaic_0001>

<bundles_post_ra>
// kernel: net_forward.1
= control target key start
LH: loop header
LB: loop body
LE: loop exit
PB: predicated region body
PF: predicated region fallthrough
CT: control target
= control target key end

     0   :  { %14 = vsyncpa [#allocation3], 0  ;;  %s17490_s0 = inlined_call_operand.vmem [shape: f32[4,16,28], index: 0, kind: input, shape index: {}]   ;;  %s17491_s1 = inlined_call_operand.hbm [shape: f32[5,28,768], index: 1, kind: input, shape index: {}]   ;;  %s17492_s2 = inlined_call_operand.hbm [shape: f32[1,384], index: 2, kind: input, shape index: {}]   ;;  %s17493_s3 = inlined_call_operand.hbm [shape: bf16[5,384,512], index: 3, kind: input, shape index: {}]   ;;  %s17494_s4 = inlined_call_operand.hbm [shape: f32[1,256], index: 4, kind: input, shape index: {}]   ;;  %s17495_s5 = inlined_call_operand.hbm [shape: bf16[4,256,512], index: 5, kind: input, shape index: {}]   ;;  %s17496_s6 = inlined_call_operand.hbm [shape: f32[1,512], index: 6, kind: input, shape index: {}]   ;;  %s17497_s7 = inlined_call_operand.hbm [shape: f32[512,128], index: 7, kind: input, shape index: {}]   ;;  %s17498_s8 = inlined_call_operand.hbm [shape: f32[1,128], index: 8, kind: input, shape index: {}]   ;;  %s17499_s9 = inlined_call_operand.hbm [shape: f32[2,128], index: 9, kind: output, shape index: {}]  }
   0x1   :  { %15 = vsyncpa [#allocation6], 0 }
   0x2   :  { %16 = vsyncpa [#allocation9], 0 }
   0x3   :  { %17 = vsyncpa [#allocation12], 0 }
   0x4   :  { %18 = vsyncpa [#allocation15], 0 }
   0x5   :  { %19 = vsyncpa [#allocation4], 0  ;;  %s15303_s30 = smov [#allocation5]   ;;  %s15304_s11 = smov [#allocation8]  }
   0x6   :  { %s40_s10 = sshll.u32 %s15303_s30, 4  ;;  %s62_s12 = sshll.u32 %s15304_s11, 4  ;;  %s41_s10 = int_to_ptr.vmem [resolvable:$true] %s40_s10  ;;  %s63_s12 = int_to_ptr.vmem [resolvable:$true] %s62_s12 }
   0x7   :  { %s15119_s13 = scalar_lea.vmem %s41_s10, 48  ;;  %s15123_s14 = scalar_lea.vmem %s41_s10, 64 }
   0x8   :  { %p15120_p0 = scmp.ne.s32.totalorder %s41_s10, %s15119_s13  ;;  %p15124_p1 = scmp.lt.s32.totalorder %s41_s10, %s41_s10 }
   0x9   :  { %p15125_p2 = scmp.lt.s32.totalorder %s15123_s14, %s15119_s13 }
   0xb   :  { %p15126_p3 = por %p15125_p2, %p15124_p1 }
   0xd   :  { %p15127_p4 = pnand %p15126_p3, %p15120_p0 }
   0xf   :  { %15130 = shalt.err (!%p15127_p4)
}
  0x10   :  { %43 = dma.hbm_to_vmem [thread:$0]  %s17492_s2, 48, %s41_s10, [#allocation6]  }
  0x11   :  { %s15139_s17 = scalar_lea.vmem %s63_s12, 32  ;;  %p15144_p6 = scmp.lt.s32.totalorder %s63_s12, %s63_s12 }
  0x12   :  { %p15140_p5 = scmp.ne.s32.totalorder %s63_s12, %s15139_s17  ;;  %p15145_p7 = scmp.lt.s32.totalorder %s15139_s17, %s15139_s17 }
  0x14   :  { %p15146_p8 = por %p15145_p7, %p15144_p6 }
  0x16   :  { %p15147_p9 = pnand %p15146_p8, %p15140_p5 }
  0x18   :  { %15150 = shalt.err (!%p15147_p9)
}
  0x19   :  { %65 = dma.hbm_to_vmem [thread:$0]  %s17494_s4, 32, %s63_s12, [#allocation9]  }
  0x1a   :  { %s15305_s20 = smov [#allocation11]   ;;  %s15306_s22 = smov [#allocation2]  }
  0x1b   :  { %s84_s21 = sshll.u32 %s15305_s20, 4  ;;  %s27_s23 = sshll.u32 %s15306_s22, 4  ;;  %s85_s21 = int_to_ptr.vmem [resolvable:$true] %s84_s21  ;;  %s28_s23 = int_to_ptr.vmem [resolvable:$true] %s27_s23 }
  0x1c   :  { %s15159_s24 = scalar_lea.vmem %s85_s21, 64  ;;  %p15164_p11 = scmp.lt.s32.totalorder %s85_s21, %s85_s21 }
  0x1d   :  { %p15160_p10 = scmp.ne.s32.totalorder %s85_s21, %s15159_s24  ;;  %p15165_p12 = scmp.lt.s32.totalorder %s15159_s24, %s15159_s24 }
  0x1f   :  { %p15166_p13 = por %p15165_p12, %p15164_p11 }
  0x21   :  { %p15167_p0 = pnand %p15166_p13, %p15160_p10 }
  0x23   :  { %15170 = shalt.err (!%p15167_p0)
}
  0x24   :  { %87 = dma.hbm_to_vmem [thread:$0]  %s17496_s6, 64, %s85_s21, [#allocation12]  }
  0x25   :  { %s15179_s26 = scalar_lea.vmem %s28_s23, 15360  ;;  %p15184_p2 = scmp.lt.s32.totalorder %s28_s23, %s28_s23 }
  0x26   :  { %p15180_p1 = scmp.ne.s32.totalorder %s28_s23, %s15179_s26  ;;  %p15185_p3 = scmp.lt.s32.totalorder %s15179_s26, %s15179_s26 }
  0x28   :  { %p15186_p4 = por %p15185_p3, %p15184_p2 }
  0x2a   :  { %p15187_p5 = pnand %p15186_p4, %p15180_p1 }
  0x2c   :  { %15190 = shalt.err (!%p15187_p5)
}
  0x2d   :  { %s15307_s4 = smov 768   ;;  %s15308_s27 = smov 48  }
  0x2e   :  { %33 = dma.hbm_to_vmem [thread:$0]  %s17491_s1, 15360, %s28_s23, [#allocation3], %s15307_s4, %s15307_s4, %s15308_s27  }
  0x2f   :  { %s15309_s30 = smov [#allocation7]  }
  0x30   :  { %s49_s10 = sshll.u32 %s15309_s30, 4  ;;  %s50_s10 = int_to_ptr.vmem [resolvable:$true] %s49_s10 }
  0x31   :  { %s15199_s11 = scalar_lea.vmem %s50_s10, 61440  ;;  %p15204_p7 = scmp.lt.s32.totalorder %s50_s10, %s50_s10 }
  0x32   :  { %p15200_p6 = scmp.ne.s32.totalorder %s50_s10, %s15199_s11  ;;  %p15205_p8 = scmp.lt.s32.totalorder %s15199_s11, %s15199_s11 }
  0x34   :  { %p15206_p9 = por %p15205_p8, %p15204_p7 }
  0x36   :  { %p15207_p10 = pnand %p15206_p9, %p15200_p6 }
  0x38   :  { %15210 = shalt.err (!%p15207_p10)
}
  0x39   :  { %s15310_s6 = smov 256   ;;  %s15311_s12 = smov 16  }
  0x3a   :  { %55 = dma.hbm_to_vmem [thread:$0]  %s17493_s3, 61440, %s50_s10, [#allocation6], %s15310_s6, %s15310_s6, %s15311_s12  }
  0x3b   :  { %s15312_s15 = smov [#allocation10]   ;;  %s15313_s1 = smov [#allocation13]  }
  0x3c   :  { %s71_s16 = sshll.u32 %s15312_s15, 4  ;;  %s93_s17 = sshll.u32 %s15313_s1, 4  ;;  %s72_s16 = int_to_ptr.vmem [resolvable:$true] %s71_s16  ;;  %s94_s17 = int_to_ptr.vmem [resolvable:$true] %s93_s17 }
  0x3d   :  { %s15219_s18 = scalar_lea.vmem %s72_s16, 32768  ;;  %p15224_p12 = scmp.lt.s32.totalorder %s72_s16, %s72_s16 }
  0x3e   :  { %p15220_p11 = scmp.ne.s32.totalorder %s72_s16, %s15219_s18  ;;  %p15225_p13 = scmp.lt.s32.totalorder %s15219_s18, %s15219_s18 }
  0x40   :  { %p15226_p0 = por %p15225_p13, %p15224_p12 }
  0x42   :  { %p15227_p1 = pnand %p15226_p0, %p15220_p11 }
  0x44   :  { %15230 = shalt.err (!%p15227_p1)
}
  0x45   :  { %77 = dma.hbm_to_vmem [thread:$0]  %s17495_s5, 32768, %s72_s16, [#allocation9], %s15310_s6, %s15310_s6, %s15311_s12  }
  0x46   :  { %s15239_s21 = scalar_lea.vmem %s94_s17, 8192  ;;  %p15244_p3 = scmp.lt.s32.totalorder %s94_s17, %s94_s17 }
  0x47   :  { %p15240_p2 = scmp.ne.s32.totalorder %s94_s17, %s15239_s21  ;;  %p15245_p4 = scmp.lt.s32.totalorder %s15239_s21, %s15239_s21 }
  0x49   :  { %p15246_p5 = por %p15245_p4, %p15244_p3 }
  0x4b   :  { %p15247_p6 = pnand %p15246_p5, %p15240_p2 }
  0x4d   :  { %15250 = shalt.err (!%p15247_p6)
}
  0x4e   :  { %s15314_s3 = smov 128   ;;  %s15315_s22 = smov 8  }
  0x4f   :  { %99 = dma.hbm_to_vmem [thread:$0]  %s17497_s7, 8192, %s94_s17, [#allocation12], %s15314_s3, %s15314_s3, %s15315_s22  }
  0x50   :  { %s15316_s2 = smov [#allocation14]  }
  0x51   :  { %s106_s25 = sshll.u32 %s15316_s2, 4  ;;  %s107_s25 = int_to_ptr.vmem [resolvable:$true] %s106_s25 }
  0x52   :  { %s15259_s26 = scalar_lea.vmem %s107_s25, 16  ;;  %s15263_s5 = scalar_lea.vmem %s107_s25, 32 }
  0x53   :  { %p15260_p7 = scmp.ne.s32.totalorder %s107_s25, %s15259_s26  ;;  %p15264_p8 = scmp.lt.s32.totalorder %s107_s25, %s107_s25 }
  0x54   :  { %p15265_p9 = scmp.lt.s32.totalorder %s15263_s5, %s15259_s26 }
  0x56   :  { %p15266_p10 = por %p15265_p9, %p15264_p8 }
  0x58   :  { %p15267_p11 = pnand %p15266_p10, %p15260_p7 }
  0x5a   :  { %15270 = shalt.err (!%p15267_p11)
}
  0x5b   :  { %109 = dma.hbm_to_vmem [thread:$0]  %s17498_s8, 16, %s107_s25, [#allocation15]  }
  0x5c   :  { %15291 = dma.done.wait [#allocation3], 15360  }
  0x5d   :  { %15292 = vsyncadd [#allocation3], 4294951936 }
  0x5e   :  { %15293 = dma.done.wait [#allocation6], 61488  }
  0x5f   :  { %15294 = vsyncadd [#allocation6], 4294905808 }
  0x60   :  { %15295 = dma.done.wait [#allocation9], 32800  }
  0x61   :  { %15296 = vsyncadd [#allocation9], 4294934496 }
  0x62   :  { %15297 = dma.done.wait [#allocation12], 8256  }
  0x63   :  { %15298 = vsyncadd [#allocation12], 4294959040 }
  0x64   :  { %15299 = dma.done.wait [#allocation15], 16  }
  0x65   :  { %15300 = vsyncadd [#allocation15], 4294967280  ;;  %v17500_v0 = vmov 0.0   ;;  %vm196_vm0 = vcmask 1043456   ;;  %v15396_v1 = vld [vmem:[#allocation2 + $0x158] sm:$0xf] }
  0x66   :  { %279 = vmatprep.mubr.f32.mxu0 %v17500_v0  ;;  %356 = vmatprep.mubr.f32.mxu1 %v17500_v0  ;;  %v15398_v2 = vld [vmem:[#allocation2 + $0x168] sm:$0xf]  ;;  %v15400_v3 = vld [vmem:[#allocation2 + $0x150] sm:$0xf]  ;;  %v15406_v4 = vld [vmem:[#allocation2 + $0x160] sm:$0xf] }
  0x67   :  { %12251 = vmatprep.subr.msk.mxu0 %vm196_vm0, %v15396_v1  ;;  %12255 = vmatprep.subr.msk.mxu1 %vm196_vm0, %v15398_v2  ;;  %v15408_v5 = vld [vmem:[#allocation2 + $0x128] sm:$0xff]  ;;  %v15410_v6 = vld [vmem:[#allocation2 + $0x138] sm:$0xff]  ;;  %v15416_v7 = vld [vmem:[#allocation2 + $0x120] sm:$0xff]  ;;  %vm189_vm1 = vcmask 228352   ;;  %vm12207_vm2 = vcmask 1040384  }
  0x68   :  { %12252 = vmatpush1.msk.msra.mxu0 %vm196_vm0, %v15400_v3  ;;  %12256 = vmatpush1.msk.msra.mxu1 %vm196_vm0, %v15406_v4  ;;  %v15418_v8 = vld [vmem:[#allocation2 + $0x130] sm:$0xff]  ;;  %v15420_v9 = vld [vmem:[#allocation2 + $0xf8] sm:$0xff]  ;;  %v15424_v10 = vld [vmem:[#allocation2 + $0x108] sm:$0xff] }
  0x69   :  { %241 = vmatprep.subr.mxu0 %v15408_v5  ;;  %318 = vmatprep.subr.mxu1 %v15410_v6  ;;  %v15426_v11 = vld [vmem:[#allocation2 + $0xf0] sm:$0xff]  ;;  %v15428_v12 = vld [vmem:[#allocation2 + $0x100] sm:$0xff]  ;;  %v15432_v13 = vld [vmem:[#allocation2 + $0xc8] sm:$0xff] }
  0x6a   :  { %242 = vmatpush1.msra.mxu0 %v15416_v7  ;;  %319 = vmatpush1.msra.mxu1 %v15418_v8  ;;  %v15434_v14 = vld [vmem:[#allocation2 + $0xd8] sm:$0xff]  ;;  %v15438_v15 = vld [vmem:[#allocation2 + $0xc0] sm:$0xff]  ;;  %v15440_v16 = vld [vmem:[#allocation2 + $0xd0] sm:$0xff] }
  0x6b   :  { %243 = vmatprep.subr.mxu0 %v15420_v9  ;;  %320 = vmatprep.subr.mxu1 %v15424_v10  ;;  %v12249_v17 = vld [vmem:[%s17490_s0 + $0x10] sm:$0xff]  ;;  %v15449_v18 = vld [vmem:[#allocation2 + $0x178] sm:$0xf]  ;;  %v15461_v22 = vld [vmem:[#allocation2 + $0x148] sm:$0xff] }
  0x6c   :  { %244 = vmatpush1.msra.mxu0 %v15426_v11  ;;  %321 = vmatpush1.msra.mxu1 %v15428_v12  ;;  %v15451_v19 = vld [vmem:[#allocation2 + $0x98] sm:$0xf]  ;;  %v15455_v20 = vld [vmem:[#allocation2 + $0x170] sm:$0xf]  ;;  %v15463_v23 = vld [vmem:[#allocation2 + $0x68] sm:$0xff] }
  0x6d   :  { %245 = vmatprep.subr.mxu0 %v15432_v13  ;;  %322 = vmatprep.subr.mxu1 %v15434_v14  ;;  %v15457_v21 = vld [vmem:[#allocation2 + $0x90] sm:$0xf]  ;;  %v15473_v24 = vld [vmem:[#allocation2 + $0x140] sm:$0xff]  ;;  %v12250_v26 = vld [vmem:[%s17490_s0 + $0x18] sm:$0x3f] }
  0x6e   :  { %246 = vmatpush1.msra.mxu0 %v15438_v15  ;;  %323 = vmatpush1.msra.mxu1 %v15440_v16  ;;  %v15475_v25 = vld [vmem:[#allocation2 + $0x60] sm:$0xff]  ;;  %v15484_v27 = vld [vmem:[#allocation2 + $0x118] sm:$0xff]  ;;  %v15490_v29 = vld [vmem:[#allocation2 + $0x110] sm:$0xff] }
  0x6f   :  { %12253 = vmatmul.mubr.msk.f32.vlgmr.msra.gmra.mxu0 %vm189_vm1, %v12249_v17  ;;  %12257 = vmatmul.mubr.msk.f32.vlgmr.msra.gmra.mxu1 %vm189_vm1, %v12249_v17  ;;  %v15486_v28 = vld [vmem:[#allocation2 + $0x38] sm:$0xff]  ;;  %v15492_v30 = vld [vmem:[#allocation2 + $0x30] sm:$0xff]  ;;  %v15496_v31 = vld [vmem:[#allocation2 + $0xe8] sm:$0xff] }
  0x70   :  { %12259 = vmatprep.subr.msk.mxu0 %vm196_vm0, %v15449_v18  ;;  %12263 = vmatprep.subr.msk.mxu1 %vm196_vm0, %v15451_v19  ;;  %v15498_v32 = vld [vmem:[#allocation2 + $0x8] sm:$0xff]  ;;  %v15502_v33 = vld [vmem:[#allocation2 + $0xe0] sm:$0xff]  ;;  %v160_v37 = vld [vmem:[#allocation2 + $0xb8] sm:$0xf] }
  0x71   :  { %12260 = vmatpush1.msk.msra.mxu0 %vm196_vm0, %v15455_v20  ;;  %12264 = vmatpush1.msk.msra.mxu1 %vm196_vm0, %v15457_v21  ;;  %v15506_v34 = vld [vmem:[#allocation2] sm:$0xff]  ;;  %v15515_v36 = vld [vmem:[#allocation2 + $0xa8] sm:$0xf]  ;;  %v159_v39 = vld [vmem:[#allocation2 + $0xb0] sm:$0xf] }
  0x72   :  { %395 = vmatprep.subr.mxu0 %v15461_v22  ;;  %496 = vmatprep.subr.mxu1 %v15463_v23  ;;  %v135_v35 = vld [vmem:[%s17490_s0] sm:$0xff]  ;;  %v15523_v40 = vld [vmem:[#allocation2 + $0x78] sm:$0xff]  ;;  %v154_v41 = vld [vmem:[#allocation2 + $0x88] sm:$0xff] }
  0x73   :  { %285 = vmatprep.mubr.f32.mxu0 %v17500_v0  ;;  %362 = vmatprep.mubr.f32.mxu1 %v17500_v0  ;;  %v15519_v38 = vld [vmem:[#allocation2 + $0xa0] sm:$0xf]  ;;  %v15531_v42 = vld [vmem:[#allocation2 + $0x70] sm:$0xff]  ;;  %v136_v44 = vld [vmem:[%s17490_s0 + $0x8] sm:$0x3f] }
  0x74   :  { %396 = vmatpush1.msra.mxu0 %v15473_v24  ;;  %497 = vmatpush1.msra.mxu1 %v15475_v25  ;;  %v153_v43 = vld [vmem:[#allocation2 + $0x80] sm:$0xff]  ;;  %v15539_v45 = vld [vmem:[#allocation2 + $0x48] sm:$0xff]  ;;  %v148_v46 = vld [vmem:[#allocation2 + $0x58] sm:$0xff] }
  0x75   :  { %12254 = vmatmul.mubr.msk.f32.gmra.mxu0 %vm189_vm1, %v12250_v26  ;;  %12258 = vmatmul.mubr.msk.f32.gmra.mxu1 %vm189_vm1, %v12250_v26  ;;  %v15542_v47 = vld [vmem:[#allocation2 + $0x40] sm:$0xff]  ;;  %v147_v48 = vld [vmem:[#allocation2 + $0x50] sm:$0xff]  ;;  %v15546_v49 = vld [vmem:[#allocation2 + $0x18] sm:$0xff] }
  0x76   :  { %397 = vmatprep.subr.mxu0 %v15484_v27  ;;  %498 = vmatprep.subr.mxu1 %v15486_v28  ;;  %v142_v50 = vld [vmem:[#allocation2 + $0x28] sm:$0xff]  ;;  %v15549_v51 = vld [vmem:[#allocation2 + $0x10] sm:$0xff]  ;;  %v141_v52 = vld [vmem:[#allocation2 + $0x20] sm:$0xff] }
  0x77   :  { %398 = vmatpush1.msra.mxu0 %v15490_v29  ;;  %499 = vmatpush1.msra.mxu1 %v15492_v30  ;;  %v15555_v53 = vld [vmem:[#allocation2 + $0x218] sm:$0xf]  ;;  %v726_v54 = vld [vmem:[#allocation2 + $0x228] sm:$0xf]  ;;  %v15558_v55 = vld [vmem:[#allocation2 + $0x210] sm:$0xf] }
  0x78   :  { %399 = vmatprep.subr.mxu0 %v15496_v31  ;;  %500 = vmatprep.subr.mxu1 %v15498_v32  ;;  %v725_v56 = vld [vmem:[#allocation2 + $0x220] sm:$0xf]  ;;  %v15562_v57 = vld [vmem:[#allocation2 + $0x1e8] sm:$0xff]  ;;  %v720_v58 = vld [vmem:[#allocation2 + $0x1f8] sm:$0xff] }
  0x79   :  { %400 = vmatpush1.msra.mxu0 %v15502_v33  ;;  %433 = vmatprep.mubr.f32.mxu0 %v17500_v0  ;;  %v15570_v59 = vld [vmem:[#allocation2 + $0x1e0] sm:$0xff]  ;;  %v719_v60 = vld [vmem:[#allocation2 + $0x1f0] sm:$0xff]  ;;  %v15575_v61 = vld [vmem:[#allocation2 + $0x1b8] sm:$0xff] }
  0x7a   :  { %501 = vmatpush1.msra.mxu1 %v15506_v34  ;;  %534 = vmatprep.mubr.f32.mxu1 %v17500_v0  ;;  %v714_v62 = vld [vmem:[#allocation2 + $0x1c8] sm:$0xff]  ;;  %v15578_v63 = vld [vmem:[#allocation2 + $0x1b0] sm:$0xff] }
  0x7b   :  { %12261 = vmatmul.mubr.msk.f32.vlgmr.msra.gmra.mxu0 %vm189_vm1, %v12249_v17  ;;  %12265 = vmatmul.mubr.msk.f32.vlgmr.msra.gmra.mxu1 %vm189_vm1, %v135_v35  ;;  %v713_v17 = vld [vmem:[#allocation2 + $0x1c0] sm:$0xff] }
  0x7c   :  { %12267 = vmatprep.subr.msk.mxu0 %vm196_vm0, %v15515_v36  ;;  %12271 = vmatprep.subr.msk.mxu1 %vm196_vm0, %v160_v37  ;;  %v15585_v37 = vld [vmem:[#allocation2 + $0x180] sm:$0xff] }
  0x7d   :  { %12268 = vmatpush1.msk.msra.mxu0 %vm196_vm0, %v15519_v38  ;;  %12272 = vmatpush1.msk.msra.mxu1 %vm196_vm0, %v159_v39  ;;  %17561 = vst [vmem:[#allocation24_spill] sm:$0xff] %v15585_v37  ;;  %v707_v39 = vld [vmem:[#allocation2 + $0x190] sm:$0xff] }
  0x7e   :  { %573 = vmatprep.subr.mxu0 %v15523_v40  ;;  %650 = vmatprep.subr.mxu1 %v154_v41  ;;  %v15591_v41 = vld [vmem:[%s17490_s0 + $0x20] sm:$0xff] }
  0x7f   :  { %439 = vmatprep.mubr.f32.mxu0 %v17500_v0  ;;  %540 = vmatprep.mubr.f32.mxu1 %v17500_v0 }
  0x80   :  { %574 = vmatpush1.msra.mxu0 %v15531_v42  ;;  %651 = vmatpush1.msra.mxu1 %v153_v43  ;;  %v15594_v43 = vld [vmem:[#allocation2 + $0x238] sm:$0xf] }
  0x81   :  { %12262 = vmatmul.mubr.msk.f32.gmra.mxu0 %vm189_vm1, %v12250_v26  ;;  %12266 = vmatmul.mubr.msk.f32.gmra.mxu1 %vm189_vm1, %v136_v44  ;;  %v15582_v26 = vld [vmem:[#allocation2 + $0x188] sm:$0xff]  ;;  %17562 = vst [vmem:[#allocation25_spill] sm:$0xff] %v15594_v43 }
  0x82   :  { %575 = vmatprep.subr.mxu0 %v15539_v45  ;;  %652 = vmatprep.subr.mxu1 %v148_v46  ;;  %17560 = vst [vmem:[#allocation23_spill] sm:$0xff] %v15582_v26  ;;  %v15596_v46 = vld [vmem:[#allocation2 + $0x230] sm:$0xf] }
  0x83   :  { %576 = vmatpush1.msra.mxu0 %v15542_v47  ;;  %653 = vmatpush1.msra.mxu1 %v147_v48  ;;  %17563 = vst [vmem:[#allocation26_spill] sm:$0xff] %v15596_v46  ;;  %v1018_v48 = vld [vmem:[#allocation2 + $0x2d0] sm:$0xf] }
  0x84   :  { %577 = vmatprep.subr.mxu0 %v15546_v49  ;;  %654 = vmatprep.subr.mxu1 %v142_v50  ;;  %v15600_v50 = vld [vmem:[#allocation2 + $0x208] sm:$0xff] }
  0x85   :  { %578 = vmatpush1.msra.mxu0 %v15549_v51  ;;  %611 = vmatprep.mubr.f32.mxu0 %v17500_v0  ;;  %17564 = vst [vmem:[#allocation27_spill] sm:$0xff] %v15600_v50 }
  0x86   :  { %655 = vmatpush1.msra.mxu1 %v141_v52  ;;  %688 = vmatprep.mubr.f32.mxu1 %v17500_v0  ;;  %v1013_v52 = vld [vmem:[#allocation2 + $0x2a8] sm:$0xff] }
  0x87   :  { %12269 = vmatmul.mubr.msk.f32.vlgmr.msra.gmra.mxu0 %vm189_vm1, %v135_v35  ;;  %12273 = vmatmul.mubr.msk.f32.vlgmr.msra.gmra.mxu1 %vm189_vm1, %v135_v35  ;;  %v708_v35 = vld [vmem:[#allocation2 + $0x198] sm:$0xff] }
  0x88   :  { %12277 = vmatprep.subr.msk.mxu0 %vm196_vm0, %v15555_v53  ;;  %12281 = vmatprep.subr.msk.mxu1 %vm196_vm0, %v726_v54  ;;  %v15607_v54 = vld [vmem:[#allocation2 + $0x200] sm:$0xff] }
  0x89   :  { %12278 = vmatpush1.msk.msra.mxu0 %vm196_vm0, %v15558_v55  ;;  %12282 = vmatpush1.msk.msra.mxu1 %vm196_vm0, %v725_v56  ;;  %17565 = vst [vmem:[#allocation28_spill] sm:$0xff] %v15607_v54  ;;  %v1012_v56 = vld [vmem:[#allocation2 + $0x2a0] sm:$0xff] }
  0x8a   :  { %779 = vmatprep.subr.mxu0 %v15562_v57  ;;  %856 = vmatprep.subr.mxu1 %v720_v58  ;;  %v15615_v58 = vld [vmem:[%s17490_s0 + $0x28] sm:$0x3f] }
  0x8b   :  { %617 = vmatprep.mubr.f32.mxu0 %v17500_v0  ;;  %694 = vmatprep.mubr.f32.mxu1 %v17500_v0 }
  0x8c   :  { %780 = vmatpush1.msra.mxu0 %v15570_v59  ;;  %857 = vmatpush1.msra.mxu1 %v719_v60  ;;  %v15620_v60 = vld [vmem:[#allocation2 + $0x1d8] sm:$0xff] }
  0x8d   :  { %12270 = vmatmul.mubr.msk.f32.gmra.mxu0 %vm189_vm1, %v136_v44  ;;  %12274 = vmatmul.mubr.msk.f32.gmra.mxu1 %vm189_vm1, %v136_v44  ;;  %v1019_v44 = vld [vmem:[#allocation2 + $0x2d8] sm:$0xf]  ;;  %17566 = vst [vmem:[#allocation29_spill] sm:$0xff] %v15620_v60 }
  0x8e   :  { %781 = vmatprep.subr.mxu0 %v15575_v61  ;;  %858 = vmatprep.subr.mxu1 %v714_v62  ;;  %v1007_v62 = vld [vmem:[#allocation2 + $0x278] sm:$0xff] }
  0x8f   :  { %782 = vmatpush1.msra.mxu0 %v15578_v63  ;;  %859 = vmatpush1.msra.mxu1 %v713_v17  ;;  %v15623_v17 = vld [vmem:[#allocation2 + $0x1d0] sm:$0xff] }
  0x90   :  { %783 = vmatprep.subr.mxu0 %v15582_v26  ;;  %860 = vmatprep.subr.mxu1 %v708_v35  ;;  %17567 = vst [vmem:[#allocation30_spill] sm:$0xff] %v15623_v17  ;;  %v1006_v35 = vld [vmem:[#allocation2 + $0x270] sm:$0xff]  ;;  %v15695_v26 = vld [vmem:[#allocation2 + $0x368] sm:$0xff] }
  0x91   :  { %784 = vmatpush1.msra.mxu0 %v15585_v37  ;;  %817 = vmatprep.mubr.f32.mxu0 %v17500_v0  ;;  %v1005_v37 = vld [vmem:[#allocation2 + $0x268] sm:$0xff]  ;;  %17579 = vst [vmem:[#allocation41_spill] sm:$0xff] %v15695_v26 }
  0x92   :  { %861 = vmatpush1.msra.mxu1 %v707_v39  ;;  %894 = vmatprep.mubr.f32.mxu1 %v17500_v0  ;;  %v15627_v39 = vld [vmem:[#allocation2 + $0x1a8] sm:$0xff] }
  0x93   :  { %12279 = vmatmul.mubr.msk.f32.vlgmr.msra.gmra.mxu0 %vm189_vm1, %v15591_v41  ;;  %12283 = vmatmul.mubr.msk.f32.vlgmr.msra.gmra.mxu1 %vm189_vm1, %v15591_v41  ;;  %17568 = vst [vmem:[#allocation31_spill] sm:$0xff] %v15627_v39 }
  0x94   :  { %12285 = vmatprep.subr.msk.mxu0 %vm196_vm0, %v15594_v43  ;;  %12291 = vmatprep.subr.msk.mxu1 %vm196_vm0, %v1019_v44  ;;  %v1001_v44 = vld [vmem:[#allocation2 + $0x248] sm:$0xff] }
  0x95   :  { %12286 = vmatpush1.msk.msra.mxu0 %vm196_vm0, %v15596_v46  ;;  %12292 = vmatpush1.msk.msra.mxu1 %vm196_vm0, %v1018_v48  ;;  %v15630_v48 = vld [vmem:[#allocation2 + $0x1a0] sm:$0xff]  ;;  %v1022_v46 = vld [vmem:[#allocation2 + $0x2f0] sm:$0xf]  ;;  %v1017_v43 = vld [vmem:[#allocation2 + $0x2c8] sm:$0xff] }
  0x96   :  { %933 = vmatprep.subr.mxu0 %v15600_v50  ;;  %1074 = vmatprep.subr.mxu1 %v1013_v52  ;;  %17569 = vst [vmem:[#allocation32_spill] sm:$0xff] %v15630_v48  ;;  %v1000_v52 = vld [vmem:[#allocation2 + $0x240] sm:$0xff] }
  0x97   :  { %823 = vmatprep.mubr.f32.mxu0 %v17500_v0  ;;  %900 = vmatprep.mubr.f32.mxu1 %v17500_v0  ;;  %v15640_v0 = vld [vmem:[%s17490_s0 + $0x30] sm:$0xff]  ;;  %v15646_v50 = vld [vmem:[#allocation2 + $0x2e0] sm:$0xf] }
  0x98   :  { %934 = vmatpush1.msra.mxu0 %v15607_v54  ;;  %1075 = vmatpush1.msra.mxu1 %v1012_v56  ;;  %v15643_v56 = vld [vmem:[#allocation2 + $0x2e8] sm:$0xf]  ;;  %v1023_v54 = vld [vmem:[#allocation2 + $0x2f8] sm:$0xf]  ;;  %17571 = vst [vmem:[#allocation34_spill] sm:$0xff] %v15646_v50 }
  0x99   :  { %12280 = vmatmul.mubr.msk.f32.gmra.mxu0 %vm189_vm1, %v15615_v58  ;;  %12284 = vmatmul.mubr.msk.f32.gmra.mxu1 %vm189_vm1, %v15615_v58  ;;  %17570 = vst [vmem:[#allocation33_spill] sm:$0xff] %v15643_v56 }
  0x9a   :  { %935 = vmatprep.subr.mxu0 %v15620_v60  ;;  %1076 = vmatprep.subr.mxu1 %v1007_v62  ;;  %v17572_v62 = vmov 0.0   ;;  %v15650_v60 = vld [vmem:[#allocation2 + $0x2b8] sm:$0xff] }
  0x9b   :  { %936 = vmatpush1.msra.mxu0 %v15623_v17  ;;  %1077 = vmatpush1.msra.mxu1 %v1006_v35  ;;  %17573 = vst [vmem:[#allocation35_spill] sm:$0xff] %v15650_v60  ;;  %v15657_v35 = vld [vmem:[#allocation2 + $0x2b0] sm:$0xff]  ;;  %v15673_v17 = vld [vmem:[#allocation2 + $0x280] sm:$0xff] }
  0x9c   :  { %937 = vmatprep.subr.mxu0 %v15627_v39  ;;  %1078 = vmatprep.subr.mxu1 %v1001_v44  ;;  %17574 = vst [vmem:[#allocation36_spill] sm:$0xff] %v15657_v35  ;;  %v1016_v44 = vld [vmem:[#allocation2 + $0x2c0] sm:$0xff]  ;;  %v1011_v39 = vld [vmem:[#allocation2 + $0x298] sm:$0xff] }
  0x9d   :  { %938 = vmatpush1.msra.mxu0 %v15630_v48  ;;  %971 = vmatprep.mubr.f32.mxu0 %v17572_v62  ;;  %v15670_v48 = vld [vmem:[#allocation2 + $0x288] sm:$0xff] }
  0x9e   :  { %1079 = vmatpush1.msra.mxu1 %v1000_v52  ;;  %1112 = vmatprep.mubr.f32.mxu1 %v17572_v62  ;;  %v15665_v52 = vld [vmem:[%s17490_s0 + $0x38] sm:$0x3f]  ;;  %17575 = vst [vmem:[#allocation37_spill] sm:$0xff] %v15670_v48 }
  0x9f   :  { %12287 = vmatmul.mubr.msk.f32.vlgmr.msra.gmra.mxu0 %vm189_vm1, %v15591_v41  ;;  %12293 = vmatmul.mubr.msk.f32.vlgmr.msra.gmra.mxu1 %vm189_vm1, %v15640_v0 }
  0xa0   :  { %12295 = vmatprep.subr.msk.mxu0 %vm196_vm0, %v15643_v56  ;;  %12299 = vmatprep.subr.msk.mxu1 %vm196_vm0, %v1023_v54  ;;  %v1010_v56 = vld [vmem:[#allocation2 + $0x290] sm:$0xff]  ;;  %v15677_v54 = vld [vmem:[#allocation2 + $0x258] sm:$0xff] }
  0xa1   :  { %12296 = vmatpush1.msk.msra.mxu0 %vm196_vm0, %v15646_v50  ;;  %12300 = vmatpush1.msk.msra.mxu1 %vm196_vm0, %v1022_v46  ;;  %17576 = vst [vmem:[#allocation38_spill] sm:$0xff] %v15677_v54  ;;  %v15680_v46 = vld [vmem:[#allocation2 + $0x250] sm:$0xff]  ;;  %v1315_v50 = vld [vmem:[#allocation2 + $0x3a8] sm:$0xf] }
  0xa2   :  { %1151 = vmatprep.subr.mxu0 %v15650_v60  ;;  %1228 = vmatprep.subr.mxu1 %v1017_v43  ;;  %17577 = vst [vmem:[#allocation39_spill] sm:$0xff] %v15680_v46  ;;  %v1004_v43 = vld [vmem:[#allocation2 + $0x260] sm:$0xff]  ;;  %v15688_v60 = vld [vmem:[#allocation2 + $0x398] sm:$0xf] }
  0xa3   :  { %977 = vmatprep.mubr.f32.mxu0 %v17572_v62  ;;  %1118 = vmatprep.mubr.f32.mxu1 %v17572_v62  ;;  %17578 = vst [vmem:[#allocation40_spill] sm:$0xff] %v15688_v60 }
  0xa4   :  { %1152 = vmatpush1.msra.mxu0 %v15657_v35  ;;  %1229 = vmatpush1.msra.mxu1 %v1016_v44  ;;  %v15691_v44 = vld [vmem:[#allocation2 + $0x390] sm:$0xf]  ;;  %v1314_v35 = vld [vmem:[#allocation2 + $0x3a0] sm:$0xf] }
  0xa5   :  { %12288 = vmatmul.mubr.msk.f32.gmra.mxu0 %vm189_vm1, %v15615_v58  ;;  %12294 = vmatmul.mubr.msk.f32.gmra.mxu1 %vm189_vm1, %v15665_v52 }
  0xa6   :  { %1153 = vmatprep.subr.mxu0 %v15670_v48  ;;  %1230 = vmatprep.subr.mxu1 %v1011_v39  ;;  %v1309_v48 = vld [vmem:[#allocation2 + $0x378] sm:$0xff]  ;;  %v1308_v39 = vld [vmem:[#allocation2 + $0x370] sm:$0xff] }
  0xa7   :  { %1154 = vmatpush1.msra.mxu0 %v15673_v17  ;;  %1231 = vmatpush1.msra.mxu1 %v1010_v56  ;;  %v15710_v56 = vld [vmem:[#allocation2 + $0x338] sm:$0xff] }
  0xa8   :  { %1155 = vmatprep.subr.mxu0 %v15677_v54  ;;  %1232 = vmatprep.subr.mxu1 %v1005_v37  ;;  %v15702_v37 = vld [vmem:[#allocation2 + $0x360] sm:$0xff] }
  0xa9   :  { %1156 = vmatpush1.msra.mxu0 %v15680_v46  ;;  %1189 = vmatprep.mubr.f32.mxu0 %v17572_v62  ;;  %17580 = vst [vmem:[#allocation42_spill] sm:$0xff] %v15702_v37  ;;  %v15713_v46 = vld [vmem:[#allocation2 + $0x330] sm:$0xff]  ;;  %v1302_v54 = vld [vmem:[#allocation2 + $0x340] sm:$0xff] }
  0xaa   :  { %1233 = vmatpush1.msra.mxu1 %v1004_v43  ;;  %1266 = vmatprep.mubr.f32.mxu1 %v17572_v62  ;;  %v1303_v43 = vld [vmem:[#allocation2 + $0x348] sm:$0xff] }
  0xab   :  { %12297 = vmatmul.mubr.msk.f32.vlgmr.msra.gmra.mxu0 %vm189_vm1, %v15640_v0  ;;  %12301 = vmatmul.mubr.msk.f32.vlgmr.msra.gmra.mxu1 %vm189_vm1, %v15640_v0 }
  0xac   :  { %12303 = vmatprep.subr.msk.mxu0 %vm196_vm0, %v15688_v60  ;;  %12307 = vmatprep.subr.msk.mxu1 %vm196_vm0, %v1315_v50  ;;  %v15717_v60 = vld [vmem:[#allocation2 + $0x308] sm:$0xff]  ;;  %v1297_v50 = vld [vmem:[#allocation2 + $0x318] sm:$0xff] }
  0xad   :  { %12304 = vmatpush1.msk.msra.mxu0 %vm196_vm0, %v15691_v44  ;;  %12308 = vmatpush1.msk.msra.mxu1 %vm196_vm0, %v1314_v35  ;;  %v15720_v35 = vld [vmem:[#allocation2 + $0x300] sm:$0xff] }
  0xae   :  { %1368 = vmatprep.subr.mxu0 %v15695_v26  ;;  %1445 = vmatprep.subr.mxu1 %v1309_v48  ;;  %v15726_v48 = vld [vmem:[#allocation2 + $0x310] sm:$0xff]  ;;  %v15732_v26 = vld [vmem:[%s17490_s0 + $0x1] sm:$0xff] }
  0xaf   :  { %1195 = vmatprep.mubr.f32.mxu0 %v17572_v62  ;;  %1272 = vmatprep.mubr.f32.mxu1 %v17572_v62  ;;  %17581 = vst [vmem:[#allocation43_spill] sm:$0xff] %v15726_v48 }
  0xb0   :  { %1369 = vmatpush1.msra.mxu0 %v15702_v37  ;;  %1446 = vmatpush1.msra.mxu1 %v1308_v39  ;;  %v15735_v39 = vld [vmem:[#allocation2 + $0x3b8] sm:$0xf]  ;;  %v15738_v37 = vld [vmem:[#allocation2 + $0x3b0] sm:$0xf] }
  0xb1   :  { %12298 = vmatmul.mubr.msk.f32.gmra.mxu0 %vm189_vm1, %v15665_v52  ;;  %12302 = vmatmul.mubr.msk.f32.gmra.mxu1 %vm189_vm1, %v15665_v52  ;;  %17582 = vst [vmem:[#allocation44_spill] sm:$0xff] %v15735_v39  ;;  %17583 = vst [vmem:[#allocation45_spill] sm:$0xff] %v15738_v37 }
  0xb2   :  { %1370 = vmatprep.subr.mxu0 %v15710_v56  ;;  %1447 = vmatprep.subr.mxu1 %v1303_v43  ;;  %v15742_v43 = vld [vmem:[#allocation2 + $0x388] sm:$0xff] }
  0xb3   :  { %1371 = vmatpush1.msra.mxu0 %v15713_v46  ;;  %1448 = vmatpush1.msra.mxu1 %v1302_v54  ;;  %v15750_v54 = vld [vmem:[#allocation2 + $0x380] sm:$0xff] }
  0xb4   :  { %1372 = vmatprep.subr.mxu0 %v15717_v60  ;;  %1449 = vmatprep.subr.mxu1 %v1297_v50  ;;  %v15759_v50 = vld [vmem:[%s17490_s0 + $0x9] sm:$0x3f] }
  0xb5   :  { %1373 = vmatpush1.msra.mxu0 %v15720_v35  ;;  %1406 = vmatprep.mubr.f32.mxu0 %v17572_v62 }
  0xb6   :  { %1450 = vmatpush1.msra.mxu1 %v15726_v48  ;;  %1483 = vmatprep.mubr.f32.mxu1 %v17572_v62  ;;  %v15765_v48 = vld [vmem:[#allocation2 + $0x358] sm:$0xff] }
  0xb7   :  { %12305 = vmatmul.mubr.msk.f32.vlgmr.msra.gmra.mxu0 %vm189_vm1, %v15732_v26  ;;  %12309 = vmatmul.mubr.msk.f32.vlgmr.msra.gmra.mxu1 %vm189_vm1, %v15732_v26 }
  0xb8   :  { %12311 = vmatprep.subr.msk.mxu0 %vm196_vm0, %v15735_v39  ;;  %12315 = vmatprep.subr.msk.mxu1 %vm196_vm0, %v15396_v1  ;;  %v15769_v39 = vld [vmem:[#allocation2 + $0x350] sm:$0xff]  ;;  %v15773_v1 = vld [vmem:[#allocation2 + $0x328] sm:$0xff] }
  0xb9   :  { %12312 = vmatpush1.msk.msra.mxu0 %vm196_vm0, %v15738_v37  ;;  %12316 = vmatpush1.msk.msra.mxu1 %vm196_vm0, %v15400_v3  ;;  %v15777_v37 = vld [vmem:[#allocation2 + $0x320] sm:$0xff]  ;;  %v15862_v3 = vld [vmem:[#allocation2 + $0xb8] sm:$0xf] }
  0xba   :  { %1522 = vmatprep.subr.mxu0 %v15742_v43  ;;  %1611 = vmatprep.subr.mxu1 %v15408_v5  ;;  %v15874_v5 = vld [vmem:[#allocation2 + $0x88] sm:$0xff] }
  0xbb   :  { %1412 = vmatprep.mubr.f32.mxu0 %v17572_v62  ;;  %1489 = vmatprep.mubr.f32.mxu1 %v17572_v62 }
  0xbc   :  { %1523 = vmatpush1.msra.mxu0 %v15750_v54  ;;  %1612 = vmatpush1.msra.mxu1 %v15416_v7  ;;  %v14448_v7 = vld [vmem:[%s17490_s0 + $0x18] sm:$0x3f] }
  0xbd   :  { %12306 = vmatmul.mubr.msk.f32.gmra.mxu0 %vm189_vm1, %v15759_v50  ;;  %12310 = vmatmul.mubr.msk.f32.gmra.mxu1 %vm189_vm1, %v15759_v50 }
  0xbe   :  { %1524 = vmatprep.subr.mxu0 %v15765_v48  ;;  %1613 = vmatprep.subr.mxu1 %v15420_v9  ;;  %v15893_v9 = vld [vmem:[#allocation2 + $0x50] sm:$0xff] }
  0xbf   :  { %1525 = vmatpush1.msra.mxu0 %v15769_v39  ;;  %1614 = vmatpush1.msra.mxu1 %v15426_v11  ;;  %v17584_v11 = vld [vmem:[#allocation23_spill] sm:$0xff] }
  0xc0   :  { %1526 = vmatprep.subr.mxu0 %v15773_v1  ;;  %1615 = vmatprep.subr.mxu1 %v15432_v13  ;;  %v17585_v13 = vld [vmem:[#allocation24_spill] sm:$0xff] }
  0xc1   :  { %1527 = vmatpush1.msra.mxu0 %v15777_v37  ;;  %1560 = vmatprep.mubr.f32.mxu0 %v17572_v62 }
  0xc2   :  { %1616 = vmatpush1.msra.mxu1 %v15438_v15  ;;  %1649 = vmatprep.mubr.f32.mxu1 %v17572_v62  ;;  %v17586_v15 = vld [vmem:[#allocation25_spill] sm:$0xff] }
  0xc3   :  { %12313 = vmatmul.mubr.msk.f32.vlgmr.msra.gmra.mxu0 %vm189_vm1, %v15732_v26  ;;  %12317 = vmatmul.mubr.msk.f32.vlgmr.msra.gmra.mxu1 %vm189_vm1, %v15591_v41 }
  0xc4   :  { %12319 = vmatprep.subr.msk.mxu0 %vm196_vm0, %v15398_v2  ;;  %12323 = vmatprep.subr.msk.mxu1 %vm196_vm0, %v15449_v18  ;;  %v14443_v2 = vld [vmem:[%s17490_s0 + $0x10] sm:$0xff]  ;;  %v17587_v18 = vld [vmem:[#allocation26_spill] sm:$0xff] }
  0xc5   :  { %12320 = vmatpush1.msk.msra.mxu0 %vm196_vm0, %v15406_v4  ;;  %12324 = vmatpush1.msk.msra.mxu1 %vm196_vm0, %v15455_v20  ;;  %v15868_v4 = vld [vmem:[#allocation2 + $0xb0] sm:$0xf] }
  0xc6   :  { %1688 = vmatprep.subr.mxu0 %v15410_v6  ;;  %1765 = vmatprep.subr.mxu1 %v15461_v22  ;;  %v15880_v6 = vld [vmem:[#allocation2 + $0x80] sm:$0xff]  ;;  %v17588_v20 = vld [vmem:[#allocation27_spill] sm:$0xff]  ;;  %v17589_v22 = vld [vmem:[#allocation28_spill] sm:$0xff] }
  0xc7   :  { %1566 = vmatprep.mubr.f32.mxu0 %v17572_v62  ;;  %1655 = vmatprep.mubr.f32.mxu1 %v17572_v62 }
  0xc8   :  { %1689 = vmatpush1.msra.mxu0 %v15418_v8  ;;  %1766 = vmatpush1.msra.mxu1 %v15473_v24  ;;  %v15889_v8 = vld [vmem:[#allocation2 + $0x58] sm:$0xff] }
  0xc9   :  { %12314 = vmatmul.mubr.msk.f32.gmra.mxu0 %vm189_vm1, %v15759_v50  ;;  %12318 = vmatmul.mubr.msk.f32.gmra.mxu1 %vm189_vm1, %v15615_v58  ;;  %v17590_v24 = vld [vmem:[#allocation29_spill] sm:$0xff] }
  0xca   :  { %1690 = vmatprep.subr.mxu0 %v15424_v10  ;;  %1767 = vmatprep.subr.mxu1 %v15484_v27  ;;  %v15897_v10 = vld [vmem:[#allocation2 + $0x28] sm:$0xff] }
  0xcb   :  { %1691 = vmatpush1.msra.mxu0 %v15428_v12  ;;  %1768 = vmatpush1.msra.mxu1 %v15490_v29  ;;  %v15901_v12 = vld [vmem:[#allocation2 + $0x20] sm:$0xff]  ;;  %v17592_v29 = vld [vmem:[#allocation31_spill] sm:$0xff] }
  0xcc   :  { %1692 = vmatprep.subr.mxu0 %v15434_v14  ;;  %1769 = vmatprep.subr.mxu1 %v15496_v31  ;;  %v15910_v14 = vld [vmem:[#allocation2 + $0x228] sm:$0xf]  ;;  %v17593_v31 = vld [vmem:[#allocation32_spill] sm:$0xff] }
  0xcd   :  { %1693 = vmatpush1.msra.mxu0 %v15440_v16  ;;  %1726 = vmatprep.mubr.f32.mxu0 %v17572_v62  ;;  %v15916_v16 = vld [vmem:[#allocation2 + $0x220] sm:$0xf]  ;;  %v17591_v27 = vld [vmem:[#allocation30_spill] sm:$0xff] }
  0xce   :  { %1770 = vmatpush1.msra.mxu1 %v15502_v33  ;;  %1803 = vmatprep.mubr.f32.mxu1 %v17572_v62  ;;  %v17594_v33 = vld [vmem:[#allocation33_spill] sm:$0xff] }
  0xcf   :  { %12321 = vmatmul.mubr.msk.f32.vlgmr.msra.gmra.mxu0 %vm189_vm1, %v15591_v41  ;;  %12325 = vmatmul.mubr.msk.f32.vlgmr.msra.gmra.mxu1 %vm189_vm1, %v15591_v41  ;;  %v16017_v41 = vld [vmem:[#allocation2 + $0x2c8] sm:$0xff] }
  0xd0   :  { %12327 = vmatprep.subr.msk.mxu0 %vm196_vm0, %v15451_v19  ;;  %12331 = vmatprep.subr.msk.mxu1 %vm196_vm0, %v15515_v36  ;;  %v15922_v19 = vld [vmem:[#allocation2 + $0x1f8] sm:$0xff]  ;;  %v17595_v36 = vld [vmem:[#allocation34_spill] sm:$0xff] }
  0xd1   :  { %12328 = vmatpush1.msk.msra.mxu0 %vm196_vm0, %v15457_v21  ;;  %12332 = vmatpush1.msk.msra.mxu1 %vm196_vm0, %v15519_v38  ;;  %v15928_v21 = vld [vmem:[#allocation2 + $0x1f0] sm:$0xff]  ;;  %v15969_v38 = vld [vmem:[#allocation2 + $0x2a8] sm:$0xff] }
  0xd2   :  { %1842 = vmatprep.subr.mxu0 %v15463_v23  ;;  %1919 = vmatprep.subr.mxu1 %v15523_v40  ;;  %v15935_v23 = vld [vmem:[#allocation2 + $0x1c8] sm:$0xff]  ;;  %v15975_v40 = vld [vmem:[#allocation2 + $0x2a0] sm:$0xff] }
  0xd3   :  { %1732 = vmatprep.mubr.f32.mxu0 %v17572_v62  ;;  %1809 = vmatprep.mubr.f32.mxu1 %v17572_v62 }
  0xd4   :  { %1843 = vmatpush1.msra.mxu0 %v15475_v25  ;;  %1920 = vmatpush1.msra.mxu1 %v15531_v42  ;;  %v15939_v25 = vld [vmem:[#allocation2 + $0x1c0] sm:$0xff]  ;;  %v17597_v42 = vld [vmem:[#allocation36_spill] sm:$0xff] }
  0xd5   :  { %12322 = vmatmul.mubr.msk.f32.gmra.mxu0 %vm189_vm1, %v15615_v58  ;;  %12326 = vmatmul.mubr.msk.f32.gmra.mxu1 %vm189_vm1, %v15615_v58  ;;  %v17602_v58 = vld [vmem:[#allocation41_spill] sm:$0xff] }
  0xd6   :  { %1844 = vmatprep.subr.mxu0 %v15486_v28  ;;  %1921 = vmatprep.subr.mxu1 %v15539_v45  ;;  %v15943_v28 = vld [vmem:[#allocation2 + $0x198] sm:$0xff] }
  0xd7   :  { %1845 = vmatpush1.msra.mxu0 %v15492_v30  ;;  %1922 = vmatpush1.msra.mxu1 %v15542_v47  ;;  %v15947_v30 = vld [vmem:[#allocation2 + $0x190] sm:$0xff]  ;;  %v15983_v45 = vld [vmem:[#allocation2 + $0x278] sm:$0xff] }
  0xd8   :  { %1846 = vmatprep.subr.mxu0 %v15498_v32  ;;  %1923 = vmatprep.subr.mxu1 %v15546_v49  ;;  %v15957_v32 = vld [vmem:[#allocation2 + $0x2d8] sm:$0xf]  ;;  %v17598_v47 = vld [vmem:[#allocation37_spill] sm:$0xff]  ;;  %v15987_v49 = vld [vmem:[#allocation2 + $0x270] sm:$0xff] }
  0xd9   :  { %1847 = vmatpush1.msra.mxu0 %v15506_v34  ;;  %1880 = vmatprep.mubr.f32.mxu0 %v17572_v62  ;;  %v15963_v34 = vld [vmem:[#allocation2 + $0x2d0] sm:$0xf] }
  0xda   :  { %1924 = vmatpush1.msra.mxu1 %v15549_v51  ;;  %1957 = vmatprep.mubr.f32.mxu1 %v17572_v62  ;;  %v15991_v51 = vld [vmem:[#allocation2 + $0x248] sm:$0xff] }
  0xdb   :  { %12329 = vmatmul.mubr.msk.f32.vlgmr.msra.gmra.mxu0 %vm189_vm1, %v14443_v2  ;;  %12333 = vmatmul.mubr.msk.f32.vlgmr.msra.gmra.mxu1 %vm189_vm1, %v14443_v2 }
  0xdc   :  { %12335 = vmatprep.subr.msk.mxu0 %vm196_vm0, %v15862_v3  ;;  %12339 = vmatprep.subr.msk.mxu1 %vm196_vm0, %v15555_v53  ;;  %v17599_v53 = vld [vmem:[#allocation38_spill] sm:$0xff] }
  0xdd   :  { %12336 = vmatpush1.msk.msra.mxu0 %vm196_vm0, %v15868_v4  ;;  %12340 = vmatpush1.msk.msra.mxu1 %vm196_vm0, %v15558_v55  ;;  %v15995_v55 = vld [vmem:[#allocation2 + $0x240] sm:$0xff] }
  0xde   :  { %1996 = vmatprep.subr.mxu0 %v15874_v5  ;;  %2073 = vmatprep.subr.mxu1 %v15562_v57  ;;  %v17600_v57 = vld [vmem:[#allocation39_spill] sm:$0xff] }
  0xdf   :  { %1886 = vmatprep.mubr.f32.mxu0 %v17572_v62  ;;  %1963 = vmatprep.mubr.f32.mxu1 %v17572_v62 }
  0xe0   :  { %1997 = vmatpush1.msra.mxu0 %v15880_v6  ;;  %2074 = vmatpush1.msra.mxu1 %v15570_v59  ;;  %v16005_v59 = vld [vmem:[#allocation2 + $0x2f8] sm:$0xf] }
  0xe1   :  { %12330 = vmatmul.mubr.msk.f32.gmra.mxu0 %vm189_vm1, %v14448_v7  ;;  %12334 = vmatmul.mubr.msk.f32.gmra.mxu1 %vm189_vm1, %v14448_v7 }
  0xe2   :  { %1998 = vmatprep.subr.mxu0 %v15889_v8  ;;  %2075 = vmatprep.subr.mxu1 %v15575_v61  ;;  %v17601_v61 = vld [vmem:[#allocation40_spill] sm:$0xff] }
  0xe3   :  { %1999 = vmatpush1.msra.mxu0 %v15893_v9  ;;  %2076 = vmatpush1.msra.mxu1 %v15578_v63  ;;  %v16011_v63 = vld [vmem:[#allocation2 + $0x2f0] sm:$0xf] }
  0xe4   :  { %2000 = vmatprep.subr.mxu0 %v15897_v10  ;;  %2077 = vmatprep.subr.mxu1 %v17584_v11  ;;  %v16044_v11 = vld [vmem:[#allocation2 + $0x268] sm:$0xff] }
  0xe5   :  { %2001 = vmatpush1.msra.mxu0 %v15901_v12  ;;  %2034 = vmatprep.mubr.f32.mxu0 %v17572_v62 }
  0xe6   :  { %2078 = vmatpush1.msra.mxu1 %v17585_v13  ;;  %2111 = vmatprep.mubr.f32.mxu1 %v17572_v62  ;;  %v16048_v13 = vld [vmem:[#allocation2 + $0x260] sm:$0xff] }
  0xe7   :  { %12337 = vmatmul.mubr.msk.f32.vlgmr.msra.gmra.mxu0 %vm189_vm1, %v14443_v2  ;;  %12341 = vmatmul.mubr.msk.f32.vlgmr.msra.gmra.mxu1 %vm189_vm1, %v15640_v0  ;;  %v16038_v2 = vld [vmem:[%s17490_s0 + $0x11] sm:$0xff] }
  0xe8   :  { %12343 = vmatprep.subr.msk.mxu0 %vm196_vm0, %v15910_v14  ;;  %12347 = vmatprep.subr.msk.mxu1 %vm196_vm0, %v17586_v15  ;;  %v16075_v15 = vld [vmem:[#allocation2 + $0x378] sm:$0xff] }
  0xe9   :  { %12344 = vmatpush1.msk.msra.mxu0 %vm196_vm0, %v15916_v16  ;;  %12348 = vmatpush1.msk.msra.mxu1 %vm196_vm0, %v17587_v18  ;;  %v16081_v18 = vld [vmem:[#allocation2 + $0x370] sm:$0xff] }
  0xea   :  { %2150 = vmatprep.subr.mxu0 %v15922_v19  ;;  %2227 = vmatprep.subr.mxu1 %v17588_v20  ;;  %v16089_v20 = vld [vmem:[#allocation2 + $0x348] sm:$0xff] }
  0xeb   :  { %2040 = vmatprep.mubr.f32.mxu0 %v17572_v62  ;;  %2117 = vmatprep.mubr.f32.mxu1 %v17572_v62 }
  0xec   :  { %2151 = vmatpush1.msra.mxu0 %v15928_v21  ;;  %2228 = vmatpush1.msra.mxu1 %v17589_v22  ;;  %v16097_v22 = vld [vmem:[#allocation2 + $0x318] sm:$0xff] }
  0xed   :  { %12338 = vmatmul.mubr.msk.f32.gmra.mxu0 %vm189_vm1, %v14448_v7  ;;  %12342 = vmatmul.mubr.msk.f32.gmra.mxu1 %vm189_vm1, %v15665_v52  ;;  %v16040_v7 = vld [vmem:[#allocation2 + $0x290] sm:$0xff] }
  0xee   :  { %2152 = vmatprep.subr.mxu0 %v15935_v23  ;;  %2229 = vmatprep.subr.mxu1 %v17590_v24  ;;  %v14489_v24 = vld [vmem:[#allocation2 + $0x138] sm:$0xff] }
  0xef   :  { %2153 = vmatpush1.msra.mxu0 %v15939_v25  ;;  %2230 = vmatpush1.msra.mxu1 %v17591_v27  ;;  %v16124_v27 = vld [vmem:[#allocation2 + $0x120] sm:$0xff] }
  0xf0   :  { %2154 = vmatprep.subr.mxu0 %v15943_v28  ;;  %2231 = vmatprep.subr.mxu1 %v17592_v29  ;;  %v14491_v29 = vld [vmem:[#allocation2 + $0x130] sm:$0xff] }
  0xf1   :  { %2155 = vmatpush1.msra.mxu0 %v15947_v30  ;;  %2188 = vmatprep.mubr.f32.mxu0 %v17572_v62 }
  0xf2   :  { %2232 = vmatpush1.msra.mxu1 %v17593_v31  ;;  %2265 = vmatprep.mubr.f32.mxu1 %v17572_v62  ;;  %v16131_v31 = vld [vmem:[#allocation2 + $0xf8] sm:$0xff] }
  0xf3   :  { %12345 = vmatmul.mubr.msk.f32.vlgmr.msra.gmra.mxu0 %vm189_vm1, %v15640_v0  ;;  %12349 = vmatmul.mubr.msk.f32.vlgmr.msra.gmra.mxu1 %vm189_vm1, %v15640_v0  ;;  %v17596_v0 = vld [vmem:[#allocation35_spill] sm:$0xff] }
  0xf4   :  { %12351 = vmatprep.subr.msk.mxu0 %vm196_vm0, %v15957_v32  ;;  %12355 = vmatprep.subr.msk.mxu1 %vm196_vm0, %v17594_v33  ;;  %v14493_v33 = vld [vmem:[#allocation2 + $0x108] sm:$0xff] }
  0xf5   :  { %12352 = vmatpush1.msk.msra.mxu0 %vm196_vm0, %v15963_v34  ;;  %12356 = vmatpush1.msk.msra.mxu1 %vm196_vm0, %v17595_v36  ;;  %v16134_v36 = vld [vmem:[#allocation2 + $0xf0] sm:$0xff] }
  0xf6   :  { %2316 = vmatprep.subr.mxu0 %v15969_v38  ;;  %2393 = vmatprep.subr.mxu1 %v17596_v0  ;;  %v14495_v0 = vld [vmem:[#allocation2 + $0x100] sm:$0xff] }
  0xf7   :  { %2194 = vmatprep.mubr.f32.mxu0 %v17572_v62  ;;  %2271 = vmatprep.mubr.f32.mxu1 %v17572_v62 }
  0xf8   :  { %2317 = vmatpush1.msra.mxu0 %v15975_v40  ;;  %2394 = vmatpush1.msra.mxu1 %v17597_v42  ;;  %v16137_v42 = vld [vmem:[#allocation2 + $0xc8] sm:$0xff] }
  0xf9   :  { %12346 = vmatmul.mubr.msk.f32.gmra.mxu0 %vm189_vm1, %v15665_v52  ;;  %12350 = vmatmul.mubr.msk.f32.gmra.mxu1 %vm189_vm1, %v15665_v52  ;;  %v17603_v52 = vld [vmem:[#allocation42_spill] sm:$0xff] }
  0xfa   :  { %2318 = vmatprep.subr.mxu0 %v15983_v45  ;;  %2395 = vmatprep.subr.mxu1 %v17598_v47  ;;  %v14497_v47 = vld [vmem:[#allocation2 + $0xd8] sm:$0xff] }
  0xfb   :  { %2319 = vmatpush1.msra.mxu0 %v15987_v49  ;;  %2396 = vmatpush1.msra.mxu1 %v15673_v17  ;;  %v16023_v17 = vld [vmem:[#allocation2 + $0x2c0] sm:$0xff] }
  0xfc   :  { %2320 = vmatprep.subr.mxu0 %v15991_v51  ;;  %2397 = vmatprep.subr.mxu1 %v17599_v53  ;;  %v16140_v53 = vld [vmem:[#allocation2 + $0xc0] sm:$0xff] }
  0xfd   :  { %2321 = vmatpush1.msra.mxu0 %v15995_v55  ;;  %2354 = vmatprep.mubr.f32.mxu0 %v17572_v62 }
  0xfe   :  { %2398 = vmatpush1.msra.mxu1 %v17600_v57  ;;  %2431 = vmatprep.mubr.f32.mxu1 %v17572_v62  ;;  %v14499_v57 = vld [vmem:[#allocation2 + $0xd0] sm:$0xff] }
  0xff   :  { %12353 = vmatmul.mubr.msk.f32.vlgmr.msra.gmra.mxu0 %vm189_vm1, %v15732_v26  ;;  %12357 = vmatmul.mubr.msk.f32.vlgmr.msra.gmra.mxu1 %vm189_vm1, %v15732_v26 }
 0x100   :  { %12359 = vmatprep.subr.msk.mxu0 %vm196_vm0, %v16005_v59  ;;  %12365 = vmatprep.subr.msk.mxu1 %vm196_vm0, %v17601_v61  ;;  %v14500_v61 = vld [vmem:[%s17490_s0 + $0x30] sm:$0xff] }
 0x101   :  { %12360 = vmatpush1.msk.msra.mxu0 %vm196_vm0, %v16011_v63  ;;  %12366 = vmatpush1.msk.msra.mxu1 %vm196_vm0, %v15691_v44  ;;  %v16031_v44 = vld [vmem:[#allocation2 + $0x298] sm:$0xff] }
 0x102   :  { %2470 = vmatprep.subr.mxu0 %v16017_v41  ;;  %2567 = vmatprep.subr.mxu1 %v17602_v58  ;;  %v16150_v58 = vld [vmem:[#allocation2 + $0x178] sm:$0xf] }
 0x103   :  { %2360 = vmatprep.mubr.f32.mxu0 %v17572_v62  ;;  %2437 = vmatprep.mubr.f32.mxu1 %v17572_v62 }
 0x104   :  { %2471 = vmatpush1.msra.mxu0 %v16023_v17  ;;  %2568 = vmatpush1.msra.mxu1 %v17603_v52  ;;  %v14502_v52 = vld [vmem:[#allocation2 + $0x98] sm:$0xf] }
 0x105   :  { %12354 = vmatmul.mubr.msk.f32.gmra.mxu0 %vm189_vm1, %v15759_v50  ;;  %12358 = vmatmul.mubr.msk.f32.gmra.mxu1 %vm189_vm1, %v15759_v50 }
 0x106   :  { %2472 = vmatprep.subr.mxu0 %v16031_v44  ;;  %2569 = vmatprep.subr.mxu1 %v15710_v56  ;;  %v16067_v56 = vld [vmem:[%s17490_s0 + $0x19] sm:$0x3f] }
 0x107   :  { %2473 = vmatpush1.msra.mxu0 %v16040_v7  ;;  %2570 = vmatpush1.msra.mxu1 %v15713_v46  ;;  %v16058_v46 = vld [vmem:[#allocation2 + $0x3a8] sm:$0xf] }
 0x108   :  { %2474 = vmatprep.subr.mxu0 %v16044_v11  ;;  %2571 = vmatprep.subr.mxu1 %v15717_v60  ;;  %v17604_v60 = vld [vmem:[#allocation44_spill] sm:$0xff] }
 0x109   :  { %2475 = vmatpush1.msra.mxu0 %v16048_v13  ;;  %2508 = vmatprep.mubr.f32.mxu0 %v17572_v62 }
 0x10a   :  { %2572 = vmatpush1.msra.mxu1 %v15720_v35  ;;  %2605 = vmatprep.mubr.f32.mxu1 %v17572_v62  ;;  %v16069_v35 = vld [vmem:[#allocation2 + $0x3a0] sm:$0xf] }
 0x10b   :  { %12361 = vmatmul.mubr.msk.f32.vlgmr.msra.gmra.mxu0 %vm189_vm1, %v15732_v26  ;;  %12367 = vmatmul.mubr.msk.f32.vlgmr.msra.gmra.mxu1 %vm189_vm1, %v16038_v2  ;;  %v17605_v26 = vld [vmem:[#allocation45_spill] sm:$0xff] }
 0x10c   :  { %12369 = vmatprep.subr.msk.mxu0 %vm196_vm0, %v16058_v46  ;;  %12373 = vmatprep.subr.msk.mxu1 %vm196_vm0, %v17604_v60  ;;  %v16155_v60 = vld [vmem:[#allocation2 + $0x170] sm:$0xf] }
 0x10d   :  { %12370 = vmatpush1.msk.msra.mxu0 %vm196_vm0, %v16069_v35  ;;  %12374 = vmatpush1.msk.msra.mxu1 %vm196_vm0, %v17605_v26  ;;  %v14504_v26 = vld [vmem:[#allocation2 + $0x90] sm:$0xf] }
 0x10e   :  { %2644 = vmatprep.subr.mxu0 %v16075_v15  ;;  %2721 = vmatprep.subr.mxu1 %v15742_v43  ;;  %v16093_v43 = vld [vmem:[#allocation2 + $0x340] sm:$0xff] }
 0x10f   :  { %2514 = vmatprep.mubr.f32.mxu0 %v17572_v62  ;;  %2611 = vmatprep.mubr.f32.mxu1 %v17572_v62 }
 0x110   :  { %2645 = vmatpush1.msra.mxu0 %v16081_v18  ;;  %2722 = vmatpush1.msra.mxu1 %v15750_v54  ;;  %v17606_v54 = vld [vmem:[#allocation43_spill] sm:$0xff] }
 0x111   :  { %12362 = vmatmul.mubr.msk.f32.gmra.mxu0 %vm189_vm1, %v15759_v50  ;;  %12368 = vmatmul.mubr.msk.f32.gmra.mxu1 %vm189_vm1, %v16067_v56  ;;  %v16114_v50 = vld [vmem:[#allocation2 + $0x150] sm:$0xf] }
 0x112   :  { %2646 = vmatprep.subr.mxu0 %v16089_v20  ;;  %2723 = vmatprep.subr.mxu1 %v15765_v48  ;;  %v16109_v48 = vld [vmem:[#allocation2 + $0x158] sm:$0xf] }
 0x113   :  { %2647 = vmatpush1.msra.mxu0 %v16093_v43  ;;  %2724 = vmatpush1.msra.mxu1 %v15769_v39  ;;  %v14485_v39 = vld [vmem:[#allocation2 + $0x168] sm:$0xf] }
 0x114   :  { %2648 = vmatprep.subr.mxu0 %v16097_v22  ;;  %2725 = vmatprep.subr.mxu1 %v15773_v1  ;;  %v16119_v1 = vld [vmem:[#allocation2 + $0x128] sm:$0xff] }
 0x115   :  { %2649 = vmatpush1.msra.mxu0 %v17606_v54  ;;  %2682 = vmatprep.mubr.f32.mxu0 %v17572_v62  ;;  %v16160_v54 = vld [vmem:[#allocation2 + $0x148] sm:$0xff] }
 0x116   :  { %2726 = vmatpush1.msra.mxu1 %v15777_v37  ;;  %2759 = vmatprep.mubr.f32.mxu1 %v17572_v62  ;;  %v14487_v37 = vld [vmem:[#allocation2 + $0x160] sm:$0xf] }
 0x117   :  { %12371 = vmatmul.mubr.msk.f32.vlgmr.msra.gmra.mxu0 %vm189_vm1, %v16038_v2  ;;  %12375 = vmatmul.mubr.msk.f32.vlgmr.msra.gmra.mxu1 %vm189_vm1, %v16038_v2 }
 0x118   :  { %12377 = vmatprep.subr.msk.mxu0 %vm196_vm0, %v16109_v48  ;;  %12381 = vmatprep.subr.msk.mxu1 %vm196_vm0, %v14485_v39  ;;  %v14506_v39 = vld [vmem:[#allocation2 + $0x68] sm:$0xff] }
 0x119   :  { %12378 = vmatpush1.msk.msra.mxu0 %vm196_vm0, %v16114_v50  ;;  %12382 = vmatpush1.msk.msra.mxu1 %vm196_vm0, %v14487_v37  ;;  %v16165_v37 = vld [vmem:[#allocation2 + $0x140] sm:$0xff] }
 0x11a   :  { %2857 = vmatprep.subr.mxu0 %v16119_v1  ;;  %2934 = vmatprep.subr.mxu1 %v14489_v24  ;;  %v14508_v24 = vld [vmem:[#allocation2 + $0x60] sm:$0xff] }
 0x11b   :  { %2688 = vmatprep.mubr.f32.mxu0 %v17572_v62  ;;  %2765 = vmatprep.mubr.f32.mxu1 %v17572_v62 }
 0x11c   :  { %2858 = vmatpush1.msra.mxu0 %v16124_v27  ;;  %2935 = vmatpush1.msra.mxu1 %v14491_v29  ;;  %v14509_v29 = vld [vmem:[%s17490_s0 + $0x38] sm:$0x3f] }
 0x11d   :  { %12372 = vmatmul.mubr.msk.f32.gmra.mxu0 %vm189_vm1, %v16067_v56  ;;  %12376 = vmatmul.mubr.msk.f32.gmra.mxu1 %vm189_vm1, %v16067_v56 }
 0x11e   :  { %2859 = vmatprep.subr.mxu0 %v16131_v31  ;;  %2936 = vmatprep.subr.mxu1 %v14493_v33  ;;  %v16173_v33 = vld [vmem:[#allocation2 + $0x118] sm:$0xff] }
 0x11f   :  { %2860 = vmatpush1.msra.mxu0 %v16134_v36  ;;  %2937 = vmatpush1.msra.mxu1 %v14495_v0  ;;  %17607 = vst [vmem:[#allocation23_spill] sm:$0xff] %v16173_v33  ;;  %v14511_v0 = vld [vmem:[#allocation2 + $0x38] sm:$0xff] }
 0x120   :  { %2861 = vmatprep.subr.mxu0 %v16137_v42  ;;  %2938 = vmatprep.subr.mxu1 %v14497_v47  ;;  %v16176_v47 = vld [vmem:[#allocation2 + $0x110] sm:$0xff] }
 0x121   :  { %2862 = vmatpush1.msra.mxu0 %v16140_v53  ;;  %2895 = vmatprep.mubr.f32.mxu0 %v17572_v62  ;;  %17608 = vst [vmem:[#allocation24_spill] sm:$0xff] %v16176_v47 }
 0x122   :  { %2939 = vmatpush1.msra.mxu1 %v14499_v57  ;;  %2972 = vmatprep.mubr.f32.mxu1 %v17572_v62  ;;  %v14513_v57 = vld [vmem:[#allocation2 + $0x30] sm:$0xff] }
 0x123   :  { %12379 = vmatmul.mubr.msk.f32.vlgmr.msra.gmra.mxu0 %vm189_vm1, %v14500_v61  ;;  %12383 = vmatmul.mubr.msk.f32.vlgmr.msra.gmra.mxu1 %vm189_vm1, %v14500_v61 }
 0x124   :  { %12385 = vmatprep.subr.msk.mxu0 %vm196_vm0, %v16150_v58  ;;  %12389 = vmatprep.subr.msk.mxu1 %vm196_vm0, %v14502_v52  ;;  %v16179_v52 = vld [vmem:[#allocation2 + $0xe8] sm:$0xff] }
 0x125   :  { %12386 = vmatpush1.msk.msra.mxu0 %vm196_vm0, %v16155_v60  ;;  %12390 = vmatpush1.msk.msra.mxu1 %vm196_vm0, %v14504_v26  ;;  %17609 = vst [vmem:[#allocation25_spill] sm:$0xff] %v16179_v52  ;;  %v14515_v26 = vld [vmem:[#allocation2 + $0x8] sm:$0xff] }
 0x126   :  { %3011 = vmatprep.subr.mxu0 %v16160_v54  ;;  %3088 = vmatprep.subr.mxu1 %v14506_v39  ;;  %v14516_v39 = vld [vmem:[#allocation2 + $0xe0] sm:$0xff] }
 0x127   :  { %2901 = vmatprep.mubr.f32.mxu0 %v17572_v62  ;;  %2978 = vmatprep.mubr.f32.mxu1 %v17572_v62 }
 0x128   :  { %3012 = vmatpush1.msra.mxu0 %v16165_v37  ;;  %3089 = vmatpush1.msra.mxu1 %v14508_v24  ;;  %v14517_v24 = vld [vmem:[#allocation2] sm:$0xff] }
 0x129   :  { %12380 = vmatmul.mubr.msk.f32.gmra.mxu0 %vm189_vm1, %v14509_v29  ;;  %12384 = vmatmul.mubr.msk.f32.gmra.mxu1 %vm189_vm1, %v14509_v29 }
 0x12a   :  { %3013 = vmatprep.subr.mxu0 %v16173_v33  ;;  %3090 = vmatprep.subr.mxu1 %v14511_v0  ;;  %v14518_v0 = vld [vmem:[%s17490_s0 + $0x20] sm:$0xff]  ;;  %v16240_v33 = vld [vmem:[#allocation2 + $0x10] sm:$0xff] }
 0x12b   :  { %3014 = vmatpush1.msra.mxu0 %v16176_v47  ;;  %3091 = vmatpush1.msra.mxu1 %v14513_v57  ;;  %v16207_v47 = vld [vmem:[#allocation2 + $0x78] sm:$0xff]  ;;  %17616 = vst [vmem:[#allocation32_spill] sm:$0xff] %v16240_v33 }
 0x12c   :  { %3015 = vmatprep.subr.mxu0 %v16179_v52  ;;  %3092 = vmatprep.subr.mxu1 %v14515_v26  ;;  %v16191_v26 = vld [vmem:[#allocation2 + $0xa8] sm:$0xf]  ;;  %17612 = vst [vmem:[#allocation28_spill] sm:$0xff] %v16207_v47 }
 0x12d   :  { %3016 = vmatpush1.msra.mxu0 %v14516_v39  ;;  %3049 = vmatprep.mubr.f32.mxu0 %v17572_v62  ;;  %17610 = vst [vmem:[#allocation26_spill] sm:$0xff] %v16191_v26  ;;  %v16197_v39 = vld [vmem:[#allocation2 + $0xa0] sm:$0xf] }
 0x12e   :  { %3093 = vmatpush1.msra.mxu1 %v14517_v24  ;;  %3126 = vmatprep.mubr.f32.mxu1 %v17572_v62  ;;  %17611 = vst [vmem:[#allocation27_spill] sm:$0xff] %v16197_v39 }
 0x12f   :  { %12387 = vmatmul.mubr.msk.f32.vlgmr.msra.gmra.mxu0 %vm189_vm1, %v14500_v61  ;;  %12391 = vmatmul.mubr.msk.f32.vlgmr.msra.gmra.mxu1 %vm189_vm1, %v14518_v0  ;;  %v281_v57 = vpop.f32.mrf.mxu0  ;;  %v16189_v52 = vpop.f32.mrf.mxu1 }
 0x130   :  { %12393 = vmatprep.subr.msk.mxu0 %vm196_vm0, %v16191_v26  ;;  %12397 = vmatprep.subr.msk.mxu1 %vm196_vm0, %v15862_v3  ;;  %v16213_v3 = vld [vmem:[#allocation2 + $0x70] sm:$0xff]  ;;  %v16236_v26 = vld [vmem:[#allocation2 + $0x18] sm:$0xff] }
 0x131   :  { %12394 = vmatpush1.msk.msra.mxu0 %vm196_vm0, %v16197_v39  ;;  %12398 = vmatpush1.msk.msra.mxu1 %vm196_vm0, %v15868_v4  ;;  %v16203_v61 = vpop.f32.mrf.mxu0  ;;  %v16205_v24 = vpop.f32.mrf.mxu1  ;;  %17613 = vst [vmem:[#allocation29_spill] sm:$0xff] %v16213_v3  ;;  %v14523_v4 = vld [vmem:[%s17490_s0 + $0x28] sm:$0x3f] }
 0x132   :  { %3165 = vmatprep.subr.mxu0 %v16207_v47  ;;  %3242 = vmatprep.subr.mxu1 %v15874_v5  ;;  %v16224_v39 = vld [vmem:[#allocation2 + $0x48] sm:$0xff] }
 0x133   :  { %3055 = vmatprep.mubr.f32.mxu0 %v17572_v62  ;;  %3132 = vmatprep.mubr.f32.mxu1 %v17572_v62 }
 0x134   :  { %3166 = vmatpush1.msra.mxu0 %v16213_v3  ;;  %3243 = vmatpush1.msra.mxu1 %v15880_v6  ;;  %v16228_v3 = vld [vmem:[#allocation2 + $0x40] sm:$0xff] }
 0x135   :  { %12388 = vmatmul.mubr.msk.f32.gmra.mxu0 %vm189_vm1, %v14509_v29  ;;  %12392 = vmatmul.mubr.msk.f32.gmra.mxu1 %vm189_vm1, %v14523_v4  ;;  %v287_v47 = vpop.f32.mrf.mxu0  ;;  %v16222_v5 = vpop.f32.mrf.mxu1 }
 0x136   :  { %3167 = vmatprep.subr.mxu0 %v16224_v39  ;;  %3244 = vmatprep.subr.mxu1 %v15889_v8 }
 0x137   :  { %3168 = vmatpush1.msra.mxu0 %v16228_v3  ;;  %3245 = vmatpush1.msra.mxu1 %v15893_v9  ;;  %v16232_v6 = vpop.f32.mrf.mxu0  ;;  %v16234_v29 = vpop.f32.mrf.mxu1 }
 0x138   :  { %17614 = vst [vmem:[#allocation30_spill] sm:$0xff] %v16232_v6  ;;  %17615 = vst [vmem:[#allocation31_spill] sm:$0xff] %v16234_v29  ;;  %3169 = vmatprep.subr.mxu0 %v16236_v26  ;;  %3246 = vmatprep.subr.mxu1 %v15897_v10  ;;  %v16248_v29 = vld [vmem:[#allocation2 + $0x218] sm:$0xf]  ;;  %v16256_v6 = vld [vmem:[#allocation2 + $0x210] sm:$0xf] }
 0x139   :  { %3170 = vmatpush1.msra.mxu0 %v16240_v33  ;;  %3203 = vmatprep.mubr.f32.mxu0 %v17572_v62  ;;  %v16266_v33 = vld [vmem:[#allocation2 + $0x1e8] sm:$0xff] }
 0x13a   :  { %3247 = vmatpush1.msra.mxu1 %v15901_v12  ;;  %3280 = vmatprep.mubr.f32.mxu1 %v17572_v62  ;;  %17617 = vst [vmem:[#allocation33_spill] sm:$0xff] %v16266_v33 }
 0x13b   :  { %12395 = vmatmul.mubr.msk.f32.vlgmr.msra.gmra.mxu0 %vm189_vm1, %v14518_v0  ;;  %12399 = vmatmul.mubr.msk.f32.vlgmr.msra.gmra.mxu1 %vm189_vm1, %v14518_v0  ;;  %v435_v8 = vpop.f32.mrf.mxu0  ;;  %v536_v9 = vpop.f32.mrf.mxu1 }
 0x13c   :  { %12401 = vmatprep.subr.msk.mxu0 %vm196_vm0, %v16248_v29  ;;  %12405 = vmatprep.subr.msk.mxu1 %vm196_vm0, %v15910_v14  ;;  %v16254_v10 = vadd.f32 %v536_v9, %v281_v57  ;;  %v16272_v14 = vld [vmem:[#allocation2 + $0x1e0] sm:$0xff]  ;;  %v16278_v9 = vld [vmem:[#allocation2 + $0x1b8] sm:$0xff] }
 0x13d   :  { %12402 = vmatpush1.msk.msra.mxu0 %vm196_vm0, %v16256_v6  ;;  %12406 = vmatpush1.msk.msra.mxu1 %vm196_vm0, %v15916_v16  ;;  %v16262_v12 = vpop.f32.mrf.mxu0  ;;  %v16264_v0 = vpop.f32.mrf.mxu1  ;;  %17618 = vst [vmem:[#allocation34_spill] sm:$0xff] %v16272_v14  ;;  %17619 = vst [vmem:[#allocation35_spill] sm:$0xff] %v16278_v9 }
 0x13e   :  { %3319 = vmatprep.subr.mxu0 %v16266_v33  ;;  %3396 = vmatprep.subr.mxu1 %v15922_v19  ;;  %v16284_v33 = vld [vmem:[#allocation2 + $0x1b0] sm:$0xff] }
 0x13f   :  { %3209 = vmatprep.mubr.f32.mxu0 %v17572_v62  ;;  %3286 = vmatprep.mubr.f32.mxu1 %v17572_v62 }
 0x140   :  { %3320 = vmatpush1.msra.mxu0 %v16272_v14  ;;  %3397 = vmatpush1.msra.mxu1 %v15928_v21 }
 0x141   :  { %12396 = vmatmul.mubr.msk.f32.gmra.mxu0 %vm189_vm1, %v14523_v4  ;;  %12400 = vmatmul.mubr.msk.f32.gmra.mxu1 %vm189_vm1, %v14523_v4  ;;  %v441_v16 = vpop.f32.mrf.mxu0  ;;  %v542_v57 = vpop.f32.mrf.mxu1  ;;  %v16292_v4 = vld [vmem:[#allocation2 + $0x188] sm:$0xff] }
 0x142   :  { %3321 = vmatprep.subr.mxu0 %v16278_v9  ;;  %3398 = vmatprep.subr.mxu1 %v15935_v23  ;;  %v16282_v19 = vadd.f32 %v542_v57, %v287_v47  ;;  %17622 = vst [vmem:[#allocation38_spill] sm:$0xff] %v16292_v4  ;;  %v16296_v9 = vld [vmem:[#allocation2 + $0x180] sm:$0xff]  ;;  %v16311_v47 = vld [vmem:[#allocation2 + $0x238] sm:$0xf] }
 0x143   :  { %3322 = vmatpush1.msra.mxu0 %v16284_v33  ;;  %3399 = vmatpush1.msra.mxu1 %v15939_v25  ;;  %v16288_v21 = vpop.f32.mrf.mxu0  ;;  %v16290_v14 = vpop.f32.mrf.mxu1  ;;  %17623 = vst [vmem:[#allocation39_spill] sm:$0xff] %v16296_v9  ;;  %v16305_v23 = vld [vmem:[%s17490_s0 + $0x1] sm:$0xff] }
 0x144   :  { %17620 = vst [vmem:[#allocation36_spill] sm:$0xff] %v16288_v21  ;;  %17621 = vst [vmem:[#allocation37_spill] sm:$0xff] %v16290_v14  ;;  %3323 = vmatprep.subr.mxu0 %v16292_v4  ;;  %3400 = vmatprep.subr.mxu1 %v15943_v28  ;;  %v16320_v21 = vld [vmem:[#allocation2 + $0x230] sm:$0xf]  ;;  %v16328_v4 = vld [vmem:[#allocation2 + $0x208] sm:$0xff] }
 0x145   :  { %3324 = vmatpush1.msra.mxu0 %v16296_v9  ;;  %3357 = vmatprep.mubr.f32.mxu0 %v17572_v62  ;;  %17624 = vst [vmem:[#allocation40_spill] sm:$0xff] %v16320_v21  ;;  %17625 = vst [vmem:[#allocation41_spill] sm:$0xff] %v16328_v4 }
 0x146   :  { %3401 = vmatpush1.msra.mxu1 %v15947_v30  ;;  %3434 = vmatprep.mubr.f32.mxu1 %v17572_v62 }
 0x147   :  { %12403 = vmatmul.mubr.msk.f32.vlgmr.msra.gmra.mxu0 %vm189_vm1, %v16305_v23  ;;  %12407 = vmatmul.mubr.msk.f32.vlgmr.msra.gmra.mxu1 %vm189_vm1, %v16305_v23  ;;  %v613_v25 = vpop.f32.mrf.mxu0  ;;  %v690_v28 = vpop.f32.mrf.mxu1 }
 0x148   :  { %12409 = vmatprep.subr.msk.mxu0 %vm196_vm0, %v16311_v47  ;;  %12413 = vmatprep.subr.msk.mxu1 %vm196_vm0, %v15957_v32  ;;  %v614_v30 = vadd.f32 %v613_v25, %v16189_v52  ;;  %v16318_v57 = vadd.f32 %v690_v28, %v435_v8  ;;  %v16334_v32 = vld [vmem:[#allocation2 + $0x200] sm:$0xff]  ;;  %v16347_v8 = vld [vmem:[#allocation2 + $0x1d8] sm:$0xff]  ;;  %v16354_v28 = vld [vmem:[#allocation2 + $0x1d0] sm:$0xff] }
 0x149   :  { %12410 = vmatpush1.msk.msra.mxu0 %vm196_vm0, %v16320_v21  ;;  %12414 = vmatpush1.msk.msra.mxu1 %vm196_vm0, %v15963_v34  ;;  %v615_v14 = vpop.f32.mrf.mxu0  ;;  %v16326_v9 = vpop.f32.mrf.mxu1  ;;  %17626 = vst [vmem:[#allocation42_spill] sm:$0xff] %v16334_v32  ;;  %v16341_v34 = vld [vmem:[%s17490_s0 + $0x9] sm:$0x3f] }
 0x14a   :  { %3473 = vmatprep.subr.mxu0 %v16328_v4  ;;  %3562 = vmatprep.subr.mxu1 %v15969_v38  ;;  %v16362_v21 = vld [vmem:[#allocation2 + $0x1a8] sm:$0xff] }
 0x14b   :  { %3363 = vmatprep.mubr.f32.mxu0 %v17572_v62  ;;  %3440 = vmatprep.mubr.f32.mxu1 %v17572_v62 }
 0x14c   :  { %3474 = vmatpush1.msra.mxu0 %v16334_v32  ;;  %3563 = vmatpush1.msra.mxu1 %v15975_v40 }
 0x14d   :  { %12404 = vmatmul.mubr.msk.f32.gmra.mxu0 %vm189_vm1, %v16341_v34  ;;  %12408 = vmatmul.mubr.msk.f32.gmra.mxu1 %vm189_vm1, %v16341_v34  ;;  %v619_v38 = vpop.f32.mrf.mxu0  ;;  %v696_v52 = vpop.f32.mrf.mxu1 }
 0x14e   :  { %3475 = vmatprep.subr.mxu0 %v16347_v8  ;;  %3564 = vmatprep.subr.mxu1 %v15983_v45  ;;  %v620_v40 = vadd.f32 %v619_v38, %v16222_v5  ;;  %v16352_v25 = vadd.f32 %v696_v52, %v441_v16  ;;  %v16366_v45 = vld [vmem:[#allocation2 + $0x1a0] sm:$0xff]  ;;  %v16376_v16 = vld [vmem:[#allocation2 + $0x2e8] sm:$0xf] }
 0x14f   :  { %3476 = vmatpush1.msra.mxu0 %v16354_v28  ;;  %3565 = vmatpush1.msra.mxu1 %v15987_v49  ;;  %v16358_v32 = vpop.f32.mrf.mxu0  ;;  %v16360_v4 = vpop.f32.mrf.mxu1  ;;  %17629 = vst [vmem:[#allocation43_spill] sm:$0xff] %v16376_v16  ;;  %v16386_v52 = vld [vmem:[#allocation2 + $0x2e0] sm:$0xf] }
 0x150   :  { %17627 = vst [vmem:[#allocation44_spill] sm:$0xff] %v16358_v32  ;;  %17628 = vst [vmem:[#allocation45_spill] sm:$0xff] %v16360_v4  ;;  %3477 = vmatprep.subr.mxu0 %v16362_v21  ;;  %3566 = vmatprep.subr.mxu1 %v15991_v51  ;;  %v616_v51 = vadd.f32 %v615_v14, %v16205_v24  ;;  %v16400_v24 = vld [vmem:[#allocation2 + $0x2b0] sm:$0xff] }
 0x151   :  { %3478 = vmatpush1.msra.mxu0 %v16366_v45  ;;  %3511 = vmatprep.mubr.f32.mxu0 %v17572_v62 }
 0x152   :  { %3567 = vmatpush1.msra.mxu1 %v15995_v55  ;;  %3600 = vmatprep.mubr.f32.mxu1 %v17572_v62 }
 0x153   :  { %12411 = vmatmul.mubr.msk.f32.vlgmr.msra.gmra.mxu0 %vm189_vm1, %v16305_v23  ;;  %12415 = vmatmul.mubr.msk.f32.vlgmr.msra.gmra.mxu1 %vm189_vm1, %v16038_v2  ;;  %v819_v49 = vpop.f32.mrf.mxu0  ;;  %v896_v5 = vpop.f32.mrf.mxu1 }
 0x154   :  { %12417 = vmatprep.subr.msk.mxu0 %vm196_vm0, %v16376_v16  ;;  %12421 = vmatprep.subr.msk.mxu1 %vm196_vm0, %v16005_v59  ;;  %v984_v55 = vadd.f32 %v819_v49, %v16254_v10  ;;  %v16384_v38 = vadd.f32 %v896_v5, %v614_v30  ;;  %v16392_v16 = vld [vmem:[#allocation2 + $0x2b8] sm:$0xff]  ;;  %v16408_v10 = vld [vmem:[#allocation2 + $0x288] sm:$0xff] }
 0x155   :  { %12418 = vmatpush1.msk.msra.mxu0 %vm196_vm0, %v16386_v52  ;;  %12422 = vmatpush1.msk.msra.mxu1 %vm196_vm0, %v16011_v63  ;;  %v821_v4 = vpop.f32.mrf.mxu0  ;;  %v898_v32 = vpop.f32.mrf.mxu1  ;;  %v16423_v5 = vld [vmem:[#allocation2 + $0x258] sm:$0xff] }
 0x156   :  { %3639 = vmatprep.subr.mxu0 %v16392_v16  ;;  %3716 = vmatprep.subr.mxu1 %v16017_v41  ;;  %v16396_v59 = vadd.f32 %v898_v32, %v616_v51  ;;  %v16415_v32 = vld [vmem:[#allocation2 + $0x280] sm:$0xff]  ;;  %v16441_v51 = vld [vmem:[#allocation2 + $0x398] sm:$0xf] }
 0x157   :  { %3517 = vmatprep.mubr.f32.mxu0 %v17572_v62  ;;  %3606 = vmatprep.mubr.f32.mxu1 %v17572_v62 }
 0x158   :  { %3640 = vmatpush1.msra.mxu0 %v16400_v24  ;;  %3717 = vmatpush1.msra.mxu1 %v16023_v17 }
 0x159   :  { %12412 = vmatmul.mubr.msk.f32.gmra.mxu0 %vm189_vm1, %v16341_v34  ;;  %12416 = vmatmul.mubr.msk.f32.gmra.mxu1 %vm189_vm1, %v16067_v56  ;;  %v825_v63 = vpop.f32.mrf.mxu0  ;;  %v902_v41 = vpop.f32.mrf.mxu1 }
 0x15a   :  { %3641 = vmatprep.subr.mxu0 %v16408_v10  ;;  %3718 = vmatprep.subr.mxu1 %v16031_v44  ;;  %v990_v14 = vadd.f32 %v825_v63, %v16282_v19  ;;  %v16413_v30 = vadd.f32 %v902_v41, %v620_v40  ;;  %v16427_v44 = vld [vmem:[#allocation2 + $0x250] sm:$0xff]  ;;  %v16479_v41 = vld [vmem:[%s17490_s0 + $0x21] sm:$0xff] }
 0x15b   :  { %3642 = vmatpush1.msra.mxu0 %v16415_v32  ;;  %3719 = vmatpush1.msra.mxu1 %v16040_v7  ;;  %v16419_v17 = vpop.f32.mrf.mxu0  ;;  %v16421_v49 = vpop.f32.mrf.mxu1  ;;  %v539_v7 = vadd.f32 %v16264_v0, %v16203_v61  ;;  %v16450_v63 = vld [vmem:[#allocation2 + $0x390] sm:$0xf] }
 0x15c   :  { %3643 = vmatprep.subr.mxu0 %v16423_v5  ;;  %3720 = vmatprep.subr.mxu1 %v16044_v11  ;;  %v693_v11 = vadd.f32 %v16326_v9, %v16262_v12  ;;  %v16456_v9 = vld [vmem:[#allocation2 + $0x368] sm:$0xff] }
 0x15d   :  { %3644 = vmatpush1.msra.mxu0 %v16427_v44  ;;  %3677 = vmatprep.mubr.f32.mxu0 %v17572_v62 }
 0x15e   :  { %3721 = vmatpush1.msra.mxu1 %v16048_v13  ;;  %3754 = vmatprep.mubr.f32.mxu1 %v17572_v62  ;;  %v985_v13 = vadd.f32 %v821_v4, %v539_v7 }
 0x15f   :  { %12419 = vmatmul.mubr.msk.f32.vlgmr.msra.gmra.mxu0 %vm189_vm1, %v16038_v2  ;;  %12423 = vmatmul.mubr.msk.f32.vlgmr.msra.gmra.mxu1 %vm189_vm1, %v16038_v2  ;;  %v973_v19 = vpop.f32.mrf.mxu0  ;;  %v1114_v40 = vpop.f32.mrf.mxu1 }
 0x160   :  { %12427 = vmatprep.subr.msk.mxu0 %vm196_vm0, %v16441_v51  ;;  %12431 = vmatprep.subr.msk.mxu1 %vm196_vm0, %v16058_v46  ;;  %v988_v61 = vadd.f32 %v973_v19, %v16318_v57  ;;  %v16448_v0 = vadd.f32 %v1114_v40, %v984_v55  ;;  %v16464_v57 = vld [vmem:[#allocation2 + $0x360] sm:$0xff]  ;;  %v16472_v55 = vld [vmem:[#allocation2 + $0x338] sm:$0xff] }
 0x161   :  { %12428 = vmatpush1.msk.msra.mxu0 %vm196_vm0, %v16450_v63  ;;  %12432 = vmatpush1.msk.msra.mxu1 %vm196_vm0, %v16069_v35  ;;  %v975_v2 = vpop.f32.mrf.mxu0  ;;  %v1116_v12 = vpop.f32.mrf.mxu1  ;;  %v16496_v40 = vld [vmem:[#allocation2 + $0x300] sm:$0xff] }
 0x162   :  { %3813 = vmatprep.subr.mxu0 %v16456_v9  ;;  %3890 = vmatprep.subr.mxu1 %v16075_v15  ;;  %v989_v46 = vadd.f32 %v975_v2, %v693_v11  ;;  %v16460_v4 = vadd.f32 %v1116_v12, %v985_v13  ;;  %v16484_v11 = vld [vmem:[#allocation2 + $0x330] sm:$0xff]  ;;  %v16517_v13 = vld [vmem:[%s17490_s0 + $0x29] sm:$0x3f] }
 0x163   :  { %3683 = vmatprep.mubr.f32.mxu0 %v17572_v62  ;;  %3760 = vmatprep.mubr.f32.mxu1 %v17572_v62 }
 0x164   :  { %3814 = vmatpush1.msra.mxu0 %v16464_v57  ;;  %3891 = vmatpush1.msra.mxu1 %v16081_v18 }
 0x165   :  { %12420 = vmatmul.mubr.msk.f32.gmra.mxu0 %vm189_vm1, %v16067_v56  ;;  %12424 = vmatmul.mubr.msk.f32.gmra.mxu1 %vm189_vm1, %v16067_v56  ;;  %v979_v35 = vpop.f32.mrf.mxu0  ;;  %v1120_v15 = vpop.f32.mrf.mxu1 }
 0x166   :  { %3815 = vmatprep.subr.mxu0 %v16472_v55  ;;  %3892 = vmatprep.subr.mxu1 %v16089_v20  ;;  %v994_v18 = vadd.f32 %v979_v35, %v16352_v25  ;;  %v16482_v7 = vadd.f32 %v1120_v15, %v990_v14  ;;  %v16492_v20 = vld [vmem:[#allocation2 + $0x308] sm:$0xff]  ;;  %v16500_v25 = vld [vmem:[#allocation2 + $0x310] sm:$0xff]  ;;  %v16508_v14 = vld [vmem:[#allocation2 + $0x3b8] sm:$0xf] }
 0x167   :  { %3816 = vmatpush1.msra.mxu0 %v16484_v11  ;;  %3893 = vmatpush1.msra.mxu1 %v16093_v43  ;;  %v16488_v56 = vpop.f32.mrf.mxu0  ;;  %v16490_v19 = vpop.f32.mrf.mxu1  ;;  %v16522_v35 = vld [vmem:[#allocation2 + $0x3b0] sm:$0xf] }
 0x168   :  { %17630 = vst [vmem:[#allocation46_spill] sm:$0xff] %v16488_v56  ;;  %17631 = vst [vmem:[#allocation47_spill] sm:$0xff] %v16490_v19  ;;  %3817 = vmatprep.subr.mxu0 %v16492_v20  ;;  %3894 = vmatprep.subr.mxu1 %v16097_v22  ;;  %v16560_v56 = vld [vmem:[#allocation2 + $0x328] sm:$0xff] }
 0x169   :  { %3818 = vmatpush1.msra.mxu0 %v16496_v40  ;;  %3851 = vmatprep.mubr.f32.mxu0 %v17572_v62 }
 0x16a   :  { %3895 = vmatpush1.msra.mxu1 %v16500_v25  ;;  %3928 = vmatprep.mubr.f32.mxu1 %v17572_v62 }
 0x16b   :  { %12429 = vmatmul.mubr.msk.f32.vlgmr.msra.gmra.mxu0 %vm189_vm1, %v16479_v41  ;;  %12433 = vmatmul.mubr.msk.f32.vlgmr.msra.gmra.mxu1 %vm189_vm1, %v16479_v41  ;;  %v1191_v43 = vpop.f32.mrf.mxu0  ;;  %v1268_v22 = vpop.f32.mrf.mxu1 }
 0x16c   :  { %12435 = vmatprep.subr.msk.mxu0 %vm196_vm0, %v16508_v14  ;;  %12439 = vmatprep.subr.msk.mxu1 %vm196_vm0, %v16109_v48  ;;  %v1281_v2 = vadd.f32 %v1191_v43, %v16384_v38  ;;  %v16520_v12 = vadd.f32 %v1268_v22, %v988_v61  ;;  %v16528_v48 = vld [vmem:[#allocation2 + $0x388] sm:$0xff]  ;;  %v16537_v43 = vld [vmem:[#allocation2 + $0x380] sm:$0xff]  ;;  %v16552_v22 = vld [vmem:[#allocation2 + $0x350] sm:$0xff] }
 0x16d   :  { %12436 = vmatpush1.msk.msra.mxu0 %vm196_vm0, %v16522_v35  ;;  %12440 = vmatpush1.msk.msra.mxu1 %vm196_vm0, %v16114_v50  ;;  %v1193_v15 = vpop.f32.mrf.mxu0  ;;  %v1270_v19 = vpop.f32.mrf.mxu1 }
 0x16e   :  { %3967 = vmatprep.subr.mxu0 %v16528_v48  ;;  %4056 = vmatprep.subr.mxu1 %v16119_v1  ;;  %v1282_v38 = vadd.f32 %v1193_v15, %v16396_v59  ;;  %v16533_v61 = vadd.f32 %v1270_v19, %v989_v46  ;;  %v16545_v59 = vld [vmem:[#allocation2 + $0x358] sm:$0xff] }
 0x16f   :  { %3857 = vmatprep.mubr.f32.mxu0 %v17572_v62  ;;  %3934 = vmatprep.mubr.f32.mxu1 %v17572_v62 }
 0x170   :  { %3968 = vmatpush1.msra.mxu0 %v16537_v43  ;;  %4057 = vmatpush1.msra.mxu1 %v16124_v27 }
 0x171   :  { %12430 = vmatmul.mubr.msk.f32.gmra.mxu0 %vm189_vm1, %v16517_v13  ;;  %12434 = vmatmul.mubr.msk.f32.gmra.mxu1 %vm189_vm1, %v16517_v13  ;;  %v1197_v50 = vpop.f32.mrf.mxu0  ;;  %v1274_v1 = vpop.f32.mrf.mxu1 }
 0x172   :  { %3969 = vmatprep.subr.mxu0 %v16545_v59  ;;  %4058 = vmatprep.subr.mxu1 %v16131_v31  ;;  %v1287_v46 = vadd.f32 %v1197_v50, %v16413_v30  ;;  %v16550_v19 = vadd.f32 %v1274_v1, %v994_v18  ;;  %v16564_v31 = vld [vmem:[#allocation2 + $0x320] sm:$0xff]  ;;  %v14571_v18 = vld [vmem:[#allocation2 + $0x168] sm:$0xf] }
 0x173   :  { %3970 = vmatpush1.msra.mxu0 %v16552_v22  ;;  %4059 = vmatpush1.msra.mxu1 %v16134_v36  ;;  %v16556_v27 = vpop.f32.mrf.mxu0  ;;  %v16558_v15 = vpop.f32.mrf.mxu1  ;;  %v14572_v50 = vld [vmem:[#allocation2 + $0x160] sm:$0xf] }
 0x174   :  { %17632 = vst [vmem:[#allocation48_spill] sm:$0xff] %v16556_v27  ;;  %17633 = vst [vmem:[#allocation49_spill] sm:$0xff] %v16558_v15  ;;  %3971 = vmatprep.subr.mxu0 %v16560_v56  ;;  %4060 = vmatprep.subr.mxu1 %v16137_v42  ;;  %v14573_v27 = vld [vmem:[#allocation2 + $0x138] sm:$0xff] }
 0x175   :  { %3972 = vmatpush1.msra.mxu0 %v16564_v31  ;;  %4005 = vmatprep.mubr.f32.mxu0 %v17572_v62 }
 0x176   :  { %4061 = vmatpush1.msra.mxu1 %v16140_v53  ;;  %4094 = vmatprep.mubr.f32.mxu1 %v17572_v62 }
 0x177   :  { %12437 = vmatmul.mubr.msk.f32.vlgmr.msra.gmra.mxu0 %vm189_vm1, %v16479_v41  ;;  %12441 = vmatmul.mubr.msk.f32.vlgmr.msra.gmra.mxu1 %vm189_vm1, %v16305_v23  ;;  %v1408_v36 = vpop.f32.mrf.mxu0  ;;  %v1485_v30 = vpop.f32.mrf.mxu1 }
 0x178   :  { %12443 = vmatprep.subr.msk.mxu0 %vm196_vm0, %v14571_v18  ;;  %12447 = vmatprep.subr.msk.mxu1 %vm196_vm0, %v16150_v58  ;;  %v16578_v42 = vadd.f32 %v1408_v36, %v16448_v0  ;;  %v16580_v53 = vadd.f32 %v1485_v30, %v1281_v2  ;;  %v14574_v0 = vld [vmem:[#allocation2 + $0x130] sm:$0xff] }
 0x179   :  { %12444 = vmatpush1.msk.msra.mxu0 %vm196_vm0, %v14572_v50  ;;  %12448 = vmatpush1.msk.msra.mxu1 %vm196_vm0, %v16155_v60  ;;  %v1410_v1 = vpop.f32.mrf.mxu0  ;;  %v1487_v15 = vpop.f32.mrf.mxu1  ;;  %v17635_v2 = vld [vmem:[#allocation23_spill] sm:$0xff]  ;;  %v14577_v50 = vld [vmem:[#allocation2 + $0xd8] sm:$0xff] }
 0x17a   :  { %4133 = vmatprep.subr.mxu0 %v14573_v27  ;;  %4210 = vmatprep.subr.mxu1 %v16160_v54  ;;  %v16587_v18 = vadd.f32 %v1410_v1, %v16460_v4  ;;  %v16589_v58 = vadd.f32 %v1487_v15, %v1282_v38  ;;  %v14575_v4 = vld [vmem:[#allocation2 + $0x108] sm:$0xff]  ;;  %v14576_v15 = vld [vmem:[#allocation2 + $0x100] sm:$0xff] }
 0x17b   :  { %4011 = vmatprep.mubr.f32.mxu0 %v17572_v62  ;;  %4100 = vmatprep.mubr.f32.mxu1 %v17572_v62  ;;  %v17640_v1 = vld [vmem:[#allocation25_spill] sm:$0xff] }
 0x17c   :  { %17634 = vst [vmem:[#allocation50_spill] sm:$0xff] %v16589_v58  ;;  %4134 = vmatpush1.msra.mxu0 %v14574_v0  ;;  %4211 = vmatpush1.msra.mxu1 %v16165_v37  ;;  %v17637_v37 = vld [vmem:[#allocation24_spill] sm:$0xff]  ;;  %v17656_v58 = vld [vmem:[#allocation41_spill] sm:$0xff] }
 0x17d   :  { %12438 = vmatmul.mubr.msk.f32.gmra.mxu0 %vm189_vm1, %v16517_v13  ;;  %12442 = vmatmul.mubr.msk.f32.gmra.mxu1 %vm189_vm1, %v16341_v34  ;;  %v1414_v60 = vpop.f32.mrf.mxu0  ;;  %v1491_v54 = vpop.f32.mrf.mxu1  ;;  %v14578_v0 = vld [vmem:[#allocation2 + $0xd0] sm:$0xff] }
 0x17e   :  { %4135 = vmatprep.subr.mxu0 %v14575_v4  ;;  %4212 = vmatprep.subr.mxu1 %v17635_v2  ;;  %v16600_v38 = vadd.f32 %v1414_v60, %v16482_v7  ;;  %v16602_v27 = vadd.f32 %v1491_v54, %v1287_v46  ;;  %v14579_v7 = vld [vmem:[#allocation2 + $0xe0] sm:$0xff]  ;;  %v14580_v54 = vld [vmem:[#allocation2 + $0x98] sm:$0xf] }
 0x17f   :  { %4136 = vmatpush1.msra.mxu0 %v14576_v15  ;;  %4213 = vmatpush1.msra.mxu1 %v17637_v37  ;;  %v16605_v36 = vpop.f32.mrf.mxu0  ;;  %v16607_v30 = vpop.f32.mrf.mxu1  ;;  %v17641_v4 = vld [vmem:[#allocation26_spill] sm:$0xff]  ;;  %v14581_v15 = vld [vmem:[#allocation2 + $0x90] sm:$0xf] }
 0x180   :  { %17636 = vst [vmem:[#allocation23_spill] sm:$0xff] %v16602_v27  ;;  %17638 = vst [vmem:[#allocation24_spill] sm:$0xff] %v16605_v36  ;;  %4137 = vmatprep.subr.mxu0 %v14577_v50  ;;  %4214 = vmatprep.subr.mxu1 %v17640_v1  ;;  %v17642_v37 = vld [vmem:[#allocation27_spill] sm:$0xff]  ;;  %v17653_v27 = vld [vmem:[#allocation38_spill] sm:$0xff] }
 0x181   :  { %17639 = vst [vmem:[#allocation51_spill] sm:$0xff] %v16607_v30  ;;  %4138 = vmatpush1.msra.mxu0 %v14578_v0  ;;  %4171 = vmatprep.mubr.f32.mxu0 %v17572_v62  ;;  %v14582_v1 = vld [vmem:[#allocation2 + $0x68] sm:$0xff]  ;;  %v17643_v0 = vld [vmem:[#allocation28_spill] sm:$0xff] }
 0x182   :  { %4215 = vmatpush1.msra.mxu1 %v14579_v7  ;;  %4248 = vmatprep.mubr.f32.mxu1 %v17572_v62  ;;  %v17654_v30 = vld [vmem:[#allocation39_spill] sm:$0xff] }
 0x183   :  { %12445 = vmatmul.mubr.msk.f32.vlgmr.msra.gmra.mxu0 %vm189_vm1, %v16305_v23  ;;  %12449 = vmatmul.mubr.msk.f32.vlgmr.msra.gmra.mxu1 %vm189_vm1, %v16305_v23  ;;  %v1562_v46 = vpop.f32.mrf.mxu0  ;;  %v16616_v60 = vpop.f32.mrf.mxu1 }
 0x184   :  { %12451 = vmatprep.subr.msk.mxu0 %vm196_vm0, %v14580_v54  ;;  %12455 = vmatprep.subr.msk.mxu1 %vm196_vm0, %v17641_v4  ;;  %v16622_v2 = vadd.f32 %v1562_v46, %v16520_v12  ;;  %v14583_v12 = vld [vmem:[#allocation2 + $0x60] sm:$0xff] }
 0x185   :  { %12452 = vmatpush1.msk.msra.mxu0 %vm196_vm0, %v14581_v15  ;;  %12456 = vmatpush1.msk.msra.mxu1 %vm196_vm0, %v17642_v37  ;;  %v1564_v50 = vpop.f32.mrf.mxu0  ;;  %v16627_v23 = vpop.f32.mrf.mxu1  ;;  %v17645_v46 = vld [vmem:[#allocation29_spill] sm:$0xff]  ;;  %v14585_v37 = vld [vmem:[#allocation2 + $0x30] sm:$0xff] }
 0x186   :  { %4287 = vmatprep.subr.mxu0 %v14582_v1  ;;  %4364 = vmatprep.subr.mxu1 %v17643_v0  ;;  %v16631_v7 = vadd.f32 %v1564_v50, %v16533_v61  ;;  %v14584_v15 = vld [vmem:[#allocation2 + $0x38] sm:$0xff]  ;;  %v14586_v0 = vld [vmem:[#allocation2 + $0x8] sm:$0xff] }
 0x187   :  { %4177 = vmatprep.mubr.f32.mxu0 %v17572_v62  ;;  %4254 = vmatprep.mubr.f32.mxu1 %v17572_v62 }
 0x188   :  { %17644 = vst [vmem:[#allocation25_spill] sm:$0xff] %v16631_v7  ;;  %4288 = vmatpush1.msra.mxu0 %v14583_v12  ;;  %4365 = vmatpush1.msra.mxu1 %v17645_v46  ;;  %v14590_v46 = vld [vmem:[#allocation2 + $0xb0] sm:$0xf]  ;;  %v14601_v7 = vld [vmem:[#allocation2 + $0x1f8] sm:$0xff] }
 0x189   :  { %12446 = vmatmul.mubr.msk.f32.gmra.mxu0 %vm189_vm1, %v16341_v34  ;;  %12450 = vmatmul.mubr.msk.f32.gmra.mxu1 %vm189_vm1, %v16341_v34  ;;  %v1568_v54 = vpop.f32.mrf.mxu0  ;;  %v16640_v4 = vpop.f32.mrf.mxu1  ;;  %v14587_v34 = vld [vmem:[#allocation2] sm:$0xff] }
 0x18a   :  { %4289 = vmatprep.subr.mxu0 %v14584_v15  ;;  %4366 = vmatprep.subr.mxu1 %v16224_v39  ;;  %v16644_v61 = vadd.f32 %v1568_v54, %v16550_v19  ;;  %v17648_v39 = vld [vmem:[#allocation32_spill] sm:$0xff] }
 0x18b   :  { %4290 = vmatpush1.msra.mxu0 %v14585_v37  ;;  %4367 = vmatpush1.msra.mxu1 %v16228_v3  ;;  %v16647_v50 = vpop.f32.mrf.mxu0  ;;  %v16649_v1 = vpop.f32.mrf.mxu1  ;;  %v14588_v3 = vld [vmem:[%s17490_s0 + $0x30] sm:$0xff]  ;;  %v14591_v37 = vld [vmem:[#allocation2 + $0x88] sm:$0xff] }
 0x18c   :  { %17646 = vst [vmem:[#allocation26_spill] sm:$0xff] %v16644_v61  ;;  %17647 = vst [vmem:[#allocation27_spill] sm:$0xff] %v16647_v50  ;;  %4291 = vmatprep.subr.mxu0 %v14586_v0  ;;  %4368 = vmatprep.subr.mxu1 %v16236_v26  ;;  %v14589_v26 = vld [vmem:[#allocation2 + $0xb8] sm:$0xf]  ;;  %v17649_v0 = vld [vmem:[#allocation33_spill] sm:$0xff] }
 0x18d   :  { %4292 = vmatpush1.msra.mxu0 %v14587_v34  ;;  %4325 = vmatprep.mubr.f32.mxu0 %v17572_v62  ;;  %v14592_v34 = vld [vmem:[#allocation2 + $0x80] sm:$0xff]  ;;  %v14596_v61 = vld [vmem:[#allocation2 + $0x28] sm:$0xff] }
 0x18e   :  { %4369 = vmatpush1.msra.mxu1 %v17648_v39  ;;  %4402 = vmatprep.mubr.f32.mxu1 %v17572_v62  ;;  %v14593_v39 = vld [vmem:[%s17490_s0 + $0x38] sm:$0x3f]  ;;  %v14597_v50 = vld [vmem:[#allocation2 + $0x20] sm:$0xff] }
 0x18f   :  { %12453 = vmatmul.mubr.msk.f32.vlgmr.msra.gmra.mxu0 %vm189_vm1, %v14588_v3  ;;  %12457 = vmatmul.mubr.msk.f32.vlgmr.msra.gmra.mxu1 %vm189_vm1, %v14588_v3  ;;  %v1728_v19 = vpop.f32.mrf.mxu0  ;;  %v16660_v12 = vpop.f32.mrf.mxu1 }
 0x190   :  { %12459 = vmatprep.subr.msk.mxu0 %vm196_vm0, %v14589_v26  ;;  %12463 = vmatprep.subr.msk.mxu1 %vm196_vm0, %v16248_v29  ;;  %v17650_v29 = vld [vmem:[#allocation34_spill] sm:$0xff] }
 0x191   :  { %12460 = vmatpush1.msk.msra.mxu0 %vm196_vm0, %v14590_v46  ;;  %12464 = vmatpush1.msk.msra.mxu1 %vm196_vm0, %v16256_v6  ;;  %v1730_v54 = vpop.f32.mrf.mxu0  ;;  %v16668_v15 = vpop.f32.mrf.mxu1  ;;  %v14594_v46 = vld [vmem:[#allocation2 + $0x58] sm:$0xff] }
 0x192   :  { %4441 = vmatprep.subr.mxu0 %v14591_v37  ;;  %4518 = vmatprep.subr.mxu1 %v17649_v0  ;;  %v17651_v37 = vld [vmem:[#allocation35_spill] sm:$0xff] }
 0x193   :  { %4331 = vmatprep.mubr.f32.mxu0 %v17572_v62  ;;  %4408 = vmatprep.mubr.f32.mxu1 %v17572_v62  ;;  %v14595_v0 = vld [vmem:[#allocation2 + $0x50] sm:$0xff] }
 0x194   :  { %4442 = vmatpush1.msra.mxu0 %v14592_v34  ;;  %4519 = vmatpush1.msra.mxu1 %v17650_v29 }
 0x195   :  { %12454 = vmatmul.mubr.msk.f32.gmra.mxu0 %vm189_vm1, %v14593_v39  ;;  %12458 = vmatmul.mubr.msk.f32.gmra.mxu1 %vm189_vm1, %v14593_v39  ;;  %v1734_v6 = vpop.f32.mrf.mxu0  ;;  %v16679_v26 = vpop.f32.mrf.mxu1 }
 0x196   :  { %4443 = vmatprep.subr.mxu0 %v14594_v46  ;;  %4520 = vmatprep.subr.mxu1 %v17651_v37  ;;  %v14599_v37 = vld [vmem:[#allocation2 + $0x228] sm:$0xf] }
 0x197   :  { %4444 = vmatpush1.msra.mxu0 %v14595_v0  ;;  %4521 = vmatpush1.msra.mxu1 %v16284_v33  ;;  %v16683_v34 = vpop.f32.mrf.mxu0  ;;  %v16685_v29 = vpop.f32.mrf.mxu1  ;;  %v14598_v33 = vld [vmem:[%s17490_s0 + $0x11] sm:$0xff] }
 0x198   :  { %17652 = vst [vmem:[#allocation28_spill] sm:$0xff] %v16685_v29  ;;  %4445 = vmatprep.subr.mxu0 %v14596_v61  ;;  %4522 = vmatprep.subr.mxu1 %v17653_v27 }
 0x199   :  { %4446 = vmatpush1.msra.mxu0 %v14597_v50  ;;  %4479 = vmatprep.mubr.f32.mxu0 %v17572_v62  ;;  %v14600_v50 = vld [vmem:[#allocation2 + $0x220] sm:$0xf] }
 0x19a   :  { %4523 = vmatpush1.msra.mxu1 %v17654_v30  ;;  %4556 = vmatprep.mubr.f32.mxu1 %v17572_v62 }
 0x19b   :  { %12461 = vmatmul.mubr.msk.f32.vlgmr.msra.gmra.mxu0 %vm189_vm1, %v14588_v3  ;;  %12465 = vmatmul.mubr.msk.f32.vlgmr.msra.gmra.mxu1 %vm189_vm1, %v14598_v33  ;;  %v1882_v46 = vpop.f32.mrf.mxu0  ;;  %v1959_v61 = vpop.f32.mrf.mxu1  ;;  %v17655_v3 = vld [vmem:[#allocation40_spill] sm:$0xff] }
 0x19c   :  { %12467 = vmatprep.subr.msk.mxu0 %vm196_vm0, %v14599_v37  ;;  %12471 = vmatprep.subr.msk.mxu1 %vm196_vm0, %v16311_v47  ;;  %v1883_v27 = vadd.f32 %v1882_v46, %v16616_v60  ;;  %v16700_v30 = vadd.f32 %v1959_v61, %v1728_v19  ;;  %v14602_v47 = vld [vmem:[#allocation2 + $0x1f0] sm:$0xff]  ;;  %v17657_v60 = vld [vmem:[#allocation42_spill] sm:$0xff] }
 0x19d   :  { %12468 = vmatpush1.msk.msra.mxu0 %vm196_vm0, %v14600_v50  ;;  %12472 = vmatpush1.msk.msra.mxu1 %vm196_vm0, %v17655_v3  ;;  %v1884_v0 = vpop.f32.mrf.mxu0  ;;  %v1961_v36 = vpop.f32.mrf.mxu1  ;;  %v14605_v46 = vld [vmem:[#allocation2 + $0x1c0] sm:$0xff]  ;;  %v14606_v50 = vld [vmem:[#allocation2 + $0x198] sm:$0xff]  ;;  %v14607_v3 = vld [vmem:[#allocation2 + $0x190] sm:$0xff] }
 0x19e   :  { %4595 = vmatprep.subr.mxu0 %v14601_v7  ;;  %4672 = vmatprep.subr.mxu1 %v17656_v58  ;;  %v1885_v37 = vadd.f32 %v1884_v0, %v16627_v23  ;;  %v16707_v29 = vadd.f32 %v1961_v36, %v1730_v54  ;;  %v14603_v7 = vld [vmem:[%s17490_s0 + $0x19] sm:$0x3f]  ;;  %v14604_v36 = vld [vmem:[#allocation2 + $0x1c8] sm:$0xff] }
 0x19f   :  { %4485 = vmatprep.mubr.f32.mxu0 %v17572_v62  ;;  %4562 = vmatprep.mubr.f32.mxu1 %v17572_v62 }
 0x1a0   :  { %4596 = vmatpush1.msra.mxu0 %v14602_v47  ;;  %4673 = vmatpush1.msra.mxu1 %v17657_v60  ;;  %v14609_v47 = vld [vmem:[#allocation2 + $0x2d0] sm:$0xf]  ;;  %v14610_v60 = vld [vmem:[#allocation2 + $0x2a8] sm:$0xff] }
 0x1a1   :  { %12462 = vmatmul.mubr.msk.f32.gmra.mxu0 %vm189_vm1, %v14593_v39  ;;  %12466 = vmatmul.mubr.msk.f32.gmra.mxu1 %vm189_vm1, %v14603_v7  ;;  %v1888_v58 = vpop.f32.mrf.mxu0  ;;  %v1965_v23 = vpop.f32.mrf.mxu1 }
 0x1a2   :  { %4597 = vmatprep.subr.mxu0 %v14604_v36  ;;  %4674 = vmatprep.subr.mxu1 %v16347_v8  ;;  %v1889_v19 = vadd.f32 %v1888_v58, %v16640_v4  ;;  %v16719_v54 = vadd.f32 %v1965_v23, %v1734_v6  ;;  %v14608_v4 = vld [vmem:[#allocation2 + $0x2d8] sm:$0xf]  ;;  %v17658_v6 = vld [vmem:[#allocation43_spill] sm:$0xff] }
 0x1a3   :  { %4598 = vmatpush1.msra.mxu0 %v14605_v46  ;;  %4675 = vmatpush1.msra.mxu1 %v16354_v28  ;;  %v16722_v39 = vpop.f32.mrf.mxu0  ;;  %v16724_v61 = vpop.f32.mrf.mxu1  ;;  %v14612_v36 = vld [vmem:[#allocation2 + $0x278] sm:$0xff] }
 0x1a4   :  { %4599 = vmatprep.subr.mxu0 %v14606_v50  ;;  %4676 = vmatprep.subr.mxu1 %v16362_v21  ;;  %v14614_v50 = vld [vmem:[#allocation2 + $0x248] sm:$0xff] }
 0x1a5   :  { %4600 = vmatpush1.msra.mxu0 %v14607_v3  ;;  %4633 = vmatprep.mubr.f32.mxu0 %v17572_v62 }
 0x1a6   :  { %4677 = vmatpush1.msra.mxu1 %v16366_v45  ;;  %4710 = vmatprep.mubr.f32.mxu1 %v17572_v62 }
 0x1a7   :  { %12469 = vmatmul.mubr.msk.f32.vlgmr.msra.gmra.mxu0 %vm189_vm1, %v14598_v33  ;;  %12473 = vmatmul.mubr.msk.f32.vlgmr.msra.gmra.mxu1 %vm189_vm1, %v14598_v33  ;;  %v2036_v8 = vpop.f32.mrf.mxu0  ;;  %v2113_v28 = vpop.f32.mrf.mxu1 }
 0x1a8   :  { %12475 = vmatprep.subr.msk.mxu0 %vm196_vm0, %v14608_v4  ;;  %12479 = vmatprep.subr.msk.mxu1 %vm196_vm0, %v17658_v6  ;;  %v2037_v21 = vadd.f32 %v2036_v8, %v16660_v12  ;;  %v16736_v0 = vadd.f32 %v2113_v28, %v1883_v27  ;;  %v14611_v12 = vld [vmem:[#allocation2 + $0x2a0] sm:$0xff]  ;;  %v14618_v28 = vld [vmem:[#allocation2 + $0x2c8] sm:$0xff] }
 0x1a9   :  { %12476 = vmatpush1.msk.msra.mxu0 %vm196_vm0, %v14609_v47  ;;  %12480 = vmatpush1.msk.msra.mxu1 %vm196_vm0, %v16386_v52  ;;  %v2038_v45 = vpop.f32.mrf.mxu0  ;;  %v2115_v33 = vpop.f32.mrf.mxu1  ;;  %v14621_v47 = vld [vmem:[#allocation2 + $0x290] sm:$0xff] }
 0x1aa   :  { %4761 = vmatprep.subr.mxu0 %v14610_v60  ;;  %4838 = vmatprep.subr.mxu1 %v16392_v16  ;;  %v2039_v58 = vadd.f32 %v2038_v45, %v16668_v15  ;;  %v16743_v23 = vadd.f32 %v2115_v33, %v1885_v37  ;;  %v14613_v37 = vld [vmem:[#allocation2 + $0x270] sm:$0xff]  ;;  %v14622_v33 = vld [vmem:[#allocation2 + $0x268] sm:$0xff]  ;;  %v14623_v60 = vld [vmem:[#allocation2 + $0x260] sm:$0xff] }
 0x1ab   :  { %4639 = vmatprep.mubr.f32.mxu0 %v17572_v62  ;;  %4716 = vmatprep.mubr.f32.mxu1 %v17572_v62 }
 0x1ac   :  { %4762 = vmatpush1.msra.mxu0 %v14611_v12  ;;  %4839 = vmatpush1.msra.mxu1 %v16400_v24 }
 0x1ad   :  { %12470 = vmatmul.mubr.msk.f32.gmra.mxu0 %vm189_vm1, %v14603_v7  ;;  %12474 = vmatmul.mubr.msk.f32.gmra.mxu1 %vm189_vm1, %v14603_v7  ;;  %v2042_v52 = vpop.f32.mrf.mxu0  ;;  %v2119_v27 = vpop.f32.mrf.mxu1  ;;  %v14615_v7 = vld [vmem:[#allocation2 + $0x240] sm:$0xff] }
 0x1ae   :  { %4763 = vmatprep.subr.mxu0 %v14612_v36  ;;  %4840 = vmatprep.subr.mxu1 %v16408_v10  ;;  %v2043_v16 = vadd.f32 %v2042_v52, %v16679_v26  ;;  %v16752_v15 = vadd.f32 %v2119_v27, %v1889_v19  ;;  %v14616_v26 = vld [vmem:[#allocation2 + $0x2f8] sm:$0xf] }
 0x1af   :  { %4764 = vmatpush1.msra.mxu0 %v14613_v37  ;;  %4841 = vmatpush1.msra.mxu1 %v16415_v32  ;;  %v16755_v46 = vpop.f32.mrf.mxu0  ;;  %v16757_v24 = vpop.f32.mrf.mxu1  ;;  %v14626_v27 = vld [vmem:[#allocation2 + $0x378] sm:$0xff]  ;;  %v14628_v37 = vld [vmem:[#allocation2 + $0x348] sm:$0xff] }
 0x1b0   :  { %4765 = vmatprep.subr.mxu0 %v14614_v50  ;;  %4842 = vmatprep.subr.mxu1 %v16423_v5 }
 0x1b1   :  { %4766 = vmatpush1.msra.mxu0 %v14615_v7  ;;  %4799 = vmatprep.mubr.f32.mxu0 %v17572_v62  ;;  %v14629_v7 = vld [vmem:[#allocation2 + $0x340] sm:$0xff] }
 0x1b2   :  { %4843 = vmatpush1.msra.mxu1 %v16427_v44  ;;  %4876 = vmatprep.mubr.f32.mxu1 %v17572_v62  ;;  %v14617_v44 = vld [vmem:[#allocation2 + $0x2f0] sm:$0xf] }
 0x1b3   :  { %12477 = vmatmul.mubr.msk.f32.vlgmr.msra.gmra.mxu0 %vm189_vm1, %v16479_v41  ;;  %12481 = vmatmul.mubr.msk.f32.vlgmr.msra.gmra.mxu1 %vm189_vm1, %v16479_v41  ;;  %v2190_v10 = vpop.f32.mrf.mxu0  ;;  %v2267_v32 = vpop.f32.mrf.mxu1 }
 0x1b4   :  { %12483 = vmatprep.subr.msk.mxu0 %vm196_vm0, %v14616_v26  ;;  %12489 = vmatprep.subr.msk.mxu1 %vm196_vm0, %v16441_v51  ;;  %v2280_v5 = vadd.f32 %v2190_v10, %v16700_v30  ;;  %v16771_v19 = vadd.f32 %v2267_v32, %v2037_v21  ;;  %v14619_v51 = vld [vmem:[#allocation2 + $0x2c0] sm:$0xff]  ;;  %v14620_v30 = vld [vmem:[#allocation2 + $0x298] sm:$0xff] }
 0x1b5   :  { %12484 = vmatpush1.msk.msra.mxu0 %vm196_vm0, %v14617_v44  ;;  %12490 = vmatpush1.msk.msra.mxu1 %vm196_vm0, %v16450_v63  ;;  %v2192_v3 = vpop.f32.mrf.mxu0  ;;  %v2269_v8 = vpop.f32.mrf.mxu1  ;;  %v13336_v26 = vld [vmem:[#allocation7 + $0x3c4] ss:$16 sps:$4 sm:$0xff]   ;;  %v2804_v44 = vlaneseq }
 0x1b6   :  { %4915 = vmatprep.subr.mxu0 %v14618_v28  ;;  %5012 = vmatprep.subr.mxu1 %v16456_v9  ;;  %v2281_v4 = vadd.f32 %v2192_v3, %v16707_v29  ;;  %v16778_v6 = vadd.f32 %v2269_v8, %v2039_v58 }
 0x1b7   :  { %4805 = vmatprep.mubr.f32.mxu0 %v17572_v62  ;;  %4882 = vmatprep.mubr.f32.mxu1 %v17572_v62 }
 0x1b8   :  { %4916 = vmatpush1.msra.mxu0 %v14619_v51  ;;  %5013 = vmatpush1.msra.mxu1 %v16464_v57 }
 0x1b9   :  { %12478 = vmatmul.mubr.msk.f32.gmra.mxu0 %vm189_vm1, %v16517_v13  ;;  %12482 = vmatmul.mubr.msk.f32.gmra.mxu1 %vm189_vm1, %v16517_v13  ;;  %v2196_v63 = vpop.f32.mrf.mxu0  ;;  %v2273_v9 = vpop.f32.mrf.mxu1 }
 0x1ba   :  { %4917 = vmatprep.subr.mxu0 %v14620_v30  ;;  %5014 = vmatprep.subr.mxu1 %v16472_v55  ;;  %v2286_v29 = vadd.f32 %v2196_v63, %v16719_v54  ;;  %v16789_v21 = vadd.f32 %v2273_v9, %v2043_v16  ;;  %v12487_v55 = vld [vmem:[%s17490_s0 + $0x31] sm:$0xff]  ;;  %v16855_v63 = vshrl.u32 %v2804_v44, 7 }
 0x1bb   :  { %4918 = vmatpush1.msra.mxu0 %v14621_v47  ;;  %5015 = vmatpush1.msra.mxu1 %v16484_v11  ;;  %v16792_v57 = vpop.f32.mrf.mxu0  ;;  %v16794_v45 = vpop.f32.mrf.mxu1  ;;  %v14627_v16 = vld [vmem:[#allocation2 + $0x370] sm:$0xff] }
 0x1bc   :  { %4919 = vmatprep.subr.mxu0 %v14622_v33  ;;  %5016 = vmatprep.subr.mxu1 %v16492_v20  ;;  %v14624_v20 = vld [vmem:[#allocation2 + $0x3a8] sm:$0xf]  ;;  %17659 = vst [vmem:[#allocation29_spill] sm:$0xff] %v16855_v63  ;;  %v17671_v44 = vld [vmem:[#allocation28_spill] sm:$0xff] }
 0x1bd   :  { %4920 = vmatpush1.msra.mxu0 %v14623_v60  ;;  %4953 = vmatprep.mubr.f32.mxu0 %v17572_v62  ;;  %v16866_v60 = vsub.s32 0, %v16855_v63 }
 0x1be   :  { %5017 = vmatpush1.msra.mxu1 %v16496_v40  ;;  %5050 = vmatprep.mubr.f32.mxu1 %v17572_v62  ;;  %v14625_v40 = vld [vmem:[#allocation2 + $0x3a0] sm:$0xf] }
 0x1bf   :  { %12485 = vmatmul.mubr.msk.f32.vlgmr.msra.gmra.mxu0 %vm189_vm1, %v16479_v41  ;;  %12491 = vmatmul.mubr.msk.f32.vlgmr.msra.gmra.mxu1 %vm189_vm1, %v12487_v55  ;;  %v2356_v11 = vpop.f32.mrf.mxu0  ;;  %v2433_v54 = vpop.f32.mrf.mxu1  ;;  %17661 = vst [vmem:[#allocation33_spill] sm:$0xff] %v16866_v60 }
 0x1c0   :  { %12493 = vmatprep.subr.msk.mxu0 %vm196_vm0, %v14624_v20  ;;  %12497 = vmatprep.subr.msk.mxu1 %vm196_vm0, %v16508_v14  ;;  %v2521_v58 = vadd.f32 %v2356_v11, %v16736_v0  ;;  %v16810_v12 = vadd.f32 %v2433_v54, %v2280_v5  ;;  %v12488_v14 = vld [vmem:[%s17490_s0 + $0x39] sm:$0x3f]  ;;  %v17662_v11 = vld [vmem:[#allocation30_spill] sm:$0xff]  ;;  %v17664_v20 = vld [vmem:[#allocation31_spill] sm:$0xff]  ;;  %s15319_s0 = smov [#allocation16]  }
 0x1c1   :  { %12494 = vmatpush1.msk.msra.mxu0 %vm196_vm0, %v14625_v40  ;;  %12498 = vmatpush1.msk.msra.mxu1 %vm196_vm0, %v16522_v35  ;;  %v2358_v41 = vpop.f32.mrf.mxu0  ;;  %v2435_v52 = vpop.f32.mrf.mxu1  ;;  %v17663_v54 = vld [vmem:[#allocation37_spill] sm:$0xff]  ;;  %s12236_s4 = sshll.u32 %s15319_s0, 4  ;;  %s12237_s4 = int_to_ptr.vmem [resolvable:$true] %s12236_s4 }
 0x1c2   :  { %5089 = vmatprep.subr.mxu0 %v14626_v27  ;;  %5166 = vmatprep.subr.mxu1 %v16528_v48  ;;  %v2522_v0 = vadd.f32 %v2358_v41, %v16743_v23  ;;  %v16820_v36 = vadd.f32 %v2435_v52, %v2281_v4  ;;  %v13334_v4 = vld [vmem:[#allocation7 + $0x3c0] ss:$16 sps:$4 sm:$0xff]   ;;  %v2802_v41 = vld [vmem:[#allocation5] sm:$0x7]  ;;  %s15271_s27 = scalar_lea.vmem %s12237_s4, 32  ;;  %p15276_p13 = scmp.lt.s32.totalorder %s12237_s4, %s12237_s4 }
 0x1c3   :  { %4959 = vmatprep.mubr.f32.mxu0 %v17572_v62  ;;  %5056 = vmatprep.mubr.f32.mxu1 %v17572_v62  ;;  %v17666_v52 = vld [vmem:[#allocation36_spill] sm:$0xff]  ;;  %v17667_v27 = vld [vmem:[#allocation45_spill] sm:$0xff]  ;;  %p15272_p12 = scmp.ne.s32.totalorder %s12237_s4, %s15271_s27  ;;  %p15277_p0 = scmp.lt.s32.totalorder %s15271_s27, %s15271_s27 }
 0x1c4   :  { %5090 = vmatpush1.msra.mxu0 %v14627_v16  ;;  %5167 = vmatpush1.msra.mxu1 %v16537_v43 }
 0x1c5   :  { %12486 = vmatmul.mubr.msk.f32.gmra.mxu0 %vm189_vm1, %v16517_v13  ;;  %12492 = vmatmul.mubr.msk.f32.gmra.mxu1 %vm189_vm1, %v12488_v14  ;;  %v2362_v35 = vpop.f32.mrf.mxu0  ;;  %v2439_v48 = vpop.f32.mrf.mxu1  ;;  %v14630_v13 = vld [vmem:[#allocation2 + $0x318] sm:$0xff]  ;;  %p15278_p1 = por %p15277_p0, %p15276_p13 }
 0x1c6   :  { %5091 = vmatprep.subr.mxu0 %v14628_v37  ;;  %5168 = vmatprep.subr.mxu1 %v16545_v59  ;;  %v2527_v23 = vadd.f32 %v2362_v35, %v16752_v15  ;;  %v16830_v50 = vadd.f32 %v2439_v48, %v2286_v29  ;;  %v13333_v59 = vld [vmem:[#allocation7 + $0x3e4] ss:$16 sps:$4 sm:$0xff]   ;;  %v13331_v15 = vld [vmem:[#allocation7 + $0x3e0] ss:$16 sps:$4 sm:$0xff]  }
 0x1c7   :  { %5092 = vmatpush1.msra.mxu0 %v14629_v7  ;;  %5169 = vmatpush1.msra.mxu1 %v16552_v22  ;;  %v16833_v43 = vpop.f32.mrf.mxu0  ;;  %v16835_v10 = vpop.f32.mrf.mxu1  ;;  %v13339_v29 = vld [vmem:[#allocation7 + $0x3a4] ss:$16 sps:$4 sm:$0xff]   ;;  %p15279_p2 = pnand %p15278_p1, %p15272_p12 }
 0x1c8   :  { %5093 = vmatprep.subr.mxu0 %v14630_v13  ;;  %5170 = vmatprep.subr.mxu1 %v16560_v56  ;;  %v13340_v13 = vld [vmem:[#allocation7 + $0x380] ss:$16 sps:$4 sm:$0xff]  }
 0x1c9   :  { %5094 = vmatpush1.msra.mxu0 %v16500_v25  ;;  %5127 = vmatprep.mubr.f32.mxu0 %v17572_v62 }
 0x1ca   :  { %5171 = vmatpush1.msra.mxu1 %v16564_v31  ;;  %5204 = vmatprep.mubr.f32.mxu1 %v17572_v62 }
 0x1cb   :  { %12495 = vmatmul.mubr.msk.f32.vlgmr.msra.gmra.mxu0 %vm189_vm1, %v12487_v55  ;;  %12499 = vmatmul.mubr.msk.f32.vlgmr.msra.gmra.mxu1 %vm189_vm1, %v12487_v55  ;;  %v2510_v22 = vpop.f32.mrf.mxu0  ;;  %v2607_v32 = vpop.f32.mrf.mxu1 }
 0x1cc   :  { %5133 = vmatprep.mubr.f32.mxu0 %v17572_v62  ;;  %5210 = vmatprep.mubr.f32.mxu1 %v17572_v62  ;;  %v2525_v56 = vadd.f32 %v2510_v22, %v16771_v19  ;;  %v16847_v25 = vadd.f32 %v2607_v32, %v2521_v58  ;;  %v17665_v58 = vld [vmem:[#allocation44_spill] sm:$0xff] }
 0x1cd   :  { %v2512_v5 = vpop.f32.mrf.mxu0  ;;  %v2609_v31 = vpop.f32.mrf.mxu1  ;;  %5938 = vmatprep.subr.bf16.mxu0 %v13333_v59  ;;  %v622_v40 = vadd.f32 %v17665_v58, %v17664_v20  ;;  %v13342_v59 = vld [vmem:[#allocation7 + $0x384] ss:$16 sps:$4 sm:$0xff]  }
 0x1ce   :  { %v2784_v3 = vmax.f32 %v16578_v42, %v16847_v25  ;;  %v2526_v8 = vadd.f32 %v2512_v5, %v16778_v6  ;;  %v2773_v28 = vadd.f32 %v2609_v31, %v2522_v0  ;;  %5939 = vmatpush1.bf16.msra.mxu0 %v13331_v15  ;;  %v13337_v6 = vld [vmem:[#allocation7 + $0x3a0] ss:$16 sps:$4 sm:$0xff]   ;;  %v1891_v0 = vadd.f32 %v16722_v39, %v16649_v1 }
 0x1cf   :  { %12496 = vmatmul.mubr.msk.f32.gmra.mxu0 %vm189_vm1, %v12488_v14  ;;  %12500 = vmatmul.mubr.msk.f32.gmra.mxu1 %vm189_vm1, %v12488_v14  ;;  %v699_v14 = vadd.f32 %v17667_v27, %v17666_v52  ;;  %v993_v37 = vadd.f32 %v16421_v49, %v622_v40  ;;  %v17542_v39 = vsub.s32 2, %v16855_v63  ;;  %v17670_v5 = vld [vmem:[#allocation46_spill] sm:$0xff]  ;;  %v1968_v31 = vadd.f32 %v16724_v61, %v16683_v34  ;;  %v17681_v25 = vld [vmem:[#allocation23_spill] sm:$0xff] }
 0x1d0   :  { %v2785_v62 = vmax.f32 %v16587_v18, %v2773_v28  ;;  %5940 = vmatprep.subr.bf16.mxu0 %v13336_v26  ;;  %v16863_v18 = vsub.s32 1, %v16855_v63  ;;  %v2285_v15 = vadd.f32 %v16757_v24, %v1891_v0  ;;  %v16884_v26 = vrot.slane %v2802_v41, %v16866_v60  ;;  %v13343_v52 = vld [vmem:[#allocation7 + $0x360] ss:$16 sps:$4 sm:$0xff]   ;;  %v13345_v27 = vld [vmem:[#allocation7 + $0x364] ss:$16 sps:$4 sm:$0xff]  }
 0x1d1   :  { %v2516_v19 = vpop.f32.mrf.mxu0  ;;  %v2613_v51 = vpop.f32.mrf.mxu1  ;;  %v995_v24 = vadd.f32 %v17670_v5, %v699_v14  ;;  %v2045_v28 = vadd.f32 %v16755_v46, %v17671_v44  ;;  %v17676_v46 = vld [vmem:[#allocation49_spill] sm:$0xff]  ;;  %v17677_v14 = vld [vmem:[#allocation24_spill] sm:$0xff]  ;;  %v16913_v42 = vrot.slane %v2802_v41, %v17542_v39 }
 0x1d2   :  { %v2531_v9 = vadd.f32 %v2516_v19, %v16789_v21  ;;  %v16858_v30 = vadd.f32 %v2613_v51, %v2527_v23  ;;  %5941 = vmatpush1.bf16.msra.mxu0 %v13334_v4  ;;  %17660 = vst [vmem:[#allocation32_spill] sm:$0xff] %v16863_v18  ;;  %v545_v21 = vadd.f32 %v17663_v54, %v17662_v11  ;;  %17669 = vst [vmem:[#allocation35_spill] sm:$0xff] %v16884_v26  ;;  %v17672_v19 = vld [vmem:[#allocation47_spill] sm:$0xff] }
 0x1d3   :  { %v2518_v47 = vpop.f32.mrf.mxu0  ;;  %v2615_v33 = vpop.f32.mrf.mxu1  ;;  %5942 = vmatprep.subr.bf16.mxu0 %v13339_v29  ;;  %v16881_v22 = vrot.slane %v2802_v41, %v16863_v18  ;;  %v2528_v4 = vadd.f32 %v16833_v43, %v2285_v15  ;;  %v17674_v29 = vld [vmem:[#allocation25_spill] sm:$0xff]  ;;  %v2287_v54 = vadd.f32 %v16792_v57, %v1968_v31  ;;  %v1290_v58 = vadd.f32 %v17676_v46, %v995_v24 }
 0x1d4   :  { %v2790_v55 = vmax.f32 %v16600_v38, %v16858_v30  ;;  %v991_v48 = vadd.f32 %v16419_v17, %v545_v21  ;;  %v2289_v21 = vadd.f32 %v16794_v45, %v2045_v28  ;;  %17680 = vst [vmem:[#allocation38_spill] sm:$0xff] %v16913_v42  ;;  %v13346_v41 = vld [vmem:[#allocation7 + $0x340] ss:$16 sps:$4 sm:$0xff]  }
 0x1d5   :  { %17668 = vst [vmem:[#allocation34_spill] sm:$0xff] %v16881_v22  ;;  %v2779_v34 = vadd.f32 %v2615_v33, %v2528_v4  ;;  %v2530_v57 = vadd.f32 %v16835_v10, %v2287_v54  ;;  %v13349_v30 = vld [vmem:[#allocation7 + $0x320] ss:$16 sps:$4 sm:$0xff]  }
 0x1d6   :  { %5943 = vmatpush1.bf16.msra.mxu0 %v13337_v6  ;;  %v1286_v51 = vadd.f32 %v17672_v19, %v991_v48  ;;  %v17673_v6 = vld [vmem:[#allocation50_spill] sm:$0xff]  ;;  %v17678_v48 = vld [vmem:[#allocation51_spill] sm:$0xff] }
 0x1d7   :  { %v2684_v16 = vpop.f32.mrf.mxu0  ;;  %v2761_v35 = vpop.f32.mrf.mxu1  ;;  %5944 = vmatprep.subr.bf16.mxu0 %v13342_v59 }
 0x1d8   :  { %v2774_v23 = vadd.f32 %v2684_v16, %v16810_v12  ;;  %v2776_v7 = vadd.f32 %v2761_v35, %v2525_v56  ;;  %v1580_v0 = vadd.f32 %v17677_v14, %v1286_v51  ;;  %v2532_v16 = vadd.f32 %v2518_v47, %v2289_v21 }
 0x1d9   :  { %v2686_v32 = vpop.f32.mrf.mxu0  ;;  %v2763_v1 = vpop.f32.mrf.mxu1 }
 0x1da   :  { %v2786_v17 = vmax.f32 %v16580_v53, %v2774_v23  ;;  %v2788_v49 = vmax.f32 %v16622_v2, %v2776_v7  ;;  %v2775_v12 = vadd.f32 %v2686_v32, %v16820_v36  ;;  %v2777_v56 = vadd.f32 %v2763_v1, %v2526_v8  ;;  %5945 = vmatpush1.bf16.msra.mxu0 %v13340_v13  ;;  %v17675_v8 = vld [vmem:[#allocation48_spill] sm:$0xff]  ;;  %v17679_v23 = vld [vmem:[#allocation27_spill] sm:$0xff]  ;;  %v17682_v13 = vld [vmem:[#allocation26_spill] sm:$0xff] }
 0x1db   :  { %v1288_v11 = vadd.f32 %v17675_v8, %v993_v37  ;;  %v1584_v7 = vadd.f32 %v17679_v23, %v1290_v58  ;;  %5946 = vmatprep.subr.bf16.mxu0 %v13345_v27  ;;  %v13360_v23 = vld [vmem:[#allocation7 + $0x5e4] ss:$16 sps:$4 sm:$0xff]  }
 0x1dc   :  { %v2797_v53 = vmax.f32 %v2785_v62, %v2788_v49  ;;  %v2787_v2 = vmax.f32 %v17673_v6, %v2775_v12  ;;  %v2789_v36 = vmax.f32 %v17674_v29, %v2777_v56  ;;  %v13348_v56 = vld [vmem:[#allocation7 + $0x344] ss:$16 sps:$4 sm:$0xff]   ;;  %5981 = vmatprep.subr.bf16.mxu1 %v13360_v23 }
 0x1dd   :  { %v2690_v61 = vpop.f32.mrf.mxu0  ;;  %v2767_v20 = vpop.f32.mrf.mxu1  ;;  %v1582_v37 = vadd.f32 %v17678_v48, %v1288_v11 }
 0x1de   :  { %v2796_v43 = vmax.f32 %v2784_v3, %v2787_v2  ;;  %v2798_v62 = vmax.f32 %v2786_v17, %v2789_v36  ;;  %v2780_v40 = vadd.f32 %v2690_v61, %v16830_v50  ;;  %v2782_v45 = vadd.f32 %v2767_v20, %v2531_v9  ;;  %5947 = vmatpush1.bf16.msra.mxu0 %v13343_v52 }
 0x1df   :  { %v2692_v33 = vpop.f32.mrf.mxu0  ;;  %v2769_v35 = vpop.f32.mrf.mxu1  ;;  %v2791_v3 = vmax.f32 %v1580_v0, %v2779_v34  ;;  %v2820_v9 = vadd.f32 %v16881_v22, %v2797_v53  ;;  %5948 = vmatprep.subr.bf16.mxu0 %v13348_v56 }
 0x1e0   :  { %v2792_v50 = vmax.f32 %v17681_v25, %v2780_v40  ;;  %v2794_v59 = vmax.f32 %v17682_v13, %v2782_v45  ;;  %v2781_v15 = vadd.f32 %v2692_v33, %v2530_v57  ;;  %v2783_v10 = vadd.f32 %v2769_v35, %v2532_v16  ;;  %v13354_v40 = vld [vmem:[#allocation7 + $0x304] ss:$16 sps:$4 sm:$0xff]   ;;  %v13355_v45 = vld [vmem:[#allocation7 + $0x4e0] ss:$16 sps:$4 sm:$0xff]  }
 0x1e1   :  { %v2819_v12 = vadd.f32 %v16884_v26, %v2796_v43  ;;  %v2821_v5 = vadd.f32 %v16913_v42, %v2798_v62  ;;  %v2826_v19 = vmax.f32 %v2820_v9, 0.0  ;;  %v13352_v62 = vld [vmem:[#allocation7 + $0x300] ss:$16 sps:$4 sm:$0xff]   ;;  %v13357_v33 = vld [vmem:[#allocation7 + $0x4e4] ss:$16 sps:$4 sm:$0xff]  }
 0x1e2   :  { %v2800_v47 = vmax.f32 %v2791_v3, %v2794_v59  ;;  %v2793_v32 = vmax.f32 %v1582_v37, %v2781_v15  ;;  %v2795_v1 = vmax.f32 %v1584_v7, %v2783_v10  ;;  %5949 = vmatpush1.bf16.msra.mxu0 %v13346_v41  ;;  %v13358_v35 = vld [vmem:[#allocation7 + $0x5e0] ss:$16 sps:$4 sm:$0xff]   ;;  %v13363_v59 = vld [vmem:[#allocation7 + $0x4c4] ss:$16 sps:$4 sm:$0xff]  }
 0x1e3   :  { %v2897_v17 = vpop.f32.mrf.mxu0  ;;  %v2974_v49 = vpop.f32.mrf.mxu1  ;;  %v2825_v2 = vmax.f32 %v2819_v12, 0.0  ;;  %v2827_v29 = vmax.f32 %v2821_v5, 0.0  ;;  %5982 = vmatpush1.bf16.msra.mxu1 %v13358_v35  ;;  %v13361_v13 = vld [vmem:[#allocation7 + $0x4c0] ss:$16 sps:$4 sm:$0xff]  }
 0x1e4   :  { %v2823_v24 = vadd.f32 %v16881_v22, %v2800_v47  ;;  %v2799_v31 = vmax.f32 %v2790_v55, %v2793_v32  ;;  %v2801_v44 = vmax.f32 %v2792_v50, %v2795_v1  ;;  %v13351_v55 = vld [vmem:[#allocation7 + $0x324] ss:$16 sps:$4 sm:$0xff]   ;;  %v13364_v15 = vld [vmem:[#allocation7 + $0x5c0] ss:$16 sps:$4 sm:$0xff]  }
 0x1e5   :  { %v2899_v28 = vpop.f32.mrf.mxu0  ;;  %v2976_v4 = vpop.f32.mrf.mxu1  ;;  %5950 = vmatprep.subr.bf16.mxu0 %v13351_v55  ;;  %v13366_v47 = vld [vmem:[#allocation7 + $0x5c4] ss:$16 sps:$4 sm:$0xff]   ;;  %v13388_v35 = vld [vmem:[#allocation7 + $0x540] ss:$16 sps:$4 sm:$0xff]  }
 0x1e6   :  { %v2829_v51 = vmax.f32 %v2823_v24, 0.0  ;;  %v2822_v53 = vadd.f32 %v16884_v26, %v2799_v31  ;;  %v2824_v6 = vadd.f32 %v16913_v42, %v2801_v44  ;;  %5951 = vmatpush1.bf16.msra.mxu0 %v13349_v30  ;;  %5983 = vmatprep.subr.bf16.mxu1 %v13366_v47  ;;  %v13369_v24 = vld [vmem:[#allocation7 + $0x4a4] ss:$16 sps:$4 sm:$0xff]   ;;  %v13367_v44 = vld [vmem:[#allocation7 + $0x4a0] ss:$16 sps:$4 sm:$0xff]  }
 0x1e7   :  { %5952 = vmatprep.subr.bf16.mxu0 %v13354_v40  ;;  %5984 = vmatpush1.bf16.msra.mxu1 %v13364_v15  ;;  %v13372_v31 = vld [vmem:[#allocation7 + $0x5a4] ss:$16 sps:$4 sm:$0xff]  }
 0x1e8   :  { %v16926_v36 = vpack.c.bf16 %v2829_v51, %v2826_v19  ;;  %v2828_v8 = vmax.f32 %v2822_v53, 0.0  ;;  %v2830_v11 = vmax.f32 %v2824_v6, 0.0  ;;  %5985 = vmatprep.subr.bf16.mxu1 %v13372_v31  ;;  %v13375_v51 = vld [vmem:[#allocation7 + $0x484] ss:$16 sps:$4 sm:$0xff]   ;;  %v13397_v31 = vld [vmem:[#allocation7 + $0x400] ss:$16 sps:$4 sm:$0xff]  }
 0x1e9   :  { %v2903_v54 = vpop.f32.mrf.mxu0  ;;  %v2980_v38 = vpop.f32.mrf.mxu1  ;;  %v13378_v53 = vld [vmem:[#allocation7 + $0x584] ss:$16 sps:$4 sm:$0xff]  }
 0x1ea   :  { %17683 = vst [vmem:[#allocation39_spill] sm:$0xff] %v16926_v36  ;;  %v16928_v21 = vpack.c.bf16 %v2828_v8, %v2825_v2  ;;  %v16930_v34 = vpack.c.bf16 %v2830_v11, %v2827_v29  ;;  %5953 = vmatpush1.bf16.msra.mxu0 %v13352_v62  ;;  %v13373_v29 = vld [vmem:[#allocation7 + $0x480] ss:$16 sps:$4 sm:$0xff]   ;;  %v13381_v55 = vld [vmem:[#allocation7 + $0x464] ss:$16 sps:$4 sm:$0xff]  }
 0x1eb   :  { %v16932_v61 = vpop.f32.mrf.mxu0  ;;  %v16934_v20 = vpop.f32.mrf.mxu1  ;;  %5954 = vmatprep.subr.bf16.mxu0 %v13357_v33  ;;  %v13376_v8 = vld [vmem:[#allocation7 + $0x580] ss:$16 sps:$4 sm:$0xff]  }
 0x1ec   :  { %17684 = vst [vmem:[#allocation40_spill] sm:$0xff] %v16928_v21  ;;  %17685 = vst [vmem:[#allocation41_spill] sm:$0xff] %v16930_v34  ;;  %v13382_v62 = vld [vmem:[#allocation7 + $0x560] ss:$16 sps:$4 sm:$0xff]  }
 0x1ed   :  { %v13385_v33 = vld [vmem:[#allocation7 + $0x440] ss:$16 sps:$4 sm:$0xff]  }
 0x1ee   :  { %5955 = vmatpush2.bf16.msra.mxu0 %v13355_v45  ;;  %v13390_v45 = vld [vmem:[#allocation7 + $0x544] ss:$16 sps:$4 sm:$0xff]  }
 0x1ef   :  { %v3051_v46 = vpop.f32.mrf.mxu0  ;;  %v3128_v58 = vpop.f32.mrf.mxu1  ;;  %5956 = vmatprep.subr.bf16.mxu0 %v13363_v59 }
 0x1f0   :  { %v3129_v43 = vadd.f32 %v3128_v58, %v2897_v17  ;;  %v13379_v58 = vld [vmem:[#allocation7 + $0x460] ss:$16 sps:$4 sm:$0xff]  }
 0x1f1   :  { %v3053_v52 = vpop.f32.mrf.mxu0  ;;  %v3130_v27 = vpop.f32.mrf.mxu1 }
 0x1f2   :  { %v3131_v14 = vadd.f32 %v3130_v27, %v2899_v28  ;;  %5957 = vmatpush2.bf16.msra.mxu0 %v13361_v13  ;;  %v13370_v28 = vld [vmem:[#allocation7 + $0x5a0] ss:$16 sps:$4 sm:$0xff]   ;;  %v13396_v13 = vld [vmem:[#allocation7 + $0x524] ss:$16 sps:$4 sm:$0xff]  }
 0x1f3   :  { %5958 = vmatprep.subr.bf16.mxu0 %v13369_v24  ;;  %5986 = vmatpush1.bf16.msra.mxu1 %v13370_v28 }
 0x1f4   :  { %5987 = vmatprep.subr.bf16.mxu1 %v13378_v53  ;;  %v17543_v53 = vmov 0  }
 0x1f5   :  { %v3057_v0 = vpop.f32.mrf.mxu0  ;;  %v3134_v57 = vpop.f32.mrf.mxu1  ;;  %6013 = vmatprep.mubr.bf16.mxu1 %v17543_v53 }
 0x1f6   :  { %v16936_v16 = vadd.f32 %v3134_v57, %v2903_v54  ;;  %5959 = vmatpush2.bf16.msra.mxu0 %v13367_v44  ;;  %v13387_v57 = vld [vmem:[#allocation7 + $0x444] ss:$16 sps:$4 sm:$0xff]  }
 0x1f7   :  { %v16938_v48 = vpop.f32.mrf.mxu0  ;;  %v16940_v37 = vpop.f32.mrf.mxu1  ;;  %5960 = vmatprep.subr.bf16.mxu0 %v13375_v51  ;;  %5988 = vmatpush1.bf16.msra.mxu1 %v13376_v8  ;;  %v13408_v51 = vld [vmem:[#allocation7 + $0x5ec] ss:$16 sps:$4 sm:$0xff]  }
 0x1fa   :  { %5961 = vmatpush2.bf16.msra.mxu0 %v13373_v29 }
 0x1fb   :  { %v3205_v7 = vpop.f32.mrf.mxu0  ;;  %v3282_v25 = vpop.f32.mrf.mxu1  ;;  %5962 = vmatprep.subr.bf16.mxu0 %v13381_v55 }
 0x1fc   :  { %v3206_v50 = vadd.f32 %v3205_v7, %v2974_v49  ;;  %v16942_v3 = vadd.f32 %v3282_v25, %v3051_v46  ;;  %v13384_v46 = vld [vmem:[#allocation7 + $0x564] ss:$16 sps:$4 sm:$0xff]  }
 0x1fd   :  { %v3207_v10 = vpop.f32.mrf.mxu0  ;;  %v3284_v9 = vpop.f32.mrf.mxu1  ;;  %5989 = vmatprep.subr.bf16.mxu1 %v13384_v46 }
 0x1fe   :  { %v3208_v32 = vadd.f32 %v3207_v10, %v2976_v4  ;;  %v16944_v1 = vadd.f32 %v3284_v9, %v3053_v52  ;;  %5963 = vmatpush2.bf16.msra.mxu0 %v13379_v58  ;;  %5990 = vmatpush1.bf16.msra.mxu1 %v13382_v62  ;;  %v13391_v10 = vld [vmem:[#allocation7 + $0x420] ss:$16 sps:$4 sm:$0xff]  }
 0x1ff   :  { %5964 = vmatprep.subr.bf16.mxu0 %v13387_v57  ;;  %5991 = vmatprep.subr.bf16.mxu1 %v13390_v45  ;;  %v13394_v9 = vld [vmem:[#allocation7 + $0x520] ss:$16 sps:$4 sm:$0xff]  }
 0x201   :  { %v3211_v17 = vpop.f32.mrf.mxu0  ;;  %v3288_v12 = vpop.f32.mrf.mxu1 }
 0x202   :  { %v3212_v41 = vadd.f32 %v3211_v17, %v2980_v38  ;;  %v16946_v56 = vadd.f32 %v3288_v12, %v3057_v0  ;;  %5965 = vmatpush2.bf16.msra.mxu0 %v13385_v33  ;;  %5992 = vmatpush1.bf16.msra.mxu1 %v13388_v35  ;;  %v13399_v17 = vld [vmem:[#allocation7 + $0x404] ss:$16 sps:$4 sm:$0xff]  }
 0x203   :  { %v16948_v49 = vpop.f32.mrf.mxu0  ;;  %v16950_v5 = vpop.f32.mrf.mxu1  ;;  %5993 = vmatprep.subr.bf16.mxu1 %v13396_v13  ;;  %v13402_v12 = vld [vmem:[#allocation7 + $0x504] ss:$16 sps:$4 sm:$0xff]  }
 0x206   :  { %5994 = vmatpush1.bf16.msra.mxu1 %v13394_v9 }
 0x207   :  { %v3359_v4 = vpop.f32.mrf.mxu0  ;;  %v3436_v19 = vpop.f32.mrf.mxu1  ;;  %5995 = vmatprep.subr.bf16.mxu1 %v13402_v12 }
 0x208   :  { %v3524_v6 = vadd.f32 %v3359_v4, %v3129_v43  ;;  %v16952_v2 = vadd.f32 %v3436_v19, %v3206_v50  ;;  %v13393_v50 = vld [vmem:[#allocation7 + $0x424] ss:$16 sps:$4 sm:$0xff]  }
 0x209   :  { %v3361_v11 = vpop.f32.mrf.mxu0  ;;  %v3438_v54 = vpop.f32.mrf.mxu1  ;;  %5966 = vmatprep.subr.bf16.mxu0 %v13393_v50 }
 0x20a   :  { %v3525_v38 = vadd.f32 %v3361_v11, %v3131_v14  ;;  %v16954_v30 = vadd.f32 %v3438_v54, %v3208_v32  ;;  %5967 = vmatpush2.bf16.msra.mxu0 %v13391_v10 }
 0x20b   :  { %5968 = vmatprep.subr.bf16.mxu0 %v13399_v17 }
 0x20d   :  { %v3365_v40 = vpop.f32.mrf.mxu0  ;;  %v3442_v52 = vpop.f32.mrf.mxu1 }
 0x20e   :  { %v3530_v43 = vadd.f32 %v3365_v40, %v16936_v16  ;;  %v3532_v27 = vadd.f32 %v3442_v52, %v3212_v41  ;;  %5969 = vmatpush2.bf16.msra.mxu0 %v13397_v31 }
 0x20f   :  { %v16957_v0 = vpop.f32.mrf.mxu0  ;;  %v16959_v14 = vpop.f32.mrf.mxu1  ;;  %6067 = vmatprep.subr.bf16.mxu0 %v13408_v51 }
 0x213   :  { %v3513_v23 = vpop.f32.mrf.mxu0  ;;  %v3602_v7 = vpop.f32.mrf.mxu1 }
 0x214   :  { %v3528_v25 = vadd.f32 %v3513_v23, %v16942_v3  ;;  %v3767_v16 = vadd.f32 %v3602_v7, %v3524_v6  ;;  %v13400_v3 = vld [vmem:[#allocation7 + $0x500] ss:$16 sps:$4 sm:$0xff]  }
 0x215   :  { %v3515_v59 = vpop.f32.mrf.mxu0  ;;  %v3604_v15 = vpop.f32.mrf.mxu1  ;;  %5996 = vmatpush1.bf16.msra.mxu1 %v13400_v3 }
 0x216   :  { %v3529_v47 = vadd.f32 %v3515_v59, %v16944_v1  ;;  %v3768_v32 = vadd.f32 %v3604_v15, %v3525_v38  ;;  %v13405_v1 = vld [vmem:[#allocation7 + $0x3ec] ss:$16 sps:$4 sm:$0xff]  }
 0x217   :  { %6024 = vmatprep.subr.bf16.mxu1 %v13405_v1 }
 0x219   :  { %v3519_v41 = vpop.f32.mrf.mxu0  ;;  %v3608_v24 = vpop.f32.mrf.mxu1 }
 0x21a   :  { %v3534_v44 = vadd.f32 %v3519_v41, %v16946_v56  ;;  %v3773_v28 = vadd.f32 %v3608_v24, %v3530_v43 }
 0x21b   :  { %v16964_v4 = vpop.f32.mrf.mxu0  ;;  %v16966_v19 = vpop.f32.mrf.mxu1 }
 0x21f   :  { %v3679_v6 = vpop.f32.mrf.mxu0  ;;  %v3756_v29 = vpop.f32.mrf.mxu1 }
 0x220   :  { %v3769_v56 = vadd.f32 %v3679_v6, %v16952_v2  ;;  %v16970_v8 = vadd.f32 %v3756_v29, %v3528_v25 }
 0x221   :  { %v3681_v11 = vpop.f32.mrf.mxu0  ;;  %v3758_v54 = vpop.f32.mrf.mxu1 }
 0x222   :  { %v3770_v38 = vadd.f32 %v3681_v11, %v16954_v30  ;;  %v16973_v55 = vadd.f32 %v3758_v54, %v3529_v47 }
 0x225   :  { %v3685_v46 = vpop.f32.mrf.mxu0  ;;  %v3762_v58 = vpop.f32.mrf.mxu1 }
 0x226   :  { %v3775_v62 = vadd.f32 %v3685_v46, %v3532_v27  ;;  %v16975_v40 = vadd.f32 %v3762_v58, %v3534_v44 }
 0x227   :  { %v16977_v52 = vpop.f32.mrf.mxu0  ;;  %v16979_v43 = vpop.f32.mrf.mxu1 }
 0x228   :  { %17686 = vst [vmem:[#allocation42_spill] sm:$0xff] %v16975_v40 }
 0x22b   :  { %v3853_v57 = vpop.f32.mrf.mxu0  ;;  %v3930_v45 = vpop.f32.mrf.mxu1 }
 0x22c   :  { %v16981_v2 = vadd.f32 %v3853_v57, %v3767_v16  ;;  %v16983_v33 = vadd.f32 %v3930_v45, %v3769_v56 }
 0x22d   :  { %v3855_v35 = vpop.f32.mrf.mxu0  ;;  %v3932_v23 = vpop.f32.mrf.mxu1 }
 0x22e   :  { %17687 = vst [vmem:[#allocation43_spill] sm:$0xff] %v16981_v2  ;;  %17688 = vst [vmem:[#allocation30_spill] sm:$0xff] %v16983_v33  ;;  %v16985_v30 = vadd.f32 %v3855_v35, %v3768_v32  ;;  %v16987_v7 = vadd.f32 %v3932_v23, %v3770_v38 }
 0x230   :  { %17689 = vst [vmem:[#allocation37_spill] sm:$0xff] %v16985_v30  ;;  %17690 = vst [vmem:[#allocation31_spill] sm:$0xff] %v16987_v7  ;;  %v3137_v30 = vadd.f32 %v16940_v37, %v16932_v61 }
 0x231   :  { %v3859_v25 = vpop.f32.mrf.mxu0  ;;  %v3936_v27 = vpop.f32.mrf.mxu1 }
 0x232   :  { %v16989_v50 = vadd.f32 %v3859_v25, %v3773_v28  ;;  %v16991_v13 = vadd.f32 %v3936_v27, %v3775_v62 }
 0x233   :  { %v16993_v59 = vpop.f32.mrf.mxu0  ;;  %v16995_v15 = vpop.f32.mrf.mxu1 }
 0x234   :  { %17691 = vst [vmem:[#allocation44_spill] sm:$0xff] %v16989_v50  ;;  %17692 = vst [vmem:[#allocation36_spill] sm:$0xff] %v16991_v13 }
 0x235   :  { %17693 = vst [vmem:[#allocation45_spill] sm:$0xff] %v16995_v15 }
 0x237   :  { %v4007_v16 = vpop.f32.mrf.mxu0  ;;  %v16997_v10 = vpop.f32.mrf.mxu1 }
 0x238   :  { %17694 = vst [vmem:[#allocation46_spill] sm:$0xff] %v16997_v10  ;;  %v4022_v37 = vadd.f32 %v4007_v16, %v16970_v8 }
 0x239   :  { %v4009_v9 = vpop.f32.mrf.mxu0  ;;  %v4098_v47 = vpop.f32.mrf.mxu1 }
 0x23d   :  { %v4013_v17 = vpop.f32.mrf.mxu0  ;;  %v16999_v32 = vpop.f32.mrf.mxu1 }
 0x23e   :  { %17695 = vst [vmem:[#allocation28_spill] sm:$0xff] %v16999_v32 }
 0x23f   :  { %v17001_v12 = vpop.f32.mrf.mxu0  ;;  %v17003_v41 = vpop.f32.mrf.mxu1 }
 0x240   :  { %17696 = vst [vmem:[#allocation47_spill] sm:$0xff] %v17001_v12  ;;  %17697 = vst [vmem:[#allocation50_spill] sm:$0xff] %v17003_v41 }
 0x243   :  { %v4173_v24 = vpop.f32.mrf.mxu0  ;;  %v17005_v31 = vpop.f32.mrf.mxu1 }
 0x244   :  { %17698 = vst [vmem:[#allocation25_spill] sm:$0xff] %v17005_v31 }
 0x245   :  { %v4175_v3 = vpop.f32.mrf.mxu0  ;;  %v17007_v44 = vpop.f32.mrf.mxu1 }
 0x246   :  { %17699 = vst [vmem:[#allocation48_spill] sm:$0xff] %v17007_v44 }
 0x249   :  { %v4179_v28 = vpop.f32.mrf.mxu0  ;;  %v17009_v1 = vpop.f32.mrf.mxu1 }
 0x24a   :  { %17700 = vst [vmem:[#allocation49_spill] sm:$0xff] %v17009_v1  ;;  %v3291_v1 = vadd.f32 %v16950_v5, %v16938_v48  ;;  %v17705_v5 = vld [vmem:[#allocation42_spill] sm:$0xff] }
 0x24b   :  { %v4181_v51 = vpop.f32.mrf.mxu0  ;;  %v17011_v6 = vpop.f32.mrf.mxu1 }
 0x24c   :  { %17701 = vst [vmem:[#allocation24_spill] sm:$0xff] %v17011_v6  ;;  %v3214_v6 = vadd.f32 %v16948_v49, %v16934_v20  ;;  %v3535_v32 = vadd.f32 %v16964_v4, %v3291_v1  ;;  %v17038_v49 = vadd.f32 %v4009_v9, %v16973_v55 }
 0x24e   :  { %v3533_v41 = vadd.f32 %v16959_v14, %v3214_v6  ;;  %v17031_v20 = vadd.f32 %v16979_v43, %v3535_v32  ;;  %v17706_v14 = vld [vmem:[#allocation46_spill] sm:$0xff]  ;;  %v17709_v6 = vld [vmem:[#allocation25_spill] sm:$0xff] }
 0x24f   :  { %v4327_v29 = vpop.f32.mrf.mxu0  ;;  %v4404_v56 = vpop.f32.mrf.mxu1 }
 0x250   :  { %v17028_v61 = vadd.f32 %v16977_v52, %v3533_v41  ;;  %v4328_v4 = vadd.f32 %v4327_v29, %v17706_v14 }
 0x251   :  { %v4329_v11 = vpop.f32.mrf.mxu0  ;;  %v4406_v54 = vpop.f32.mrf.mxu1 }
 0x252   :  { %v4407_v52 = vadd.f32 %v4406_v54, %v4175_v3 }
 0x255   :  { %v4333_v38 = vpop.f32.mrf.mxu0  ;;  %v4410_v46 = vpop.f32.mrf.mxu1 }
 0x256   :  { %v4411_v1 = vadd.f32 %v4410_v46, %v4179_v28 }
 0x257   :  { %v4335_v58 = vpop.f32.mrf.mxu0  ;;  %v4412_v62 = vpop.f32.mrf.mxu1 }
 0x258   :  { %v4413_v55 = vadd.f32 %v4412_v62, %v4181_v51 }
 0x25b   :  { %v4481_v57 = vpop.f32.mrf.mxu0  ;;  %v4558_v45 = vpop.f32.mrf.mxu1 }
 0x25c   :  { %v4482_v8 = vadd.f32 %v4481_v57, %v17709_v6  ;;  %v4723_v9 = vadd.f32 %v4558_v45, %v4328_v4 }
 0x25d   :  { %v4483_v35 = vpop.f32.mrf.mxu0  ;;  %v4560_v23 = vpop.f32.mrf.mxu1 }
 0x261   :  { %v4487_v25 = vpop.f32.mrf.mxu0  ;;  %v4564_v27 = vpop.f32.mrf.mxu1 }
 0x263   :  { %v4489_v39 = vpop.f32.mrf.mxu0  ;;  %v4566_v53 = vpop.f32.mrf.mxu1 }
 0x267   :  { %v4635_v63 = vpop.f32.mrf.mxu0  ;;  %v4712_v18 = vpop.f32.mrf.mxu1 }
 0x269   :  { %v4637_v60 = vpop.f32.mrf.mxu0  ;;  %v4714_v34 = vpop.f32.mrf.mxu1 }
 0x26a   :  { %v4726_v46 = vadd.f32 %v4637_v60, %v4407_v52 }
 0x26d   :  { %v4641_v21 = vpop.f32.mrf.mxu0  ;;  %v4718_v36 = vpop.f32.mrf.mxu1 }
 0x26e   :  { %v4731_v62 = vadd.f32 %v4641_v21, %v4411_v1 }
 0x26f   :  { %v4643_v42 = vpop.f32.mrf.mxu0  ;;  %v17013_v26 = vpop.f32.mrf.mxu1 }
 0x270   :  { %17702 = vst [vmem:[#allocation51_spill] sm:$0xff] %v17013_v26  ;;  %v3531_v26 = vadd.f32 %v16957_v0, %v3137_v30  ;;  %v17041_v0 = vadd.f32 %v4013_v17, %v17705_v5  ;;  %v17707_v30 = vld [vmem:[#allocation28_spill] sm:$0xff]  ;;  %v17711_v5 = vld [vmem:[#allocation49_spill] sm:$0xff] }
 0x271   :  { %v4334_v41 = vadd.f32 %v4333_v38, %v17707_v30  ;;  %v17712_v38 = vld [vmem:[#allocation24_spill] sm:$0xff] }
 0x272   :  { %v3774_v10 = vadd.f32 %v16966_v19, %v3531_v26  ;;  %v4330_v26 = vadd.f32 %v4329_v11, %v4098_v47  ;;  %v4405_v19 = vadd.f32 %v4404_v56, %v4173_v24  ;;  %v4488_v47 = vadd.f32 %v4487_v25, %v17711_v5 }
 0x273   :  { %v4801_v13 = vpop.f32.mrf.mxu0  ;;  %v4878_v22 = vpop.f32.mrf.mxu1  ;;  %v4729_v24 = vadd.f32 %v4564_v27, %v4334_v41  ;;  %v4727_v56 = vadd.f32 %v4712_v18, %v4482_v8  ;;  %v4490_v14 = vadd.f32 %v4489_v39, %v17712_v38 }
 0x274   :  { %v17034_v48 = vadd.f32 %v16993_v59, %v3774_v10  ;;  %v17708_v59 = vld [vmem:[#allocation50_spill] sm:$0xff]  ;;  %v4724_v16 = vadd.f32 %v4560_v23, %v4330_v26  ;;  %v4725_v3 = vadd.f32 %v4635_v63, %v4405_v19  ;;  %v4733_v45 = vadd.f32 %v4718_v36, %v4488_v47  ;;  %v17720_v47 = vld [vmem:[#allocation47_spill] sm:$0xff] }
 0x275   :  { %v4803_v50 = vpop.f32.mrf.mxu0  ;;  %v4880_v12 = vpop.f32.mrf.mxu1  ;;  %v4336_v10 = vadd.f32 %v4335_v58, %v17708_v59  ;;  %v4966_v58 = vadd.f32 %v4801_v13, %v4723_v9  ;;  %v17716_v59 = vld [vmem:[#allocation30_spill] sm:$0xff] }
 0x276   :  { %17704 = vst [vmem:[#allocation23_spill] sm:$0xff] %v17034_v48  ;;  %v17710_v48 = vld [vmem:[#allocation48_spill] sm:$0xff]  ;;  %v4967_v54 = vadd.f32 %v4803_v50, %v4724_v16  ;;  %v4968_v57 = vadd.f32 %v4878_v22, %v4725_v3  ;;  %v4969_v4 = vadd.f32 %v4880_v12, %v4726_v46  ;;  %v17714_v22 = vld [vmem:[#allocation37_spill] sm:$0xff]  ;;  %v17723_v46 = vld [vmem:[#allocation34_spill] sm:$0xff] }
 0x277   :  { %v4484_v17 = vadd.f32 %v4483_v35, %v17710_v48  ;;  %v4730_v28 = vadd.f32 %v4566_v53, %v4336_v10  ;;  %v4732_v35 = vadd.f32 %v4643_v42, %v4413_v55  ;;  %v17713_v50 = vld [vmem:[#allocation51_spill] sm:$0xff] }
 0x278   :  { %v4734_v19 = vadd.f32 %v17713_v50, %v4490_v14  ;;  %v17715_v42 = vld [vmem:[#allocation43_spill] sm:$0xff] }
 0x279   :  { %v4807_v15 = vpop.f32.mrf.mxu0  ;;  %v4884_v7 = vpop.f32.mrf.mxu1  ;;  %v4728_v30 = vadd.f32 %v4714_v34, %v4484_v17 }
 0x27a   :  { %v4972_v39 = vadd.f32 %v4807_v15, %v4729_v24  ;;  %v4974_v53 = vadd.f32 %v4884_v7, %v4731_v62  ;;  %v17717_v15 = vld [vmem:[#allocation31_spill] sm:$0xff] }
 0x27b   :  { %v4809_v33 = vpop.f32.mrf.mxu0  ;;  %v17015_v2 = vpop.f32.mrf.mxu1  ;;  %v17725_v62 = vld [vmem:[#allocation35_spill] sm:$0xff] }
 0x27c   :  { %17703 = vst [vmem:[#allocation27_spill] sm:$0xff] %v17015_v2  ;;  %v4973_v60 = vadd.f32 %v4809_v33, %v4730_v28  ;;  %v17722_v28 = vld [vmem:[#allocation44_spill] sm:$0xff] }
 0x27f   :  { %v4955_v44 = vpop.f32.mrf.mxu0  ;;  %v5052_v31 = vpop.f32.mrf.mxu1 }
 0x280   :  { %v4970_v23 = vadd.f32 %v4955_v44, %v4727_v56  ;;  %v5217_v48 = vadd.f32 %v5052_v31, %v4966_v58  ;;  %v17721_v56 = vld [vmem:[#allocation23_spill] sm:$0xff] }
 0x281   :  { %v4957_v2 = vpop.f32.mrf.mxu0  ;;  %v5054_v40 = vpop.f32.mrf.mxu1 }
 0x282   :  { %v5218_v51 = vadd.f32 %v5054_v40, %v4967_v54  ;;  %v4971_v27 = vadd.f32 %v4957_v2, %v4728_v30  ;;  %v5229_v31 = vmax.f32 %v17715_v42, %v5217_v48  ;;  %v17724_v30 = vld [vmem:[#allocation36_spill] sm:$0xff]  ;;  %v13417_v42 = vld [vmem:[#allocation7 + $0x3ac] ss:$16 sps:$4 sm:$0xff]  }
 0x283   :  { %v17718_v8 = vld [vmem:[#allocation27_spill] sm:$0xff] }
 0x284   :  { %v5230_v44 = vmax.f32 %v17714_v22, %v5218_v51  ;;  %v4975_v16 = vadd.f32 %v17718_v8, %v4732_v35  ;;  %v13435_v8 = vld [vmem:[#allocation7 + $0x34c] ss:$16 sps:$4 sm:$0xff]  }
 0x285   :  { %v4961_v43 = vpop.f32.mrf.mxu0  ;;  %v5058_v32 = vpop.f32.mrf.mxu1 }
 0x286   :  { %v4976_v52 = vadd.f32 %v4961_v43, %v4733_v45  ;;  %v5223_v41 = vadd.f32 %v5058_v32, %v4972_v39  ;;  %v17719_v43 = vld [vmem:[#allocation45_spill] sm:$0xff] }
 0x287   :  { %v4963_v11 = vpop.f32.mrf.mxu0  ;;  %v5060_v29 = vpop.f32.mrf.mxu1  ;;  %v4027_v32 = vadd.f32 %v17719_v43, %v17028_v61  ;;  %v13442_v43 = vld [vmem:[#allocation7 + $0x528] ss:$16 sps:$4 sm:$0xff]  }
 0x288   :  { %v5224_v12 = vadd.f32 %v5060_v29, %v4973_v60  ;;  %v4977_v55 = vadd.f32 %v4963_v11, %v4734_v19  ;;  %v4029_v29 = vadd.f32 %v17720_v47, %v17031_v20  ;;  %v5235_v11 = vmax.f32 %v17722_v28, %v5223_v41  ;;  %v17726_v20 = vld [vmem:[#allocation38_spill] sm:$0xff]  ;;  %v13450_v47 = vld [vmem:[#allocation7 + $0x50c] ss:$16 sps:$4 sm:$0xff]  }
 0x289   :  { %v13403_v60 = vld [vmem:[#allocation7 + $0x3e8] ss:$16 sps:$4 sm:$0xff]  }
 0x28a   :  { %v5236_v54 = vmax.f32 %v17721_v56, %v5224_v12  ;;  %v13415_v41 = vld [vmem:[#allocation7 + $0x3a8] ss:$16 sps:$4 sm:$0xff]   ;;  %v13456_v56 = vld [vmem:[#allocation7 + $0xe4] ss:$16 sps:$4 sm:$0xff]  }
 0x28b   :  { %v5129_v25 = vpop.f32.mrf.mxu0  ;;  %v5206_v26 = vpop.f32.mrf.mxu1  ;;  %v13418_v12 = vld [vmem:[#allocation7 + $0x5a8] ss:$16 sps:$4 sm:$0xff]  }
 0x28c   :  { %v5219_v63 = vadd.f32 %v5129_v25, %v4968_v57  ;;  %v5221_v18 = vadd.f32 %v5206_v26, %v4970_v23  ;;  %v13457_v28 = vld [vmem:[#allocation7 + $0x4c8] ss:$16 sps:$4 sm:$0xff]  }
 0x28d   :  { %v5131_v13 = vpop.f32.mrf.mxu0  ;;  %v5208_v34 = vpop.f32.mrf.mxu1 }
 0x28e   :  { %v5233_v40 = vmax.f32 %v4022_v37, %v5221_v18  ;;  %v5220_v21 = vadd.f32 %v5131_v13, %v4969_v4  ;;  %v5222_v36 = vadd.f32 %v5208_v34, %v4971_v27  ;;  %v5231_v10 = vmax.f32 %v17716_v59, %v5219_v63  ;;  %v13406_v13 = vld [vmem:[#allocation7 + $0x5e8] ss:$16 sps:$4 sm:$0xff]  }
 0x28f   :  { %v5135_v2 = vpop.f32.mrf.mxu0  ;;  %v5212_v1 = vpop.f32.mrf.mxu1  ;;  %v13421_v59 = vld [vmem:[#allocation7 + $0x388] ss:$16 sps:$4 sm:$0xff]  }
 0x290   :  { %v5242_v6 = vmax.f32 %v5230_v44, %v5233_v40  ;;  %v5232_v7 = vmax.f32 %v17717_v15, %v5220_v21  ;;  %v5234_v33 = vmax.f32 %v17038_v49, %v5222_v36  ;;  %v5225_v37 = vadd.f32 %v5135_v2, %v4974_v53  ;;  %v13411_v44 = vld [vmem:[#allocation7 + $0x3cc] ss:$16 sps:$4 sm:$0xff]   ;;  %v13409_v21 = vld [vmem:[#allocation7 + $0x3c8] ss:$16 sps:$4 sm:$0xff]  }
 0x291   :  { %v5227_v9 = vadd.f32 %v5212_v1, %v4976_v52  ;;  %v5137_v17 = vpop.f32.mrf.mxu0  ;;  %v5214_v5 = vpop.f32.mrf.mxu1  ;;  %v13414_v40 = vld [vmem:[#allocation7 + $0x5cc] ss:$16 sps:$4 sm:$0xff]   ;;  %v13412_v36 = vld [vmem:[#allocation7 + $0x5c8] ss:$16 sps:$4 sm:$0xff]   ;;  %v17727_v52 = vmov 0  }
 0x292   :  { %v5241_v24 = vmax.f32 %v5229_v31, %v5232_v7  ;;  %v5243_v3 = vmax.f32 %v5231_v10, %v5234_v33  ;;  %v5226_v49 = vadd.f32 %v5137_v17, %v4975_v16  ;;  %v5228_v14 = vadd.f32 %v5214_v5, %v4977_v55  ;;  %v13420_v31 = vld [vmem:[#allocation7 + $0x5ac] ss:$16 sps:$4 sm:$0xff]   ;;  %v13424_v10 = vld [vmem:[#allocation7 + $0x588] ss:$16 sps:$4 sm:$0xff]  }
 0x293   :  { %v5239_v38 = vmax.f32 %v17041_v0, %v5227_v9  ;;  %v5248_v58 = vadd.f32 %v5242_v6, %v17723_v46  ;;  %v5237_v57 = vmax.f32 %v17724_v30, %v5225_v37  ;;  %v13423_v2 = vld [vmem:[#allocation7 + $0x38c] ss:$16 sps:$4 sm:$0xff]   ;;  %v13427_v7 = vld [vmem:[#allocation7 + $0x368] ss:$16 sps:$4 sm:$0xff]   ;;  %v13468_v30 = vld [vmem:[#allocation7 + $0xa4] ss:$16 sps:$4 sm:$0xff]  }
 0x294   :  { %v5238_v51 = vmax.f32 %v4027_v32, %v5226_v49  ;;  %v5240_v61 = vmax.f32 %v4029_v29, %v5228_v14  ;;  %v5247_v45 = vadd.f32 %v5241_v24, %v17725_v62  ;;  %v5249_v35 = vadd.f32 %v5243_v3, %v17726_v20  ;;  %v13426_v1 = vld [vmem:[#allocation7 + $0x58c] ss:$16 sps:$4 sm:$0xff]   ;;  %v13430_v33 = vld [vmem:[#allocation7 + $0x568] ss:$16 sps:$4 sm:$0xff]   ;;  %v13462_v14 = vld [vmem:[#allocation7 + $0xc4] ss:$16 sps:$4 sm:$0xff]  }
 0x295   :  { %v5245_v23 = vmax.f32 %v5236_v54, %v5239_v38  ;;  %v5254_v0 = vmax.f32 %v5248_v58, 0.0  ;;  %v13429_v6 = vld [vmem:[#allocation7 + $0x36c] ss:$16 sps:$4 sm:$0xff]   ;;  %v13433_v55 = vld [vmem:[#allocation7 + $0x348] ss:$16 sps:$4 sm:$0xff]  }
 0x296   :  { %v5244_v25 = vmax.f32 %v5235_v11, %v5238_v51  ;;  %v5246_v26 = vmax.f32 %v5237_v57, %v5240_v61  ;;  %v5253_v18 = vmax.f32 %v5247_v45, 0.0  ;;  %v5255_v50 = vmax.f32 %v5249_v35, 0.0  ;;  %v13432_v15 = vld [vmem:[#allocation7 + $0x56c] ss:$16 sps:$4 sm:$0xff]   ;;  %v13436_v37 = vld [vmem:[#allocation7 + $0x548] ss:$16 sps:$4 sm:$0xff]  }
 0x297   :  { %v5251_v48 = vadd.f32 %v5245_v23, %v17723_v46  ;;  %v13438_v16 = vld [vmem:[#allocation7 + $0x54c] ss:$16 sps:$4 sm:$0xff]   ;;  %v13439_v5 = vld [vmem:[#allocation7 + $0x328] ss:$16 sps:$4 sm:$0xff]   ;;  %v13454_v38 = vld [vmem:[#allocation7 + $0xe0] ss:$16 sps:$4 sm:$0xff]  }
 0x298   :  { %v5250_v27 = vadd.f32 %v5244_v25, %v17725_v62  ;;  %v5252_v63 = vadd.f32 %v5246_v26, %v17726_v20  ;;  %v13441_v9 = vld [vmem:[#allocation7 + $0x32c] ss:$16 sps:$4 sm:$0xff]   ;;  %v13445_v29 = vld [vmem:[#allocation7 + $0x308] ss:$16 sps:$4 sm:$0xff]   ;;  %v13460_v11 = vld [vmem:[#allocation7 + $0xc0] ss:$16 sps:$4 sm:$0xff]  }
 0x299   :  { %v5257_v4 = vmax.f32 %v5251_v48, 0.0  ;;  %v13444_v17 = vld [vmem:[#allocation7 + $0x52c] ss:$16 sps:$4 sm:$0xff]   ;;  %v13448_v24 = vld [vmem:[#allocation7 + $0x508] ss:$16 sps:$4 sm:$0xff]  }
 0x29a   :  { %v5256_v39 = vmax.f32 %v5250_v27, 0.0  ;;  %v5258_v53 = vmax.f32 %v5252_v63, 0.0  ;;  %v13447_v32 = vld [vmem:[#allocation7 + $0x30c] ss:$16 sps:$4 sm:$0xff]   ;;  %v13451_v54 = vld [vmem:[#allocation7 + $0x4e8] ss:$16 sps:$4 sm:$0xff]  }
 0x29b   :  { %v17071_v19 = vpack.c.bf16 %v5257_v4, %v5254_v0  ;;  %v13453_v3 = vld [vmem:[#allocation7 + $0x4ec] ss:$16 sps:$4 sm:$0xff]   ;;  %v13463_v57 = vld [vmem:[#allocation7 + $0x4a8] ss:$16 sps:$4 sm:$0xff]   ;;  %v13466_v23 = vld [vmem:[#allocation7 + $0xa0] ss:$16 sps:$4 sm:$0xff]  }
 0x29c   :  { %v17073_v34 = vpack.c.bf16 %v5256_v39, %v5253_v18  ;;  %v17075_v22 = vpack.c.bf16 %v5258_v53, %v5255_v50  ;;  %v13459_v49 = vld [vmem:[#allocation7 + $0x4cc] ss:$16 sps:$4 sm:$0xff]   ;;  %v13474_v61 = vld [vmem:[#allocation7 + $0x84] ss:$16 sps:$4 sm:$0xff]   ;;  %v13469_v62 = vld [vmem:[#allocation7 + $0x488] ss:$16 sps:$4 sm:$0xff]  }
 0x29d   :  { %5970 = vmatprep.mubr.bf16.mxu0 %v17071_v19  ;;  %v17728_v46 = vld [vmem:[#allocation39_spill] sm:$0xff]  ;;  %v13480_v35 = vld [vmem:[#allocation7 + $0x64] ss:$16 sps:$4 sm:$0xff]  }
 0x29e   :  { %5971 = vmatmul.mubr.bf16.vlgmr.msra.gmra.mxu0 %v17073_v34  ;;  %6014 = vmatmul.mubr.bf16.vlgmr.msra.gmra.mxu1 %v17075_v22  ;;  %v13465_v58 = vld [vmem:[#allocation7 + $0x4ac] ss:$16 sps:$4 sm:$0xff]   ;;  %v13472_v45 = vld [vmem:[#allocation7 + $0x80] ss:$16 sps:$4 sm:$0xff]   ;;  %v13475_v48 = vld [vmem:[#allocation7 + $0x468] ss:$16 sps:$4 sm:$0xff]  }
 0x29f   :  { %6025 = vmatpush1.bf16.msra.mxu1 %v13403_v60  ;;  %6068 = vmatpush1.bf16.msra.mxu0 %v13406_v13  ;;  %v13471_v51 = vld [vmem:[#allocation7 + $0x48c] ss:$16 sps:$4 sm:$0xff]   ;;  %v13478_v25 = vld [vmem:[#allocation7 + $0x60] ss:$16 sps:$4 sm:$0xff]   ;;  %v13486_v0 = vld [vmem:[#allocation7 + $0x44] ss:$16 sps:$4 sm:$0xff]  }
 0x2a0   :  { %6056 = vmatprep.mubr.bf16.mxu1 %v17071_v19  ;;  %6026 = vmatprep.subr.bf16.mxu1 %v13411_v44  ;;  %v13477_v20 = vld [vmem:[#allocation7 + $0x46c] ss:$16 sps:$4 sm:$0xff]   ;;  %v13481_v4 = vld [vmem:[#allocation7 + $0x448] ss:$16 sps:$4 sm:$0xff]   ;;  %v13484_v27 = vld [vmem:[#allocation7 + $0x40] ss:$16 sps:$4 sm:$0xff]  }
 0x2a1   :  { %6069 = vmatprep.subr.bf16.mxu0 %v13414_v40  ;;  %6099 = vmatprep.mubr.bf16.mxu0 %v17727_v52  ;;  %v13483_v26 = vld [vmem:[#allocation7 + $0x44c] ss:$16 sps:$4 sm:$0xff]   ;;  %v13492_v18 = vld [vmem:[#allocation7 + $0x24] ss:$16 sps:$4 sm:$0xff]   ;;  %v13487_v50 = vld [vmem:[#allocation7 + $0x428] ss:$16 sps:$4 sm:$0xff]  }
 0x2a2   :  { %v13489_v63 = vld [vmem:[#allocation7 + $0x42c] ss:$16 sps:$4 sm:$0xff]   ;;  %v13490_v39 = vld [vmem:[#allocation7 + $0x20] ss:$16 sps:$4 sm:$0xff]   ;;  %v13498_v60 = vld [vmem:[#allocation7 + $0x4] ss:$16 sps:$4 sm:$0xff]  }
 0x2a3   :  { %6027 = vmatpush1.bf16.msra.mxu1 %v13409_v21  ;;  %6070 = vmatpush1.bf16.msra.mxu0 %v13412_v36  ;;  %v13495_v53 = vld [vmem:[#allocation7 + $0x40c] ss:$16 sps:$4 sm:$0xff]   ;;  %v13493_v13 = vld [vmem:[#allocation7 + $0x408] ss:$16 sps:$4 sm:$0xff]   ;;  %v13496_v44 = vld [vmem:[#allocation7] ss:$16 sps:$4 sm:$0xff]  }
 0x2a4   :  { %6028 = vmatprep.subr.bf16.mxu1 %v13417_v42  ;;  %6071 = vmatprep.subr.bf16.mxu0 %v13420_v31  ;;  %v13501_v40 = vld [vmem:[#allocation7 + $0x1e4] ss:$16 sps:$4 sm:$0xff]   ;;  %v13499_v36 = vld [vmem:[#allocation7 + $0x1e0] ss:$16 sps:$4 sm:$0xff]  }
 0x2a5   :  { %v13504_v21 = vld [vmem:[#allocation7 + $0x2e4] ss:$16 sps:$4 sm:$0xff]   ;;  %v13502_v42 = vld [vmem:[#allocation7 + $0x2e0] ss:$16 sps:$4 sm:$0xff]  }
 0x2a6   :  { %v13507_v31 = vld [vmem:[#allocation7 + $0x1c4] ss:$16 sps:$4 sm:$0xff]  }
 0x2a7   :  { %6029 = vmatpush1.bf16.msra.mxu1 %v13415_v41  ;;  %6072 = vmatpush1.bf16.msra.mxu0 %v13418_v12  ;;  %v13510_v41 = vld [vmem:[#allocation7 + $0x2c4] ss:$16 sps:$4 sm:$0xff]   ;;  %v13505_v12 = vld [vmem:[#allocation7 + $0x1c0] ss:$16 sps:$4 sm:$0xff]  }
 0x2a8   :  { %6030 = vmatprep.subr.bf16.mxu1 %v13423_v2  ;;  %6073 = vmatprep.subr.bf16.mxu0 %v13426_v1  ;;  %v13508_v2 = vld [vmem:[#allocation7 + $0x2c0] ss:$16 sps:$4 sm:$0xff]   ;;  %v13513_v1 = vld [vmem:[#allocation7 + $0x1a4] ss:$16 sps:$4 sm:$0xff]  }
 0x2ab   :  { %6031 = vmatpush1.bf16.msra.mxu1 %v13421_v59  ;;  %6074 = vmatpush1.bf16.msra.mxu0 %v13424_v10  ;;  %v13516_v59 = vld [vmem:[#allocation7 + $0x2a4] ss:$16 sps:$4 sm:$0xff]   ;;  %v13511_v10 = vld [vmem:[#allocation7 + $0x1a0] ss:$16 sps:$4 sm:$0xff]  }
 0x2ac   :  { %6032 = vmatprep.subr.bf16.mxu1 %v13429_v6  ;;  %6075 = vmatprep.subr.bf16.mxu0 %v13432_v15  ;;  %v13514_v6 = vld [vmem:[#allocation7 + $0x2a0] ss:$16 sps:$4 sm:$0xff]   ;;  %v13519_v15 = vld [vmem:[#allocation7 + $0x184] ss:$16 sps:$4 sm:$0xff]  }
 0x2af   :  { %6033 = vmatpush1.bf16.msra.mxu1 %v13427_v7  ;;  %6076 = vmatpush1.bf16.msra.mxu0 %v13430_v33  ;;  %v13522_v7 = vld [vmem:[#allocation7 + $0x284] ss:$16 sps:$4 sm:$0xff]   ;;  %v13517_v33 = vld [vmem:[#allocation7 + $0x180] ss:$16 sps:$4 sm:$0xff]  }
 0x2b0   :  { %6034 = vmatprep.subr.bf16.mxu1 %v13435_v8  ;;  %6077 = vmatprep.subr.bf16.mxu0 %v13438_v16  ;;  %v13520_v8 = vld [vmem:[#allocation7 + $0x280] ss:$16 sps:$4 sm:$0xff]   ;;  %v13525_v16 = vld [vmem:[#allocation7 + $0x164] ss:$16 sps:$4 sm:$0xff]  }
 0x2b3   :  { %6035 = vmatpush1.bf16.msra.mxu1 %v13433_v55  ;;  %6078 = vmatpush1.bf16.msra.mxu0 %v13436_v37  ;;  %v13528_v55 = vld [vmem:[#allocation7 + $0x264] ss:$16 sps:$4 sm:$0xff]   ;;  %v13523_v37 = vld [vmem:[#allocation7 + $0x160] ss:$16 sps:$4 sm:$0xff]  }
 0x2b4   :  { %6036 = vmatprep.subr.bf16.mxu1 %v13441_v9  ;;  %6079 = vmatprep.subr.bf16.mxu0 %v13444_v17  ;;  %v13526_v9 = vld [vmem:[#allocation7 + $0x260] ss:$16 sps:$4 sm:$0xff]   ;;  %v13531_v17 = vld [vmem:[#allocation7 + $0x144] ss:$16 sps:$4 sm:$0xff]  }
 0x2b7   :  { %6037 = vmatpush1.bf16.msra.mxu1 %v13439_v5  ;;  %6080 = vmatpush1.bf16.msra.mxu0 %v13442_v43  ;;  %v13534_v5 = vld [vmem:[#allocation7 + $0x244] ss:$16 sps:$4 sm:$0xff]   ;;  %v13529_v43 = vld [vmem:[#allocation7 + $0x140] ss:$16 sps:$4 sm:$0xff]  }
 0x2b8   :  { %6038 = vmatprep.subr.bf16.mxu1 %v13447_v32  ;;  %6081 = vmatprep.subr.bf16.mxu0 %v13450_v47  ;;  %v13532_v32 = vld [vmem:[#allocation7 + $0x240] ss:$16 sps:$4 sm:$0xff]   ;;  %v13537_v47 = vld [vmem:[#allocation7 + $0x124] ss:$16 sps:$4 sm:$0xff]  }
 0x2bb   :  { %6039 = vmatpush1.bf16.msra.mxu1 %v13445_v29  ;;  %6082 = vmatpush1.bf16.msra.mxu0 %v13448_v24  ;;  %v13540_v29 = vld [vmem:[#allocation7 + $0x224] ss:$16 sps:$4 sm:$0xff]   ;;  %v13535_v24 = vld [vmem:[#allocation7 + $0x120] ss:$16 sps:$4 sm:$0xff]  }
 0x2bc   :  { %6040 = vmatprep.subr.bf16.mxu1 %v13453_v3  ;;  %6590 = vmatprep.subr.bf16.mxu0 %v13456_v56  ;;  %v13538_v3 = vld [vmem:[#allocation7 + $0x220] ss:$16 sps:$4 sm:$0xff]   ;;  %v13543_v56 = vld [vmem:[#allocation7 + $0x104] ss:$16 sps:$4 sm:$0xff]  }
 0x2be   :  { %6100 = vmatmul.mubr.bf16.vlgmr.msra.gmra.mxu0 %v17075_v22 }
 0x2bf   :  { %6041 = vmatpush2.bf16.msra.mxu1 %v13451_v54  ;;  %6591 = vmatpush1.bf16.msra.mxu0 %v13454_v38  ;;  %v13546_v54 = vld [vmem:[#allocation7 + $0x204] ss:$16 sps:$4 sm:$0xff]   ;;  %v13541_v38 = vld [vmem:[#allocation7 + $0x100] ss:$16 sps:$4 sm:$0xff]  }
 0x2c0   :  { %6622 = vmatprep.mubr.bf16.mxu0 %v17728_v46  ;;  %6042 = vmatprep.subr.bf16.mxu1 %v13459_v49  ;;  %v13544_v49 = vld [vmem:[#allocation7 + $0x200] ss:$16 sps:$4 sm:$0xff]  }
 0x2c1   :  { %6592 = vmatprep.subr.bf16.mxu0 %v13462_v14  ;;  %v13549_v14 = vld [vmem:[#allocation7 + $0xec] ss:$16 sps:$4 sm:$0xff]  }
 0x2c3   :  { %6043 = vmatpush2.bf16.msra.mxu1 %v13457_v28  ;;  %6593 = vmatpush1.bf16.msra.mxu0 %v13460_v11  ;;  %v13552_v28 = vld [vmem:[#allocation7 + $0x2ec] ss:$16 sps:$4 sm:$0xff]   ;;  %v13547_v11 = vld [vmem:[#allocation7 + $0xe8] ss:$16 sps:$4 sm:$0xff]  }
 0x2c4   :  { %6044 = vmatprep.subr.bf16.mxu1 %v13465_v58  ;;  %6594 = vmatprep.subr.bf16.mxu0 %v13468_v30  ;;  %v13550_v58 = vld [vmem:[#allocation7 + $0x2e8] ss:$16 sps:$4 sm:$0xff]   ;;  %v13555_v30 = vld [vmem:[#allocation7 + $0xcc] ss:$16 sps:$4 sm:$0xff]  }
 0x2c7   :  { %6045 = vmatpush2.bf16.msra.mxu1 %v13463_v57  ;;  %6595 = vmatpush1.bf16.msra.mxu0 %v13466_v23  ;;  %v13558_v57 = vld [vmem:[#allocation7 + $0x2cc] ss:$16 sps:$4 sm:$0xff]   ;;  %v17729_v23 = vld [vmem:[#allocation40_spill] sm:$0xff] }
 0x2c8   :  { %6046 = vmatprep.subr.bf16.mxu1 %v13471_v51  ;;  %6596 = vmatprep.subr.bf16.mxu0 %v13474_v61  ;;  %v17730_v51 = vld [vmem:[#allocation41_spill] sm:$0xff] }
 0x2c9   :  { %v13553_v61 = vld [vmem:[#allocation7 + $0xc8] ss:$16 sps:$4 sm:$0xff]  }
 0x2cb   :  { %6047 = vmatpush2.bf16.msra.mxu1 %v13469_v62  ;;  %6597 = vmatpush1.bf16.msra.mxu0 %v13472_v45  ;;  %v13556_v62 = vld [vmem:[#allocation7 + $0x2c8] ss:$16 sps:$4 sm:$0xff]   ;;  %v13561_v45 = vld [vmem:[#allocation7 + $0xac] ss:$16 sps:$4 sm:$0xff]  }
 0x2cc   :  { %6048 = vmatprep.subr.bf16.mxu1 %v13477_v20  ;;  %6598 = vmatprep.subr.bf16.mxu0 %v13480_v35  ;;  %v13564_v20 = vld [vmem:[#allocation7 + $0x2ac] ss:$16 sps:$4 sm:$0xff]   ;;  %v13559_v35 = vld [vmem:[#allocation7 + $0xa8] ss:$16 sps:$4 sm:$0xff]  }
 0x2cf   :  { %6049 = vmatpush2.bf16.msra.mxu1 %v13475_v48  ;;  %6599 = vmatpush1.bf16.msra.mxu0 %v13478_v25  ;;  %v13562_v48 = vld [vmem:[#allocation7 + $0x2a8] ss:$16 sps:$4 sm:$0xff]   ;;  %v13567_v25 = vld [vmem:[#allocation7 + $0x8c] ss:$16 sps:$4 sm:$0xff]  }
 0x2d0   :  { %6050 = vmatprep.subr.bf16.mxu1 %v13483_v26  ;;  %6600 = vmatprep.subr.bf16.mxu0 %v13486_v0  ;;  %v13570_v26 = vld [vmem:[#allocation7 + $0x28c] ss:$16 sps:$4 sm:$0xff]   ;;  %v13565_v0 = vld [vmem:[#allocation7 + $0x88] ss:$16 sps:$4 sm:$0xff]  }
 0x2d3   :  { %6051 = vmatpush2.bf16.msra.mxu1 %v13481_v4  ;;  %6601 = vmatpush1.bf16.msra.mxu0 %v13484_v27  ;;  %v13568_v4 = vld [vmem:[#allocation7 + $0x288] ss:$16 sps:$4 sm:$0xff]   ;;  %v13573_v27 = vld [vmem:[#allocation7 + $0x6c] ss:$16 sps:$4 sm:$0xff]  }
 0x2d4   :  { %6052 = vmatprep.subr.bf16.mxu1 %v13489_v63  ;;  %6602 = vmatprep.subr.bf16.mxu0 %v13492_v18  ;;  %v13576_v63 = vld [vmem:[#allocation7 + $0x26c] ss:$16 sps:$4 sm:$0xff]   ;;  %v13571_v18 = vld [vmem:[#allocation7 + $0x68] ss:$16 sps:$4 sm:$0xff]  }
 0x2d7   :  { %6053 = vmatpush2.bf16.msra.mxu1 %v13487_v50  ;;  %6603 = vmatpush1.bf16.msra.mxu0 %v13490_v39  ;;  %v13574_v50 = vld [vmem:[#allocation7 + $0x268] ss:$16 sps:$4 sm:$0xff]   ;;  %v13579_v39 = vld [vmem:[#allocation7 + $0x4c] ss:$16 sps:$4 sm:$0xff]  }
 0x2d8   :  { %6054 = vmatprep.subr.bf16.mxu1 %v13495_v53  ;;  %6604 = vmatprep.subr.bf16.mxu0 %v13498_v60  ;;  %v13582_v53 = vld [vmem:[#allocation7 + $0x24c] ss:$16 sps:$4 sm:$0xff]   ;;  %v13577_v60 = vld [vmem:[#allocation7 + $0x48] ss:$16 sps:$4 sm:$0xff]  }
 0x2db   :  { %6055 = vmatpush2.bf16.msra.mxu1 %v13493_v13  ;;  %6605 = vmatpush1.bf16.msra.mxu0 %v13496_v44  ;;  %v13580_v13 = vld [vmem:[#allocation7 + $0x248] ss:$16 sps:$4 sm:$0xff]   ;;  %v13585_v44 = vld [vmem:[#allocation7 + $0x2c] ss:$16 sps:$4 sm:$0xff]  }
 0x2dc   :  { %6606 = vmatprep.subr.bf16.mxu0 %v13501_v40  ;;  %6633 = vmatprep.subr.bf16.mxu1 %v13504_v21  ;;  %v13588_v40 = vld [vmem:[#allocation7 + $0x22c] ss:$16 sps:$4 sm:$0xff]   ;;  %v13583_v21 = vld [vmem:[#allocation7 + $0x28] ss:$16 sps:$4 sm:$0xff]  }
 0x2de   :  { %6057 = vmatmul.mubr.bf16.vlgmr.msra.gmra.mxu1 %v17073_v34 }
 0x2df   :  { %6607 = vmatpush2.bf16.msra.mxu0 %v13499_v36  ;;  %6634 = vmatpush1.bf16.msra.mxu1 %v13502_v42  ;;  %v13586_v36 = vld [vmem:[#allocation7 + $0x228] ss:$16 sps:$4 sm:$0xff]   ;;  %v13591_v42 = vld [vmem:[#allocation7 + $0xc] ss:$16 sps:$4 sm:$0xff]  }
 0x2e0   :  { %6608 = vmatprep.subr.bf16.mxu0 %v13507_v31  ;;  %6635 = vmatprep.subr.bf16.mxu1 %v13510_v41  ;;  %v13594_v31 = vld [vmem:[#allocation7 + $0x20c] ss:$16 sps:$4 sm:$0xff]   ;;  %v6869_v41 = vshll.u32 %v17728_v46, 16 }
 0x2e1   :  { %6665 = vmatprep.mubr.bf16.mxu1 %v17727_v52 }
 0x2e3   :  { %6609 = vmatpush2.bf16.msra.mxu0 %v13505_v12  ;;  %6636 = vmatpush1.bf16.msra.mxu1 %v13508_v2  ;;  %v13589_v12 = vld [vmem:[#allocation7 + $0x8] ss:$16 sps:$4 sm:$0xff]  }
 0x2e4   :  { %6610 = vmatprep.subr.bf16.mxu0 %v13513_v1  ;;  %6637 = vmatprep.subr.bf16.mxu1 %v13516_v59  ;;  %v13592_v2 = vld [vmem:[#allocation7 + $0x208] ss:$16 sps:$4 sm:$0xff]   ;;  %v13597_v1 = vld [vmem:[#allocation7 + $0x1ec] ss:$16 sps:$4 sm:$0xff]   ;;  %v13600_v59 = vld [vmem:[#allocation7 + $0x6e4] ss:$16 sps:$4 sm:$0xff]  }
 0x2e7   :  { %6611 = vmatpush2.bf16.msra.mxu0 %v13511_v10  ;;  %6638 = vmatpush1.bf16.msra.mxu1 %v13514_v6  ;;  %v6871_v10 = vrot.slane %v6869_v41, 1  ;;  %v13595_v6 = vld [vmem:[#allocation7 + $0x1e8] ss:$16 sps:$4 sm:$0xff]   ;;  %v13667_v41 = vld [vmem:[#allocation7 + $0x760] ss:$16 sps:$4 sm:$0xff]  }
 0x2e8   :  { %6612 = vmatprep.subr.bf16.mxu0 %v13519_v15  ;;  %6639 = vmatprep.subr.bf16.mxu1 %v13522_v7  ;;  %v13598_v15 = vld [vmem:[#allocation7 + $0x6e0] ss:$16 sps:$4 sm:$0xff]   ;;  %v6867_v7 = vshrl.u32 %v17728_v46, 16 }
 0x2eb   :  { %6613 = vmatpush2.bf16.msra.mxu0 %v13517_v33  ;;  %6640 = vmatpush1.bf16.msra.mxu1 %v13520_v8  ;;  %v13603_v33 = vld [vmem:[#allocation7 + $0x1cc] ss:$16 sps:$4 sm:$0xff]   ;;  %v13606_v8 = vld [vmem:[#allocation7 + $0x6c4] ss:$16 sps:$4 sm:$0xff]  }
 0x2ec   :  { %6614 = vmatprep.subr.bf16.mxu0 %v13525_v16  ;;  %6641 = vmatprep.subr.bf16.mxu1 %v13528_v55  ;;  %v17092_v16 = vor.u32 %v6871_v10, %v6867_v7  ;;  %v13601_v55 = vld [vmem:[#allocation7 + $0x1c8] ss:$16 sps:$4 sm:$0xff]   ;;  %v13684_v10 = vld [vmem:[#allocation7 + $0x824] ss:$16 sps:$4 sm:$0xff]   ;;  %v13679_v7 = vld [vmem:[#allocation7 + $0x720] ss:$16 sps:$4 sm:$0xff]  }
 0x2ef   :  { %6615 = vmatpush2.bf16.msra.mxu0 %v13523_v37  ;;  %6642 = vmatpush1.bf16.msra.mxu1 %v13526_v9  ;;  %v13604_v37 = vld [vmem:[#allocation7 + $0x6c0] ss:$16 sps:$4 sm:$0xff]   ;;  %v13609_v9 = vld [vmem:[#allocation7 + $0x1ac] ss:$16 sps:$4 sm:$0xff]  }
 0x2f0   :  { %6616 = vmatprep.subr.bf16.mxu0 %v13531_v17  ;;  %6643 = vmatprep.subr.bf16.mxu1 %v13534_v5  ;;  %v13612_v17 = vld [vmem:[#allocation7 + $0x6a4] ss:$16 sps:$4 sm:$0xff]   ;;  %v13607_v5 = vld [vmem:[#allocation7 + $0x1a8] ss:$16 sps:$4 sm:$0xff]  }
 0x2f3   :  { %6617 = vmatpush2.bf16.msra.mxu0 %v13529_v43  ;;  %6644 = vmatpush1.bf16.msra.mxu1 %v13532_v32  ;;  %v13610_v43 = vld [vmem:[#allocation7 + $0x6a0] ss:$16 sps:$4 sm:$0xff]   ;;  %v13615_v32 = vld [vmem:[#allocation7 + $0x18c] ss:$16 sps:$4 sm:$0xff]  }
 0x2f4   :  { %6618 = vmatprep.subr.bf16.mxu0 %v13537_v47  ;;  %6645 = vmatprep.subr.bf16.mxu1 %v13540_v29  ;;  %v13618_v47 = vld [vmem:[#allocation7 + $0x684] ss:$16 sps:$4 sm:$0xff]   ;;  %v13613_v29 = vld [vmem:[#allocation7 + $0x188] ss:$16 sps:$4 sm:$0xff]  }
 0x2f7   :  { %6619 = vmatpush2.bf16.msra.mxu0 %v13535_v24  ;;  %6646 = vmatpush1.bf16.msra.mxu1 %v13538_v3  ;;  %v13616_v24 = vld [vmem:[#allocation7 + $0x680] ss:$16 sps:$4 sm:$0xff]   ;;  %v13621_v3 = vld [vmem:[#allocation7 + $0x16c] ss:$16 sps:$4 sm:$0xff]  }
 0x2f8   :  { %6620 = vmatprep.subr.bf16.mxu0 %v13543_v56  ;;  %6647 = vmatprep.subr.bf16.mxu1 %v13546_v54  ;;  %v13624_v56 = vld [vmem:[#allocation7 + $0x664] ss:$16 sps:$4 sm:$0xff]   ;;  %v13619_v54 = vld [vmem:[#allocation7 + $0x168] ss:$16 sps:$4 sm:$0xff]  }
 0x2fb   :  { %6621 = vmatpush2.bf16.msra.mxu0 %v13541_v38  ;;  %6648 = vmatpush1.bf16.msra.mxu1 %v13544_v49  ;;  %v13622_v38 = vld [vmem:[#allocation7 + $0x660] ss:$16 sps:$4 sm:$0xff]   ;;  %v13627_v49 = vld [vmem:[#allocation7 + $0x14c] ss:$16 sps:$4 sm:$0xff]  }
 0x2fc   :  { %6676 = vmatprep.subr.bf16.mxu1 %v13549_v14  ;;  %6719 = vmatprep.subr.bf16.mxu0 %v13552_v28  ;;  %v13630_v14 = vld [vmem:[#allocation7 + $0x644] ss:$16 sps:$4 sm:$0xff]   ;;  %v13625_v28 = vld [vmem:[#allocation7 + $0x148] ss:$16 sps:$4 sm:$0xff]  }
 0x2fe   :  { %6623 = vmatmul.mubr.bf16.vlgmr.msra.gmra.mxu0 %v17729_v23  ;;  %6666 = vmatmul.mubr.bf16.vlgmr.msra.gmra.mxu1 %v17730_v51 }
 0x2ff   :  { %6677 = vmatpush1.bf16.msra.mxu1 %v13547_v11  ;;  %6708 = vmatprep.mubr.bf16.mxu1 %v17728_v46  ;;  %v13628_v11 = vld [vmem:[#allocation7 + $0x640] ss:$16 sps:$4 sm:$0xff]  }
 0x300   :  { %6720 = vmatpush1.bf16.msra.mxu0 %v13550_v58  ;;  %6678 = vmatprep.subr.bf16.mxu1 %v13555_v30  ;;  %v13633_v58 = vld [vmem:[#allocation7 + $0x12c] ss:$16 sps:$4 sm:$0xff]   ;;  %v13636_v30 = vld [vmem:[#allocation7 + $0x624] ss:$16 sps:$4 sm:$0xff]  }
 0x301   :  { %6721 = vmatprep.subr.bf16.mxu0 %v13558_v57  ;;  %6751 = vmatprep.mubr.bf16.mxu0 %v17727_v52  ;;  %v13631_v57 = vld [vmem:[#allocation7 + $0x128] ss:$16 sps:$4 sm:$0xff]  }
 0x303   :  { %6679 = vmatpush1.bf16.msra.mxu1 %v13553_v61  ;;  %v13634_v61 = vld [vmem:[#allocation7 + $0x620] ss:$16 sps:$4 sm:$0xff]  }
 0x304   :  { %6722 = vmatpush1.bf16.msra.mxu0 %v13556_v62  ;;  %6680 = vmatprep.subr.bf16.mxu1 %v13561_v45  ;;  %v13639_v62 = vld [vmem:[#allocation7 + $0x10c] ss:$16 sps:$4 sm:$0xff]   ;;  %v13642_v45 = vld [vmem:[#allocation7 + $0x604] ss:$16 sps:$4 sm:$0xff]  }
 0x305   :  { %6723 = vmatprep.subr.bf16.mxu0 %v13564_v20  ;;  %v13637_v20 = vld [vmem:[#allocation7 + $0x108] ss:$16 sps:$4 sm:$0xff]  }
 0x307   :  { %6681 = vmatpush1.bf16.msra.mxu1 %v13559_v35  ;;  %v13640_v35 = vld [vmem:[#allocation7 + $0x600] ss:$16 sps:$4 sm:$0xff]  }
 0x308   :  { %6724 = vmatpush1.bf16.msra.mxu0 %v13562_v48  ;;  %6682 = vmatprep.subr.bf16.mxu1 %v13567_v25  ;;  %v13648_v48 = vld [vmem:[#allocation7 + $0x8e4] ss:$16 sps:$4 sm:$0xff]  }
 0x309   :  { %6725 = vmatprep.subr.bf16.mxu0 %v13570_v26  ;;  %v13645_v25 = vld [vmem:[#allocation7 + $0x7e4] ss:$16 sps:$4 sm:$0xff]   ;;  %v13646_v26 = vld [vmem:[#allocation7 + $0x8e0] ss:$16 sps:$4 sm:$0xff]  }
 0x30b   :  { %6683 = vmatpush1.bf16.msra.mxu1 %v13565_v0  ;;  %v13643_v0 = vld [vmem:[#allocation7 + $0x7e0] ss:$16 sps:$4 sm:$0xff]  }
 0x30c   :  { %6726 = vmatpush1.bf16.msra.mxu0 %v13568_v4  ;;  %6684 = vmatprep.subr.bf16.mxu1 %v13573_v27  ;;  %v13654_v4 = vld [vmem:[#allocation7 + $0x8c4] ss:$16 sps:$4 sm:$0xff]  }
 0x30d   :  { %6727 = vmatprep.subr.bf16.mxu0 %v13576_v63  ;;  %v13651_v27 = vld [vmem:[#allocation7 + $0x7c4] ss:$16 sps:$4 sm:$0xff]   ;;  %v13652_v63 = vld [vmem:[#allocation7 + $0x8c0] ss:$16 sps:$4 sm:$0xff]  }
 0x30f   :  { %6685 = vmatpush1.bf16.msra.mxu1 %v13571_v18  ;;  %v13649_v18 = vld [vmem:[#allocation7 + $0x7c0] ss:$16 sps:$4 sm:$0xff]  }
 0x310   :  { %6728 = vmatpush1.bf16.msra.mxu0 %v13574_v50  ;;  %6686 = vmatprep.subr.bf16.mxu1 %v13579_v39  ;;  %v13660_v50 = vld [vmem:[#allocation7 + $0x8a4] ss:$16 sps:$4 sm:$0xff]  }
 0x311   :  { %6729 = vmatprep.subr.bf16.mxu0 %v13582_v53  ;;  %v13657_v39 = vld [vmem:[#allocation7 + $0x7a4] ss:$16 sps:$4 sm:$0xff]   ;;  %v13658_v53 = vld [vmem:[#allocation7 + $0x8a0] ss:$16 sps:$4 sm:$0xff]  }
 0x313   :  { %6687 = vmatpush1.bf16.msra.mxu1 %v13577_v60  ;;  %v13655_v60 = vld [vmem:[#allocation7 + $0x7a0] ss:$16 sps:$4 sm:$0xff]  }
 0x314   :  { %6730 = vmatpush1.bf16.msra.mxu0 %v13580_v13  ;;  %6688 = vmatprep.subr.bf16.mxu1 %v13585_v44  ;;  %v13666_v13 = vld [vmem:[#allocation7 + $0x884] ss:$16 sps:$4 sm:$0xff]  }
 0x315   :  { %6731 = vmatprep.subr.bf16.mxu0 %v13588_v40  ;;  %v13663_v44 = vld [vmem:[#allocation7 + $0x784] ss:$16 sps:$4 sm:$0xff]   ;;  %v13664_v40 = vld [vmem:[#allocation7 + $0x880] ss:$16 sps:$4 sm:$0xff]  }
 0x317   :  { %6689 = vmatpush1.bf16.msra.mxu1 %v13583_v21  ;;  %v13661_v21 = vld [vmem:[#allocation7 + $0x780] ss:$16 sps:$4 sm:$0xff]  }
 0x318   :  { %6732 = vmatpush1.bf16.msra.mxu0 %v13586_v36  ;;  %6690 = vmatprep.subr.bf16.mxu1 %v13591_v42  ;;  %v13672_v36 = vld [vmem:[#allocation7 + $0x864] ss:$16 sps:$4 sm:$0xff]  }
 0x319   :  { %6733 = vmatprep.subr.bf16.mxu0 %v13594_v31  ;;  %v13669_v42 = vld [vmem:[#allocation7 + $0x764] ss:$16 sps:$4 sm:$0xff]   ;;  %v13670_v31 = vld [vmem:[#allocation7 + $0x860] ss:$16 sps:$4 sm:$0xff]  }
 0x31b   :  { %6691 = vmatpush1.bf16.msra.mxu1 %v13589_v12  ;;  %v13678_v12 = vld [vmem:[#allocation7 + $0x844] ss:$16 sps:$4 sm:$0xff]  }
 0x31c   :  { %6734 = vmatpush1.bf16.msra.mxu0 %v13592_v2  ;;  %6692 = vmatprep.subr.bf16.mxu1 %v13597_v1  ;;  %v13675_v2 = vld [vmem:[#allocation7 + $0x744] ss:$16 sps:$4 sm:$0xff]   ;;  %v13676_v1 = vld [vmem:[#allocation7 + $0x840] ss:$16 sps:$4 sm:$0xff]  }
 0x31d   :  { %7363 = vmatprep.subr.bf16.mxu0 %v13600_v59  ;;  %v13673_v59 = vld [vmem:[#allocation7 + $0x740] ss:$16 sps:$4 sm:$0xff]  }
 0x31f   :  { %6752 = vmatmul.mubr.bf16.vlgmr.msra.gmra.mxu0 %v17730_v51  ;;  %6693 = vmatpush2.bf16.msra.mxu1 %v13595_v6  ;;  %v13681_v6 = vld [vmem:[#allocation7 + $0x724] ss:$16 sps:$4 sm:$0xff]  }
 0x320   :  { %7364 = vmatpush1.bf16.msra.mxu0 %v13598_v15  ;;  %7395 = vmatprep.mubr.bf16.mxu0 %v17092_v16  ;;  %v13682_v15 = vld [vmem:[#allocation7 + $0x820] ss:$16 sps:$4 sm:$0xff]  }
 0x321   :  { %6694 = vmatprep.subr.bf16.mxu1 %v13603_v33  ;;  %7365 = vmatprep.subr.bf16.mxu0 %v13606_v8  ;;  %v13690_v33 = vld [vmem:[#allocation7 + $0x804] ss:$16 sps:$4 sm:$0xff]   ;;  %v6876_v8 = vshll.u32 %v17730_v51, 16 }
 0x323   :  { %6695 = vmatpush2.bf16.msra.mxu1 %v13601_v55  ;;  %v13687_v55 = vld [vmem:[#allocation7 + $0x704] ss:$16 sps:$4 sm:$0xff]  }
 0x324   :  { %7366 = vmatpush1.bf16.msra.mxu0 %v13604_v37  ;;  %6696 = vmatprep.subr.bf16.mxu1 %v13609_v9  ;;  %v6862_v37 = vshll.u32 %v17729_v23, 16  ;;  %v13688_v9 = vld [vmem:[#allocation7 + $0x800] ss:$16 sps:$4 sm:$0xff]  }
 0x325   :  { %7367 = vmatprep.subr.bf16.mxu0 %v13612_v17  ;;  %v13685_v17 = vld [vmem:[#allocation7 + $0x700] ss:$16 sps:$4 sm:$0xff]  }
 0x327   :  { %6697 = vmatpush2.bf16.msra.mxu1 %v13607_v5  ;;  %v6878_v5 = vrot.slane %v6876_v8, 1  ;;  %v13741_v8 = vld [vmem:[#allocation7 + $0x7ec] ss:$16 sps:$4 sm:$0xff]  }
 0x328   :  { %7368 = vmatpush1.bf16.msra.mxu0 %v13610_v43  ;;  %6698 = vmatprep.subr.bf16.mxu1 %v13615_v32  ;;  %v13693_v43 = vld [vmem:[#allocation7 + $0x6ec] ss:$16 sps:$4 sm:$0xff]   ;;  %v6864_v32 = vrot.slane %v6862_v37, 1 }
 0x329   :  { %7369 = vmatprep.subr.bf16.mxu0 %v13618_v47  ;;  %v13696_v47 = vld [vmem:[#allocation7 + $0x8ec] ss:$16 sps:$4 sm:$0xff]  }
 0x32b   :  { %6699 = vmatpush2.bf16.msra.mxu1 %v13613_v29  ;;  %v6874_v29 = vshrl.u32 %v17730_v51, 16 }
 0x32c   :  { %7370 = vmatpush1.bf16.msra.mxu0 %v13616_v24  ;;  %6700 = vmatprep.subr.bf16.mxu1 %v13621_v3  ;;  %v6860_v24 = vshrl.u32 %v17729_v23, 16  ;;  %v13691_v3 = vld [vmem:[#allocation7 + $0x6e8] ss:$16 sps:$4 sm:$0xff]  }
 0x32d   :  { %7371 = vmatprep.subr.bf16.mxu0 %v13624_v56  ;;  %v17102_v56 = vor.u32 %v6878_v5, %v6874_v29  ;;  %v7648_v5 = vshrl.u32 %v17071_v19, 16  ;;  %v13745_v29 = vld [vmem:[#allocation7 + $0x7c8] ss:$16 sps:$4 sm:$0xff]  }
 0x32f   :  { %6701 = vmatpush2.bf16.msra.mxu1 %v13619_v54  ;;  %v13694_v54 = vld [vmem:[#allocation7 + $0x8e8] ss:$16 sps:$4 sm:$0xff]  }
 0x330   :  { %7372 = vmatpush1.bf16.msra.mxu0 %v13622_v38  ;;  %6702 = vmatprep.subr.bf16.mxu1 %v13627_v49  ;;  %v17104_v38 = vor.u32 %v6864_v32, %v6860_v24  ;;  %v13699_v49 = vld [vmem:[#allocation7 + $0x6cc] ss:$16 sps:$4 sm:$0xff]   ;;  %v13750_v32 = vld [vmem:[#allocation7 + $0x9c4] ss:$16 sps:$4 sm:$0xff]   ;;  %v13748_v24 = vld [vmem:[#allocation7 + $0x9c0] ss:$16 sps:$4 sm:$0xff]  }
 0x331   :  { %7373 = vmatprep.subr.bf16.mxu0 %v13630_v14  ;;  %v13702_v14 = vld [vmem:[#allocation7 + $0x8cc] ss:$16 sps:$4 sm:$0xff]  }
 0x333   :  { %6703 = vmatpush2.bf16.msra.mxu1 %v13625_v28 }
 0x334   :  { %7374 = vmatpush1.bf16.msra.mxu0 %v13628_v11  ;;  %6704 = vmatprep.subr.bf16.mxu1 %v13633_v58 }
 0x335   :  { %7375 = vmatprep.subr.bf16.mxu0 %v13636_v30  ;;  %v13697_v30 = vld [vmem:[#allocation7 + $0x6c8] ss:$16 sps:$4 sm:$0xff]  }
 0x337   :  { %6705 = vmatpush2.bf16.msra.mxu1 %v13631_v57 }
 0x338   :  { %7376 = vmatpush1.bf16.msra.mxu0 %v13634_v61  ;;  %6706 = vmatprep.subr.bf16.mxu1 %v13639_v62  ;;  %v13700_v62 = vld [vmem:[#allocation7 + $0x8c8] ss:$16 sps:$4 sm:$0xff]  }
 0x339   :  { %7377 = vmatprep.subr.bf16.mxu0 %v13642_v45  ;;  %v13705_v45 = vld [vmem:[#allocation7 + $0x6ac] ss:$16 sps:$4 sm:$0xff]  }
 0x33b   :  { %6707 = vmatpush2.bf16.msra.mxu1 %v13637_v20 }
 0x33c   :  { %7378 = vmatpush1.bf16.msra.mxu0 %v13640_v35  ;;  %7406 = vmatprep.subr.bf16.mxu1 %v13648_v48  ;;  %v13708_v35 = vld [vmem:[#allocation7 + $0x8ac] ss:$16 sps:$4 sm:$0xff]  }
 0x33d   :  { %7379 = vmatprep.subr.bf16.mxu0 %v13645_v25 }
 0x33e   :  { %6709 = vmatmul.mubr.bf16.vlgmr.msra.gmra.mxu1 %v17729_v23 }
 0x33f   :  { %7407 = vmatpush1.bf16.msra.mxu1 %v13646_v26  ;;  %7438 = vmatprep.mubr.bf16.mxu1 %v17727_v52 }
 0x340   :  { %7380 = vmatpush2.bf16.msra.mxu0 %v13643_v0  ;;  %7408 = vmatprep.subr.bf16.mxu1 %v13654_v4  ;;  %v13703_v0 = vld [vmem:[#allocation7 + $0x6a8] ss:$16 sps:$4 sm:$0xff]  }
 0x341   :  { %7381 = vmatprep.subr.bf16.mxu0 %v13651_v27 }
 0x343   :  { %7409 = vmatpush1.bf16.msra.mxu1 %v13652_v63  ;;  %v13706_v63 = vld [vmem:[#allocation7 + $0x8a8] ss:$16 sps:$4 sm:$0xff]  }
 0x344   :  { %7382 = vmatpush2.bf16.msra.mxu0 %v13649_v18  ;;  %7410 = vmatprep.subr.bf16.mxu1 %v13660_v50  ;;  %v13711_v18 = vld [vmem:[#allocation7 + $0x68c] ss:$16 sps:$4 sm:$0xff]  }
 0x345   :  { %7383 = vmatprep.subr.bf16.mxu0 %v13657_v39  ;;  %v13714_v39 = vld [vmem:[#allocation7 + $0x88c] ss:$16 sps:$4 sm:$0xff]  }
 0x347   :  { %7411 = vmatpush1.bf16.msra.mxu1 %v13658_v53  ;;  %v13709_v53 = vld [vmem:[#allocation7 + $0x688] ss:$16 sps:$4 sm:$0xff]  }
 0x348   :  { %7384 = vmatpush2.bf16.msra.mxu0 %v13655_v60  ;;  %7412 = vmatprep.subr.bf16.mxu1 %v13666_v13  ;;  %v13712_v60 = vld [vmem:[#allocation7 + $0x888] ss:$16 sps:$4 sm:$0xff]   ;;  %v13717_v13 = vld [vmem:[#allocation7 + $0x66c] ss:$16 sps:$4 sm:$0xff]  }
 0x349   :  { %7385 = vmatprep.subr.bf16.mxu0 %v13663_v44  ;;  %v13720_v44 = vld [vmem:[#allocation7 + $0x86c] ss:$16 sps:$4 sm:$0xff]  }
 0x34b   :  { %7413 = vmatpush1.bf16.msra.mxu1 %v13664_v40  ;;  %v13715_v40 = vld [vmem:[#allocation7 + $0x668] ss:$16 sps:$4 sm:$0xff]  }
 0x34c   :  { %7386 = vmatpush2.bf16.msra.mxu0 %v13661_v21  ;;  %7414 = vmatprep.subr.bf16.mxu1 %v13672_v36  ;;  %v13718_v21 = vld [vmem:[#allocation7 + $0x868] ss:$16 sps:$4 sm:$0xff]   ;;  %v13723_v36 = vld [vmem:[#allocation7 + $0x64c] ss:$16 sps:$4 sm:$0xff]  }
 0x34d   :  { %7387 = vmatprep.subr.bf16.mxu0 %v13669_v42  ;;  %v13726_v42 = vld [vmem:[#allocation7 + $0x84c] ss:$16 sps:$4 sm:$0xff]  }
 0x34f   :  { %7415 = vmatpush1.bf16.msra.mxu1 %v13670_v31  ;;  %v13721_v31 = vld [vmem:[#allocation7 + $0x648] ss:$16 sps:$4 sm:$0xff]  }
 0x350   :  { %7388 = vmatpush2.bf16.msra.mxu0 %v13667_v41  ;;  %7416 = vmatprep.subr.bf16.mxu1 %v13678_v12  ;;  %v13724_v41 = vld [vmem:[#allocation7 + $0x848] ss:$16 sps:$4 sm:$0xff]   ;;  %v13729_v12 = vld [vmem:[#allocation7 + $0x62c] ss:$16 sps:$4 sm:$0xff]  }
 0x351   :  { %7389 = vmatprep.subr.bf16.mxu0 %v13675_v2  ;;  %v13732_v2 = vld [vmem:[#allocation7 + $0x82c] ss:$16 sps:$4 sm:$0xff]  }
 0x353   :  { %7417 = vmatpush1.bf16.msra.mxu1 %v13676_v1  ;;  %v13727_v1 = vld [vmem:[#allocation7 + $0x628] ss:$16 sps:$4 sm:$0xff]  }
 0x354   :  { %7390 = vmatpush2.bf16.msra.mxu0 %v13673_v59  ;;  %7418 = vmatprep.subr.bf16.mxu1 %v13684_v10  ;;  %v13730_v59 = vld [vmem:[#allocation7 + $0x828] ss:$16 sps:$4 sm:$0xff]   ;;  %v13735_v10 = vld [vmem:[#allocation7 + $0x60c] ss:$16 sps:$4 sm:$0xff]  }
 0x355   :  { %7391 = vmatprep.subr.bf16.mxu0 %v13681_v6  ;;  %v13738_v6 = vld [vmem:[#allocation7 + $0x80c] ss:$16 sps:$4 sm:$0xff]  }
 0x357   :  { %7419 = vmatpush1.bf16.msra.mxu1 %v13682_v15  ;;  %v7650_v15 = vshll.u32 %v17071_v19, 16 }
 0x358   :  { %7392 = vmatpush2.bf16.msra.mxu0 %v13679_v7  ;;  %7420 = vmatprep.subr.bf16.mxu1 %v13690_v33  ;;  %v13733_v7 = vld [vmem:[#allocation7 + $0x608] ss:$16 sps:$4 sm:$0xff]  }
 0x359   :  { %7393 = vmatprep.subr.bf16.mxu0 %v13687_v55  ;;  %v13736_v33 = vld [vmem:[#allocation7 + $0x808] ss:$16 sps:$4 sm:$0xff]   ;;  %v13744_v55 = vld [vmem:[#allocation7 + $0x9e4] ss:$16 sps:$4 sm:$0xff]   ;;  %v7652_v37 = vrot.slane %v7650_v15, 1 }
 0x35b   :  { %7421 = vmatpush1.bf16.msra.mxu1 %v13688_v9  ;;  %v13739_v9 = vld [vmem:[#allocation7 + $0x7e8] ss:$16 sps:$4 sm:$0xff]  }
 0x35c   :  { %7394 = vmatpush2.bf16.msra.mxu0 %v13685_v17  ;;  %7449 = vmatprep.subr.bf16.mxu1 %v13693_v43  ;;  %v13742_v17 = vld [vmem:[#allocation7 + $0x9e0] ss:$16 sps:$4 sm:$0xff]   ;;  %v13747_v43 = vld [vmem:[#allocation7 + $0x7cc] ss:$16 sps:$4 sm:$0xff]  }
 0x35d   :  { %7492 = vmatprep.subr.bf16.mxu0 %v13696_v47  ;;  %v17120_v47 = vor.u32 %v7652_v37, %v7648_v5 }
 0x35e   :  { %7439 = vmatmul.mubr.bf16.vlgmr.msra.gmra.mxu1 %v17102_v56  ;;  %v5972_v28 = vpop.f32.mrf.mxu0  ;;  %v6015_v11 = vpop.f32.mrf.mxu1 }
 0x35f   :  { %7396 = vmatmul.mubr.bf16.vlgmr.msra.gmra.mxu0 %v17104_v38  ;;  %v17108_v58 = vadd.f32 %v6015_v11, %v5972_v28  ;;  %7450 = vmatpush1.bf16.msra.mxu1 %v13691_v3  ;;  %v13753_v3 = vld [vmem:[#allocation7 + $0x7ac] ss:$16 sps:$4 sm:$0xff]   ;;  %v13762_v11 = vld [vmem:[#allocation7 + $0x984] ss:$16 sps:$4 sm:$0xff]  }
 0x360   :  { %7481 = vmatprep.mubr.bf16.mxu1 %v17092_v16  ;;  %7493 = vmatpush1.bf16.msra.mxu0 %v13694_v54  ;;  %v5974_v57 = vpop.f32.mrf.mxu0  ;;  %v6017_v61 = vpop.f32.mrf.mxu1  ;;  %v13756_v54 = vld [vmem:[#allocation7 + $0x9a4] ss:$16 sps:$4 sm:$0xff]   ;;  %v13759_v28 = vld [vmem:[#allocation7 + $0x78c] ss:$16 sps:$4 sm:$0xff]  }
 0x361   :  { %v17111_v20 = vadd.f32 %v6017_v61, %v5974_v57  ;;  %7451 = vmatprep.subr.bf16.mxu1 %v13699_v49  ;;  %7494 = vmatprep.subr.bf16.mxu0 %v13702_v14  ;;  %v13751_v49 = vld [vmem:[#allocation7 + $0x7a8] ss:$16 sps:$4 sm:$0xff]   ;;  %v13754_v14 = vld [vmem:[#allocation7 + $0x9a0] ss:$16 sps:$4 sm:$0xff]   ;;  %v13765_v61 = vld [vmem:[#allocation7 + $0x76c] ss:$16 sps:$4 sm:$0xff]  }
 0x362   :  { %v5976_v48 = vpop.f32.mrf.mxu0  ;;  %v6019_v25 = vpop.f32.mrf.mxu1  ;;  %7524 = vmatprep.mubr.bf16.mxu0 %v17727_v52  ;;  %v13760_v57 = vld [vmem:[#allocation7 + $0x980] ss:$16 sps:$4 sm:$0xff]  }
 0x363   :  { %v17114_v26 = vadd.f32 %v6019_v25, %v5976_v48  ;;  %7452 = vmatpush1.bf16.msra.mxu1 %v13697_v30  ;;  %v13757_v30 = vld [vmem:[#allocation7 + $0x788] ss:$16 sps:$4 sm:$0xff]   ;;  %v13771_v48 = vld [vmem:[#allocation7 + $0x74c] ss:$16 sps:$4 sm:$0xff]   ;;  %v13774_v25 = vld [vmem:[#allocation7 + $0x944] ss:$16 sps:$4 sm:$0xff]  }
 0x364   :  { %7495 = vmatpush1.bf16.msra.mxu0 %v13700_v62  ;;  %v5978_v4 = vpop.f32.mrf.mxu0  ;;  %v6021_v27 = vpop.f32.mrf.mxu1  ;;  %7453 = vmatprep.subr.bf16.mxu1 %v13705_v45  ;;  %v13768_v62 = vld [vmem:[#allocation7 + $0x964] ss:$16 sps:$4 sm:$0xff]   ;;  %v13763_v45 = vld [vmem:[#allocation7 + $0x768] ss:$16 sps:$4 sm:$0xff]  }
 0x365   :  { %v17116_v50 = vadd.f32 %v6021_v27, %v5978_v4  ;;  %7496 = vmatprep.subr.bf16.mxu0 %v13708_v35  ;;  %v13766_v35 = vld [vmem:[#allocation7 + $0x960] ss:$16 sps:$4 sm:$0xff]   ;;  %v13777_v27 = vld [vmem:[#allocation7 + $0x72c] ss:$16 sps:$4 sm:$0xff]  }
 0x366   :  { %v13772_v4 = vld [vmem:[#allocation7 + $0x940] ss:$16 sps:$4 sm:$0xff]  }
 0x367   :  { %7454 = vmatpush1.bf16.msra.mxu1 %v13703_v0  ;;  %v13769_v0 = vld [vmem:[#allocation7 + $0x748] ss:$16 sps:$4 sm:$0xff]  }
 0x368   :  { %7497 = vmatpush1.bf16.msra.mxu0 %v13706_v63  ;;  %7455 = vmatprep.subr.bf16.mxu1 %v13711_v18  ;;  %v13780_v63 = vld [vmem:[#allocation7 + $0x924] ss:$16 sps:$4 sm:$0xff]   ;;  %v13775_v18 = vld [vmem:[#allocation7 + $0x728] ss:$16 sps:$4 sm:$0xff]  }
 0x369   :  { %7498 = vmatprep.subr.bf16.mxu0 %v13714_v39  ;;  %v13778_v39 = vld [vmem:[#allocation7 + $0x920] ss:$16 sps:$4 sm:$0xff]  }
 0x36b   :  { %7456 = vmatpush1.bf16.msra.mxu1 %v13709_v53  ;;  %v13783_v53 = vld [vmem:[#allocation7 + $0x70c] ss:$16 sps:$4 sm:$0xff]  }
 0x36c   :  { %7499 = vmatpush1.bf16.msra.mxu0 %v13712_v60  ;;  %7457 = vmatprep.subr.bf16.mxu1 %v13717_v13  ;;  %v13786_v60 = vld [vmem:[#allocation7 + $0x904] ss:$16 sps:$4 sm:$0xff]   ;;  %v13781_v13 = vld [vmem:[#allocation7 + $0x708] ss:$16 sps:$4 sm:$0xff]  }
 0x36d   :  { %7500 = vmatprep.subr.bf16.mxu0 %v13720_v44 }
 0x36f   :  { %7458 = vmatpush1.bf16.msra.mxu1 %v13715_v40  ;;  %v13784_v40 = vld [vmem:[#allocation7 + $0x900] ss:$16 sps:$4 sm:$0xff]  }
 0x370   :  { %7501 = vmatpush1.bf16.msra.mxu0 %v13718_v21  ;;  %7459 = vmatprep.subr.bf16.mxu1 %v13723_v36  ;;  %v13792_v21 = vld [vmem:[#allocation7 + $0xbe4] ss:$16 sps:$4 sm:$0xff]  }
 0x371   :  { %7502 = vmatprep.subr.bf16.mxu0 %v13726_v42  ;;  %v13789_v36 = vld [vmem:[#allocation7 + $0xae4] ss:$16 sps:$4 sm:$0xff]   ;;  %v13790_v42 = vld [vmem:[#allocation7 + $0xbe0] ss:$16 sps:$4 sm:$0xff]  }
 0x373   :  { %7460 = vmatpush1.bf16.msra.mxu1 %v13721_v31 }
 0x374   :  { %7503 = vmatpush1.bf16.msra.mxu0 %v13724_v41  ;;  %7461 = vmatprep.subr.bf16.mxu1 %v13729_v12  ;;  %v13787_v41 = vld [vmem:[#allocation7 + $0xae0] ss:$16 sps:$4 sm:$0xff]   ;;  %v13798_v12 = vld [vmem:[#allocation7 + $0xbc4] ss:$16 sps:$4 sm:$0xff]  }
 0x375   :  { %7504 = vmatprep.subr.bf16.mxu0 %v13732_v2  ;;  %v13795_v2 = vld [vmem:[#allocation7 + $0xac4] ss:$16 sps:$4 sm:$0xff]  }
 0x377   :  { %7462 = vmatpush1.bf16.msra.mxu1 %v13727_v1 }
 0x378   :  { %7505 = vmatpush1.bf16.msra.mxu0 %v13730_v59  ;;  %7463 = vmatprep.subr.bf16.mxu1 %v13735_v10  ;;  %v13796_v10 = vld [vmem:[#allocation7 + $0xbc0] ss:$16 sps:$4 sm:$0xff]  }
 0x379   :  { %7506 = vmatprep.subr.bf16.mxu0 %v13738_v6 }
 0x37b   :  { %7464 = vmatpush1.bf16.msra.mxu1 %v13733_v7  ;;  %v13793_v7 = vld [vmem:[#allocation7 + $0xac0] ss:$16 sps:$4 sm:$0xff]  }
 0x37c   :  { %7507 = vmatpush1.bf16.msra.mxu0 %v13736_v33  ;;  %7465 = vmatprep.subr.bf16.mxu1 %v13741_v8  ;;  %v13804_v33 = vld [vmem:[#allocation7 + $0xba4] ss:$16 sps:$4 sm:$0xff]  }
 0x37d   :  { %8144 = vmatprep.subr.bf16.mxu0 %v13744_v55  ;;  %v13801_v55 = vld [vmem:[#allocation7 + $0xaa4] ss:$16 sps:$4 sm:$0xff]  }
 0x37e   :  { %v6101_v44 = vpop.f32.mrf.mxu0 }
 0x37f   :  { %7525 = vmatmul.mubr.bf16.vlgmr.msra.gmra.mxu0 %v17102_v56  ;;  %7466 = vmatpush2.bf16.msra.mxu1 %v13739_v9 }
 0x380   :  { %8145 = vmatpush1.bf16.msra.mxu0 %v13742_v17  ;;  %8176 = vmatprep.mubr.bf16.mxu0 %v17120_v47  ;;  %v6103_v31 = vpop.f32.mrf.mxu0  ;;  %v13802_v17 = vld [vmem:[#allocation7 + $0xba0] ss:$16 sps:$4 sm:$0xff]  }
 0x381   :  { %7467 = vmatprep.subr.bf16.mxu1 %v13747_v43  ;;  %8146 = vmatprep.subr.bf16.mxu0 %v13750_v32  ;;  %v13799_v32 = vld [vmem:[#allocation7 + $0xaa0] ss:$16 sps:$4 sm:$0xff]  }
 0x382   :  { %v6105_v6 = vpop.f32.mrf.mxu0 }
 0x383   :  { %7468 = vmatpush2.bf16.msra.mxu1 %v13745_v29  ;;  %v13810_v29 = vld [vmem:[#allocation7 + $0xb84] ss:$16 sps:$4 sm:$0xff]  }
 0x384   :  { %8147 = vmatpush1.bf16.msra.mxu0 %v13748_v24  ;;  %7469 = vmatprep.subr.bf16.mxu1 %v13753_v3  ;;  %v6107_v5 = vpop.f32.mrf.mxu0  ;;  %v13807_v3 = vld [vmem:[#allocation7 + $0xa84] ss:$16 sps:$4 sm:$0xff]  }
 0x385   :  { %8148 = vmatprep.subr.bf16.mxu0 %v13756_v54  ;;  %v13808_v54 = vld [vmem:[#allocation7 + $0xb80] ss:$16 sps:$4 sm:$0xff]  }
 0x387   :  { %7470 = vmatpush2.bf16.msra.mxu1 %v13751_v49  ;;  %v13805_v49 = vld [vmem:[#allocation7 + $0xa80] ss:$16 sps:$4 sm:$0xff]  }
 0x388   :  { %8149 = vmatpush1.bf16.msra.mxu0 %v13754_v14  ;;  %7471 = vmatprep.subr.bf16.mxu1 %v13759_v28  ;;  %v13816_v14 = vld [vmem:[#allocation7 + $0xb64] ss:$16 sps:$4 sm:$0xff]  }
 0x389   :  { %8150 = vmatprep.subr.bf16.mxu0 %v13762_v11  ;;  %v13813_v28 = vld [vmem:[#allocation7 + $0xa64] ss:$16 sps:$4 sm:$0xff]   ;;  %v13814_v11 = vld [vmem:[#allocation7 + $0xb60] ss:$16 sps:$4 sm:$0xff]  }
 0x38b   :  { %7472 = vmatpush2.bf16.msra.mxu1 %v13757_v30  ;;  %v13811_v30 = vld [vmem:[#allocation7 + $0xa60] ss:$16 sps:$4 sm:$0xff]  }
 0x38c   :  { %8151 = vmatpush1.bf16.msra.mxu0 %v13760_v57  ;;  %7473 = vmatprep.subr.bf16.mxu1 %v13765_v61  ;;  %v13822_v57 = vld [vmem:[#allocation7 + $0xb44] ss:$16 sps:$4 sm:$0xff]  }
 0x38d   :  { %8152 = vmatprep.subr.bf16.mxu0 %v13768_v62  ;;  %v13819_v61 = vld [vmem:[#allocation7 + $0xa44] ss:$16 sps:$4 sm:$0xff]   ;;  %v13820_v62 = vld [vmem:[#allocation7 + $0xb40] ss:$16 sps:$4 sm:$0xff]  }
 0x38f   :  { %7474 = vmatpush2.bf16.msra.mxu1 %v13763_v45  ;;  %v13817_v45 = vld [vmem:[#allocation7 + $0xa40] ss:$16 sps:$4 sm:$0xff]  }
 0x390   :  { %8153 = vmatpush1.bf16.msra.mxu0 %v13766_v35  ;;  %7475 = vmatprep.subr.bf16.mxu1 %v13771_v48  ;;  %v13828_v35 = vld [vmem:[#allocation7 + $0xb24] ss:$16 sps:$4 sm:$0xff]  }
 0x391   :  { %8154 = vmatprep.subr.bf16.mxu0 %v13774_v25  ;;  %v13825_v48 = vld [vmem:[#allocation7 + $0xa24] ss:$16 sps:$4 sm:$0xff]   ;;  %v13826_v25 = vld [vmem:[#allocation7 + $0xb20] ss:$16 sps:$4 sm:$0xff]  }
 0x393   :  { %7476 = vmatpush2.bf16.msra.mxu1 %v13769_v0  ;;  %v13823_v0 = vld [vmem:[#allocation7 + $0xa20] ss:$16 sps:$4 sm:$0xff]  }
 0x394   :  { %8155 = vmatpush1.bf16.msra.mxu0 %v13772_v4  ;;  %7477 = vmatprep.subr.bf16.mxu1 %v13777_v27  ;;  %v13834_v4 = vld [vmem:[#allocation7 + $0xb04] ss:$16 sps:$4 sm:$0xff]   ;;  %v7657_v27 = vshll.u32 %v17075_v22, 16 }
 0x395   :  { %8156 = vmatprep.subr.bf16.mxu0 %v13780_v63  ;;  %v13831_v63 = vld [vmem:[#allocation7 + $0xa04] ss:$16 sps:$4 sm:$0xff]  }
 0x397   :  { %7478 = vmatpush2.bf16.msra.mxu1 %v13775_v18  ;;  %v7643_v18 = vshll.u32 %v17073_v34, 16 }
 0x398   :  { %8157 = vmatpush1.bf16.msra.mxu0 %v13778_v39  ;;  %7479 = vmatprep.subr.bf16.mxu1 %v13783_v53  ;;  %v13832_v39 = vld [vmem:[#allocation7 + $0xb00] ss:$16 sps:$4 sm:$0xff]  }
 0x399   :  { %8158 = vmatprep.subr.bf16.mxu0 %v13786_v60  ;;  %v13829_v53 = vld [vmem:[#allocation7 + $0xa00] ss:$16 sps:$4 sm:$0xff]   ;;  %v7659_v60 = vrot.slane %v7657_v27, 1  ;;  %v13865_v27 = vld [vmem:[#allocation7 + $0x948] ss:$16 sps:$4 sm:$0xff]  }
 0x39b   :  { %7480 = vmatpush2.bf16.msra.mxu1 %v13781_v13  ;;  %v13837_v13 = vld [vmem:[#allocation7 + $0x9ec] ss:$16 sps:$4 sm:$0xff]  }
 0x39c   :  { %8159 = vmatpush1.bf16.msra.mxu0 %v13784_v40  ;;  %8187 = vmatprep.subr.bf16.mxu1 %v13792_v21  ;;  %v13840_v40 = vld [vmem:[#allocation7 + $0xbec] ss:$16 sps:$4 sm:$0xff]   ;;  %v7655_v21 = vshrl.u32 %v17075_v22, 16 }
 0x39d   :  { %8160 = vmatprep.subr.bf16.mxu0 %v13789_v36  ;;  %v7641_v36 = vshrl.u32 %v17073_v34, 16 }
 0x39e   :  { %v6058_v1 = vpop.f32.mrf.mxu1  ;;  %7482 = vmatmul.mubr.bf16.vlgmr.msra.gmra.mxu1 %v17104_v38 }
 0x39f   :  { %v17125_v59 = vadd.f32 %v6101_v44, %v6058_v1  ;;  %8188 = vmatpush1.bf16.msra.mxu1 %v13790_v42  ;;  %8219 = vmatprep.mubr.bf16.mxu1 %v17727_v52  ;;  %v7645_v44 = vrot.slane %v7643_v18, 1  ;;  %v13835_v42 = vld [vmem:[#allocation7 + $0x9e8] ss:$16 sps:$4 sm:$0xff]   ;;  %v13846_v1 = vld [vmem:[#allocation7 + $0xbcc] ss:$16 sps:$4 sm:$0xff]  }
 0x3a0   :  { %8161 = vmatpush2.bf16.msra.mxu0 %v13787_v41  ;;  %v6060_v15 = vpop.f32.mrf.mxu1  ;;  %8189 = vmatprep.subr.bf16.mxu1 %v13798_v12  ;;  %v13838_v41 = vld [vmem:[#allocation7 + $0xbe8] ss:$16 sps:$4 sm:$0xff]   ;;  %v13873_v18 = vld [vmem:[#allocation7 + $0x92c] ss:$16 sps:$4 sm:$0xff]  }
 0x3a1   :  { %v17128_v8 = vadd.f32 %v6103_v31, %v6060_v15  ;;  %8162 = vmatprep.subr.bf16.mxu0 %v13795_v2  ;;  %v17138_v31 = vor.u32 %v7659_v60, %v7655_v21  ;;  %v17140_v12 = vor.u32 %v7645_v44, %v7641_v36  ;;  %v13843_v2 = vld [vmem:[#allocation7 + $0x9cc] ss:$16 sps:$4 sm:$0xff]   ;;  %v13874_v60 = vld [vmem:[#allocation7 + $0xb28] ss:$16 sps:$4 sm:$0xff]  }
 0x3a2   :  { %v6062_v37 = vpop.f32.mrf.mxu1  ;;  %v13882_v44 = vld [vmem:[#allocation7 + $0xb0c] ss:$16 sps:$4 sm:$0xff]   ;;  %v13880_v21 = vld [vmem:[#allocation7 + $0xb08] ss:$16 sps:$4 sm:$0xff]  }
 0x3a3   :  { %v17130_v9 = vadd.f32 %v6105_v6, %v6062_v37  ;;  %8190 = vmatpush1.bf16.msra.mxu1 %v13796_v10  ;;  %v13844_v37 = vld [vmem:[#allocation7 + $0xbc8] ss:$16 sps:$4 sm:$0xff]   ;;  %v13885_v36 = vld [vmem:[#allocation7 + $0xaec] ss:$16 sps:$4 sm:$0xff]  }
 0x3a4   :  { %8163 = vmatpush2.bf16.msra.mxu0 %v13793_v7  ;;  %v6064_v43 = vpop.f32.mrf.mxu1  ;;  %8191 = vmatprep.subr.bf16.mxu1 %v13804_v33  ;;  %v13841_v7 = vld [vmem:[#allocation7 + $0x9c8] ss:$16 sps:$4 sm:$0xff]  }
 0x3a5   :  { %v17132_v24 = vadd.f32 %v6107_v5, %v6064_v43  ;;  %8164 = vmatprep.subr.bf16.mxu0 %v13801_v55 }
 0x3a7   :  { %8192 = vmatpush1.bf16.msra.mxu1 %v13802_v17  ;;  %v13849_v17 = vld [vmem:[#allocation7 + $0x9ac] ss:$16 sps:$4 sm:$0xff]  }
 0x3a8   :  { %8165 = vmatpush2.bf16.msra.mxu0 %v13799_v32  ;;  %8193 = vmatprep.subr.bf16.mxu1 %v13810_v29  ;;  %v13852_v32 = vld [vmem:[#allocation7 + $0xbac] ss:$16 sps:$4 sm:$0xff]  }
 0x3a9   :  { %8166 = vmatprep.subr.bf16.mxu0 %v13807_v3 }
 0x3ab   :  { %8194 = vmatpush1.bf16.msra.mxu1 %v13808_v54 }
 0x3ac   :  { %8167 = vmatpush2.bf16.msra.mxu0 %v13805_v49  ;;  %8195 = vmatprep.subr.bf16.mxu1 %v13816_v14  ;;  %v13847_v49 = vld [vmem:[#allocation7 + $0x9a8] ss:$16 sps:$4 sm:$0xff]  }
 0x3ad   :  { %8168 = vmatprep.subr.bf16.mxu0 %v13813_v28  ;;  %v13850_v28 = vld [vmem:[#allocation7 + $0xba8] ss:$16 sps:$4 sm:$0xff]  }
 0x3af   :  { %8196 = vmatpush1.bf16.msra.mxu1 %v13814_v11  ;;  %v13855_v11 = vld [vmem:[#allocation7 + $0x98c] ss:$16 sps:$4 sm:$0xff]  }
 0x3b0   :  { %8169 = vmatpush2.bf16.msra.mxu0 %v13811_v30  ;;  %8197 = vmatprep.subr.bf16.mxu1 %v13822_v57  ;;  %v13858_v57 = vld [vmem:[#allocation7 + $0xb8c] ss:$16 sps:$4 sm:$0xff]  }
 0x3b1   :  { %8170 = vmatprep.subr.bf16.mxu0 %v13819_v61 }
 0x3b3   :  { %8198 = vmatpush1.bf16.msra.mxu1 %v13820_v62 }
 0x3b4   :  { %8171 = vmatpush2.bf16.msra.mxu0 %v13817_v45  ;;  %8199 = vmatprep.subr.bf16.mxu1 %v13828_v35  ;;  %v13853_v45 = vld [vmem:[#allocation7 + $0x988] ss:$16 sps:$4 sm:$0xff]   ;;  %v13861_v35 = vld [vmem:[#allocation7 + $0x96c] ss:$16 sps:$4 sm:$0xff]  }
 0x3b5   :  { %8172 = vmatprep.subr.bf16.mxu0 %v13825_v48  ;;  %v13864_v48 = vld [vmem:[#allocation7 + $0xb6c] ss:$16 sps:$4 sm:$0xff]  }
 0x3b7   :  { %8200 = vmatpush1.bf16.msra.mxu1 %v13826_v25  ;;  %v13859_v25 = vld [vmem:[#allocation7 + $0x968] ss:$16 sps:$4 sm:$0xff]  }
 0x3b8   :  { %8173 = vmatpush2.bf16.msra.mxu0 %v13823_v0  ;;  %8201 = vmatprep.subr.bf16.mxu1 %v13834_v4  ;;  %v13862_v0 = vld [vmem:[#allocation7 + $0xb68] ss:$16 sps:$4 sm:$0xff]   ;;  %v13867_v4 = vld [vmem:[#allocation7 + $0x94c] ss:$16 sps:$4 sm:$0xff]  }
 0x3b9   :  { %8174 = vmatprep.subr.bf16.mxu0 %v13831_v63  ;;  %v13868_v63 = vld [vmem:[#allocation7 + $0xb48] ss:$16 sps:$4 sm:$0xff]  }
 0x3bb   :  { %8202 = vmatpush1.bf16.msra.mxu1 %v13832_v39  ;;  %v13876_v39 = vld [vmem:[#allocation7 + $0xb2c] ss:$16 sps:$4 sm:$0xff]  }
 0x3bc   :  { %8175 = vmatpush2.bf16.msra.mxu0 %v13829_v53  ;;  %8230 = vmatprep.subr.bf16.mxu1 %v13837_v13  ;;  %v13871_v53 = vld [vmem:[#allocation7 + $0x928] ss:$16 sps:$4 sm:$0xff]   ;;  %v13879_v13 = vld [vmem:[#allocation7 + $0x90c] ss:$16 sps:$4 sm:$0xff]  }
 0x3bd   :  { %8273 = vmatprep.subr.bf16.mxu0 %v13840_v40  ;;  %v13877_v40 = vld [vmem:[#allocation7 + $0x908] ss:$16 sps:$4 sm:$0xff]  }
 0x3be   :  { %v6624_v10 = vpop.f32.mrf.mxu0  ;;  %v6667_v6 = vpop.f32.mrf.mxu1  ;;  %8220 = vmatmul.mubr.bf16.vlgmr.msra.gmra.mxu1 %v17138_v31 }
 0x3bf   :  { %v6625_v15 = vadd.f32 %v6624_v10, %v17108_v58  ;;  %8177 = vmatmul.mubr.bf16.vlgmr.msra.gmra.mxu0 %v17140_v12  ;;  %8231 = vmatpush1.bf16.msra.mxu1 %v13835_v42  ;;  %v13888_v42 = vld [vmem:[#allocation7 + $0xce4] ss:$16 sps:$4 sm:$0xff]  }
 0x3c0   :  { %8262 = vmatprep.mubr.bf16.mxu1 %v17120_v47  ;;  %8274 = vmatpush1.bf16.msra.mxu0 %v13838_v41  ;;  %v6626_v33 = vpop.f32.mrf.mxu0  ;;  %v6669_v55 = vpop.f32.mrf.mxu1  ;;  %v13883_v41 = vld [vmem:[#allocation7 + $0xae8] ss:$16 sps:$4 sm:$0xff]   ;;  %v13894_v10 = vld [vmem:[#allocation7 + $0xcc4] ss:$16 sps:$4 sm:$0xff]  }
 0x3c1   :  { %v17146_v5 = vadd.f32 %v6667_v6, %v6625_v15  ;;  %v6627_v43 = vadd.f32 %v6626_v33, %v17111_v20  ;;  %8232 = vmatprep.subr.bf16.mxu1 %v13843_v2  ;;  %8275 = vmatprep.subr.bf16.mxu0 %v13846_v1  ;;  %v13886_v2 = vld [vmem:[#allocation7 + $0xce0] ss:$16 sps:$4 sm:$0xff]   ;;  %v13891_v1 = vld [vmem:[#allocation7 + $0xacc] ss:$16 sps:$4 sm:$0xff]   ;;  %v17159_v6 = vrot.slane %v17728_v46, 1 }
 0x3c2   :  { %v6628_v29 = vpop.f32.mrf.mxu0  ;;  %v6671_v58 = vpop.f32.mrf.mxu1  ;;  %8305 = vmatprep.mubr.bf16.mxu0 %v17727_v52  ;;  %v13889_v15 = vld [vmem:[#allocation7 + $0xac8] ss:$16 sps:$4 sm:$0xff]   ;;  %v13897_v33 = vld [vmem:[#allocation7 + $0xaac] ss:$16 sps:$4 sm:$0xff]   ;;  %v13906_v46 = vld [vmem:[#allocation7 + $0xc84] ss:$16 sps:$4 sm:$0xff]  }
 0x3c3   :  { %v17150_v3 = vadd.f32 %v6669_v55, %v6627_v43  ;;  %v6629_v54 = vadd.f32 %v6628_v29, %v17114_v26  ;;  %8233 = vmatpush1.bf16.msra.mxu1 %v13841_v7  ;;  %v13856_v26 = vld [vmem:[#allocation7 + $0xb88] ss:$16 sps:$4 sm:$0xff]   ;;  %v13892_v7 = vld [vmem:[#allocation7 + $0xcc0] ss:$16 sps:$4 sm:$0xff]   ;;  %v13900_v55 = vld [vmem:[#allocation7 + $0xca4] ss:$16 sps:$4 sm:$0xff]  }
 0x3c4   :  { %8276 = vmatpush1.bf16.msra.mxu0 %v13844_v37  ;;  %v6630_v14 = vpop.f32.mrf.mxu0  ;;  %8234 = vmatprep.subr.bf16.mxu1 %v13849_v17  ;;  %v6673_v61 = vpop.f32.mrf.mxu1  ;;  %v13895_v37 = vld [vmem:[#allocation7 + $0xaa8] ss:$16 sps:$4 sm:$0xff]   ;;  %v13898_v17 = vld [vmem:[#allocation7 + $0xca0] ss:$16 sps:$4 sm:$0xff]   ;;  %v13903_v43 = vld [vmem:[#allocation7 + $0xa8c] ss:$16 sps:$4 sm:$0xff]  }
 0x3c5   :  { %v17153_v30 = vadd.f32 %v6671_v58, %v6629_v54  ;;  %v6631_v20 = vadd.f32 %v6630_v14, %v17116_v50  ;;  %8277 = vmatprep.subr.bf16.mxu0 %v13852_v32  ;;  %v13870_v50 = vld [vmem:[#allocation7 + $0xb4c] ss:$16 sps:$4 sm:$0xff]   ;;  %v13901_v32 = vld [vmem:[#allocation7 + $0xa88] ss:$16 sps:$4 sm:$0xff]   ;;  %v13904_v29 = vld [vmem:[#allocation7 + $0xc80] ss:$16 sps:$4 sm:$0xff]  }
 0x3c6   :  { %v13909_v58 = vld [vmem:[#allocation7 + $0xa6c] ss:$16 sps:$4 sm:$0xff]   ;;  %v13912_v54 = vld [vmem:[#allocation7 + $0xc64] ss:$16 sps:$4 sm:$0xff]   ;;  %v13910_v14 = vld [vmem:[#allocation7 + $0xc60] ss:$16 sps:$4 sm:$0xff]  }
 0x3c7   :  { %v17156_v62 = vadd.f32 %v6673_v61, %v6631_v20  ;;  %8235 = vmatpush1.bf16.msra.mxu1 %v13847_v49  ;;  %v13907_v49 = vld [vmem:[#allocation7 + $0xa68] ss:$16 sps:$4 sm:$0xff]   ;;  %v13921_v61 = vld [vmem:[#allocation7 + $0xa2c] ss:$16 sps:$4 sm:$0xff]  }
 0x3c8   :  { %8278 = vmatpush1.bf16.msra.mxu0 %v13850_v28  ;;  %8236 = vmatprep.subr.bf16.mxu1 %v13855_v11  ;;  %v13915_v28 = vld [vmem:[#allocation7 + $0xa4c] ss:$16 sps:$4 sm:$0xff]   ;;  %v13918_v11 = vld [vmem:[#allocation7 + $0xc44] ss:$16 sps:$4 sm:$0xff]   ;;  %v13913_v20 = vld [vmem:[#allocation7 + $0xa48] ss:$16 sps:$4 sm:$0xff]  }
 0x3c9   :  { %8279 = vmatprep.subr.bf16.mxu0 %v13858_v57  ;;  %v13916_v57 = vld [vmem:[#allocation7 + $0xc40] ss:$16 sps:$4 sm:$0xff]  }
 0x3cb   :  { %8237 = vmatpush1.bf16.msra.mxu1 %v13853_v45  ;;  %v13924_v45 = vld [vmem:[#allocation7 + $0xc24] ss:$16 sps:$4 sm:$0xff]  }
 0x3cc   :  { %8280 = vmatpush1.bf16.msra.mxu0 %v13856_v26  ;;  %8238 = vmatprep.subr.bf16.mxu1 %v13861_v35  ;;  %v13919_v26 = vld [vmem:[#allocation7 + $0xa28] ss:$16 sps:$4 sm:$0xff]   ;;  %v13922_v35 = vld [vmem:[#allocation7 + $0xc20] ss:$16 sps:$4 sm:$0xff]  }
 0x3cd   :  { %8281 = vmatprep.subr.bf16.mxu0 %v13864_v48  ;;  %v13927_v48 = vld [vmem:[#allocation7 + $0xa0c] ss:$16 sps:$4 sm:$0xff]  }
 0x3cf   :  { %8239 = vmatpush1.bf16.msra.mxu1 %v13859_v25  ;;  %v13930_v25 = vld [vmem:[#allocation7 + $0xc04] ss:$16 sps:$4 sm:$0xff]  }
 0x3d0   :  { %8282 = vmatpush1.bf16.msra.mxu0 %v13862_v0  ;;  %8240 = vmatprep.subr.bf16.mxu1 %v13867_v4  ;;  %v13925_v0 = vld [vmem:[#allocation7 + $0xa08] ss:$16 sps:$4 sm:$0xff]   ;;  %v13928_v4 = vld [vmem:[#allocation7 + $0xc00] ss:$16 sps:$4 sm:$0xff]  }
 0x3d1   :  { %8283 = vmatprep.subr.bf16.mxu0 %v13870_v50  ;;  %v13936_v50 = vld [vmem:[#allocation7 + $0xee4] ss:$16 sps:$4 sm:$0xff]  }
 0x3d3   :  { %8241 = vmatpush1.bf16.msra.mxu1 %v13865_v27  ;;  %v13933_v27 = vld [vmem:[#allocation7 + $0xde4] ss:$16 sps:$4 sm:$0xff]  }
 0x3d4   :  { %8284 = vmatpush1.bf16.msra.mxu0 %v13868_v63  ;;  %8242 = vmatprep.subr.bf16.mxu1 %v13873_v18  ;;  %v13934_v18 = vld [vmem:[#allocation7 + $0xee0] ss:$16 sps:$4 sm:$0xff]  }
 0x3d5   :  { %8285 = vmatprep.subr.bf16.mxu0 %v13876_v39  ;;  %v13931_v39 = vld [vmem:[#allocation7 + $0xde0] ss:$16 sps:$4 sm:$0xff]  }
 0x3d7   :  { %8243 = vmatpush1.bf16.msra.mxu1 %v13871_v53  ;;  %v13942_v53 = vld [vmem:[#allocation7 + $0xec4] ss:$16 sps:$4 sm:$0xff]  }
 0x3d8   :  { %8286 = vmatpush1.bf16.msra.mxu0 %v13874_v60  ;;  %8244 = vmatprep.subr.bf16.mxu1 %v13879_v13  ;;  %v13939_v60 = vld [vmem:[#allocation7 + $0xdc4] ss:$16 sps:$4 sm:$0xff]  }
 0x3d9   :  { %8287 = vmatprep.subr.bf16.mxu0 %v13882_v44 }
 0x3db   :  { %8245 = vmatpush1.bf16.msra.mxu1 %v13877_v40 }
 0x3dc   :  { %8288 = vmatpush1.bf16.msra.mxu0 %v13880_v21  ;;  %8246 = vmatprep.subr.bf16.mxu1 %v13885_v36  ;;  %v13940_v21 = vld [vmem:[#allocation7 + $0xec0] ss:$16 sps:$4 sm:$0xff]  }
 0x3dd   :  { %8910 = vmatprep.subr.bf16.mxu0 %v13888_v42  ;;  %v13937_v42 = vld [vmem:[#allocation7 + $0xdc0] ss:$16 sps:$4 sm:$0xff]  }
 0x3df   :  { %8306 = vmatmul.mubr.bf16.vlgmr.msra.gmra.mxu0 %v17138_v31  ;;  %8247 = vmatpush2.bf16.msra.mxu1 %v13883_v41  ;;  %v6753_v63 = vpop.f32.mrf.mxu0  ;;  %v13948_v41 = vld [vmem:[#allocation7 + $0xea4] ss:$16 sps:$4 sm:$0xff]  }
 0x3e0   :  { %8911 = vmatpush1.bf16.msra.mxu0 %v13886_v2  ;;  %8942 = vmatprep.mubr.bf16.mxu0 %v17159_v6 }
 0x3e1   :  { %8248 = vmatprep.subr.bf16.mxu1 %v13891_v1  ;;  %8912 = vmatprep.subr.bf16.mxu0 %v13894_v10  ;;  %v6755_v13 = vpop.f32.mrf.mxu0  ;;  %v13945_v10 = vld [vmem:[#allocation7 + $0xda4] ss:$16 sps:$4 sm:$0xff]  }
 0x3e3   :  { %8249 = vmatpush2.bf16.msra.mxu1 %v13889_v15  ;;  %v6757_v15 = vpop.f32.mrf.mxu0 }
 0x3e4   :  { %8913 = vmatpush1.bf16.msra.mxu0 %v13892_v7  ;;  %8250 = vmatprep.subr.bf16.mxu1 %v13897_v33 }
 0x3e5   :  { %8914 = vmatprep.subr.bf16.mxu0 %v13900_v55  ;;  %v13946_v55 = vld [vmem:[#allocation7 + $0xea0] ss:$16 sps:$4 sm:$0xff]  }
 0x3e7   :  { %8251 = vmatpush2.bf16.msra.mxu1 %v13895_v37 }
 0x3e8   :  { %8915 = vmatpush1.bf16.msra.mxu0 %v13898_v17  ;;  %8252 = vmatprep.subr.bf16.mxu1 %v13903_v43  ;;  %v13943_v17 = vld [vmem:[#allocation7 + $0xda0] ss:$16 sps:$4 sm:$0xff]   ;;  %v13954_v43 = vld [vmem:[#allocation7 + $0xe84] ss:$16 sps:$4 sm:$0xff]  }
 0x3e9   :  { %8916 = vmatprep.subr.bf16.mxu0 %v13906_v46 }
 0x3eb   :  { %8253 = vmatpush2.bf16.msra.mxu1 %v13901_v32 }
 0x3ec   :  { %8917 = vmatpush1.bf16.msra.mxu0 %v13904_v29  ;;  %8254 = vmatprep.subr.bf16.mxu1 %v13909_v58  ;;  %v6759_v29 = vpop.f32.mrf.mxu0 }
 0x3ed   :  { %8918 = vmatprep.subr.bf16.mxu0 %v13912_v54  ;;  %v13952_v54 = vld [vmem:[#allocation7 + $0xe80] ss:$16 sps:$4 sm:$0xff]  }
 0x3ef   :  { %8255 = vmatpush2.bf16.msra.mxu1 %v13907_v49  ;;  %v13960_v49 = vld [vmem:[#allocation7 + $0xe64] ss:$16 sps:$4 sm:$0xff]  }
 0x3f0   :  { %8919 = vmatpush1.bf16.msra.mxu0 %v13910_v14  ;;  %8256 = vmatprep.subr.bf16.mxu1 %v13915_v28  ;;  %v13957_v14 = vld [vmem:[#allocation7 + $0xd64] ss:$16 sps:$4 sm:$0xff]   ;;  %v13958_v28 = vld [vmem:[#allocation7 + $0xe60] ss:$16 sps:$4 sm:$0xff]  }
 0x3f1   :  { %8920 = vmatprep.subr.bf16.mxu0 %v13918_v11  ;;  %v13955_v11 = vld [vmem:[#allocation7 + $0xd60] ss:$16 sps:$4 sm:$0xff]  }
 0x3f3   :  { %8257 = vmatpush2.bf16.msra.mxu1 %v13913_v20  ;;  %v13966_v20 = vld [vmem:[#allocation7 + $0xe44] ss:$16 sps:$4 sm:$0xff]  }
 0x3f4   :  { %8921 = vmatpush1.bf16.msra.mxu0 %v13916_v57  ;;  %8258 = vmatprep.subr.bf16.mxu1 %v13921_v61  ;;  %v13964_v57 = vld [vmem:[#allocation7 + $0xe40] ss:$16 sps:$4 sm:$0xff]  }
 0x3f5   :  { %8922 = vmatprep.subr.bf16.mxu0 %v13924_v45  ;;  %v13961_v61 = vld [vmem:[#allocation7 + $0xd40] ss:$16 sps:$4 sm:$0xff]   ;;  %v13972_v45 = vld [vmem:[#allocation7 + $0xe24] ss:$16 sps:$4 sm:$0xff]  }
 0x3f7   :  { %8259 = vmatpush2.bf16.msra.mxu1 %v13919_v26  ;;  %v13969_v26 = vld [vmem:[#allocation7 + $0xd24] ss:$16 sps:$4 sm:$0xff]  }
 0x3f8   :  { %8923 = vmatpush1.bf16.msra.mxu0 %v13922_v35  ;;  %8260 = vmatprep.subr.bf16.mxu1 %v13927_v48  ;;  %v13970_v35 = vld [vmem:[#allocation7 + $0xe20] ss:$16 sps:$4 sm:$0xff]  }
 0x3f9   :  { %8924 = vmatprep.subr.bf16.mxu0 %v13930_v25  ;;  %v13967_v48 = vld [vmem:[#allocation7 + $0xd20] ss:$16 sps:$4 sm:$0xff]   ;;  %v13978_v25 = vld [vmem:[#allocation7 + $0xe04] ss:$16 sps:$4 sm:$0xff]  }
 0x3fb   :  { %8261 = vmatpush2.bf16.msra.mxu1 %v13925_v0  ;;  %v13975_v0 = vld [vmem:[#allocation7 + $0xd04] ss:$16 sps:$4 sm:$0xff]  }
 0x3fc   :  { %8925 = vmatpush1.bf16.msra.mxu0 %v13928_v4  ;;  %8953 = vmatprep.subr.bf16.mxu1 %v13936_v50  ;;  %v13976_v4 = vld [vmem:[#allocation7 + $0xe00] ss:$16 sps:$4 sm:$0xff]  }
 0x3fd   :  { %8926 = vmatprep.subr.bf16.mxu0 %v13933_v27  ;;  %v13973_v50 = vld [vmem:[#allocation7 + $0xd00] ss:$16 sps:$4 sm:$0xff]   ;;  %v13981_v27 = vld [vmem:[#allocation7 + $0xcec] ss:$16 sps:$4 sm:$0xff]  }
 0x3fe   :  { %v6710_v44 = vpop.f32.mrf.mxu1  ;;  %8263 = vmatmul.mubr.bf16.vlgmr.msra.gmra.mxu1 %v17140_v12 }
 0x3ff   :  { %v6711_v40 = vadd.f32 %v6710_v44, %v17125_v59  ;;  %8954 = vmatpush1.bf16.msra.mxu1 %v13934_v18  ;;  %8985 = vmatprep.mubr.bf16.mxu1 %v17727_v52  ;;  %v13979_v18 = vld [vmem:[#allocation7 + $0xce8] ss:$16 sps:$4 sm:$0xff]   ;;  %v13990_v44 = vld [vmem:[#allocation7 + $0xecc] ss:$16 sps:$4 sm:$0xff]  }
 0x400   :  { %8927 = vmatpush2.bf16.msra.mxu0 %v13931_v39  ;;  %v6712_v36 = vpop.f32.mrf.mxu1  ;;  %8955 = vmatprep.subr.bf16.mxu1 %v13942_v53  ;;  %v17178_v39 = vrot.slane %v17730_v51, 1  ;;  %v13982_v53 = vld [vmem:[#allocation7 + $0xee8] ss:$16 sps:$4 sm:$0xff]  }
 0x401   :  { %v17166_v2 = vadd.f32 %v6753_v63, %v6711_v40  ;;  %v6713_v1 = vadd.f32 %v6712_v36, %v17128_v8  ;;  %8928 = vmatprep.subr.bf16.mxu0 %v13939_v60  ;;  %v13951_v8 = vld [vmem:[#allocation7 + $0xd84] ss:$16 sps:$4 sm:$0xff]   ;;  %v13984_v63 = vld [vmem:[#allocation7 + $0xeec] ss:$16 sps:$4 sm:$0xff]   ;;  %v17181_v60 = vrot.slane %v17729_v23, 1 }
 0x402   :  { %v6714_v7 = vpop.f32.mrf.mxu1  ;;  %v13985_v36 = vld [vmem:[#allocation7 + $0xcc8] ss:$16 sps:$4 sm:$0xff]  }
 0x403   :  { %v17169_v33 = vadd.f32 %v6755_v13, %v6713_v1  ;;  %v6715_v59 = vadd.f32 %v6714_v7, %v17130_v9  ;;  %8956 = vmatpush1.bf16.msra.mxu1 %v13940_v21  ;;  %v13949_v9 = vld [vmem:[#allocation7 + $0xd80] ss:$16 sps:$4 sm:$0xff]   ;;  %v13987_v13 = vld [vmem:[#allocation7 + $0xccc] ss:$16 sps:$4 sm:$0xff]  }
 0x404   :  { %8929 = vmatpush2.bf16.msra.mxu0 %v13937_v42  ;;  %v6716_v37 = vpop.f32.mrf.mxu1  ;;  %8957 = vmatprep.subr.bf16.mxu1 %v13948_v41  ;;  %v13988_v41 = vld [vmem:[#allocation7 + $0xec8] ss:$16 sps:$4 sm:$0xff]   ;;  %v13993_v1 = vld [vmem:[#allocation7 + $0xcac] ss:$16 sps:$4 sm:$0xff]  }
 0x405   :  { %v17172_v46 = vadd.f32 %v6757_v15, %v6715_v59  ;;  %v6717_v32 = vadd.f32 %v6716_v37, %v17132_v24  ;;  %8930 = vmatprep.subr.bf16.mxu0 %v13945_v10  ;;  %v13963_v24 = vld [vmem:[#allocation7 + $0xd44] ss:$16 sps:$4 sm:$0xff]   ;;  %v13996_v10 = vld [vmem:[#allocation7 + $0xeac] ss:$16 sps:$4 sm:$0xff]   ;;  %v13991_v37 = vld [vmem:[#allocation7 + $0xca8] ss:$16 sps:$4 sm:$0xff]  }
 0x407   :  { %v17175_v58 = vadd.f32 %v6759_v29, %v6717_v32  ;;  %8958 = vmatpush1.bf16.msra.mxu1 %v13946_v55  ;;  %v13999_v29 = vld [vmem:[#allocation7 + $0xc8c] ss:$16 sps:$4 sm:$0xff]  }
 0x408   :  { %8931 = vmatpush2.bf16.msra.mxu0 %v13943_v17  ;;  %8959 = vmatprep.subr.bf16.mxu1 %v13954_v43 }
 0x409   :  { %8932 = vmatprep.subr.bf16.mxu0 %v13951_v8  ;;  %v13994_v8 = vld [vmem:[#allocation7 + $0xea8] ss:$16 sps:$4 sm:$0xff]  }
 0x40b   :  { %8960 = vmatpush1.bf16.msra.mxu1 %v13952_v54 }
 0x40c   :  { %8933 = vmatpush2.bf16.msra.mxu0 %v13949_v9  ;;  %8961 = vmatprep.subr.bf16.mxu1 %v13960_v49 }
 0x40d   :  { %8934 = vmatprep.subr.bf16.mxu0 %v13957_v14  ;;  %v13997_v14 = vld [vmem:[#allocation7 + $0xc88] ss:$16 sps:$4 sm:$0xff]  }
 0x40f   :  { %8962 = vmatpush1.bf16.msra.mxu1 %v13958_v28 }
 0x410   :  { %8935 = vmatpush2.bf16.msra.mxu0 %v13955_v11  ;;  %8963 = vmatprep.subr.bf16.mxu1 %v13966_v20  ;;  %v14005_v11 = vld [vmem:[#allocation7 + $0xc6c] ss:$16 sps:$4 sm:$0xff]  }
 0x411   :  { %8936 = vmatprep.subr.bf16.mxu0 %v13963_v24  ;;  %v14008_v20 = vld [vmem:[#allocation7 + $0xe6c] ss:$16 sps:$4 sm:$0xff]   ;;  %v14003_v24 = vld [vmem:[#allocation7 + $0xc68] ss:$16 sps:$4 sm:$0xff]  }
 0x413   :  { %8964 = vmatpush1.bf16.msra.mxu1 %v13964_v57  ;;  %v14006_v57 = vld [vmem:[#allocation7 + $0xe68] ss:$16 sps:$4 sm:$0xff]  }
 0x414   :  { %8937 = vmatpush2.bf16.msra.mxu0 %v13961_v61  ;;  %8965 = vmatprep.subr.bf16.mxu1 %v13972_v45  ;;  %v14011_v61 = vld [vmem:[#allocation7 + $0xc4c] ss:$16 sps:$4 sm:$0xff]   ;;  %v14009_v45 = vld [vmem:[#allocation7 + $0xc48] ss:$16 sps:$4 sm:$0xff]  }
 0x415   :  { %8938 = vmatprep.subr.bf16.mxu0 %v13969_v26  ;;  %v14017_v26 = vld [vmem:[#allocation7 + $0xc2c] ss:$16 sps:$4 sm:$0xff]  }
 0x417   :  { %8966 = vmatpush1.bf16.msra.mxu1 %v13970_v35  ;;  %v14020_v35 = vld [vmem:[#allocation7 + $0xe2c] ss:$16 sps:$4 sm:$0xff]  }
 0x418   :  { %8939 = vmatpush2.bf16.msra.mxu0 %v13967_v48  ;;  %8967 = vmatprep.subr.bf16.mxu1 %v13978_v25  ;;  %v14015_v48 = vld [vmem:[#allocation7 + $0xc28] ss:$16 sps:$4 sm:$0xff]  }
 0x419   :  { %8940 = vmatprep.subr.bf16.mxu0 %v13975_v0  ;;  %v14018_v25 = vld [vmem:[#allocation7 + $0xe28] ss:$16 sps:$4 sm:$0xff]   ;;  %v14023_v0 = vld [vmem:[#allocation7 + $0xc0c] ss:$16 sps:$4 sm:$0xff]  }
 0x41b   :  { %8968 = vmatpush1.bf16.msra.mxu1 %v13976_v4  ;;  %v14026_v4 = vld [vmem:[#allocation7 + $0xe0c] ss:$16 sps:$4 sm:$0xff]  }
 0x41c   :  { %8941 = vmatpush2.bf16.msra.mxu0 %v13973_v50  ;;  %8996 = vmatprep.subr.bf16.mxu1 %v13981_v27  ;;  %v14021_v50 = vld [vmem:[#allocation7 + $0xc08] ss:$16 sps:$4 sm:$0xff]  }
 0x41d   :  { %9039 = vmatprep.subr.bf16.mxu0 %v13984_v63  ;;  %v14024_v27 = vld [vmem:[#allocation7 + $0xe08] ss:$16 sps:$4 sm:$0xff]   ;;  %v14029_v63 = vld [vmem:[#allocation7 + $0xdec] ss:$16 sps:$4 sm:$0xff]  }
 0x41e   :  { %v7440_v40 = vpop.f32.mrf.mxu1  ;;  %8986 = vmatmul.mubr.bf16.vlgmr.msra.gmra.mxu1 %v17178_v39 }
 0x41f   :  { %v7397_v21 = vpop.f32.mrf.mxu0  ;;  %8943 = vmatmul.mubr.bf16.vlgmr.msra.gmra.mxu0 %v17181_v60  ;;  %8997 = vmatpush1.bf16.msra.mxu1 %v13979_v18  ;;  %v14027_v18 = vld [vmem:[#allocation7 + $0xde8] ss:$16 sps:$4 sm:$0xff]  }
 0x420   :  { %v7441_v42 = vadd.f32 %v7440_v40, %v7397_v21  ;;  %9028 = vmatprep.mubr.bf16.mxu1 %v17159_v6  ;;  %9040 = vmatpush1.bf16.msra.mxu0 %v13982_v53  ;;  %v7442_v51 = vpop.f32.mrf.mxu1  ;;  %v14631_v53 = vld [vmem:[#allocation7 + $0x3e4] ss:$16 sps:$4 sm:$0xff]   ;;  %v14632_v40 = vld [vmem:[#allocation7 + $0x3e0] ss:$16 sps:$4 sm:$0xff]   ;;  %v14035_v21 = vld [vmem:[#allocation7 + $0xdac] ss:$16 sps:$4 sm:$0xff]  }
 0x421   :  { %v7399_v23 = vpop.f32.mrf.mxu0  ;;  %8998 = vmatprep.subr.bf16.mxu1 %v13987_v13  ;;  %9041 = vmatprep.subr.bf16.mxu0 %v13990_v44  ;;  %v14032_v13 = vld [vmem:[#allocation7 + $0xdcc] ss:$16 sps:$4 sm:$0xff]   ;;  %v14030_v44 = vld [vmem:[#allocation7 + $0xdc8] ss:$16 sps:$4 sm:$0xff]  }
 0x422   :  { %v17187_v15 = vadd.f32 %v7441_v42, %v17146_v5  ;;  %v7443_v7 = vadd.f32 %v7442_v51, %v7399_v23  ;;  %v7444_v59 = vpop.f32.mrf.mxu1  ;;  %9071 = vmatprep.mubr.bf16.mxu0 %v17727_v52  ;;  %v14002_v5 = vld [vmem:[#allocation7 + $0xe8c] ss:$16 sps:$4 sm:$0xff]   ;;  %v14033_v42 = vld [vmem:[#allocation7 + $0xda8] ss:$16 sps:$4 sm:$0xff]   ;;  %v14634_v51 = vld [vmem:[#allocation7 + $0x3c0] ss:$16 sps:$4 sm:$0xff]  }
 0x423   :  { %v7401_v55 = vpop.f32.mrf.mxu0  ;;  %8999 = vmatpush1.bf16.msra.mxu1 %v13985_v36  ;;  %v14633_v36 = vld [vmem:[#allocation7 + $0x3c4] ss:$16 sps:$4 sm:$0xff]   ;;  %v14036_v23 = vld [vmem:[#allocation7 + $0xd88] ss:$16 sps:$4 sm:$0xff]  }
 0x424   :  { %v17191_v17 = vadd.f32 %v7443_v7, %v17150_v3  ;;  %v7445_v43 = vadd.f32 %v7444_v59, %v7401_v55  ;;  %9042 = vmatpush1.bf16.msra.mxu0 %v13988_v41  ;;  %v7446_v32 = vpop.f32.mrf.mxu1  ;;  %9000 = vmatprep.subr.bf16.mxu1 %v13993_v1  ;;  %v14000_v3 = vld [vmem:[#allocation7 + $0xe88] ss:$16 sps:$4 sm:$0xff]   ;;  %v14038_v41 = vld [vmem:[#allocation7 + $0xd8c] ss:$16 sps:$4 sm:$0xff]   ;;  %v14635_v1 = vld [vmem:[#allocation7 + $0x3a4] ss:$16 sps:$4 sm:$0xff]  }
 0x425   :  { %v7403_v54 = vpop.f32.mrf.mxu0  ;;  %9043 = vmatprep.subr.bf16.mxu0 %v13996_v10  ;;  %v14636_v10 = vld [vmem:[#allocation7 + $0x3a0] ss:$16 sps:$4 sm:$0xff]   ;;  %v14041_v7 = vld [vmem:[#allocation7 + $0xd6c] ss:$16 sps:$4 sm:$0xff]   ;;  %v14637_v59 = vld [vmem:[#allocation7 + $0x384] ss:$16 sps:$4 sm:$0xff]  }
 0x426   :  { %v17194_v9 = vadd.f32 %v7445_v43, %v17153_v30  ;;  %v7447_v49 = vadd.f32 %v7446_v32, %v7403_v54  ;;  %v14014_v30 = vld [vmem:[#allocation7 + $0xe4c] ss:$16 sps:$4 sm:$0xff]   ;;  %v14039_v55 = vld [vmem:[#allocation7 + $0xd68] ss:$16 sps:$4 sm:$0xff]   ;;  %v14639_v32 = vld [vmem:[#allocation7 + $0x364] ss:$16 sps:$4 sm:$0xff]  }
 0x427   :  { %9001 = vmatpush1.bf16.msra.mxu1 %v13991_v37  ;;  %v14638_v37 = vld [vmem:[#allocation7 + $0x380] ss:$16 sps:$4 sm:$0xff]   ;;  %v14044_v43 = vld [vmem:[#allocation7 + $0xd4c] ss:$16 sps:$4 sm:$0xff]  }
 0x428   :  { %v17197_v28 = vadd.f32 %v7447_v49, %v17156_v62  ;;  %9044 = vmatpush1.bf16.msra.mxu0 %v13994_v8  ;;  %9002 = vmatprep.subr.bf16.mxu1 %v13999_v29  ;;  %v14012_v62 = vld [vmem:[#allocation7 + $0xe48] ss:$16 sps:$4 sm:$0xff]   ;;  %v14640_v29 = vld [vmem:[#allocation7 + $0x360] ss:$16 sps:$4 sm:$0xff]   ;;  %v14047_v54 = vld [vmem:[#allocation7 + $0xd2c] ss:$16 sps:$4 sm:$0xff]  }
 0x429   :  { %9045 = vmatprep.subr.bf16.mxu0 %v14002_v5  ;;  %v14042_v8 = vld [vmem:[#allocation7 + $0xd48] ss:$16 sps:$4 sm:$0xff]   ;;  %v14641_v5 = vld [vmem:[#allocation7 + $0x344] ss:$16 sps:$4 sm:$0xff]  }
 0x42a   :  { %v14045_v49 = vld [vmem:[#allocation7 + $0xd28] ss:$16 sps:$4 sm:$0xff]  }
 0x42b   :  { %9003 = vmatpush1.bf16.msra.mxu1 %v13997_v14  ;;  %v14642_v14 = vld [vmem:[#allocation7 + $0x340] ss:$16 sps:$4 sm:$0xff]  }
 0x42c   :  { %9046 = vmatpush1.bf16.msra.mxu0 %v14000_v3  ;;  %9004 = vmatprep.subr.bf16.mxu1 %v14005_v11  ;;  %v14050_v3 = vld [vmem:[#allocation7 + $0xd0c] ss:$16 sps:$4 sm:$0xff]   ;;  %v14643_v11 = vld [vmem:[#allocation7 + $0x324] ss:$16 sps:$4 sm:$0xff]  }
 0x42d   :  { %9047 = vmatprep.subr.bf16.mxu0 %v14008_v20  ;;  %v14048_v20 = vld [vmem:[#allocation7 + $0xd08] ss:$16 sps:$4 sm:$0xff]  }
 0x42f   :  { %9005 = vmatpush1.bf16.msra.mxu1 %v14003_v24 }
 0x430   :  { %9048 = vmatpush1.bf16.msra.mxu0 %v14006_v57  ;;  %9006 = vmatprep.subr.bf16.mxu1 %v14011_v61  ;;  %v14644_v57 = vld [vmem:[#allocation7 + $0x320] ss:$16 sps:$4 sm:$0xff]   ;;  %v14645_v61 = vld [vmem:[#allocation7 + $0x304] ss:$16 sps:$4 sm:$0xff]  }
 0x431   :  { %9049 = vmatprep.subr.bf16.mxu0 %v14014_v30 }
 0x433   :  { %9007 = vmatpush1.bf16.msra.mxu1 %v14009_v45  ;;  %v14646_v45 = vld [vmem:[#allocation7 + $0x300] ss:$16 sps:$4 sm:$0xff]  }
 0x434   :  { %9050 = vmatpush1.bf16.msra.mxu0 %v14012_v62  ;;  %9008 = vmatprep.subr.bf16.mxu1 %v14017_v26  ;;  %v14647_v62 = vld [vmem:[#allocation7 + $0x5e4] ss:$16 sps:$4 sm:$0xff]  }
 0x435   :  { %9051 = vmatprep.subr.bf16.mxu0 %v14020_v35  ;;  %v14648_v26 = vld [vmem:[#allocation7 + $0x4e4] ss:$16 sps:$4 sm:$0xff]  }
 0x437   :  { %9009 = vmatpush1.bf16.msra.mxu1 %v14015_v48 }
 0x438   :  { %9052 = vmatpush1.bf16.msra.mxu0 %v14018_v25  ;;  %9010 = vmatprep.subr.bf16.mxu1 %v14023_v0  ;;  %v14649_v25 = vld [vmem:[#allocation7 + $0x5e0] ss:$16 sps:$4 sm:$0xff]  }
 0x439   :  { %9053 = vmatprep.subr.bf16.mxu0 %v14026_v4  ;;  %v14650_v4 = vld [vmem:[#allocation7 + $0x4e0] ss:$16 sps:$4 sm:$0xff]  }
 0x43b   :  { %9011 = vmatpush1.bf16.msra.mxu1 %v14021_v50 }
 0x43c   :  { %9054 = vmatpush1.bf16.msra.mxu0 %v14024_v27  ;;  %9012 = vmatprep.subr.bf16.mxu1 %v14029_v63  ;;  %v14651_v27 = vld [vmem:[#allocation7 + $0x5c4] ss:$16 sps:$4 sm:$0xff]  }
 0x43d   :  { %9090 = vmatprep.subr.bf16.mxu0 %v14631_v53  ;;  %v14652_v53 = vld [vmem:[#allocation7 + $0x4c4] ss:$16 sps:$4 sm:$0xff]  }
 0x43f   :  { %9072 = vmatmul.mubr.bf16.vlgmr.msra.gmra.mxu0 %v17178_v39  ;;  %9013 = vmatpush2.bf16.msra.mxu1 %v14027_v18  ;;  %v7526_v24 = vpop.f32.mrf.mxu0 }
 0x440   :  { %9091 = vmatpush1.bf16.msra.mxu0 %v14632_v40  ;;  %9122 = vmatprep.mubr.bf16.mxu0 %v17092_v16 }
 0x441   :  { %9014 = vmatprep.subr.bf16.mxu1 %v14032_v13  ;;  %9092 = vmatprep.subr.bf16.mxu0 %v14633_v36  ;;  %v7528_v30 = vpop.f32.mrf.mxu0 }
 0x443   :  { %9015 = vmatpush2.bf16.msra.mxu1 %v14030_v44  ;;  %v7530_v0 = vpop.f32.mrf.mxu0 }
 0x444   :  { %9093 = vmatpush1.bf16.msra.mxu0 %v14634_v51  ;;  %9016 = vmatprep.subr.bf16.mxu1 %v14035_v21  ;;  %v14653_v21 = vld [vmem:[#allocation7 + $0x5c0] ss:$16 sps:$4 sm:$0xff]  }
 0x445   :  { %9094 = vmatprep.subr.bf16.mxu0 %v14635_v1  ;;  %v7532_v36 = vpop.f32.mrf.mxu0 }
 0x447   :  { %9017 = vmatpush2.bf16.msra.mxu1 %v14033_v42  ;;  %v14654_v42 = vld [vmem:[#allocation7 + $0x4c0] ss:$16 sps:$4 sm:$0xff]  }
 0x448   :  { %9095 = vmatpush1.bf16.msra.mxu0 %v14636_v10  ;;  %9018 = vmatprep.subr.bf16.mxu1 %v14038_v41  ;;  %v14655_v41 = vld [vmem:[#allocation7 + $0x5a4] ss:$16 sps:$4 sm:$0xff]  }
 0x449   :  { %9096 = vmatprep.subr.bf16.mxu0 %v14637_v59  ;;  %v14659_v59 = vld [vmem:[#allocation7 + $0x584] ss:$16 sps:$4 sm:$0xff]  }
 0x44b   :  { %9019 = vmatpush2.bf16.msra.mxu1 %v14036_v23  ;;  %v14656_v23 = vld [vmem:[#allocation7 + $0x4a4] ss:$16 sps:$4 sm:$0xff]  }
 0x44c   :  { %9097 = vmatpush1.bf16.msra.mxu0 %v14638_v37  ;;  %9020 = vmatprep.subr.bf16.mxu1 %v14041_v7  ;;  %v14658_v7 = vld [vmem:[#allocation7 + $0x4a0] ss:$16 sps:$4 sm:$0xff]  }
 0x44d   :  { %9098 = vmatprep.subr.bf16.mxu0 %v14639_v32  ;;  %v14661_v37 = vld [vmem:[#allocation7 + $0x580] ss:$16 sps:$4 sm:$0xff]   ;;  %v14664_v32 = vld [vmem:[#allocation7 + $0x464] ss:$16 sps:$4 sm:$0xff]  }
 0x44f   :  { %9021 = vmatpush2.bf16.msra.mxu1 %v14039_v55  ;;  %v14660_v55 = vld [vmem:[#allocation7 + $0x484] ss:$16 sps:$4 sm:$0xff]  }
 0x450   :  { %9099 = vmatpush1.bf16.msra.mxu0 %v14640_v29  ;;  %9022 = vmatprep.subr.bf16.mxu1 %v14044_v43  ;;  %v14662_v43 = vld [vmem:[#allocation7 + $0x480] ss:$16 sps:$4 sm:$0xff]   ;;  %v14667_v29 = vld [vmem:[#allocation7 + $0x544] ss:$16 sps:$4 sm:$0xff]  }
 0x451   :  { %9100 = vmatprep.subr.bf16.mxu0 %v14641_v5  ;;  %v14669_v5 = vld [vmem:[#allocation7 + $0x540] ss:$16 sps:$4 sm:$0xff]  }
 0x453   :  { %9023 = vmatpush2.bf16.msra.mxu1 %v14042_v8  ;;  %v14665_v8 = vld [vmem:[#allocation7 + $0x560] ss:$16 sps:$4 sm:$0xff]  }
 0x454   :  { %9101 = vmatpush1.bf16.msra.mxu0 %v14642_v14  ;;  %9024 = vmatprep.subr.bf16.mxu1 %v14047_v54  ;;  %v14668_v54 = vld [vmem:[#allocation7 + $0x444] ss:$16 sps:$4 sm:$0xff]  }
 0x455   :  { %9102 = vmatprep.subr.bf16.mxu0 %v14643_v11  ;;  %v14671_v14 = vld [vmem:[#allocation7 + $0x524] ss:$16 sps:$4 sm:$0xff]   ;;  %v14673_v11 = vld [vmem:[#allocation7 + $0x520] ss:$16 sps:$4 sm:$0xff]  }
 0x457   :  { %9025 = vmatpush2.bf16.msra.mxu1 %v14045_v49  ;;  %v14670_v49 = vld [vmem:[#allocation7 + $0x440] ss:$16 sps:$4 sm:$0xff]  }
 0x458   :  { %9103 = vmatpush1.bf16.msra.mxu0 %v14644_v57  ;;  %9026 = vmatprep.subr.bf16.mxu1 %v14050_v3  ;;  %v14672_v3 = vld [vmem:[#allocation7 + $0x424] ss:$16 sps:$4 sm:$0xff]  }
 0x459   :  { %9104 = vmatprep.subr.bf16.mxu0 %v14645_v61  ;;  %v14676_v57 = vld [vmem:[#allocation7 + $0x404] ss:$16 sps:$4 sm:$0xff]   ;;  %v14677_v61 = vld [vmem:[#allocation7 + $0x500] ss:$16 sps:$4 sm:$0xff]  }
 0x45b   :  { %9027 = vmatpush2.bf16.msra.mxu1 %v14048_v20  ;;  %v14674_v20 = vld [vmem:[#allocation7 + $0x420] ss:$16 sps:$4 sm:$0xff]  }
 0x45c   :  { %9105 = vmatpush1.bf16.msra.mxu0 %v14646_v45  ;;  %9133 = vmatprep.subr.bf16.mxu1 %v14647_v62  ;;  %v14679_v45 = vld [vmem:[#allocation7 + $0x3ec] ss:$16 sps:$4 sm:$0xff]  }
 0x45d   :  { %9106 = vmatprep.subr.bf16.mxu0 %v14648_v26  ;;  %v14680_v62 = vld [vmem:[#allocation7 + $0x5ec] ss:$16 sps:$4 sm:$0xff]  }
 0x45e   :  { %v7483_v35 = vpop.f32.mrf.mxu1  ;;  %9029 = vmatmul.mubr.bf16.vlgmr.msra.gmra.mxu1 %v17181_v60 }
 0x45f   :  { %v7527_v48 = vadd.f32 %v7526_v24, %v7483_v35  ;;  %9134 = vmatpush1.bf16.msra.mxu1 %v14649_v25  ;;  %9165 = vmatprep.mubr.bf16.mxu1 %v17727_v52  ;;  %v14675_v24 = vld [vmem:[#allocation7 + $0x504] ss:$16 sps:$4 sm:$0xff]  }
 0x460   :  { %9107 = vmatpush2.bf16.msra.mxu0 %v14650_v4  ;;  %v7485_v50 = vpop.f32.mrf.mxu1  ;;  %9135 = vmatprep.subr.bf16.mxu1 %v14651_v27  ;;  %v14683_v27 = vld [vmem:[#allocation7 + $0x3cc] ss:$16 sps:$4 sm:$0xff]  }
 0x461   :  { %v17204_v63 = vadd.f32 %v7527_v48, %v17166_v2  ;;  %v7529_v18 = vadd.f32 %v7528_v30, %v7485_v50  ;;  %9108 = vmatprep.subr.bf16.mxu0 %v14652_v53  ;;  %v14678_v30 = vld [vmem:[#allocation7 + $0x400] ss:$16 sps:$4 sm:$0xff]   ;;  %v14681_v48 = vld [vmem:[#allocation7 + $0x3e8] ss:$16 sps:$4 sm:$0xff]  }
 0x462   :  { %v7487_v13 = vpop.f32.mrf.mxu1 }
 0x463   :  { %v17207_v44 = vadd.f32 %v7529_v18, %v17169_v33  ;;  %v7531_v40 = vadd.f32 %v7530_v0, %v7487_v13  ;;  %9136 = vmatpush1.bf16.msra.mxu1 %v14653_v21  ;;  %v14657_v33 = vld [vmem:[#allocation7 + $0x5a0] ss:$16 sps:$4 sm:$0xff]   ;;  %v14682_v0 = vld [vmem:[#allocation7 + $0x5e8] ss:$16 sps:$4 sm:$0xff]   ;;  %v14684_v18 = vld [vmem:[#allocation7 + $0x5cc] ss:$16 sps:$4 sm:$0xff]  }
 0x464   :  { %9109 = vmatpush2.bf16.msra.mxu0 %v14654_v42  ;;  %v7489_v51 = vpop.f32.mrf.mxu1  ;;  %9137 = vmatprep.subr.bf16.mxu1 %v14655_v41 }
 0x465   :  { %v17210_v1 = vadd.f32 %v7531_v40, %v17172_v46  ;;  %v7533_v2 = vadd.f32 %v7532_v36, %v7489_v51  ;;  %9110 = vmatprep.subr.bf16.mxu0 %v14656_v23  ;;  %v14663_v46 = vld [vmem:[#allocation7 + $0x564] ss:$16 sps:$4 sm:$0xff]   ;;  %v14685_v36 = vld [vmem:[#allocation7 + $0x3c8] ss:$16 sps:$4 sm:$0xff]  }
 0x466   :  { %v14686_v51 = vld [vmem:[#allocation7 + $0x5c8] ss:$16 sps:$4 sm:$0xff]  }
 0x467   :  { %v17213_v10 = vadd.f32 %v7533_v2, %v17175_v58  ;;  %9138 = vmatpush1.bf16.msra.mxu1 %v14657_v33  ;;  %v14666_v58 = vld [vmem:[#allocation7 + $0x460] ss:$16 sps:$4 sm:$0xff]   ;;  %v14687_v2 = vld [vmem:[#allocation7 + $0x3ac] ss:$16 sps:$4 sm:$0xff]  }
 0x468   :  { %9111 = vmatpush2.bf16.msra.mxu0 %v14658_v7  ;;  %9139 = vmatprep.subr.bf16.mxu1 %v14659_v59  ;;  %v14688_v33 = vld [vmem:[#allocation7 + $0x5ac] ss:$16 sps:$4 sm:$0xff]   ;;  %v14689_v59 = vld [vmem:[#allocation7 + $0x3a8] ss:$16 sps:$4 sm:$0xff]  }
 0x469   :  { %9112 = vmatprep.subr.bf16.mxu0 %v14660_v55 }
 0x46b   :  { %9140 = vmatpush1.bf16.msra.mxu1 %v14661_v37  ;;  %v14691_v37 = vld [vmem:[#allocation7 + $0x38c] ss:$16 sps:$4 sm:$0xff]  }
 0x46c   :  { %9113 = vmatpush2.bf16.msra.mxu0 %v14662_v43  ;;  %9141 = vmatprep.subr.bf16.mxu1 %v14663_v46  ;;  %v14692_v43 = vld [vmem:[#allocation7 + $0x58c] ss:$16 sps:$4 sm:$0xff]   ;;  %v14693_v46 = vld [vmem:[#allocation7 + $0x388] ss:$16 sps:$4 sm:$0xff]  }
 0x46d   :  { %9114 = vmatprep.subr.bf16.mxu0 %v14664_v32  ;;  %v14694_v32 = vld [vmem:[#allocation7 + $0x588] ss:$16 sps:$4 sm:$0xff]  }
 0x46f   :  { %9142 = vmatpush1.bf16.msra.mxu1 %v14665_v8  ;;  %v14695_v8 = vld [vmem:[#allocation7 + $0x36c] ss:$16 sps:$4 sm:$0xff]  }
 0x470   :  { %9115 = vmatpush2.bf16.msra.mxu0 %v14666_v58  ;;  %9143 = vmatprep.subr.bf16.mxu1 %v14667_v29  ;;  %v14697_v58 = vld [vmem:[#allocation7 + $0x368] ss:$16 sps:$4 sm:$0xff]  }
 0x471   :  { %9116 = vmatprep.subr.bf16.mxu0 %v14668_v54  ;;  %v14698_v29 = vld [vmem:[#allocation7 + $0x568] ss:$16 sps:$4 sm:$0xff]   ;;  %v14700_v54 = vld [vmem:[#allocation7 + $0x54c] ss:$16 sps:$4 sm:$0xff]  }
 0x473   :  { %9144 = vmatpush1.bf16.msra.mxu1 %v14669_v5  ;;  %v14701_v5 = vld [vmem:[#allocation7 + $0x348] ss:$16 sps:$4 sm:$0xff]  }
 0x474   :  { %9117 = vmatpush2.bf16.msra.mxu0 %v14670_v49  ;;  %9145 = vmatprep.subr.bf16.mxu1 %v14671_v14  ;;  %v14702_v49 = vld [vmem:[#allocation7 + $0x548] ss:$16 sps:$4 sm:$0xff]   ;;  %v14703_v14 = vld [vmem:[#allocation7 + $0x32c] ss:$16 sps:$4 sm:$0xff]  }
 0x475   :  { %9118 = vmatprep.subr.bf16.mxu0 %v14672_v3  ;;  %v14704_v3 = vld [vmem:[#allocation7 + $0x52c] ss:$16 sps:$4 sm:$0xff]  }
 0x477   :  { %9146 = vmatpush1.bf16.msra.mxu1 %v14673_v11  ;;  %v14705_v11 = vld [vmem:[#allocation7 + $0x328] ss:$16 sps:$4 sm:$0xff]  }
 0x478   :  { %9119 = vmatpush2.bf16.msra.mxu0 %v14674_v20  ;;  %9147 = vmatprep.subr.bf16.mxu1 %v14675_v24  ;;  %v14706_v20 = vld [vmem:[#allocation7 + $0x528] ss:$16 sps:$4 sm:$0xff]   ;;  %v14707_v24 = vld [vmem:[#allocation7 + $0x30c] ss:$16 sps:$4 sm:$0xff]  }
 0x479   :  { %9120 = vmatprep.subr.bf16.mxu0 %v14676_v57  ;;  %v14708_v57 = vld [vmem:[#allocation7 + $0x50c] ss:$16 sps:$4 sm:$0xff]  }
 0x47b   :  { %9148 = vmatpush1.bf16.msra.mxu1 %v14677_v61  ;;  %v14709_v61 = vld [vmem:[#allocation7 + $0x308] ss:$16 sps:$4 sm:$0xff]  }
 0x47c   :  { %9121 = vmatpush2.bf16.msra.mxu0 %v14678_v30  ;;  %9176 = vmatprep.subr.bf16.mxu1 %v14679_v45  ;;  %v14710_v30 = vld [vmem:[#allocation7 + $0x508] ss:$16 sps:$4 sm:$0xff]   ;;  %v14711_v45 = vld [vmem:[#allocation7 + $0x4ec] ss:$16 sps:$4 sm:$0xff]  }
 0x47d   :  { %9219 = vmatprep.subr.bf16.mxu0 %v14680_v62  ;;  %v14712_v62 = vld [vmem:[#allocation7 + $0xe4] ss:$16 sps:$4 sm:$0xff]  }
 0x47e   :  { %v8221_v26 = vpop.f32.mrf.mxu1  ;;  %9166 = vmatmul.mubr.bf16.vlgmr.msra.gmra.mxu1 %v17102_v56 }
 0x47f   :  { %v8178_v35 = vpop.f32.mrf.mxu0  ;;  %9123 = vmatmul.mubr.bf16.vlgmr.msra.gmra.mxu0 %v17104_v38  ;;  %9177 = vmatpush1.bf16.msra.mxu1 %v14681_v48  ;;  %v14715_v48 = vld [vmem:[#allocation7 + $0x4cc] ss:$16 sps:$4 sm:$0xff]  }
 0x480   :  { %v8222_v25 = vadd.f32 %v8221_v26, %v8178_v35  ;;  %9208 = vmatprep.mubr.bf16.mxu1 %v17092_v16  ;;  %9220 = vmatpush1.bf16.msra.mxu0 %v14682_v0  ;;  %v8223_v4 = vpop.f32.mrf.mxu1  ;;  %v14713_v26 = vld [vmem:[#allocation7 + $0x4e8] ss:$16 sps:$4 sm:$0xff]   ;;  %v14714_v35 = vld [vmem:[#allocation7 + $0xe0] ss:$16 sps:$4 sm:$0xff]  }
 0x481   :  { %v8180_v50 = vpop.f32.mrf.mxu0  ;;  %9178 = vmatprep.subr.bf16.mxu1 %v14683_v27  ;;  %9221 = vmatprep.subr.bf16.mxu0 %v14684_v18  ;;  %v14717_v0 = vld [vmem:[#allocation7 + $0x4c8] ss:$16 sps:$4 sm:$0xff]   ;;  %v14720_v27 = vld [vmem:[#allocation7 + $0xa4] ss:$16 sps:$4 sm:$0xff]  }
 0x482   :  { %v17219_v53 = vadd.f32 %v8222_v25, %v17187_v15  ;;  %v8224_v13 = vadd.f32 %v8223_v4, %v8180_v50  ;;  %v8225_v40 = vpop.f32.mrf.mxu1  ;;  %9251 = vmatprep.mubr.bf16.mxu0 %v17727_v52  ;;  %v14716_v25 = vld [vmem:[#allocation7 + $0xc4] ss:$16 sps:$4 sm:$0xff]   ;;  %v14718_v4 = vld [vmem:[#allocation7 + $0xc0] ss:$16 sps:$4 sm:$0xff]   ;;  %v14719_v50 = vld [vmem:[#allocation7 + $0x4ac] ss:$16 sps:$4 sm:$0xff]  }
 0x483   :  { %v8182_v21 = vpop.f32.mrf.mxu0  ;;  %9179 = vmatpush1.bf16.msra.mxu1 %v14685_v36  ;;  %v14721_v18 = vld [vmem:[#allocation7 + $0x4a8] ss:$16 sps:$4 sm:$0xff]   ;;  %v14726_v36 = vld [vmem:[#allocation7 + $0x80] ss:$16 sps:$4 sm:$0xff]  }
 0x484   :  { %v17223_v16 = vadd.f32 %v8224_v13, %v17191_v17  ;;  %v8226_v42 = vadd.f32 %v8225_v40, %v8182_v21  ;;  %9222 = vmatpush1.bf16.msra.mxu0 %v14686_v51  ;;  %v8227_v41 = vpop.f32.mrf.mxu1  ;;  %9180 = vmatprep.subr.bf16.mxu1 %v14687_v2  ;;  %v14690_v17 = vld [vmem:[#allocation7 + $0x5a8] ss:$16 sps:$4 sm:$0xff]   ;;  %v14723_v13 = vld [vmem:[#allocation7 + $0x48c] ss:$16 sps:$4 sm:$0xff]   ;;  %v14724_v40 = vld [vmem:[#allocation7 + $0x84] ss:$16 sps:$4 sm:$0xff]  }
 0x485   :  { %v8184_v23 = vpop.f32.mrf.mxu0  ;;  %9223 = vmatprep.subr.bf16.mxu0 %v14688_v33  ;;  %v14725_v21 = vld [vmem:[#allocation7 + $0x488] ss:$16 sps:$4 sm:$0xff]   ;;  %v14728_v51 = vld [vmem:[#allocation7 + $0x64] ss:$16 sps:$4 sm:$0xff]   ;;  %v14730_v2 = vld [vmem:[#allocation7 + $0x60] ss:$16 sps:$4 sm:$0xff]  }
 0x486   :  { %v17226_v15 = vadd.f32 %v8226_v42, %v17194_v9  ;;  %v8228_v7 = vadd.f32 %v8227_v41, %v8184_v23  ;;  %v14696_v9 = vld [vmem:[#allocation7 + $0x56c] ss:$16 sps:$4 sm:$0xff]   ;;  %v14729_v41 = vld [vmem:[#allocation7 + $0x468] ss:$16 sps:$4 sm:$0xff]   ;;  %v14732_v33 = vld [vmem:[#allocation7 + $0x44] ss:$16 sps:$4 sm:$0xff]  }
 0x487   :  { %9181 = vmatpush1.bf16.msra.mxu1 %v14689_v59  ;;  %v14727_v42 = vld [vmem:[#allocation7 + $0x46c] ss:$16 sps:$4 sm:$0xff]   ;;  %v14734_v59 = vld [vmem:[#allocation7 + $0x40] ss:$16 sps:$4 sm:$0xff]  }
 0x488   :  { %v17229_v55 = vadd.f32 %v8228_v7, %v17197_v28  ;;  %9224 = vmatpush1.bf16.msra.mxu0 %v14690_v17  ;;  %9182 = vmatprep.subr.bf16.mxu1 %v14691_v37  ;;  %v14699_v28 = vld [vmem:[#allocation7 + $0x34c] ss:$16 sps:$4 sm:$0xff]   ;;  %v14733_v7 = vld [vmem:[#allocation7 + $0x448] ss:$16 sps:$4 sm:$0xff]   ;;  %v14736_v37 = vld [vmem:[#allocation7 + $0x24] ss:$16 sps:$4 sm:$0xff]  }
 0x489   :  { %9225 = vmatprep.subr.bf16.mxu0 %v14692_v43  ;;  %v14731_v23 = vld [vmem:[#allocation7 + $0x44c] ss:$16 sps:$4 sm:$0xff]   ;;  %v14737_v43 = vld [vmem:[#allocation7 + $0x428] ss:$16 sps:$4 sm:$0xff]  }
 0x48a   :  { %v14735_v17 = vld [vmem:[#allocation7 + $0x42c] ss:$16 sps:$4 sm:$0xff]  }
 0x48b   :  { %9183 = vmatpush1.bf16.msra.mxu1 %v14693_v46 }
 0x48c   :  { %9226 = vmatpush1.bf16.msra.mxu0 %v14694_v32  ;;  %9184 = vmatprep.subr.bf16.mxu1 %v14695_v8  ;;  %v14738_v32 = vld [vmem:[#allocation7 + $0x20] ss:$16 sps:$4 sm:$0xff]   ;;  %v14739_v8 = vld [vmem:[#allocation7 + $0x40c] ss:$16 sps:$4 sm:$0xff]  }
 0x48d   :  { %9227 = vmatprep.subr.bf16.mxu0 %v14696_v9  ;;  %v14740_v9 = vld [vmem:[#allocation7 + $0x4] ss:$16 sps:$4 sm:$0xff]  }
 0x48f   :  { %9185 = vmatpush1.bf16.msra.mxu1 %v14697_v58  ;;  %v14741_v58 = vld [vmem:[#allocation7 + $0x408] ss:$16 sps:$4 sm:$0xff]  }
 0x490   :  { %9228 = vmatpush1.bf16.msra.mxu0 %v14698_v29  ;;  %9186 = vmatprep.subr.bf16.mxu1 %v14699_v28  ;;  %v14742_v28 = vld [vmem:[#allocation7] ss:$16 sps:$4 sm:$0xff]  }
 0x491   :  { %9229 = vmatprep.subr.bf16.mxu0 %v14700_v54  ;;  %v14743_v54 = vld [vmem:[#allocation7 + $0x2e4] ss:$16 sps:$4 sm:$0xff]  }
 0x493   :  { %9187 = vmatpush1.bf16.msra.mxu1 %v14701_v5  ;;  %v14744_v5 = vld [vmem:[#allocation7 + $0x1e4] ss:$16 sps:$4 sm:$0xff]  }
 0x494   :  { %9230 = vmatpush1.bf16.msra.mxu0 %v14702_v49  ;;  %9188 = vmatprep.subr.bf16.mxu1 %v14703_v14 }
 0x495   :  { %9231 = vmatprep.subr.bf16.mxu0 %v14704_v3  ;;  %v14745_v3 = vld [vmem:[#allocation7 + $0x2e0] ss:$16 sps:$4 sm:$0xff]  }
 0x497   :  { %9189 = vmatpush1.bf16.msra.mxu1 %v14705_v11 }
 0x498   :  { %9232 = vmatpush1.bf16.msra.mxu0 %v14706_v20  ;;  %9190 = vmatprep.subr.bf16.mxu1 %v14707_v24  ;;  %v14746_v20 = vld [vmem:[#allocation7 + $0x1e0] ss:$16 sps:$4 sm:$0xff]  }
 0x499   :  { %9233 = vmatprep.subr.bf16.mxu0 %v14708_v57  ;;  %v14747_v57 = vld [vmem:[#allocation7 + $0x2c4] ss:$16 sps:$4 sm:$0xff]  }
 0x49b   :  { %9191 = vmatpush1.bf16.msra.mxu1 %v14709_v61 }
 0x49c   :  { %9234 = vmatpush1.bf16.msra.mxu0 %v14710_v30  ;;  %9192 = vmatprep.subr.bf16.mxu1 %v14711_v45  ;;  %v14748_v45 = vld [vmem:[#allocation7 + $0x1c4] ss:$16 sps:$4 sm:$0xff]  }
 0x49d   :  { %9262 = vmatprep.subr.bf16.mxu0 %v14712_v62 }
 0x49f   :  { %9252 = vmatmul.mubr.bf16.vlgmr.msra.gmra.mxu0 %v17102_v56  ;;  %9193 = vmatpush2.bf16.msra.mxu1 %v14713_v26  ;;  %v14722_v56 = vld [vmem:[#allocation7 + $0xa0] ss:$16 sps:$4 sm:$0xff]   ;;  %v8307_v46 = vpop.f32.mrf.mxu0 }
 0x4a0   :  { %9263 = vmatpush1.bf16.msra.mxu0 %v14714_v35  ;;  %9294 = vmatprep.mubr.bf16.mxu0 %v17071_v19  ;;  %v14749_v35 = vld [vmem:[#allocation7 + $0x2c0] ss:$16 sps:$4 sm:$0xff]  }
 0x4a1   :  { %9194 = vmatprep.subr.bf16.mxu1 %v14715_v48  ;;  %9264 = vmatprep.subr.bf16.mxu0 %v14716_v25  ;;  %v8309_v29 = vpop.f32.mrf.mxu0  ;;  %v14750_v25 = vld [vmem:[#allocation7 + $0x1c0] ss:$16 sps:$4 sm:$0xff]  }
 0x4a3   :  { %9195 = vmatpush2.bf16.msra.mxu1 %v14717_v0  ;;  %v8311_v11 = vpop.f32.mrf.mxu0 }
 0x4a4   :  { %9265 = vmatpush1.bf16.msra.mxu0 %v14718_v4  ;;  %9196 = vmatprep.subr.bf16.mxu1 %v14719_v50  ;;  %v14751_v4 = vld [vmem:[#allocation7 + $0x2a4] ss:$16 sps:$4 sm:$0xff]  }
 0x4a5   :  { %9266 = vmatprep.subr.bf16.mxu0 %v14720_v27  ;;  %v8313_v48 = vpop.f32.mrf.mxu0  ;;  %v14752_v27 = vld [vmem:[#allocation7 + $0x1a4] ss:$16 sps:$4 sm:$0xff]  }
 0x4a7   :  { %9197 = vmatpush2.bf16.msra.mxu1 %v14721_v18 }
 0x4a8   :  { %9267 = vmatpush1.bf16.msra.mxu0 %v14722_v56  ;;  %9198 = vmatprep.subr.bf16.mxu1 %v14723_v13  ;;  %v14754_v56 = vld [vmem:[#allocation7 + $0x1a0] ss:$16 sps:$4 sm:$0xff]   ;;  %v14755_v13 = vld [vmem:[#allocation7 + $0x284] ss:$16 sps:$4 sm:$0xff]  }
 0x4a9   :  { %9268 = vmatprep.subr.bf16.mxu0 %v14724_v40  ;;  %v14756_v40 = vld [vmem:[#allocation7 + $0x184] ss:$16 sps:$4 sm:$0xff]  }
 0x4ab   :  { %9199 = vmatpush2.bf16.msra.mxu1 %v14725_v21  ;;  %v14757_v21 = vld [vmem:[#allocation7 + $0x280] ss:$16 sps:$4 sm:$0xff]  }
 0x4ac   :  { %9269 = vmatpush1.bf16.msra.mxu0 %v14726_v36  ;;  %9200 = vmatprep.subr.bf16.mxu1 %v14727_v42  ;;  %v14758_v36 = vld [vmem:[#allocation7 + $0x180] ss:$16 sps:$4 sm:$0xff]   ;;  %v14760_v42 = vld [vmem:[#allocation7 + $0x164] ss:$16 sps:$4 sm:$0xff]  }
 0x4ad   :  { %9270 = vmatprep.subr.bf16.mxu0 %v14728_v51  ;;  %v14761_v51 = vld [vmem:[#allocation7 + $0x260] ss:$16 sps:$4 sm:$0xff]  }
 0x4af   :  { %9201 = vmatpush2.bf16.msra.mxu1 %v14729_v41  ;;  %v14763_v41 = vld [vmem:[#allocation7 + $0x244] ss:$16 sps:$4 sm:$0xff]  }
 0x4b0   :  { %9271 = vmatpush1.bf16.msra.mxu0 %v14730_v2  ;;  %9202 = vmatprep.subr.bf16.mxu1 %v14731_v23  ;;  %v14764_v2 = vld [vmem:[#allocation7 + $0x144] ss:$16 sps:$4 sm:$0xff]   ;;  %v14765_v23 = vld [vmem:[#allocation7 + $0x240] ss:$16 sps:$4 sm:$0xff]  }
 0x4b1   :  { %9272 = vmatprep.subr.bf16.mxu0 %v14732_v33  ;;  %v14766_v33 = vld [vmem:[#allocation7 + $0x140] ss:$16 sps:$4 sm:$0xff]  }
 0x4b3   :  { %9203 = vmatpush2.bf16.msra.mxu1 %v14733_v7  ;;  %v14767_v7 = vld [vmem:[#allocation7 + $0x224] ss:$16 sps:$4 sm:$0xff]  }
 0x4b4   :  { %9273 = vmatpush1.bf16.msra.mxu0 %v14734_v59  ;;  %9204 = vmatprep.subr.bf16.mxu1 %v14735_v17  ;;  %v14768_v59 = vld [vmem:[#allocation7 + $0x124] ss:$16 sps:$4 sm:$0xff]   ;;  %v14769_v17 = vld [vmem:[#allocation7 + $0x220] ss:$16 sps:$4 sm:$0xff]  }
 0x4b5   :  { %9274 = vmatprep.subr.bf16.mxu0 %v14736_v37  ;;  %v14770_v37 = vld [vmem:[#allocation7 + $0x120] ss:$16 sps:$4 sm:$0xff]  }
 0x4b7   :  { %9205 = vmatpush2.bf16.msra.mxu1 %v14737_v43  ;;  %v14771_v43 = vld [vmem:[#allocation7 + $0x204] ss:$16 sps:$4 sm:$0xff]  }
 0x4b8   :  { %9275 = vmatpush1.bf16.msra.mxu0 %v14738_v32  ;;  %9206 = vmatprep.subr.bf16.mxu1 %v14739_v8  ;;  %v14773_v32 = vld [vmem:[#allocation7 + $0x200] ss:$16 sps:$4 sm:$0xff]  }
 0x4b9   :  { %9276 = vmatprep.subr.bf16.mxu0 %v14740_v9  ;;  %v14774_v8 = vld [vmem:[#allocation7 + $0x100] ss:$16 sps:$4 sm:$0xff]   ;;  %v14775_v9 = vld [vmem:[#allocation7 + $0xec] ss:$16 sps:$4 sm:$0xff]  }
 0x4bb   :  { %9207 = vmatpush2.bf16.msra.mxu1 %v14741_v58  ;;  %v14776_v58 = vld [vmem:[#allocation7 + $0x2ec] ss:$16 sps:$4 sm:$0xff]  }
 0x4bc   :  { %9277 = vmatpush1.bf16.msra.mxu0 %v14742_v28  ;;  %9305 = vmatprep.subr.bf16.mxu1 %v14743_v54  ;;  %v14777_v54 = vld [vmem:[#allocation7 + $0xe8] ss:$16 sps:$4 sm:$0xff]  }
 0x4bd   :  { %9278 = vmatprep.subr.bf16.mxu0 %v14744_v5 }
 0x4be   :  { %v8264_v49 = vpop.f32.mrf.mxu1  ;;  %9209 = vmatmul.mubr.bf16.vlgmr.msra.gmra.mxu1 %v17104_v38 }
 0x4bf   :  { %v8308_v14 = vadd.f32 %v8307_v46, %v8264_v49  ;;  %9306 = vmatpush1.bf16.msra.mxu1 %v14745_v3  ;;  %9337 = vmatprep.mubr.bf16.mxu1 %v17727_v52  ;;  %v14772_v46 = vld [vmem:[#allocation7 + $0x104] ss:$16 sps:$4 sm:$0xff]   ;;  %v14778_v49 = vld [vmem:[#allocation7 + $0x2e8] ss:$16 sps:$4 sm:$0xff]  }
 0x4c0   :  { %9279 = vmatpush2.bf16.msra.mxu0 %v14746_v20  ;;  %v8266_v24 = vpop.f32.mrf.mxu1  ;;  %9307 = vmatprep.subr.bf16.mxu1 %v14747_v57  ;;  %v14780_v20 = vld [vmem:[#allocation7 + $0x2cc] ss:$16 sps:$4 sm:$0xff]  }
 0x4c1   :  { %v17236_v61 = vadd.f32 %v8308_v14, %v17204_v63  ;;  %v8310_v30 = vadd.f32 %v8309_v29, %v8266_v24  ;;  %9280 = vmatprep.subr.bf16.mxu0 %v14748_v45 }
 0x4c2   :  { %v8268_v62 = vpop.f32.mrf.mxu1 }
 0x4c3   :  { %v17239_v38 = vadd.f32 %v8310_v30, %v17207_v44  ;;  %v8312_v26 = vadd.f32 %v8311_v11, %v8268_v62  ;;  %9308 = vmatpush1.bf16.msra.mxu1 %v14749_v35  ;;  %v14753_v44 = vld [vmem:[#allocation7 + $0x2a0] ss:$16 sps:$4 sm:$0xff]   ;;  %v14779_v11 = vld [vmem:[#allocation7 + $0xcc] ss:$16 sps:$4 sm:$0xff]   ;;  %v14781_v62 = vld [vmem:[#allocation7 + $0xc8] ss:$16 sps:$4 sm:$0xff]  }
 0x4c4   :  { %9281 = vmatpush2.bf16.msra.mxu0 %v14750_v25  ;;  %v8270_v0 = vpop.f32.mrf.mxu1  ;;  %9309 = vmatprep.subr.bf16.mxu1 %v14751_v4 }
 0x4c5   :  { %v17242_v50 = vadd.f32 %v8312_v26, %v17210_v1  ;;  %v8314_v63 = vadd.f32 %v8313_v48, %v8270_v0  ;;  %9282 = vmatprep.subr.bf16.mxu0 %v14752_v27  ;;  %v14759_v1 = vld [vmem:[#allocation7 + $0x264] ss:$16 sps:$4 sm:$0xff]   ;;  %v14782_v48 = vld [vmem:[#allocation7 + $0x2c8] ss:$16 sps:$4 sm:$0xff]   ;;  %v14783_v0 = vld [vmem:[#allocation7 + $0xac] ss:$16 sps:$4 sm:$0xff]  }
 0x4c7   :  { %v17245_v18 = vadd.f32 %v8314_v63, %v17213_v10  ;;  %9310 = vmatpush1.bf16.msra.mxu1 %v14753_v44  ;;  %v14762_v10 = vld [vmem:[#allocation7 + $0x160] ss:$16 sps:$4 sm:$0xff]   ;;  %v14784_v63 = vld [vmem:[#allocation7 + $0x2ac] ss:$16 sps:$4 sm:$0xff]   ;;  %v14785_v44 = vld [vmem:[#allocation7 + $0xa8] ss:$16 sps:$4 sm:$0xff]  }
 0x4c8   :  { %9283 = vmatpush2.bf16.msra.mxu0 %v14754_v56  ;;  %9311 = vmatprep.subr.bf16.mxu1 %v14755_v13  ;;  %v14787_v13 = vld [vmem:[#allocation7 + $0x8c] ss:$16 sps:$4 sm:$0xff]  }
 0x4c9   :  { %9284 = vmatprep.subr.bf16.mxu0 %v14756_v40  ;;  %v14788_v40 = vld [vmem:[#allocation7 + $0x28c] ss:$16 sps:$4 sm:$0xff]  }
 0x4cb   :  { %9312 = vmatpush1.bf16.msra.mxu1 %v14757_v21  ;;  %v14789_v21 = vld [vmem:[#allocation7 + $0x88] ss:$16 sps:$4 sm:$0xff]  }
 0x4cc   :  { %9285 = vmatpush2.bf16.msra.mxu0 %v14758_v36  ;;  %9313 = vmatprep.subr.bf16.mxu1 %v14759_v1  ;;  %v14790_v36 = vld [vmem:[#allocation7 + $0x288] ss:$16 sps:$4 sm:$0xff]   ;;  %v14791_v1 = vld [vmem:[#allocation7 + $0x6c] ss:$16 sps:$4 sm:$0xff]  }
 0x4cd   :  { %9286 = vmatprep.subr.bf16.mxu0 %v14760_v42  ;;  %v14793_v42 = vld [vmem:[#allocation7 + $0x68] ss:$16 sps:$4 sm:$0xff]  }
 0x4cf   :  { %9314 = vmatpush1.bf16.msra.mxu1 %v14761_v51  ;;  %v14794_v51 = vld [vmem:[#allocation7 + $0x268] ss:$16 sps:$4 sm:$0xff]  }
 0x4d0   :  { %9287 = vmatpush2.bf16.msra.mxu0 %v14762_v10  ;;  %9315 = vmatprep.subr.bf16.mxu1 %v14763_v41  ;;  %v14796_v10 = vld [vmem:[#allocation7 + $0x24c] ss:$16 sps:$4 sm:$0xff]   ;;  %v14797_v41 = vld [vmem:[#allocation7 + $0x48] ss:$16 sps:$4 sm:$0xff]  }
 0x4d1   :  { %9288 = vmatprep.subr.bf16.mxu0 %v14764_v2  ;;  %v14798_v2 = vld [vmem:[#allocation7 + $0x248] ss:$16 sps:$4 sm:$0xff]  }
 0x4d3   :  { %9316 = vmatpush1.bf16.msra.mxu1 %v14765_v23  ;;  %v14799_v23 = vld [vmem:[#allocation7 + $0x2c] ss:$16 sps:$4 sm:$0xff]  }
 0x4d4   :  { %9289 = vmatpush2.bf16.msra.mxu0 %v14766_v33  ;;  %9317 = vmatprep.subr.bf16.mxu1 %v14767_v7  ;;  %v14800_v33 = vld [vmem:[#allocation7 + $0x22c] ss:$16 sps:$4 sm:$0xff]   ;;  %v14801_v7 = vld [vmem:[#allocation7 + $0x28] ss:$16 sps:$4 sm:$0xff]  }
 0x4d5   :  { %9290 = vmatprep.subr.bf16.mxu0 %v14768_v59  ;;  %v14802_v59 = vld [vmem:[#allocation7 + $0x228] ss:$16 sps:$4 sm:$0xff]  }
 0x4d7   :  { %9318 = vmatpush1.bf16.msra.mxu1 %v14769_v17  ;;  %v14803_v17 = vld [vmem:[#allocation7 + $0xc] ss:$16 sps:$4 sm:$0xff]  }
 0x4d8   :  { %9291 = vmatpush2.bf16.msra.mxu0 %v14770_v37  ;;  %9319 = vmatprep.subr.bf16.mxu1 %v14771_v43  ;;  %v14804_v37 = vld [vmem:[#allocation7 + $0x20c] ss:$16 sps:$4 sm:$0xff]   ;;  %v14805_v43 = vld [vmem:[#allocation7 + $0x8] ss:$16 sps:$4 sm:$0xff]  }
 0x4d9   :  { %9292 = vmatprep.subr.bf16.mxu0 %v14772_v46  ;;  %v14806_v46 = vld [vmem:[#allocation7 + $0x208] ss:$16 sps:$4 sm:$0xff]  }
 0x4db   :  { %9320 = vmatpush1.bf16.msra.mxu1 %v14773_v32  ;;  %v14807_v32 = vld [vmem:[#allocation7 + $0x1ec] ss:$16 sps:$4 sm:$0xff]  }
 0x4dc   :  { %9293 = vmatpush2.bf16.msra.mxu0 %v14774_v8  ;;  %9348 = vmatprep.subr.bf16.mxu1 %v14775_v9  ;;  %v14808_v8 = vld [vmem:[#allocation7 + $0x6e4] ss:$16 sps:$4 sm:$0xff]   ;;  %v14809_v9 = vld [vmem:[#allocation7 + $0x1e8] ss:$16 sps:$4 sm:$0xff]  }
 0x4dd   :  { %9391 = vmatprep.subr.bf16.mxu0 %v14776_v58  ;;  %v14810_v58 = vld [vmem:[#allocation7 + $0x6e0] ss:$16 sps:$4 sm:$0xff]  }
 0x4de   :  { %v8987_v29 = vpop.f32.mrf.mxu1  ;;  %9338 = vmatmul.mubr.bf16.vlgmr.msra.gmra.mxu1 %v17075_v22 }
 0x4df   :  { %v8944_v28 = vpop.f32.mrf.mxu0  ;;  %9295 = vmatmul.mubr.bf16.vlgmr.msra.gmra.mxu0 %v17073_v34  ;;  %9349 = vmatpush1.bf16.msra.mxu1 %v14777_v54  ;;  %v14813_v54 = vld [vmem:[#allocation7 + $0x1c8] ss:$16 sps:$4 sm:$0xff]  }
 0x4e0   :  { %v8988_v5 = vadd.f32 %v8987_v29, %v8944_v28  ;;  %9380 = vmatprep.mubr.bf16.mxu1 %v17071_v19  ;;  %9392 = vmatpush1.bf16.msra.mxu0 %v14778_v49  ;;  %v8989_v14 = vpop.f32.mrf.mxu1  ;;  %v14811_v29 = vld [vmem:[#allocation7 + $0x1cc] ss:$16 sps:$4 sm:$0xff]   ;;  %v14812_v28 = vld [vmem:[#allocation7 + $0x6c4] ss:$16 sps:$4 sm:$0xff]  }
 0x4e1   :  { %v8946_v3 = vpop.f32.mrf.mxu0  ;;  %9350 = vmatprep.subr.bf16.mxu1 %v14779_v11  ;;  %9393 = vmatprep.subr.bf16.mxu0 %v14780_v20  ;;  %v14815_v49 = vld [vmem:[#allocation7 + $0x1ac] ss:$16 sps:$4 sm:$0xff]   ;;  %v14818_v11 = vld [vmem:[#allocation7 + $0x6a0] ss:$16 sps:$4 sm:$0xff]  }
 0x4e2   :  { %v17251_v24 = vadd.f32 %v8988_v5, %v17219_v53  ;;  %v8990_v57 = vadd.f32 %v8989_v14, %v8946_v3  ;;  %v8991_v30 = vpop.f32.mrf.mxu1  ;;  %9423 = vmatprep.mubr.bf16.mxu0 %v17727_v52  ;;  %v14814_v5 = vld [vmem:[#allocation7 + $0x6c0] ss:$16 sps:$4 sm:$0xff]   ;;  %v14816_v14 = vld [vmem:[#allocation7 + $0x6a4] ss:$16 sps:$4 sm:$0xff]   ;;  %v14817_v3 = vld [vmem:[#allocation7 + $0x1a8] ss:$16 sps:$4 sm:$0xff]  }
 0x4e3   :  { %v8948_v45 = vpop.f32.mrf.mxu0  ;;  %9351 = vmatpush1.bf16.msra.mxu1 %v14781_v62  ;;  %v14819_v20 = vld [vmem:[#allocation7 + $0x18c] ss:$16 sps:$4 sm:$0xff]  }
 0x4e4   :  { %v17255_v26 = vadd.f32 %v8990_v57, %v17223_v16  ;;  %v8992_v35 = vadd.f32 %v8991_v30, %v8948_v45  ;;  %9394 = vmatpush1.bf16.msra.mxu0 %v14782_v48  ;;  %v8993_v25 = vpop.f32.mrf.mxu1  ;;  %9352 = vmatprep.subr.bf16.mxu1 %v14783_v0  ;;  %v14786_v16 = vld [vmem:[#allocation7 + $0x2a8] ss:$16 sps:$4 sm:$0xff]   ;;  %v14820_v57 = vld [vmem:[#allocation7 + $0x684] ss:$16 sps:$4 sm:$0xff]   ;;  %v14822_v45 = vld [vmem:[#allocation7 + $0x680] ss:$16 sps:$4 sm:$0xff]  }
 0x4e5   :  { %v8950_v4 = vpop.f32.mrf.mxu0  ;;  %9395 = vmatprep.subr.bf16.mxu0 %v14784_v63  ;;  %v14821_v30 = vld [vmem:[#allocation7 + $0x188] ss:$16 sps:$4 sm:$0xff]   ;;  %v14823_v62 = vld [vmem:[#allocation7 + $0x16c] ss:$16 sps:$4 sm:$0xff]  }
 0x4e6   :  { %v17258_v53 = vadd.f32 %v8992_v35, %v17226_v15  ;;  %v8994_v27 = vadd.f32 %v8993_v25, %v8950_v4  ;;  %v14792_v15 = vld [vmem:[#allocation7 + $0x26c] ss:$16 sps:$4 sm:$0xff]   ;;  %v14824_v35 = vld [vmem:[#allocation7 + $0x664] ss:$16 sps:$4 sm:$0xff]   ;;  %v14825_v48 = vld [vmem:[#allocation7 + $0x168] ss:$16 sps:$4 sm:$0xff]  }
 0x4e7   :  { %9353 = vmatpush1.bf16.msra.mxu1 %v14785_v44  ;;  %v14826_v25 = vld [vmem:[#allocation7 + $0x660] ss:$16 sps:$4 sm:$0xff]   ;;  %v14827_v0 = vld [vmem:[#allocation7 + $0x14c] ss:$16 sps:$4 sm:$0xff]   ;;  %v14828_v4 = vld [vmem:[#allocation7 + $0x644] ss:$16 sps:$4 sm:$0xff]  }
 0x4e8   :  { %v17261_v56 = vadd.f32 %v8994_v27, %v17229_v55  ;;  %9396 = vmatpush1.bf16.msra.mxu0 %v14786_v16  ;;  %9354 = vmatprep.subr.bf16.mxu1 %v14787_v13  ;;  %v14795_v55 = vld [vmem:[#allocation7 + $0x4c] ss:$16 sps:$4 sm:$0xff]   ;;  %v14829_v63 = vld [vmem:[#allocation7 + $0x148] ss:$16 sps:$4 sm:$0xff]   ;;  %v14830_v27 = vld [vmem:[#allocation7 + $0x640] ss:$16 sps:$4 sm:$0xff]  }
 0x4e9   :  { %9397 = vmatprep.subr.bf16.mxu0 %v14788_v40  ;;  %v14831_v44 = vld [vmem:[#allocation7 + $0x12c] ss:$16 sps:$4 sm:$0xff]   ;;  %v14832_v16 = vld [vmem:[#allocation7 + $0x624] ss:$16 sps:$4 sm:$0xff]   ;;  %v14833_v13 = vld [vmem:[#allocation7 + $0x128] ss:$16 sps:$4 sm:$0xff]  }
 0x4eb   :  { %9355 = vmatpush1.bf16.msra.mxu1 %v14789_v21  ;;  %v14834_v21 = vld [vmem:[#allocation7 + $0x620] ss:$16 sps:$4 sm:$0xff]  }
 0x4ec   :  { %9398 = vmatpush1.bf16.msra.mxu0 %v14790_v36  ;;  %9356 = vmatprep.subr.bf16.mxu1 %v14791_v1  ;;  %v14835_v36 = vld [vmem:[#allocation7 + $0x10c] ss:$16 sps:$4 sm:$0xff]   ;;  %v14836_v1 = vld [vmem:[#allocation7 + $0x604] ss:$16 sps:$4 sm:$0xff]  }
 0x4ed   :  { %9399 = vmatprep.subr.bf16.mxu0 %v14792_v15  ;;  %v14837_v15 = vld [vmem:[#allocation7 + $0x108] ss:$16 sps:$4 sm:$0xff]  }
 0x4ef   :  { %9357 = vmatpush1.bf16.msra.mxu1 %v14793_v42 }
 0x4f0   :  { %9400 = vmatpush1.bf16.msra.mxu0 %v14794_v51  ;;  %9358 = vmatprep.subr.bf16.mxu1 %v14795_v55  ;;  %v14838_v51 = vld [vmem:[#allocation7 + $0x600] ss:$16 sps:$4 sm:$0xff]   ;;  %v14839_v55 = vld [vmem:[#allocation7 + $0x8e4] ss:$16 sps:$4 sm:$0xff]  }
 0x4f1   :  { %9401 = vmatprep.subr.bf16.mxu0 %v14796_v10  ;;  %v14840_v10 = vld [vmem:[#allocation7 + $0x7e4] ss:$16 sps:$4 sm:$0xff]  }
 0x4f3   :  { %9359 = vmatpush1.bf16.msra.mxu1 %v14797_v41 }
 0x4f4   :  { %9402 = vmatpush1.bf16.msra.mxu0 %v14798_v2  ;;  %9360 = vmatprep.subr.bf16.mxu1 %v14799_v23  ;;  %v14841_v23 = vld [vmem:[#allocation7 + $0x8e0] ss:$16 sps:$4 sm:$0xff]  }
 0x4f5   :  { %9403 = vmatprep.subr.bf16.mxu0 %v14800_v33 }
 0x4f7   :  { %9361 = vmatpush1.bf16.msra.mxu1 %v14801_v7  ;;  %v14842_v7 = vld [vmem:[#allocation7 + $0x7e0] ss:$16 sps:$4 sm:$0xff]  }
 0x4f8   :  { %9404 = vmatpush1.bf16.msra.mxu0 %v14802_v59  ;;  %9362 = vmatprep.subr.bf16.mxu1 %v14803_v17  ;;  %v14843_v17 = vld [vmem:[#allocation7 + $0x8c4] ss:$16 sps:$4 sm:$0xff]  }
 0x4f9   :  { %9405 = vmatprep.subr.bf16.mxu0 %v14804_v37 }
 0x4fb   :  { %9363 = vmatpush1.bf16.msra.mxu1 %v14805_v43 }
 0x4fc   :  { %9406 = vmatpush1.bf16.msra.mxu0 %v14806_v46  ;;  %9364 = vmatprep.subr.bf16.mxu1 %v14807_v32  ;;  %v14844_v46 = vld [vmem:[#allocation7 + $0x7c4] ss:$16 sps:$4 sm:$0xff]  }
 0x4fd   :  { %9434 = vmatprep.subr.bf16.mxu0 %v14808_v8 }
 0x4ff   :  { %9424 = vmatmul.mubr.bf16.vlgmr.msra.gmra.mxu0 %v17075_v22  ;;  %9365 = vmatpush2.bf16.msra.mxu1 %v14809_v9  ;;  %v9073_v40 = vpop.f32.mrf.mxu0 }
 0x500   :  { %9435 = vmatpush1.bf16.msra.mxu0 %v14810_v58  ;;  %9466 = vmatprep.mubr.bf16.mxu0 %v17120_v47  ;;  %v14845_v58 = vld [vmem:[#allocation7 + $0x8c0] ss:$16 sps:$4 sm:$0xff]  }
 0x501   :  { %9366 = vmatprep.subr.bf16.mxu1 %v14811_v29  ;;  %9436 = vmatprep.subr.bf16.mxu0 %v14812_v28  ;;  %v9075_v42 = vpop.f32.mrf.mxu0  ;;  %v14846_v28 = vld [vmem:[#allocation7 + $0x7c0] ss:$16 sps:$4 sm:$0xff]  }
 0x503   :  { %9367 = vmatpush2.bf16.msra.mxu1 %v14813_v54  ;;  %v9077_v33 = vpop.f32.mrf.mxu0 }
 0x504   :  { %9437 = vmatpush1.bf16.msra.mxu0 %v14814_v5  ;;  %9368 = vmatprep.subr.bf16.mxu1 %v14815_v49  ;;  %v14847_v5 = vld [vmem:[#allocation7 + $0x8a4] ss:$16 sps:$4 sm:$0xff]  }
 0x505   :  { %9438 = vmatprep.subr.bf16.mxu0 %v14816_v14  ;;  %v9079_v29 = vpop.f32.mrf.mxu0  ;;  %v14848_v14 = vld [vmem:[#allocation7 + $0x7a4] ss:$16 sps:$4 sm:$0xff]  }
 0x507   :  { %9369 = vmatpush2.bf16.msra.mxu1 %v14817_v3 }
 0x508   :  { %9439 = vmatpush1.bf16.msra.mxu0 %v14818_v11  ;;  %9370 = vmatprep.subr.bf16.mxu1 %v14819_v20  ;;  %v14850_v11 = vld [vmem:[#allocation7 + $0x7a0] ss:$16 sps:$4 sm:$0xff]   ;;  %v14851_v20 = vld [vmem:[#allocation7 + $0x884] ss:$16 sps:$4 sm:$0xff]  }
 0x509   :  { %9440 = vmatprep.subr.bf16.mxu0 %v14820_v57  ;;  %v14852_v57 = vld [vmem:[#allocation7 + $0x784] ss:$16 sps:$4 sm:$0xff]  }
 0x50b   :  { %9371 = vmatpush2.bf16.msra.mxu1 %v14821_v30  ;;  %v14853_v30 = vld [vmem:[#allocation7 + $0x880] ss:$16 sps:$4 sm:$0xff]  }
 0x50c   :  { %9441 = vmatpush1.bf16.msra.mxu0 %v14822_v45  ;;  %9372 = vmatprep.subr.bf16.mxu1 %v14823_v62  ;;  %v14854_v45 = vld [vmem:[#allocation7 + $0x780] ss:$16 sps:$4 sm:$0xff]   ;;  %v14856_v62 = vld [vmem:[#allocation7 + $0x764] ss:$16 sps:$4 sm:$0xff]  }
 0x50d   :  { %9442 = vmatprep.subr.bf16.mxu0 %v14824_v35  ;;  %v14857_v35 = vld [vmem:[#allocation7 + $0x860] ss:$16 sps:$4 sm:$0xff]  }
 0x50f   :  { %9373 = vmatpush2.bf16.msra.mxu1 %v14825_v48  ;;  %v14859_v48 = vld [vmem:[#allocation7 + $0x844] ss:$16 sps:$4 sm:$0xff]  }
 0x510   :  { %9443 = vmatpush1.bf16.msra.mxu0 %v14826_v25  ;;  %9374 = vmatprep.subr.bf16.mxu1 %v14827_v0  ;;  %v14860_v25 = vld [vmem:[#allocation7 + $0x744] ss:$16 sps:$4 sm:$0xff]   ;;  %v14861_v0 = vld [vmem:[#allocation7 + $0x840] ss:$16 sps:$4 sm:$0xff]  }
 0x511   :  { %9444 = vmatprep.subr.bf16.mxu0 %v14828_v4  ;;  %v14862_v4 = vld [vmem:[#allocation7 + $0x740] ss:$16 sps:$4 sm:$0xff]  }
 0x513   :  { %9375 = vmatpush2.bf16.msra.mxu1 %v14829_v63  ;;  %v14863_v63 = vld [vmem:[#allocation7 + $0x824] ss:$16 sps:$4 sm:$0xff]  }
 0x514   :  { %9445 = vmatpush1.bf16.msra.mxu0 %v14830_v27  ;;  %9376 = vmatprep.subr.bf16.mxu1 %v14831_v44  ;;  %v14864_v27 = vld [vmem:[#allocation7 + $0x724] ss:$16 sps:$4 sm:$0xff]   ;;  %v14865_v44 = vld [vmem:[#allocation7 + $0x820] ss:$16 sps:$4 sm:$0xff]  }
 0x515   :  { %9446 = vmatprep.subr.bf16.mxu0 %v14832_v16  ;;  %v14866_v16 = vld [vmem:[#allocation7 + $0x720] ss:$16 sps:$4 sm:$0xff]  }
 0x517   :  { %9377 = vmatpush2.bf16.msra.mxu1 %v14833_v13  ;;  %v14867_v13 = vld [vmem:[#allocation7 + $0x804] ss:$16 sps:$4 sm:$0xff]  }
 0x518   :  { %9447 = vmatpush1.bf16.msra.mxu0 %v14834_v21  ;;  %9378 = vmatprep.subr.bf16.mxu1 %v14835_v36  ;;  %v14869_v21 = vld [vmem:[#allocation7 + $0x800] ss:$16 sps:$4 sm:$0xff]  }
 0x519   :  { %9448 = vmatprep.subr.bf16.mxu0 %v14836_v1  ;;  %v14870_v36 = vld [vmem:[#allocation7 + $0x700] ss:$16 sps:$4 sm:$0xff]   ;;  %v14871_v1 = vld [vmem:[#allocation7 + $0x6ec] ss:$16 sps:$4 sm:$0xff]  }
 0x51b   :  { %9379 = vmatpush2.bf16.msra.mxu1 %v14837_v15  ;;  %v14872_v15 = vld [vmem:[#allocation7 + $0x8ec] ss:$16 sps:$4 sm:$0xff]  }
 0x51c   :  { %9449 = vmatpush1.bf16.msra.mxu0 %v14838_v51  ;;  %9477 = vmatprep.subr.bf16.mxu1 %v14839_v55  ;;  %v14873_v55 = vld [vmem:[#allocation7 + $0x6e8] ss:$16 sps:$4 sm:$0xff]  }
 0x51d   :  { %9450 = vmatprep.subr.bf16.mxu0 %v14840_v10 }
 0x51e   :  { %v9030_v41 = vpop.f32.mrf.mxu1  ;;  %9381 = vmatmul.mubr.bf16.vlgmr.msra.gmra.mxu1 %v17073_v34 }
 0x51f   :  { %v9074_v2 = vadd.f32 %v9073_v40, %v9030_v41  ;;  %9478 = vmatpush1.bf16.msra.mxu1 %v14841_v23  ;;  %9509 = vmatprep.mubr.bf16.mxu1 %v17727_v52  ;;  %v14868_v40 = vld [vmem:[#allocation7 + $0x704] ss:$16 sps:$4 sm:$0xff]   ;;  %v14874_v41 = vld [vmem:[#allocation7 + $0x8e8] ss:$16 sps:$4 sm:$0xff]  }
 0x520   :  { %9451 = vmatpush2.bf16.msra.mxu0 %v14842_v7  ;;  %v9032_v59 = vpop.f32.mrf.mxu1  ;;  %9479 = vmatprep.subr.bf16.mxu1 %v14843_v17  ;;  %v14876_v7 = vld [vmem:[#allocation7 + $0x8cc] ss:$16 sps:$4 sm:$0xff]  }
 0x521   :  { %v17268_v37 = vadd.f32 %v9074_v2, %v17236_v61  ;;  %v9076_v43 = vadd.f32 %v9075_v42, %v9032_v59  ;;  %9452 = vmatprep.subr.bf16.mxu0 %v14844_v46  ;;  %v14877_v46 = vld [vmem:[#allocation7 + $0x6c8] ss:$16 sps:$4 sm:$0xff]  }
 0x522   :  { %v9034_v32 = vpop.f32.mrf.mxu1 }
 0x523   :  { %17731 = vst [vmem:[#allocation26_spill] sm:$0xff] %v17268_v37  ;;  %v17271_v8 = vadd.f32 %v9076_v43, %v17239_v38  ;;  %v9078_v9 = vadd.f32 %v9077_v33, %v9034_v32  ;;  %9480 = vmatpush1.bf16.msra.mxu1 %v14845_v58  ;;  %v14849_v38 = vld [vmem:[#allocation7 + $0x8a0] ss:$16 sps:$4 sm:$0xff]   ;;  %v14875_v33 = vld [vmem:[#allocation7 + $0x6cc] ss:$16 sps:$4 sm:$0xff]  }
 0x524   :  { %9453 = vmatpush2.bf16.msra.mxu0 %v14846_v28  ;;  %v9036_v54 = vpop.f32.mrf.mxu1  ;;  %9481 = vmatprep.subr.bf16.mxu1 %v14847_v5  ;;  %v14879_v58 = vld [vmem:[#allocation7 + $0x6ac] ss:$16 sps:$4 sm:$0xff]   ;;  %v14881_v5 = vld [vmem:[#allocation7 + $0x6a8] ss:$16 sps:$4 sm:$0xff]  }
 0x525   :  { %17732 = vst [vmem:[#allocation42_spill] sm:$0xff] %v17271_v8  ;;  %v17274_v49 = vadd.f32 %v9078_v9, %v17242_v50  ;;  %v9080_v61 = vadd.f32 %v9079_v29, %v9036_v54  ;;  %9454 = vmatprep.subr.bf16.mxu0 %v14848_v14  ;;  %v14855_v50 = vld [vmem:[#allocation7 + $0x864] ss:$16 sps:$4 sm:$0xff]   ;;  %v14878_v9 = vld [vmem:[#allocation7 + $0x8c8] ss:$16 sps:$4 sm:$0xff]  }
 0x526   :  { %v14880_v28 = vld [vmem:[#allocation7 + $0x8ac] ss:$16 sps:$4 sm:$0xff]  }
 0x527   :  { %17733 = vst [vmem:[#allocation46_spill] sm:$0xff] %v17274_v49  ;;  %v17277_v3 = vadd.f32 %v9080_v61, %v17245_v18  ;;  %9482 = vmatpush1.bf16.msra.mxu1 %v14849_v38  ;;  %v14858_v18 = vld [vmem:[#allocation7 + $0x760] ss:$16 sps:$4 sm:$0xff]   ;;  %v14882_v61 = vld [vmem:[#allocation7 + $0x8a8] ss:$16 sps:$4 sm:$0xff]  }
 0x528   :  { %9455 = vmatpush2.bf16.msra.mxu0 %v14850_v11  ;;  %9483 = vmatprep.subr.bf16.mxu1 %v14851_v20  ;;  %v14883_v14 = vld [vmem:[#allocation7 + $0x68c] ss:$16 sps:$4 sm:$0xff]   ;;  %v14885_v11 = vld [vmem:[#allocation7 + $0x688] ss:$16 sps:$4 sm:$0xff]  }
 0x529   :  { %17734 = vst [vmem:[#allocation28_spill] sm:$0xff] %v17277_v3  ;;  %9456 = vmatprep.subr.bf16.mxu0 %v14852_v57  ;;  %v14884_v38 = vld [vmem:[#allocation7 + $0x88c] ss:$16 sps:$4 sm:$0xff]   ;;  %v14886_v20 = vld [vmem:[#allocation7 + $0x888] ss:$16 sps:$4 sm:$0xff]  }
 0x52a   :  { %v14887_v57 = vld [vmem:[#allocation7 + $0x66c] ss:$16 sps:$4 sm:$0xff]  }
 0x52b   :  { %9484 = vmatpush1.bf16.msra.mxu1 %v14853_v30  ;;  %v14888_v30 = vld [vmem:[#allocation7 + $0x86c] ss:$16 sps:$4 sm:$0xff]  }
 0x52c   :  { %9457 = vmatpush2.bf16.msra.mxu0 %v14854_v45  ;;  %9485 = vmatprep.subr.bf16.mxu1 %v14855_v50  ;;  %v14889_v45 = vld [vmem:[#allocation7 + $0x668] ss:$16 sps:$4 sm:$0xff]  }
 0x52d   :  { %9458 = vmatprep.subr.bf16.mxu0 %v14856_v62  ;;  %v14890_v50 = vld [vmem:[#allocation7 + $0x868] ss:$16 sps:$4 sm:$0xff]   ;;  %v14891_v62 = vld [vmem:[#allocation7 + $0x64c] ss:$16 sps:$4 sm:$0xff]  }
 0x52f   :  { %9486 = vmatpush1.bf16.msra.mxu1 %v14857_v35  ;;  %v14892_v35 = vld [vmem:[#allocation7 + $0x84c] ss:$16 sps:$4 sm:$0xff]  }
 0x530   :  { %9459 = vmatpush2.bf16.msra.mxu0 %v14858_v18  ;;  %9487 = vmatprep.subr.bf16.mxu1 %v14859_v48  ;;  %v14893_v18 = vld [vmem:[#allocation7 + $0x648] ss:$16 sps:$4 sm:$0xff]  }
 0x531   :  { %9460 = vmatprep.subr.bf16.mxu0 %v14860_v25  ;;  %v14894_v48 = vld [vmem:[#allocation7 + $0x848] ss:$16 sps:$4 sm:$0xff]   ;;  %v14895_v25 = vld [vmem:[#allocation7 + $0x62c] ss:$16 sps:$4 sm:$0xff]  }
 0x533   :  { %9488 = vmatpush1.bf16.msra.mxu1 %v14861_v0  ;;  %v14896_v0 = vld [vmem:[#allocation7 + $0x82c] ss:$16 sps:$4 sm:$0xff]  }
 0x534   :  { %9461 = vmatpush2.bf16.msra.mxu0 %v14862_v4  ;;  %9489 = vmatprep.subr.bf16.mxu1 %v14863_v63  ;;  %v14897_v4 = vld [vmem:[#allocation7 + $0x628] ss:$16 sps:$4 sm:$0xff]  }
 0x535   :  { %9462 = vmatprep.subr.bf16.mxu0 %v14864_v27  ;;  %v14898_v63 = vld [vmem:[#allocation7 + $0x828] ss:$16 sps:$4 sm:$0xff]   ;;  %v14899_v27 = vld [vmem:[#allocation7 + $0x60c] ss:$16 sps:$4 sm:$0xff]  }
 0x537   :  { %9490 = vmatpush1.bf16.msra.mxu1 %v14865_v44  ;;  %v14900_v44 = vld [vmem:[#allocation7 + $0x80c] ss:$16 sps:$4 sm:$0xff]  }
 0x538   :  { %9463 = vmatpush2.bf16.msra.mxu0 %v14866_v16  ;;  %9491 = vmatprep.subr.bf16.mxu1 %v14867_v13  ;;  %v14901_v16 = vld [vmem:[#allocation7 + $0x608] ss:$16 sps:$4 sm:$0xff]  }
 0x539   :  { %9464 = vmatprep.subr.bf16.mxu0 %v14868_v40  ;;  %v14902_v13 = vld [vmem:[#allocation7 + $0x808] ss:$16 sps:$4 sm:$0xff]   ;;  %v14903_v40 = vld [vmem:[#allocation7 + $0x7ec] ss:$16 sps:$4 sm:$0xff]  }
 0x53b   :  { %9492 = vmatpush1.bf16.msra.mxu1 %v14869_v21  ;;  %v14904_v21 = vld [vmem:[#allocation7 + $0x9e4] ss:$16 sps:$4 sm:$0xff]  }
 0x53c   :  { %9465 = vmatpush2.bf16.msra.mxu0 %v14870_v36  ;;  %9520 = vmatprep.subr.bf16.mxu1 %v14871_v1  ;;  %v14905_v36 = vld [vmem:[#allocation7 + $0x7e8] ss:$16 sps:$4 sm:$0xff]   ;;  %v14906_v1 = vld [vmem:[#allocation7 + $0x9e0] ss:$16 sps:$4 sm:$0xff]  }
 0x53d   :  { %9563 = vmatprep.subr.bf16.mxu0 %v14872_v15  ;;  %v14907_v15 = vld [vmem:[#allocation7 + $0x7cc] ss:$16 sps:$4 sm:$0xff]  }
 0x53e   :  { %v9167_v42 = vpop.f32.mrf.mxu1  ;;  %9510 = vmatmul.mubr.bf16.vlgmr.msra.gmra.mxu1 %v17138_v31 }
 0x53f   :  { %v9124_v51 = vpop.f32.mrf.mxu0  ;;  %9467 = vmatmul.mubr.bf16.vlgmr.msra.gmra.mxu0 %v17140_v12  ;;  %9521 = vmatpush1.bf16.msra.mxu1 %v14873_v55  ;;  %v14910_v55 = vld [vmem:[#allocation7 + $0x9c0] ss:$16 sps:$4 sm:$0xff]  }
 0x540   :  { %v17281_v10 = vadd.f32 %v9167_v42, %v9124_v51  ;;  %9552 = vmatprep.mubr.bf16.mxu1 %v17120_v47  ;;  %9564 = vmatpush1.bf16.msra.mxu0 %v14874_v41  ;;  %v9169_v2 = vpop.f32.mrf.mxu1  ;;  %v14908_v42 = vld [vmem:[#allocation7 + $0x9c4] ss:$16 sps:$4 sm:$0xff]   ;;  %v14909_v51 = vld [vmem:[#allocation7 + $0x7c8] ss:$16 sps:$4 sm:$0xff]   ;;  %v14911_v41 = vld [vmem:[#allocation7 + $0x7ac] ss:$16 sps:$4 sm:$0xff]  }
 0x541   :  { %v9126_v23 = vpop.f32.mrf.mxu0  ;;  %9522 = vmatprep.subr.bf16.mxu1 %v14875_v33  ;;  %9565 = vmatprep.subr.bf16.mxu0 %v14876_v7  ;;  %v14915_v33 = vld [vmem:[#allocation7 + $0x78c] ss:$16 sps:$4 sm:$0xff]   ;;  %v14916_v7 = vld [vmem:[#allocation7 + $0x984] ss:$16 sps:$4 sm:$0xff]  }
 0x542   :  { %v17284_v59 = vadd.f32 %v9169_v2, %v9126_v23  ;;  %v9171_v17 = vpop.f32.mrf.mxu1  ;;  %9595 = vmatprep.mubr.bf16.mxu0 %v17727_v52  ;;  %v14912_v2 = vld [vmem:[#allocation7 + $0x9a4] ss:$16 sps:$4 sm:$0xff]   ;;  %v14913_v23 = vld [vmem:[#allocation7 + $0x7a8] ss:$16 sps:$4 sm:$0xff]  }
 0x543   :  { %v9128_v43 = vpop.f32.mrf.mxu0  ;;  %9523 = vmatpush1.bf16.msra.mxu1 %v14877_v46  ;;  %v14919_v46 = vld [vmem:[#allocation7 + $0x76c] ss:$16 sps:$4 sm:$0xff]  }
 0x544   :  { %v17287_v32 = vadd.f32 %v9171_v17, %v9128_v43  ;;  %9566 = vmatpush1.bf16.msra.mxu0 %v14878_v9  ;;  %v9173_v47 = vpop.f32.mrf.mxu1  ;;  %9524 = vmatprep.subr.bf16.mxu1 %v14879_v58  ;;  %v14917_v17 = vld [vmem:[#allocation7 + $0x788] ss:$16 sps:$4 sm:$0xff]   ;;  %v14918_v43 = vld [vmem:[#allocation7 + $0x980] ss:$16 sps:$4 sm:$0xff]   ;;  %v14920_v9 = vld [vmem:[#allocation7 + $0x964] ss:$16 sps:$4 sm:$0xff]  }
 0x545   :  { %v9130_v29 = vpop.f32.mrf.mxu0  ;;  %9567 = vmatprep.subr.bf16.mxu0 %v14880_v28  ;;  %v14922_v58 = vld [vmem:[#allocation7 + $0x960] ss:$16 sps:$4 sm:$0xff]   ;;  %v14924_v28 = vld [vmem:[#allocation7 + $0x944] ss:$16 sps:$4 sm:$0xff]  }
 0x546   :  { %v17289_v54 = vadd.f32 %v9173_v47, %v9130_v29  ;;  %v14921_v47 = vld [vmem:[#allocation7 + $0x768] ss:$16 sps:$4 sm:$0xff]   ;;  %v14923_v29 = vld [vmem:[#allocation7 + $0x74c] ss:$16 sps:$4 sm:$0xff]  }
 0x547   :  { %9525 = vmatpush1.bf16.msra.mxu1 %v14881_v5  ;;  %v14925_v5 = vld [vmem:[#allocation7 + $0x748] ss:$16 sps:$4 sm:$0xff]  }
 0x548   :  { %9568 = vmatpush1.bf16.msra.mxu0 %v14882_v61  ;;  %9526 = vmatprep.subr.bf16.mxu1 %v14883_v14  ;;  %v14926_v61 = vld [vmem:[#allocation7 + $0x940] ss:$16 sps:$4 sm:$0xff]   ;;  %v14927_v14 = vld [vmem:[#allocation7 + $0x72c] ss:$16 sps:$4 sm:$0xff]  }
 0x549   :  { %9569 = vmatprep.subr.bf16.mxu0 %v14884_v38  ;;  %v14928_v38 = vld [vmem:[#allocation7 + $0x924] ss:$16 sps:$4 sm:$0xff]  }
 0x54b   :  { %9527 = vmatpush1.bf16.msra.mxu1 %v14885_v11  ;;  %v14929_v11 = vld [vmem:[#allocation7 + $0x728] ss:$16 sps:$4 sm:$0xff]  }
 0x54c   :  { %9570 = vmatpush1.bf16.msra.mxu0 %v14886_v20  ;;  %9528 = vmatprep.subr.bf16.mxu1 %v14887_v57  ;;  %v14930_v20 = vld [vmem:[#allocation7 + $0x920] ss:$16 sps:$4 sm:$0xff]   ;;  %v14931_v57 = vld [vmem:[#allocation7 + $0x70c] ss:$16 sps:$4 sm:$0xff]  }
 0x54d   :  { %9571 = vmatprep.subr.bf16.mxu0 %v14888_v30  ;;  %v14932_v30 = vld [vmem:[#allocation7 + $0x904] ss:$16 sps:$4 sm:$0xff]  }
 0x54f   :  { %9529 = vmatpush1.bf16.msra.mxu1 %v14889_v45  ;;  %v14933_v45 = vld [vmem:[#allocation7 + $0x708] ss:$16 sps:$4 sm:$0xff]  }
 0x550   :  { %9572 = vmatpush1.bf16.msra.mxu0 %v14890_v50  ;;  %9530 = vmatprep.subr.bf16.mxu1 %v14891_v62  ;;  %v14934_v50 = vld [vmem:[#allocation7 + $0x900] ss:$16 sps:$4 sm:$0xff]   ;;  %v14935_v62 = vld [vmem:[#allocation7 + $0xbe4] ss:$16 sps:$4 sm:$0xff]  }
 0x551   :  { %9573 = vmatprep.subr.bf16.mxu0 %v14892_v35  ;;  %v14936_v35 = vld [vmem:[#allocation7 + $0xae4] ss:$16 sps:$4 sm:$0xff]  }
 0x553   :  { %9531 = vmatpush1.bf16.msra.mxu1 %v14893_v18  ;;  %v14937_v18 = vld [vmem:[#allocation7 + $0xbe0] ss:$16 sps:$4 sm:$0xff]  }
 0x554   :  { %9574 = vmatpush1.bf16.msra.mxu0 %v14894_v48  ;;  %9532 = vmatprep.subr.bf16.mxu1 %v14895_v25  ;;  %v14938_v48 = vld [vmem:[#allocation7 + $0xae0] ss:$16 sps:$4 sm:$0xff]   ;;  %v14939_v25 = vld [vmem:[#allocation7 + $0xbc4] ss:$16 sps:$4 sm:$0xff]  }
 0x555   :  { %9575 = vmatprep.subr.bf16.mxu0 %v14896_v0  ;;  %v14940_v0 = vld [vmem:[#allocation7 + $0xac4] ss:$16 sps:$4 sm:$0xff]  }
 0x557   :  { %9533 = vmatpush1.bf16.msra.mxu1 %v14897_v4  ;;  %v14941_v4 = vld [vmem:[#allocation7 + $0xbc0] ss:$16 sps:$4 sm:$0xff]  }
 0x558   :  { %9576 = vmatpush1.bf16.msra.mxu0 %v14898_v63  ;;  %9534 = vmatprep.subr.bf16.mxu1 %v14899_v27  ;;  %v14942_v63 = vld [vmem:[#allocation7 + $0xac0] ss:$16 sps:$4 sm:$0xff]   ;;  %v14943_v27 = vld [vmem:[#allocation7 + $0xba4] ss:$16 sps:$4 sm:$0xff]  }
 0x559   :  { %9577 = vmatprep.subr.bf16.mxu0 %v14900_v44  ;;  %v14944_v44 = vld [vmem:[#allocation7 + $0xaa4] ss:$16 sps:$4 sm:$0xff]  }
 0x55b   :  { %9535 = vmatpush1.bf16.msra.mxu1 %v14901_v16  ;;  %v14945_v16 = vld [vmem:[#allocation7 + $0xba0] ss:$16 sps:$4 sm:$0xff]  }
 0x55c   :  { %9578 = vmatpush1.bf16.msra.mxu0 %v14902_v13  ;;  %9536 = vmatprep.subr.bf16.mxu1 %v14903_v40  ;;  %v14947_v13 = vld [vmem:[#allocation7 + $0xb84] ss:$16 sps:$4 sm:$0xff]  }
 0x55d   :  { %9614 = vmatprep.subr.bf16.mxu0 %v14904_v21  ;;  %v14948_v40 = vld [vmem:[#allocation7 + $0xa84] ss:$16 sps:$4 sm:$0xff]   ;;  %v14949_v21 = vld [vmem:[#allocation7 + $0xb80] ss:$16 sps:$4 sm:$0xff]  }
 0x55f   :  { %9596 = vmatmul.mubr.bf16.vlgmr.msra.gmra.mxu0 %v17138_v31  ;;  %9537 = vmatpush2.bf16.msra.mxu1 %v14905_v36  ;;  %v14914_v31 = vld [vmem:[#allocation7 + $0x9a0] ss:$16 sps:$4 sm:$0xff]  }
 0x560   :  { %9615 = vmatpush1.bf16.msra.mxu0 %v14906_v1  ;;  %9646 = vmatprep.mubr.bf16.mxu0 %v17159_v6  ;;  %v14950_v36 = vld [vmem:[#allocation7 + $0xa80] ss:$16 sps:$4 sm:$0xff]   ;;  %v14951_v1 = vld [vmem:[#allocation7 + $0xb64] ss:$16 sps:$4 sm:$0xff]  }
 0x561   :  { %9538 = vmatprep.subr.bf16.mxu1 %v14907_v15  ;;  %9616 = vmatprep.subr.bf16.mxu0 %v14908_v42  ;;  %v14952_v15 = vld [vmem:[#allocation7 + $0xa64] ss:$16 sps:$4 sm:$0xff]   ;;  %v14953_v42 = vld [vmem:[#allocation7 + $0xb60] ss:$16 sps:$4 sm:$0xff]  }
 0x563   :  { %9539 = vmatpush2.bf16.msra.mxu1 %v14909_v51  ;;  %v14954_v51 = vld [vmem:[#allocation7 + $0xa60] ss:$16 sps:$4 sm:$0xff]  }
 0x564   :  { %9617 = vmatpush1.bf16.msra.mxu0 %v14910_v55  ;;  %9540 = vmatprep.subr.bf16.mxu1 %v14911_v41  ;;  %v14955_v55 = vld [vmem:[#allocation7 + $0xb44] ss:$16 sps:$4 sm:$0xff]  }
 0x565   :  { %9618 = vmatprep.subr.bf16.mxu0 %v14912_v2  ;;  %v14956_v41 = vld [vmem:[#allocation7 + $0xa44] ss:$16 sps:$4 sm:$0xff]   ;;  %v14957_v2 = vld [vmem:[#allocation7 + $0xb40] ss:$16 sps:$4 sm:$0xff]  }
 0x567   :  { %9541 = vmatpush2.bf16.msra.mxu1 %v14913_v23  ;;  %v14958_v23 = vld [vmem:[#allocation7 + $0xa40] ss:$16 sps:$4 sm:$0xff]  }
 0x568   :  { %9619 = vmatpush1.bf16.msra.mxu0 %v14914_v31  ;;  %9542 = vmatprep.subr.bf16.mxu1 %v14915_v33  ;;  %v14959_v31 = vld [vmem:[#allocation7 + $0xb24] ss:$16 sps:$4 sm:$0xff]  }
 0x569   :  { %9620 = vmatprep.subr.bf16.mxu0 %v14916_v7  ;;  %v14960_v33 = vld [vmem:[#allocation7 + $0xa24] ss:$16 sps:$4 sm:$0xff]   ;;  %v14961_v7 = vld [vmem:[#allocation7 + $0xb20] ss:$16 sps:$4 sm:$0xff]  }
 0x56b   :  { %9543 = vmatpush2.bf16.msra.mxu1 %v14917_v17  ;;  %v14962_v17 = vld [vmem:[#allocation7 + $0xa20] ss:$16 sps:$4 sm:$0xff]  }
 0x56c   :  { %9621 = vmatpush1.bf16.msra.mxu0 %v14918_v43  ;;  %9544 = vmatprep.subr.bf16.mxu1 %v14919_v46  ;;  %v14963_v43 = vld [vmem:[#allocation7 + $0xb04] ss:$16 sps:$4 sm:$0xff]  }
 0x56d   :  { %9622 = vmatprep.subr.bf16.mxu0 %v14920_v9  ;;  %v14964_v46 = vld [vmem:[#allocation7 + $0xa04] ss:$16 sps:$4 sm:$0xff]   ;;  %v14965_v9 = vld [vmem:[#allocation7 + $0xb00] ss:$16 sps:$4 sm:$0xff]  }
 0x56f   :  { %9545 = vmatpush2.bf16.msra.mxu1 %v14921_v47  ;;  %v14966_v47 = vld [vmem:[#allocation7 + $0xa00] ss:$16 sps:$4 sm:$0xff]  }
 0x570   :  { %9623 = vmatpush1.bf16.msra.mxu0 %v14922_v58  ;;  %9546 = vmatprep.subr.bf16.mxu1 %v14923_v29  ;;  %v14967_v58 = vld [vmem:[#allocation7 + $0x9ec] ss:$16 sps:$4 sm:$0xff]  }
 0x571   :  { %9624 = vmatprep.subr.bf16.mxu0 %v14924_v28  ;;  %v14968_v29 = vld [vmem:[#allocation7 + $0xbec] ss:$16 sps:$4 sm:$0xff]   ;;  %v14969_v28 = vld [vmem:[#allocation7 + $0x9e8] ss:$16 sps:$4 sm:$0xff]  }
 0x573   :  { %9547 = vmatpush2.bf16.msra.mxu1 %v14925_v5  ;;  %v14970_v5 = vld [vmem:[#allocation7 + $0xbe8] ss:$16 sps:$4 sm:$0xff]  }
 0x574   :  { %9625 = vmatpush1.bf16.msra.mxu0 %v14926_v61  ;;  %9548 = vmatprep.subr.bf16.mxu1 %v14927_v14  ;;  %v14971_v61 = vld [vmem:[#allocation7 + $0x9cc] ss:$16 sps:$4 sm:$0xff]  }
 0x575   :  { %9626 = vmatprep.subr.bf16.mxu0 %v14928_v38  ;;  %v14972_v14 = vld [vmem:[#allocation7 + $0xbcc] ss:$16 sps:$4 sm:$0xff]   ;;  %v14973_v38 = vld [vmem:[#allocation7 + $0x9c8] ss:$16 sps:$4 sm:$0xff]  }
 0x577   :  { %9549 = vmatpush2.bf16.msra.mxu1 %v14929_v11  ;;  %v14974_v11 = vld [vmem:[#allocation7 + $0xbc8] ss:$16 sps:$4 sm:$0xff]  }
 0x578   :  { %9627 = vmatpush1.bf16.msra.mxu0 %v14930_v20  ;;  %9550 = vmatprep.subr.bf16.mxu1 %v14931_v57  ;;  %v14975_v20 = vld [vmem:[#allocation7 + $0x9ac] ss:$16 sps:$4 sm:$0xff]  }
 0x579   :  { %9628 = vmatprep.subr.bf16.mxu0 %v14932_v30  ;;  %v14976_v57 = vld [vmem:[#allocation7 + $0xbac] ss:$16 sps:$4 sm:$0xff]   ;;  %v14977_v30 = vld [vmem:[#allocation7 + $0x9a8] ss:$16 sps:$4 sm:$0xff]  }
 0x57b   :  { %9551 = vmatpush2.bf16.msra.mxu1 %v14933_v45  ;;  %v14978_v45 = vld [vmem:[#allocation7 + $0xba8] ss:$16 sps:$4 sm:$0xff]  }
 0x57c   :  { %9629 = vmatpush1.bf16.msra.mxu0 %v14934_v50  ;;  %9657 = vmatprep.subr.bf16.mxu1 %v14935_v62  ;;  %v14980_v50 = vld [vmem:[#allocation7 + $0xb8c] ss:$16 sps:$4 sm:$0xff]   ;;  %v14981_v62 = vld [vmem:[#allocation7 + $0x988] ss:$16 sps:$4 sm:$0xff]  }
 0x57d   :  { %9630 = vmatprep.subr.bf16.mxu0 %v14936_v35  ;;  %v14982_v35 = vld [vmem:[#allocation7 + $0xb88] ss:$16 sps:$4 sm:$0xff]  }
 0x57e   :  { %9553 = vmatmul.mubr.bf16.vlgmr.msra.gmra.mxu1 %v17140_v12  ;;  %v14946_v12 = vld [vmem:[#allocation7 + $0xaa0] ss:$16 sps:$4 sm:$0xff]  }
 0x57f   :  { %9658 = vmatpush1.bf16.msra.mxu1 %v14937_v18  ;;  %9689 = vmatprep.mubr.bf16.mxu1 %v17727_v52  ;;  %v14983_v18 = vld [vmem:[#allocation7 + $0x96c] ss:$16 sps:$4 sm:$0xff]  }
 0x580   :  { %9631 = vmatpush2.bf16.msra.mxu0 %v14938_v48  ;;  %9659 = vmatprep.subr.bf16.mxu1 %v14939_v25  ;;  %v14984_v48 = vld [vmem:[#allocation7 + $0xb6c] ss:$16 sps:$4 sm:$0xff]   ;;  %v14985_v25 = vld [vmem:[#allocation7 + $0x968] ss:$16 sps:$4 sm:$0xff]  }
 0x581   :  { %9632 = vmatprep.subr.bf16.mxu0 %v14940_v0  ;;  %v14986_v0 = vld [vmem:[#allocation7 + $0xb68] ss:$16 sps:$4 sm:$0xff]  }
 0x583   :  { %9660 = vmatpush1.bf16.msra.mxu1 %v14941_v4  ;;  %v14987_v4 = vld [vmem:[#allocation7 + $0x94c] ss:$16 sps:$4 sm:$0xff]  }
 0x584   :  { %9633 = vmatpush2.bf16.msra.mxu0 %v14942_v63  ;;  %9661 = vmatprep.subr.bf16.mxu1 %v14943_v27  ;;  %v14988_v63 = vld [vmem:[#allocation7 + $0xb4c] ss:$16 sps:$4 sm:$0xff]   ;;  %v14989_v27 = vld [vmem:[#allocation7 + $0x948] ss:$16 sps:$4 sm:$0xff]  }
 0x585   :  { %9634 = vmatprep.subr.bf16.mxu0 %v14944_v44  ;;  %v14990_v44 = vld [vmem:[#allocation7 + $0xb48] ss:$16 sps:$4 sm:$0xff]  }
 0x587   :  { %9662 = vmatpush1.bf16.msra.mxu1 %v14945_v16  ;;  %v14991_v16 = vld [vmem:[#allocation7 + $0x92c] ss:$16 sps:$4 sm:$0xff]  }
 0x588   :  { %9635 = vmatpush2.bf16.msra.mxu0 %v14946_v12  ;;  %9663 = vmatprep.subr.bf16.mxu1 %v14947_v13  ;;  %v14992_v12 = vld [vmem:[#allocation7 + $0xb2c] ss:$16 sps:$4 sm:$0xff]   ;;  %v14993_v13 = vld [vmem:[#allocation7 + $0x928] ss:$16 sps:$4 sm:$0xff]  }
 0x589   :  { %9636 = vmatprep.subr.bf16.mxu0 %v14948_v40  ;;  %v14994_v40 = vld [vmem:[#allocation7 + $0xb28] ss:$16 sps:$4 sm:$0xff]  }
 0x58b   :  { %9664 = vmatpush1.bf16.msra.mxu1 %v14949_v21  ;;  %v14995_v21 = vld [vmem:[#allocation7 + $0x90c] ss:$16 sps:$4 sm:$0xff]  }
 0x58c   :  { %9637 = vmatpush2.bf16.msra.mxu0 %v14950_v36  ;;  %9665 = vmatprep.subr.bf16.mxu1 %v14951_v1  ;;  %v14996_v36 = vld [vmem:[#allocation7 + $0xb0c] ss:$16 sps:$4 sm:$0xff]   ;;  %v14997_v1 = vld [vmem:[#allocation7 + $0x908] ss:$16 sps:$4 sm:$0xff]  }
 0x58d   :  { %9638 = vmatprep.subr.bf16.mxu0 %v14952_v15  ;;  %v14998_v15 = vld [vmem:[#allocation7 + $0xb08] ss:$16 sps:$4 sm:$0xff]  }
 0x58f   :  { %9666 = vmatpush1.bf16.msra.mxu1 %v14953_v42  ;;  %v14999_v42 = vld [vmem:[#allocation7 + $0xaec] ss:$16 sps:$4 sm:$0xff]  }
 0x590   :  { %9639 = vmatpush2.bf16.msra.mxu0 %v14954_v51  ;;  %9667 = vmatprep.subr.bf16.mxu1 %v14955_v55  ;;  %v15000_v51 = vld [vmem:[#allocation7 + $0xce4] ss:$16 sps:$4 sm:$0xff]   ;;  %v9798_v55 = vrot.slane %v17071_v19, 1  ;;  %v15074_v19 = vld [vmem:[#allocation7 + $0xea8] ss:$16 sps:$4 sm:$0xff]  }
 0x591   :  { %9640 = vmatprep.subr.bf16.mxu0 %v14956_v41  ;;  %v15001_v41 = vld [vmem:[#allocation7 + $0xae8] ss:$16 sps:$4 sm:$0xff]  }
 0x593   :  { %9668 = vmatpush1.bf16.msra.mxu1 %v14957_v2  ;;  %v15002_v2 = vld [vmem:[#allocation7 + $0xce0] ss:$16 sps:$4 sm:$0xff]  }
 0x594   :  { %9641 = vmatpush2.bf16.msra.mxu0 %v14958_v23  ;;  %9669 = vmatprep.subr.bf16.mxu1 %v14959_v31  ;;  %v15003_v23 = vld [vmem:[#allocation7 + $0xacc] ss:$16 sps:$4 sm:$0xff]   ;;  %v15004_v31 = vld [vmem:[#allocation7 + $0xcc4] ss:$16 sps:$4 sm:$0xff]  }
 0x595   :  { %9642 = vmatprep.subr.bf16.mxu0 %v14960_v33  ;;  %v15005_v33 = vld [vmem:[#allocation7 + $0xac8] ss:$16 sps:$4 sm:$0xff]  }
 0x597   :  { %9670 = vmatpush1.bf16.msra.mxu1 %v14961_v7  ;;  %v15006_v7 = vld [vmem:[#allocation7 + $0xcc0] ss:$16 sps:$4 sm:$0xff]  }
 0x598   :  { %9643 = vmatpush2.bf16.msra.mxu0 %v14962_v17  ;;  %9671 = vmatprep.subr.bf16.mxu1 %v14963_v43  ;;  %v15007_v17 = vld [vmem:[#allocation7 + $0xaac] ss:$16 sps:$4 sm:$0xff]   ;;  %v15008_v43 = vld [vmem:[#allocation7 + $0xca4] ss:$16 sps:$4 sm:$0xff]  }
 0x599   :  { %9644 = vmatprep.subr.bf16.mxu0 %v14964_v46  ;;  %v15010_v46 = vld [vmem:[#allocation7 + $0xca0] ss:$16 sps:$4 sm:$0xff]  }
 0x59b   :  { %9672 = vmatpush1.bf16.msra.mxu1 %v14965_v9  ;;  %v15011_v9 = vld [vmem:[#allocation7 + $0xa8c] ss:$16 sps:$4 sm:$0xff]  }
 0x59c   :  { %9645 = vmatpush2.bf16.msra.mxu0 %v14966_v47  ;;  %9700 = vmatprep.subr.bf16.mxu1 %v14967_v58  ;;  %v15012_v47 = vld [vmem:[#allocation7 + $0xc84] ss:$16 sps:$4 sm:$0xff]   ;;  %v15013_v58 = vld [vmem:[#allocation7 + $0xa88] ss:$16 sps:$4 sm:$0xff]  }
 0x59d   :  { %9743 = vmatprep.subr.bf16.mxu0 %v14968_v29  ;;  %v15014_v29 = vld [vmem:[#allocation7 + $0xc80] ss:$16 sps:$4 sm:$0xff]  }
 0x59e   :  { %9690 = vmatmul.mubr.bf16.vlgmr.msra.gmra.mxu1 %v17178_v39 }
 0x59f   :  { %9647 = vmatmul.mubr.bf16.vlgmr.msra.gmra.mxu0 %v17181_v60  ;;  %9701 = vmatpush1.bf16.msra.mxu1 %v14969_v28  ;;  %v15015_v28 = vld [vmem:[#allocation7 + $0xa6c] ss:$16 sps:$4 sm:$0xff]  }
 0x5a0   :  { %9732 = vmatprep.mubr.bf16.mxu1 %v17159_v6  ;;  %9744 = vmatpush1.bf16.msra.mxu0 %v14970_v5  ;;  %v14979_v6 = vld [vmem:[#allocation7 + $0x98c] ss:$16 sps:$4 sm:$0xff]   ;;  %v15016_v5 = vld [vmem:[#allocation7 + $0xc64] ss:$16 sps:$4 sm:$0xff]  }
 0x5a1   :  { %9702 = vmatprep.subr.bf16.mxu1 %v14971_v61  ;;  %9745 = vmatprep.subr.bf16.mxu0 %v14972_v14  ;;  %v15017_v61 = vld [vmem:[#allocation7 + $0xa68] ss:$16 sps:$4 sm:$0xff]   ;;  %v15018_v14 = vld [vmem:[#allocation7 + $0xc60] ss:$16 sps:$4 sm:$0xff]  }
 0x5a2   :  { %9775 = vmatprep.mubr.bf16.mxu0 %v17727_v52 }
 0x5a3   :  { %9703 = vmatpush1.bf16.msra.mxu1 %v14973_v38  ;;  %v15019_v38 = vld [vmem:[#allocation7 + $0xa4c] ss:$16 sps:$4 sm:$0xff]  }
 0x5a4   :  { %9746 = vmatpush1.bf16.msra.mxu0 %v14974_v11  ;;  %9704 = vmatprep.subr.bf16.mxu1 %v14975_v20  ;;  %v15020_v11 = vld [vmem:[#allocation7 + $0xc44] ss:$16 sps:$4 sm:$0xff]   ;;  %v15021_v20 = vld [vmem:[#allocation7 + $0xa48] ss:$16 sps:$4 sm:$0xff]  }
 0x5a5   :  { %9747 = vmatprep.subr.bf16.mxu0 %v14976_v57  ;;  %v15022_v57 = vld [vmem:[#allocation7 + $0xc40] ss:$16 sps:$4 sm:$0xff]  }
 0x5a7   :  { %9705 = vmatpush1.bf16.msra.mxu1 %v14977_v30  ;;  %v15023_v30 = vld [vmem:[#allocation7 + $0xa2c] ss:$16 sps:$4 sm:$0xff]  }
 0x5a8   :  { %9748 = vmatpush1.bf16.msra.mxu0 %v14978_v45  ;;  %9706 = vmatprep.subr.bf16.mxu1 %v14979_v6  ;;  %v15024_v45 = vld [vmem:[#allocation7 + $0xc24] ss:$16 sps:$4 sm:$0xff]   ;;  %v15025_v6 = vld [vmem:[#allocation7 + $0xa28] ss:$16 sps:$4 sm:$0xff]  }
 0x5a9   :  { %9749 = vmatprep.subr.bf16.mxu0 %v14980_v50  ;;  %v15026_v50 = vld [vmem:[#allocation7 + $0xc20] ss:$16 sps:$4 sm:$0xff]  }
 0x5ab   :  { %9707 = vmatpush1.bf16.msra.mxu1 %v14981_v62  ;;  %v15027_v62 = vld [vmem:[#allocation7 + $0xa0c] ss:$16 sps:$4 sm:$0xff]  }
 0x5ac   :  { %9750 = vmatpush1.bf16.msra.mxu0 %v14982_v35  ;;  %9708 = vmatprep.subr.bf16.mxu1 %v14983_v18  ;;  %v15028_v35 = vld [vmem:[#allocation7 + $0xc04] ss:$16 sps:$4 sm:$0xff]   ;;  %v15029_v18 = vld [vmem:[#allocation7 + $0xa08] ss:$16 sps:$4 sm:$0xff]  }
 0x5ad   :  { %9751 = vmatprep.subr.bf16.mxu0 %v14984_v48  ;;  %v15030_v48 = vld [vmem:[#allocation7 + $0xc00] ss:$16 sps:$4 sm:$0xff]  }
 0x5af   :  { %9709 = vmatpush1.bf16.msra.mxu1 %v14985_v25  ;;  %v15031_v25 = vld [vmem:[#allocation7 + $0xee4] ss:$16 sps:$4 sm:$0xff]  }
 0x5b0   :  { %9752 = vmatpush1.bf16.msra.mxu0 %v14986_v0  ;;  %9710 = vmatprep.subr.bf16.mxu1 %v14987_v4  ;;  %v15032_v0 = vld [vmem:[#allocation7 + $0xde4] ss:$16 sps:$4 sm:$0xff]   ;;  %v15033_v4 = vld [vmem:[#allocation7 + $0xee0] ss:$16 sps:$4 sm:$0xff]  }
 0x5b1   :  { %9753 = vmatprep.subr.bf16.mxu0 %v14988_v63  ;;  %v15034_v63 = vld [vmem:[#allocation7 + $0xde0] ss:$16 sps:$4 sm:$0xff]  }
 0x5b3   :  { %9711 = vmatpush1.bf16.msra.mxu1 %v14989_v27  ;;  %v15035_v27 = vld [vmem:[#allocation7 + $0xec4] ss:$16 sps:$4 sm:$0xff]  }
 0x5b4   :  { %9754 = vmatpush1.bf16.msra.mxu0 %v14990_v44  ;;  %9712 = vmatprep.subr.bf16.mxu1 %v14991_v16  ;;  %v15036_v44 = vld [vmem:[#allocation7 + $0xdc4] ss:$16 sps:$4 sm:$0xff]   ;;  %v15037_v16 = vld [vmem:[#allocation7 + $0xec0] ss:$16 sps:$4 sm:$0xff]  }
 0x5b5   :  { %9755 = vmatprep.subr.bf16.mxu0 %v14992_v12  ;;  %v15038_v12 = vld [vmem:[#allocation7 + $0xdc0] ss:$16 sps:$4 sm:$0xff]  }
 0x5b7   :  { %9713 = vmatpush1.bf16.msra.mxu1 %v14993_v13  ;;  %v15039_v13 = vld [vmem:[#allocation7 + $0xea4] ss:$16 sps:$4 sm:$0xff]  }
 0x5b8   :  { %9756 = vmatpush1.bf16.msra.mxu0 %v14994_v40  ;;  %9714 = vmatprep.subr.bf16.mxu1 %v14995_v21  ;;  %v15040_v40 = vld [vmem:[#allocation7 + $0xda4] ss:$16 sps:$4 sm:$0xff]   ;;  %v15041_v21 = vld [vmem:[#allocation7 + $0xea0] ss:$16 sps:$4 sm:$0xff]  }
 0x5b9   :  { %9757 = vmatprep.subr.bf16.mxu0 %v14996_v36  ;;  %v15043_v36 = vld [vmem:[#allocation7 + $0xe84] ss:$16 sps:$4 sm:$0xff]  }
 0x5bb   :  { %9715 = vmatpush1.bf16.msra.mxu1 %v14997_v1  ;;  %v15044_v1 = vld [vmem:[#allocation7 + $0xd84] ss:$16 sps:$4 sm:$0xff]  }
 0x5bc   :  { %9758 = vmatpush1.bf16.msra.mxu0 %v14998_v15  ;;  %9716 = vmatprep.subr.bf16.mxu1 %v14999_v42  ;;  %v15045_v15 = vld [vmem:[#allocation7 + $0xe80] ss:$16 sps:$4 sm:$0xff]  }
 0x5bd   :  { %9803 = vmatprep.subr.bf16.mxu0 %v15000_v51  ;;  %v15046_v42 = vld [vmem:[#allocation7 + $0xd80] ss:$16 sps:$4 sm:$0xff]   ;;  %v15047_v51 = vld [vmem:[#allocation7 + $0xe64] ss:$16 sps:$4 sm:$0xff]  }
 0x5bf   :  { %9776 = vmatmul.mubr.bf16.vlgmr.msra.gmra.mxu0 %v17178_v39  ;;  %9717 = vmatpush2.bf16.msra.mxu1 %v15001_v41  ;;  %v15009_v39 = vld [vmem:[#allocation7 + $0xaa8] ss:$16 sps:$4 sm:$0xff]   ;;  %v15048_v41 = vld [vmem:[#allocation7 + $0xd64] ss:$16 sps:$4 sm:$0xff]  }
 0x5c0   :  { %9804 = vmatpush1.bf16.msra.mxu0 %v15002_v2  ;;  %9835 = vmatprep.mubr.bf16.mxu0 %v9798_v55  ;;  %v15049_v2 = vld [vmem:[#allocation7 + $0xe60] ss:$16 sps:$4 sm:$0xff]  }
 0x5c1   :  { %9718 = vmatprep.subr.bf16.mxu1 %v15003_v23  ;;  %9805 = vmatprep.subr.bf16.mxu0 %v15004_v31  ;;  %v15050_v23 = vld [vmem:[#allocation7 + $0xd60] ss:$16 sps:$4 sm:$0xff]   ;;  %v15051_v31 = vld [vmem:[#allocation7 + $0xe44] ss:$16 sps:$4 sm:$0xff]  }
 0x5c3   :  { %9719 = vmatpush2.bf16.msra.mxu1 %v15005_v33  ;;  %v15052_v33 = vld [vmem:[#allocation7 + $0xd44] ss:$16 sps:$4 sm:$0xff]  }
 0x5c4   :  { %9806 = vmatpush1.bf16.msra.mxu0 %v15006_v7  ;;  %9720 = vmatprep.subr.bf16.mxu1 %v15007_v17  ;;  %v15053_v7 = vld [vmem:[#allocation7 + $0xe40] ss:$16 sps:$4 sm:$0xff]  }
 0x5c5   :  { %9807 = vmatprep.subr.bf16.mxu0 %v15008_v43  ;;  %v15054_v17 = vld [vmem:[#allocation7 + $0xd40] ss:$16 sps:$4 sm:$0xff]   ;;  %v15055_v43 = vld [vmem:[#allocation7 + $0xe24] ss:$16 sps:$4 sm:$0xff]  }
 0x5c7   :  { %9721 = vmatpush2.bf16.msra.mxu1 %v15009_v39  ;;  %v15056_v39 = vld [vmem:[#allocation7 + $0xd24] ss:$16 sps:$4 sm:$0xff]  }
 0x5c8   :  { %9808 = vmatpush1.bf16.msra.mxu0 %v15010_v46  ;;  %9722 = vmatprep.subr.bf16.mxu1 %v15011_v9  ;;  %v15057_v46 = vld [vmem:[#allocation7 + $0xe20] ss:$16 sps:$4 sm:$0xff]  }
 0x5c9   :  { %9809 = vmatprep.subr.bf16.mxu0 %v15012_v47  ;;  %v15058_v9 = vld [vmem:[#allocation7 + $0xd20] ss:$16 sps:$4 sm:$0xff]   ;;  %v15059_v47 = vld [vmem:[#allocation7 + $0xe04] ss:$16 sps:$4 sm:$0xff]  }
 0x5cb   :  { %9723 = vmatpush2.bf16.msra.mxu1 %v15013_v58  ;;  %v15060_v58 = vld [vmem:[#allocation7 + $0xd04] ss:$16 sps:$4 sm:$0xff]  }
 0x5cc   :  { %9810 = vmatpush1.bf16.msra.mxu0 %v15014_v29  ;;  %9724 = vmatprep.subr.bf16.mxu1 %v15015_v28  ;;  %v15061_v29 = vld [vmem:[#allocation7 + $0xe00] ss:$16 sps:$4 sm:$0xff]  }
 0x5cd   :  { %9811 = vmatprep.subr.bf16.mxu0 %v15016_v5  ;;  %v15062_v28 = vld [vmem:[#allocation7 + $0xd00] ss:$16 sps:$4 sm:$0xff]   ;;  %v9799_v5 = vrot.slane %v17075_v22, 1  ;;  %v15105_v22 = vld [vmem:[#allocation7 + $0xd4c] ss:$16 sps:$4 sm:$0xff]  }
 0x5cf   :  { %9725 = vmatpush2.bf16.msra.mxu1 %v15017_v61  ;;  %v15063_v61 = vld [vmem:[#allocation7 + $0xcec] ss:$16 sps:$4 sm:$0xff]  }
 0x5d0   :  { %9812 = vmatpush1.bf16.msra.mxu0 %v15018_v14  ;;  %9726 = vmatprep.subr.bf16.mxu1 %v15019_v38  ;;  %v9797_v14 = vrot.slane %v17073_v34, 1  ;;  %v15064_v38 = vld [vmem:[#allocation7 + $0xeec] ss:$16 sps:$4 sm:$0xff]   ;;  %v17320_v34 = vpop.f32.mrf.mxu0 }
 0x5d1   :  { %9813 = vmatprep.subr.bf16.mxu0 %v15020_v11  ;;  %v15065_v11 = vld [vmem:[#allocation7 + $0xce8] ss:$16 sps:$4 sm:$0xff]  }
 0x5d3   :  { %9727 = vmatpush2.bf16.msra.mxu1 %v15021_v20  ;;  %v15066_v20 = vld [vmem:[#allocation7 + $0xee8] ss:$16 sps:$4 sm:$0xff]  }
 0x5d4   :  { %9814 = vmatpush1.bf16.msra.mxu0 %v15022_v57  ;;  %9728 = vmatprep.subr.bf16.mxu1 %v15023_v30  ;;  %v15067_v57 = vld [vmem:[#allocation7 + $0xccc] ss:$16 sps:$4 sm:$0xff]  }
 0x5d5   :  { %9815 = vmatprep.subr.bf16.mxu0 %v15024_v45  ;;  %v15068_v30 = vld [vmem:[#allocation7 + $0xecc] ss:$16 sps:$4 sm:$0xff]   ;;  %v15069_v45 = vld [vmem:[#allocation7 + $0xcc8] ss:$16 sps:$4 sm:$0xff]  }
 0x5d7   :  { %9729 = vmatpush2.bf16.msra.mxu1 %v15025_v6  ;;  %v15070_v6 = vld [vmem:[#allocation7 + $0xec8] ss:$16 sps:$4 sm:$0xff]  }
 0x5d8   :  { %9816 = vmatpush1.bf16.msra.mxu0 %v15026_v50  ;;  %9730 = vmatprep.subr.bf16.mxu1 %v15027_v62  ;;  %v15071_v50 = vld [vmem:[#allocation7 + $0xcac] ss:$16 sps:$4 sm:$0xff]  }
 0x5d9   :  { %9817 = vmatprep.subr.bf16.mxu0 %v15028_v35  ;;  %v15072_v62 = vld [vmem:[#allocation7 + $0xeac] ss:$16 sps:$4 sm:$0xff]   ;;  %v15073_v35 = vld [vmem:[#allocation7 + $0xca8] ss:$16 sps:$4 sm:$0xff]  }
 0x5db   :  { %9731 = vmatpush2.bf16.msra.mxu1 %v15029_v18  ;;  %v15076_v18 = vld [vmem:[#allocation7 + $0xe8c] ss:$16 sps:$4 sm:$0xff]  }
 0x5dc   :  { %9818 = vmatpush1.bf16.msra.mxu0 %v15030_v48  ;;  %9846 = vmatprep.subr.bf16.mxu1 %v15031_v25  ;;  %v15077_v48 = vld [vmem:[#allocation7 + $0xc88] ss:$16 sps:$4 sm:$0xff]  }
 0x5dd   :  { %9819 = vmatprep.subr.bf16.mxu0 %v15032_v0  ;;  %v15078_v25 = vld [vmem:[#allocation7 + $0xe88] ss:$16 sps:$4 sm:$0xff]   ;;  %v15080_v0 = vld [vmem:[#allocation7 + $0xe6c] ss:$16 sps:$4 sm:$0xff]  }
 0x5de   :  { %9733 = vmatmul.mubr.bf16.vlgmr.msra.gmra.mxu1 %v17181_v60  ;;  %v15042_v60 = vld [vmem:[#allocation7 + $0xda0] ss:$16 sps:$4 sm:$0xff]  }
 0x5df   :  { %9847 = vmatpush1.bf16.msra.mxu1 %v15033_v4  ;;  %9878 = vmatprep.mubr.bf16.mxu1 %v17727_v52  ;;  %v15081_v4 = vld [vmem:[#allocation7 + $0xc68] ss:$16 sps:$4 sm:$0xff]  }
 0x5e0   :  { %9820 = vmatpush2.bf16.msra.mxu0 %v15034_v63  ;;  %9848 = vmatprep.subr.bf16.mxu1 %v15035_v27  ;;  %v15082_v63 = vld [vmem:[#allocation7 + $0xe68] ss:$16 sps:$4 sm:$0xff]   ;;  %v15083_v27 = vld [vmem:[#allocation7 + $0xc4c] ss:$16 sps:$4 sm:$0xff]  }
 0x5e1   :  { %9821 = vmatprep.subr.bf16.mxu0 %v15036_v44  ;;  %v15084_v44 = vld [vmem:[#allocation7 + $0xe4c] ss:$16 sps:$4 sm:$0xff]  }
 0x5e3   :  { %9849 = vmatpush1.bf16.msra.mxu1 %v15037_v16  ;;  %v15085_v16 = vld [vmem:[#allocation7 + $0xc48] ss:$16 sps:$4 sm:$0xff]  }
 0x5e4   :  { %9822 = vmatpush2.bf16.msra.mxu0 %v15038_v12  ;;  %9850 = vmatprep.subr.bf16.mxu1 %v15039_v13  ;;  %v15086_v12 = vld [vmem:[#allocation7 + $0xe48] ss:$16 sps:$4 sm:$0xff]   ;;  %v15087_v13 = vld [vmem:[#allocation7 + $0xc2c] ss:$16 sps:$4 sm:$0xff]  }
 0x5e5   :  { %9823 = vmatprep.subr.bf16.mxu0 %v15040_v40  ;;  %v15088_v40 = vld [vmem:[#allocation7 + $0xe2c] ss:$16 sps:$4 sm:$0xff]  }
 0x5e7   :  { %9851 = vmatpush1.bf16.msra.mxu1 %v15041_v21  ;;  %v15089_v21 = vld [vmem:[#allocation7 + $0xc28] ss:$16 sps:$4 sm:$0xff]  }
 0x5e8   :  { %9824 = vmatpush2.bf16.msra.mxu0 %v15042_v60  ;;  %9852 = vmatprep.subr.bf16.mxu1 %v15043_v36  ;;  %v15090_v60 = vld [vmem:[#allocation7 + $0xe28] ss:$16 sps:$4 sm:$0xff]   ;;  %v15091_v36 = vld [vmem:[#allocation7 + $0xc0c] ss:$16 sps:$4 sm:$0xff]  }
 0x5e9   :  { %9825 = vmatprep.subr.bf16.mxu0 %v15044_v1  ;;  %v15092_v1 = vld [vmem:[#allocation7 + $0xe0c] ss:$16 sps:$4 sm:$0xff]  }
 0x5eb   :  { %9853 = vmatpush1.bf16.msra.mxu1 %v15045_v15  ;;  %v15093_v15 = vld [vmem:[#allocation7 + $0xc08] ss:$16 sps:$4 sm:$0xff]  }
 0x5ec   :  { %9826 = vmatpush2.bf16.msra.mxu0 %v15046_v42  ;;  %9854 = vmatprep.subr.bf16.mxu1 %v15047_v51  ;;  %v15094_v42 = vld [vmem:[#allocation7 + $0xe08] ss:$16 sps:$4 sm:$0xff]   ;;  %v15095_v51 = vld [vmem:[#allocation7 + $0xdec] ss:$16 sps:$4 sm:$0xff]  }
 0x5ed   :  { %9827 = vmatprep.subr.bf16.mxu0 %v15048_v41  ;;  %v15096_v41 = vld [vmem:[#allocation7 + $0xde8] ss:$16 sps:$4 sm:$0xff]  }
 0x5ef   :  { %9855 = vmatpush1.bf16.msra.mxu1 %v15049_v2  ;;  %v15097_v2 = vld [vmem:[#allocation7 + $0xdcc] ss:$16 sps:$4 sm:$0xff]  }
 0x5f0   :  { %9828 = vmatpush2.bf16.msra.mxu0 %v15050_v23  ;;  %9856 = vmatprep.subr.bf16.mxu1 %v15051_v31  ;;  %v15098_v23 = vld [vmem:[#allocation7 + $0xdc8] ss:$16 sps:$4 sm:$0xff]   ;;  %v15099_v31 = vld [vmem:[#allocation7 + $0xdac] ss:$16 sps:$4 sm:$0xff]  }
 0x5f1   :  { %9829 = vmatprep.subr.bf16.mxu0 %v15052_v33  ;;  %v15100_v33 = vld [vmem:[#allocation7 + $0xda8] ss:$16 sps:$4 sm:$0xff]  }
 0x5f3   :  { %9857 = vmatpush1.bf16.msra.mxu1 %v15053_v7  ;;  %v15101_v7 = vld [vmem:[#allocation7 + $0xd8c] ss:$16 sps:$4 sm:$0xff]  }
 0x5f4   :  { %9830 = vmatpush2.bf16.msra.mxu0 %v15054_v17  ;;  %9858 = vmatprep.subr.bf16.mxu1 %v15055_v43  ;;  %v15102_v17 = vld [vmem:[#allocation7 + $0xd88] ss:$16 sps:$4 sm:$0xff]   ;;  %v15103_v43 = vld [vmem:[#allocation7 + $0xd6c] ss:$16 sps:$4 sm:$0xff]  }
 0x5f5   :  { %9831 = vmatprep.subr.bf16.mxu0 %v15056_v39  ;;  %v15104_v39 = vld [vmem:[#allocation7 + $0xd68] ss:$16 sps:$4 sm:$0xff]  }
 0x5f7   :  { %9859 = vmatpush1.bf16.msra.mxu1 %v15057_v46  ;;  %v15106_v46 = vld [vmem:[#allocation7 + $0xd48] ss:$16 sps:$4 sm:$0xff]  }
 0x5f8   :  { %9832 = vmatpush2.bf16.msra.mxu0 %v15058_v9  ;;  %9860 = vmatprep.subr.bf16.mxu1 %v15059_v47  ;;  %v15107_v9 = vld [vmem:[#allocation7 + $0xd2c] ss:$16 sps:$4 sm:$0xff]   ;;  %v15108_v47 = vld [vmem:[#allocation7 + $0xd28] ss:$16 sps:$4 sm:$0xff]  }
 0x5f9   :  { %9833 = vmatprep.subr.bf16.mxu0 %v15060_v58  ;;  %v15109_v58 = vld [vmem:[#allocation7 + $0xd0c] ss:$16 sps:$4 sm:$0xff]  }
 0x5fb   :  { %9861 = vmatpush1.bf16.msra.mxu1 %v15061_v29  ;;  %v15110_v29 = vld [vmem:[#allocation7 + $0xd08] ss:$16 sps:$4 sm:$0xff]  }
 0x5fc   :  { %9834 = vmatpush2.bf16.msra.mxu0 %v15062_v28  ;;  %9889 = vmatprep.subr.bf16.mxu1 %v15063_v61  ;;  %v14051_v28 = vld [vmem:[#allocation10 + $0x2e0] ss:$16 sps:$4 sm:$0xff]   ;;  %v14054_v61 = vld [vmem:[#allocation10 + $0x2e8] ss:$16 sps:$4 sm:$0xff]  }
 0x5fd   :  { %9932 = vmatprep.subr.bf16.mxu0 %v15064_v38  ;;  %v14056_v38 = vld [vmem:[#allocation10 + $0x2ec] ss:$16 sps:$4 sm:$0xff]  }
 0x5fe   :  { %9879 = vmatmul.mubr.bf16.vlgmr.msra.gmra.mxu1 %v9799_v5 }
 0x5ff   :  { %9836 = vmatmul.mubr.bf16.vlgmr.msra.gmra.mxu0 %v9797_v14  ;;  %9890 = vmatpush1.bf16.msra.mxu1 %v15065_v11  ;;  %v14059_v11 = vld [vmem:[#allocation10 + $0x2c4] ss:$16 sps:$4 sm:$0xff]  }
 0x600   :  { %9921 = vmatprep.mubr.bf16.mxu1 %v9798_v55  ;;  %9933 = vmatpush1.bf16.msra.mxu0 %v15066_v20  ;;  %v15075_v55 = vld [vmem:[#allocation7 + $0xc8c] ss:$16 sps:$4 sm:$0xff]  }
 0x601   :  { %9891 = vmatprep.subr.bf16.mxu1 %v15067_v57  ;;  %9934 = vmatprep.subr.bf16.mxu0 %v15068_v30  ;;  %v14062_v20 = vld [vmem:[#allocation10 + $0x2cc] ss:$16 sps:$4 sm:$0xff]   ;;  %v14057_v57 = vld [vmem:[#allocation10 + $0x2c0] ss:$16 sps:$4 sm:$0xff]   ;;  %v14060_v30 = vld [vmem:[#allocation10 + $0x2c8] ss:$16 sps:$4 sm:$0xff]  }
 0x602   :  { %9964 = vmatprep.mubr.bf16.mxu0 %v17727_v52  ;;  %v15079_v52 = vld [vmem:[#allocation7 + $0xc6c] ss:$16 sps:$4 sm:$0xff]  }
 0x603   :  { %9892 = vmatpush1.bf16.msra.mxu1 %v15069_v45  ;;  %v17318_v45 = vpop.f32.mrf.mxu1 }
 0x604   :  { %9935 = vmatpush1.bf16.msra.mxu0 %v15070_v6  ;;  %9893 = vmatprep.subr.bf16.mxu1 %v15071_v50  ;;  %v14065_v6 = vld [vmem:[#allocation10 + $0x2a4] ss:$16 sps:$4 sm:$0xff]   ;;  %v14068_v50 = vld [vmem:[#allocation10 + $0x2ac] ss:$16 sps:$4 sm:$0xff]  }
 0x605   :  { %9936 = vmatprep.subr.bf16.mxu0 %v15072_v62  ;;  %v17324_v62 = vpop.f32.mrf.mxu0 }
 0x607   :  { %9894 = vmatpush1.bf16.msra.mxu1 %v15073_v35  ;;  %v14063_v35 = vld [vmem:[#allocation10 + $0x2a0] ss:$16 sps:$4 sm:$0xff]  }
 0x608   :  { %9937 = vmatpush1.bf16.msra.mxu0 %v15074_v19  ;;  %9895 = vmatprep.subr.bf16.mxu1 %v15075_v55  ;;  %v14066_v19 = vld [vmem:[#allocation10 + $0x2a8] ss:$16 sps:$4 sm:$0xff]  }
 0x609   :  { %9938 = vmatprep.subr.bf16.mxu0 %v15076_v18  ;;  %v14071_v18 = vld [vmem:[#allocation10 + $0x284] ss:$16 sps:$4 sm:$0xff]  }
 0x60b   :  { %9896 = vmatpush1.bf16.msra.mxu1 %v15077_v48  ;;  %v14074_v48 = vld [vmem:[#allocation10 + $0x28c] ss:$16 sps:$4 sm:$0xff]  }
 0x60c   :  { %9939 = vmatpush1.bf16.msra.mxu0 %v15078_v25  ;;  %9897 = vmatprep.subr.bf16.mxu1 %v15079_v52  ;;  %v17328_v25 = vpop.f32.mrf.mxu0  ;;  %v14069_v52 = vld [vmem:[#allocation10 + $0x280] ss:$16 sps:$4 sm:$0xff]  }
 0x60d   :  { %9940 = vmatprep.subr.bf16.mxu0 %v15080_v0  ;;  %v14072_v0 = vld [vmem:[#allocation10 + $0x288] ss:$16 sps:$4 sm:$0xff]  }
 0x60f   :  { %9898 = vmatpush1.bf16.msra.mxu1 %v15081_v4  ;;  %v14077_v4 = vld [vmem:[#allocation10 + $0x264] ss:$16 sps:$4 sm:$0xff]  }
 0x610   :  { %9941 = vmatpush1.bf16.msra.mxu0 %v15082_v63  ;;  %9899 = vmatprep.subr.bf16.mxu1 %v15083_v27  ;;  %v14080_v63 = vld [vmem:[#allocation10 + $0x26c] ss:$16 sps:$4 sm:$0xff]   ;;  %v14075_v27 = vld [vmem:[#allocation10 + $0x260] ss:$16 sps:$4 sm:$0xff]  }
 0x611   :  { %9942 = vmatprep.subr.bf16.mxu0 %v15084_v44  ;;  %v14078_v44 = vld [vmem:[#allocation10 + $0x268] ss:$16 sps:$4 sm:$0xff]  }
 0x613   :  { %9900 = vmatpush1.bf16.msra.mxu1 %v15085_v16 }
 0x614   :  { %9943 = vmatpush1.bf16.msra.mxu0 %v15086_v12  ;;  %9901 = vmatprep.subr.bf16.mxu1 %v15087_v13  ;;  %v14083_v12 = vld [vmem:[#allocation10 + $0x244] ss:$16 sps:$4 sm:$0xff]   ;;  %v14086_v13 = vld [vmem:[#allocation10 + $0x24c] ss:$16 sps:$4 sm:$0xff]  }
 0x615   :  { %9944 = vmatprep.subr.bf16.mxu0 %v15088_v40  ;;  %v17332_v40 = vpop.f32.mrf.mxu0 }
 0x617   :  { %9902 = vmatpush1.bf16.msra.mxu1 %v15089_v21 }
 0x618   :  { %9945 = vmatpush1.bf16.msra.mxu0 %v15090_v60  ;;  %9903 = vmatprep.subr.bf16.mxu1 %v15091_v36  ;;  %v17336_v60 = vpop.f32.mrf.mxu0  ;;  %v14081_v36 = vld [vmem:[#allocation10 + $0x240] ss:$16 sps:$4 sm:$0xff]  }
 0x619   :  { %9946 = vmatprep.subr.bf16.mxu0 %v15092_v1  ;;  %v14084_v1 = vld [vmem:[#allocation10 + $0x248] ss:$16 sps:$4 sm:$0xff]   ;;  %v9297_v3 = vadd.f32 %v17336_v60, %v17281_v10 }
 0x61b   :  { %9904 = vmatpush1.bf16.msra.mxu1 %v15093_v15  ;;  %v14089_v15 = vld [vmem:[#allocation10 + $0x224] ss:$16 sps:$4 sm:$0xff]  }
 0x61c   :  { %9947 = vmatpush1.bf16.msra.mxu0 %v15094_v42  ;;  %9905 = vmatprep.subr.bf16.mxu1 %v15095_v51  ;;  %v14092_v42 = vld [vmem:[#allocation10 + $0x22c] ss:$16 sps:$4 sm:$0xff]  }
 0x61f   :  { %9965 = vmatmul.mubr.bf16.vlgmr.msra.gmra.mxu0 %v9799_v5  ;;  %9906 = vmatpush2.bf16.msra.mxu1 %v15096_v41  ;;  %v14053_v5 = vld [vmem:[#allocation10 + $0x2e4] ss:$16 sps:$4 sm:$0xff]   ;;  %v17340_v41 = vpop.f32.mrf.mxu0 }
 0x620   :  { %9907 = vmatprep.subr.bf16.mxu1 %v15097_v2  ;;  %10482 = vmatprep.subr.bf16.mxu0 %v14053_v5  ;;  %v14087_v2 = vld [vmem:[#allocation10 + $0x220] ss:$16 sps:$4 sm:$0xff]   ;;  %v14107_v5 = vld [vmem:[#allocation10 + $0x3c4] ss:$16 sps:$4 sm:$0xff]   ;;  %v9299_v37 = vadd.f32 %v17340_v41, %v17284_v59 }
 0x621   :  { %10483 = vmatpush1.bf16.msra.mxu0 %v14051_v28 }
 0x622   :  { %10484 = vmatprep.subr.bf16.mxu0 %v14059_v11  ;;  %v14105_v11 = vld [vmem:[#allocation10 + $0x3c0] ss:$16 sps:$4 sm:$0xff]  }
 0x623   :  { %9908 = vmatpush2.bf16.msra.mxu1 %v15098_v23  ;;  %v14090_v23 = vld [vmem:[#allocation10 + $0x228] ss:$16 sps:$4 sm:$0xff]  }
 0x624   :  { %9909 = vmatprep.subr.bf16.mxu1 %v15099_v31  ;;  %v14095_v31 = vld [vmem:[#allocation10 + $0x204] ss:$16 sps:$4 sm:$0xff]  }
 0x625   :  { %10485 = vmatpush1.bf16.msra.mxu0 %v14057_v57 }
 0x626   :  { %10486 = vmatprep.subr.bf16.mxu0 %v14065_v6 }
 0x627   :  { %9910 = vmatpush2.bf16.msra.mxu1 %v15100_v33  ;;  %v14098_v33 = vld [vmem:[#allocation10 + $0x20c] ss:$16 sps:$4 sm:$0xff]  }
 0x628   :  { %9911 = vmatprep.subr.bf16.mxu1 %v15101_v7 }
 0x629   :  { %10487 = vmatpush1.bf16.msra.mxu0 %v14063_v35  ;;  %v14116_v35 = vld [vmem:[#allocation10 + $0x3ac] ss:$16 sps:$4 sm:$0xff]  }
 0x62a   :  { %10488 = vmatprep.subr.bf16.mxu0 %v14071_v18  ;;  %v14111_v18 = vld [vmem:[#allocation10 + $0x3a0] ss:$16 sps:$4 sm:$0xff]  }
 0x62b   :  { %9912 = vmatpush2.bf16.msra.mxu1 %v15102_v17  ;;  %v17344_v17 = vpop.f32.mrf.mxu0 }
 0x62c   :  { %9913 = vmatprep.subr.bf16.mxu1 %v15103_v43  ;;  %v14093_v43 = vld [vmem:[#allocation10 + $0x200] ss:$16 sps:$4 sm:$0xff]  }
 0x62d   :  { %10489 = vmatpush1.bf16.msra.mxu0 %v14069_v52 }
 0x62e   :  { %10490 = vmatprep.subr.bf16.mxu0 %v14077_v4  ;;  %v14122_v4 = vld [vmem:[#allocation10 + $0x38c] ss:$16 sps:$4 sm:$0xff]  }
 0x62f   :  { %9914 = vmatpush2.bf16.msra.mxu1 %v15104_v39  ;;  %v14096_v39 = vld [vmem:[#allocation10 + $0x208] ss:$16 sps:$4 sm:$0xff]  }
 0x630   :  { %9915 = vmatprep.subr.bf16.mxu1 %v15105_v22  ;;  %v14101_v22 = vld [vmem:[#allocation10 + $0x3e4] ss:$16 sps:$4 sm:$0xff]  }
 0x631   :  { %10491 = vmatpush1.bf16.msra.mxu0 %v14075_v27  ;;  %v14117_v27 = vld [vmem:[#allocation10 + $0x380] ss:$16 sps:$4 sm:$0xff]  }
 0x632   :  { %10492 = vmatprep.subr.bf16.mxu0 %v14083_v12 }
 0x633   :  { %9916 = vmatpush2.bf16.msra.mxu1 %v15106_v46  ;;  %v14104_v46 = vld [vmem:[#allocation10 + $0x3ec] ss:$16 sps:$4 sm:$0xff]  }
 0x634   :  { %9917 = vmatprep.subr.bf16.mxu1 %v15107_v9 }
 0x635   :  { %10493 = vmatpush1.bf16.msra.mxu0 %v14081_v36  ;;  %v14125_v36 = vld [vmem:[#allocation10 + $0x364] ss:$16 sps:$4 sm:$0xff]  }
 0x636   :  { %10494 = vmatprep.subr.bf16.mxu0 %v14089_v15  ;;  %v14123_v15 = vld [vmem:[#allocation10 + $0x360] ss:$16 sps:$4 sm:$0xff]  }
 0x637   :  { %9918 = vmatpush2.bf16.msra.mxu1 %v15108_v47  ;;  %v17348_v47 = vpop.f32.mrf.mxu0 }
 0x638   :  { %9919 = vmatprep.subr.bf16.mxu1 %v15109_v58  ;;  %v14099_v58 = vld [vmem:[#allocation10 + $0x3e0] ss:$16 sps:$4 sm:$0xff]   ;;  %v9303_v10 = vadd.f32 %v17348_v47, %v17289_v54 }
 0x639   :  { %10495 = vmatpush1.bf16.msra.mxu0 %v14087_v2 }
 0x63a   :  { %10496 = vmatprep.subr.bf16.mxu0 %v14095_v31  ;;  %v14131_v31 = vld [vmem:[#allocation10 + $0x344] ss:$16 sps:$4 sm:$0xff]  }
 0x63b   :  { %9920 = vmatpush2.bf16.msra.mxu1 %v15110_v29  ;;  %v14102_v29 = vld [vmem:[#allocation10 + $0x3e8] ss:$16 sps:$4 sm:$0xff]  }
 0x63c   :  { %10525 = vmatprep.subr.bf16.mxu1 %v14056_v38  ;;  %v17352_v38 = vpop.f32.mrf.mxu0 }
 0x63d   :  { %10497 = vmatpush1.bf16.msra.mxu0 %v14093_v43  ;;  %v14129_v43 = vld [vmem:[#allocation10 + $0x340] ss:$16 sps:$4 sm:$0xff]  }
 0x63e   :  { %9922 = vmatmul.mubr.bf16.vlgmr.msra.gmra.mxu1 %v9797_v14  ;;  %v17322_v14 = vpop.f32.mrf.mxu1  ;;  %10498 = vmatprep.subr.bf16.mxu0 %v14101_v22 }
 0x63f   :  { %10526 = vmatpush1.bf16.msra.mxu1 %v14054_v61  ;;  %v14110_v61 = vld [vmem:[#allocation10 + $0x3cc] ss:$16 sps:$4 sm:$0xff]  }
 0x640   :  { %10527 = vmatprep.subr.bf16.mxu1 %v14062_v20  ;;  %v17326_v55 = vpop.f32.mrf.mxu1  ;;  %v14108_v20 = vld [vmem:[#allocation10 + $0x3c8] ss:$16 sps:$4 sm:$0xff]  }
 0x641   :  { %10499 = vmatpush2.bf16.msra.mxu0 %v14099_v58  ;;  %v14137_v58 = vld [vmem:[#allocation10 + $0x324] ss:$16 sps:$4 sm:$0xff]  }
 0x642   :  { %v17330_v16 = vpop.f32.mrf.mxu1  ;;  %10500 = vmatprep.subr.bf16.mxu0 %v14107_v5  ;;  %v14135_v5 = vld [vmem:[#allocation10 + $0x320] ss:$16 sps:$4 sm:$0xff]  }
 0x643   :  { %10528 = vmatpush1.bf16.msra.mxu1 %v14060_v30  ;;  %v17356_v30 = vpop.f32.mrf.mxu0 }
 0x644   :  { %10529 = vmatprep.subr.bf16.mxu1 %v14068_v50  ;;  %v17334_v21 = vpop.f32.mrf.mxu1  ;;  %v14113_v50 = vld [vmem:[#allocation10 + $0x3a4] ss:$16 sps:$4 sm:$0xff]  }
 0x645   :  { %10501 = vmatpush2.bf16.msra.mxu0 %v14105_v11 }
 0x646   :  { %v17338_v51 = vpop.f32.mrf.mxu1  ;;  %10502 = vmatprep.subr.bf16.mxu0 %v14113_v50  ;;  %v14146_v50 = vld [vmem:[#allocation10 + $0x30c] ss:$16 sps:$4 sm:$0xff]  }
 0x647   :  { %10530 = vmatpush1.bf16.msra.mxu1 %v14066_v19  ;;  %v17360_v19 = vpop.f32.mrf.mxu0  ;;  %v9342_v59 = vadd.f32 %v17338_v51, %v9299_v37 }
 0x648   :  { %10531 = vmatprep.subr.bf16.mxu1 %v14074_v48  ;;  %v17342_v7 = vpop.f32.mrf.mxu1  ;;  %17735 = vst [vmem:[#allocation50_spill] sm:$0xff] %v17360_v19  ;;  %v14114_v48 = vld [vmem:[#allocation10 + $0x3a8] ss:$16 sps:$4 sm:$0xff]  }
 0x649   :  { %10503 = vmatpush2.bf16.msra.mxu0 %v14111_v18  ;;  %v14141_v18 = vld [vmem:[#allocation10 + $0x300] ss:$16 sps:$4 sm:$0xff]  }
 0x64a   :  { %v17346_v9 = vpop.f32.mrf.mxu1 }
 0x64b   :  { %10532 = vmatpush1.bf16.msra.mxu1 %v14072_v0  ;;  %v14119_v0 = vld [vmem:[#allocation10 + $0x384] ss:$16 sps:$4 sm:$0xff]  }
 0x64c   :  { %10533 = vmatprep.subr.bf16.mxu1 %v14080_v63  ;;  %v17350_v28 = vpop.f32.mrf.mxu1  ;;  %v17364_v63 = vpop.f32.mrf.mxu0  ;;  %10504 = vmatprep.subr.bf16.mxu0 %v14119_v0 }
 0x64d   :  { %17736 = vst [vmem:[#allocation25_spill] sm:$0xff] %v17364_v63  ;;  %10505 = vmatpush2.bf16.msra.mxu0 %v14117_v27 }
 0x64e   :  { %v17354_v57 = vpop.f32.mrf.mxu1  ;;  %10506 = vmatprep.subr.bf16.mxu0 %v14125_v36  ;;  %v14152_v36 = vld [vmem:[#allocation10 + $0xec] ss:$16 sps:$4 sm:$0xff]  }
 0x64f   :  { %10534 = vmatpush1.bf16.msra.mxu1 %v14078_v44  ;;  %v14120_v44 = vld [vmem:[#allocation10 + $0x388] ss:$16 sps:$4 sm:$0xff]  }
 0x650   :  { %10535 = vmatprep.subr.bf16.mxu1 %v14086_v13  ;;  %v17358_v6 = vpop.f32.mrf.mxu1  ;;  %v17368_v13 = vpop.f32.mrf.mxu0 }
 0x651   :  { %10507 = vmatpush2.bf16.msra.mxu0 %v14123_v15 }
 0x652   :  { %v17362_v52 = vpop.f32.mrf.mxu1  ;;  %10508 = vmatprep.subr.bf16.mxu0 %v14131_v31 }
 0x653   :  { %10536 = vmatpush1.bf16.msra.mxu1 %v14084_v1  ;;  %v14128_v1 = vld [vmem:[#allocation10 + $0x36c] ss:$16 sps:$4 sm:$0xff]  }
 0x654   :  { %10537 = vmatprep.subr.bf16.mxu1 %v14092_v42  ;;  %v17366_v12 = vpop.f32.mrf.mxu1  ;;  %v14126_v42 = vld [vmem:[#allocation10 + $0x368] ss:$16 sps:$4 sm:$0xff]  }
 0x655   :  { %10509 = vmatpush2.bf16.msra.mxu0 %v14129_v43  ;;  %v9512_v63 = vadd.f32 %v17366_v12, %v17368_v13 }
 0x656   :  { %v17370_v2 = vpop.f32.mrf.mxu1  ;;  %10510 = vmatprep.subr.bf16.mxu0 %v14137_v58 }
 0x657   :  { %10538 = vmatpush1.bf16.msra.mxu1 %v14090_v23  ;;  %v9470_v23 = vpop.f32.mrf.mxu0 }
 0x658   :  { %10539 = vmatprep.subr.bf16.mxu1 %v14098_v33  ;;  %v14134_v33 = vld [vmem:[#allocation10 + $0x34c] ss:$16 sps:$4 sm:$0xff]   ;;  %v9515_v22 = vpop.f32.mrf.mxu1  ;;  %v9514_v19 = vadd.f32 %v17370_v2, %v9470_v23 }
 0x659   :  { %10511 = vmatpush2.bf16.msra.mxu0 %v14135_v5 }
 0x65a   :  { %v9517_v11 = vpop.f32.mrf.mxu1 }
 0x65b   :  { %10540 = vmatpush1.bf16.msra.mxu1 %v14096_v39  ;;  %v14132_v39 = vld [vmem:[#allocation10 + $0x348] ss:$16 sps:$4 sm:$0xff]  }
 0x65c   :  { %10541 = vmatprep.subr.bf16.mxu1 %v14104_v46  ;;  %v9472_v46 = vpop.f32.mrf.mxu0  ;;  %v17372_v0 = vpop.f32.mrf.mxu1 }
 0x65d   :  { %v9516_v60 = vadd.f32 %v9515_v22, %v9472_v46 }
 0x65e   :  { %v17376_v27 = vpop.f32.mrf.mxu1 }
 0x65f   :  { %10542 = vmatpush2.bf16.msra.mxu1 %v14102_v29  ;;  %v14140_v29 = vld [vmem:[#allocation10 + $0x32c] ss:$16 sps:$4 sm:$0xff]  }
 0x660   :  { %10543 = vmatprep.subr.bf16.mxu1 %v14110_v61  ;;  %v14138_v61 = vld [vmem:[#allocation10 + $0x328] ss:$16 sps:$4 sm:$0xff]   ;;  %v17380_v15 = vpop.f32.mrf.mxu1 }
 0x662   :  { %v17384_v31 = vpop.f32.mrf.mxu1 }
 0x663   :  { %10544 = vmatpush2.bf16.msra.mxu1 %v14108_v20  ;;  %v14143_v20 = vld [vmem:[#allocation10 + $0x304] ss:$16 sps:$4 sm:$0xff]   ;;  %17737 = vst [vmem:[#allocation48_spill] sm:$0xff] %v17384_v31  ;;  %v9340_v31 = vadd.f32 %v17334_v21, %v9297_v3  ;;  %v9607_v3 = vadd.f32 %v9514_v19, %v9342_v59 }
 0x664   :  { %10545 = vmatprep.subr.bf16.mxu1 %v14116_v35  ;;  %v9474_v35 = vpop.f32.mrf.mxu0  ;;  %10512 = vmatprep.subr.bf16.mxu0 %v14143_v20  ;;  %v9691_v43 = vpop.f32.mrf.mxu1 }
 0x665   :  { %10513 = vmatpush2.bf16.msra.mxu0 %v14141_v18  ;;  %v9606_v41 = vadd.f32 %v9512_v63, %v9340_v31 }
 0x666   :  { %v9693_v58 = vpop.f32.mrf.mxu1 }
 0x667   :  { %10546 = vmatpush2.bf16.msra.mxu1 %v14114_v48  ;;  %v14144_v48 = vld [vmem:[#allocation10 + $0x308] ss:$16 sps:$4 sm:$0xff]  }
 0x668   :  { %10547 = vmatprep.subr.bf16.mxu1 %v14122_v4  ;;  %v17374_v4 = vpop.f32.mrf.mxu0  ;;  %v9695_v5 = vpop.f32.mrf.mxu1 }
 0x66a   :  { %v9697_v20 = vpop.f32.mrf.mxu1 }
 0x66b   :  { %10548 = vmatpush2.bf16.msra.mxu1 %v14120_v44  ;;  %v14149_v44 = vld [vmem:[#allocation10 + $0xe4] ss:$16 sps:$4 sm:$0xff]  }
 0x66c   :  { %10549 = vmatprep.subr.bf16.mxu1 %v14128_v1  ;;  %v17378_v1 = vpop.f32.mrf.mxu0  ;;  %10888 = vmatprep.subr.bf16.mxu0 %v14149_v44 }
 0x66f   :  { %10550 = vmatpush2.bf16.msra.mxu1 %v14126_v42  ;;  %v17382_v42 = vpop.f32.mrf.mxu0 }
 0x670   :  { %10551 = vmatprep.subr.bf16.mxu1 %v14134_v33 }
 0x671   :  { %v17386_v33 = vpop.f32.mrf.mxu0 }
 0x672   :  { %17738 = vst [vmem:[#allocation49_spill] sm:$0xff] %v17386_v33  ;;  %v9301_v33 = vadd.f32 %v17344_v17, %v17287_v32  ;;  %v9518_v32 = vadd.f32 %v9517_v11, %v9474_v35 }
 0x673   :  { %10552 = vmatpush2.bf16.msra.mxu1 %v14132_v39  ;;  %v9648_v39 = vpop.f32.mrf.mxu0 }
 0x674   :  { %10553 = vmatprep.subr.bf16.mxu1 %v14140_v29  ;;  %v9344_v13 = vadd.f32 %v17342_v7, %v9301_v33 }
 0x675   :  { %v9650_v29 = vpop.f32.mrf.mxu0 }
 0x677   :  { %10554 = vmatpush2.bf16.msra.mxu1 %v14138_v61  ;;  %v9652_v61 = vpop.f32.mrf.mxu0 }
 0x678   :  { %10555 = vmatprep.subr.bf16.mxu1 %v14146_v50  ;;  %v9696_v2 = vadd.f32 %v9695_v5, %v9652_v61 }
 0x679   :  { %v9654_v50 = vpop.f32.mrf.mxu0 }
 0x67a   :  { %v9698_v22 = vadd.f32 %v9697_v20, %v9654_v50 }
 0x67b   :  { %10556 = vmatpush2.bf16.msra.mxu1 %v14144_v48 }
 0x67c   :  { %10931 = vmatprep.subr.bf16.mxu1 %v14152_v36 }
 0x67f   :  { %v9777_v48 = vpop.f32.mrf.mxu0 }
 0x681   :  { %v17392_v36 = vpop.f32.mrf.mxu0 }
 0x682   :  { %17740 = vst [vmem:[#allocation51_spill] sm:$0xff] %v17392_v36  ;;  %v9692_v36 = vadd.f32 %v9691_v43, %v9648_v39  ;;  %v9346_v39 = vadd.f32 %v17346_v9, %v9303_v10  ;;  %v9258_v10 = vadd.f32 %v17328_v25, %v17326_v55 }
 0x683   :  { %v17398_v8 = vpop.f32.mrf.mxu0 }
 0x684   :  { %17742 = vst [vmem:[#allocation43_spill] sm:$0xff] %v17398_v8  ;;  %v9786_v21 = vadd.f32 %v9692_v36, %v9606_v41  ;;  %v9611_v63 = vadd.f32 %v9518_v32, %v9346_v39  ;;  %v9387_v59 = vadd.f32 %v17358_v6, %v9258_v10  ;;  %v17746_v6 = vld [vmem:[#allocation50_spill] sm:$0xff]  ;;  %v17748_v41 = vld [vmem:[#allocation49_spill] sm:$0xff] }
 0x685   :  { %v9783_v8 = vpop.f32.mrf.mxu0  ;;  %v9995_v39 = vld [vmem:[#allocation8] sm:$0x3]  ;;  %v17757_v10 = vld [vmem:[#allocation46_spill] sm:$0xff] }
 0x69e   :  { %v17388_v18 = vpop.f32.mrf.mxu1 }
 0x6a0   :  { %v17390_v44 = vpop.f32.mrf.mxu1 }
 0x6a1   :  { %17739 = vst [vmem:[#allocation24_spill] sm:$0xff] %v17390_v44 }
 0x6a2   :  { %v17396_v49 = vpop.f32.mrf.mxu1 }
 0x6a3   :  { %17741 = vst [vmem:[#allocation37_spill] sm:$0xff] %v17396_v49  ;;  %v9694_v49 = vadd.f32 %v9693_v58, %v9650_v29  ;;  %v9791_v29 = vadd.f32 %v9698_v22, %v9611_v63 }
 0x6a4   :  { %v17408_v44 = vpop.f32.mrf.mxu1 }
 0x6a5   :  { %17743 = vst [vmem:[#allocation30_spill] sm:$0xff] %v17408_v44  ;;  %v9610_v44 = vadd.f32 %v9516_v60, %v9344_v13  ;;  %v9787_v47 = vadd.f32 %v9694_v49, %v9607_v3 }
 0x6a7   :  { %v9790_v7 = vadd.f32 %v9696_v2, %v9610_v44  ;;  %v9254_v44 = vadd.f32 %v17320_v34, %v17318_v45  ;;  %v9600_v34 = vadd.f32 %v17378_v1, %v17376_v27 }
 0x6a9   :  { %v9383_v36 = vadd.f32 %v17350_v28, %v9254_v44 }
 0x6ab   :  { %v9426_v45 = vadd.f32 %v17352_v38, %v9383_v36  ;;  %v17747_v38 = vld [vmem:[#allocation48_spill] sm:$0xff] }
 0x6ac   :  { %v17752_v3 = vld [vmem:[#allocation30_spill] sm:$0xff] }
 0x6be   :  { %v9880_v12 = vpop.f32.mrf.mxu1 }
 0x6bf   :  { %v9837_v17 = vpop.f32.mrf.mxu0 }
 0x6c0   :  { %v9881_v23 = vadd.f32 %v9880_v12, %v9837_v17  ;;  %v9882_v43 = vpop.f32.mrf.mxu1  ;;  %v9604_v12 = vadd.f32 %v17748_v41, %v17747_v38 }
 0x6c1   :  { %v9839_v54 = vpop.f32.mrf.mxu0 }
 0x6c2   :  { %v17415_v46 = vadd.f32 %v9881_v23, %v9786_v21  ;;  %v9883_v37 = vadd.f32 %v9882_v43, %v9839_v54  ;;  %v9884_v51 = vpop.f32.mrf.mxu1  ;;  %v9784_v21 = vadd.f32 %v9783_v8, %v17752_v3  ;;  %v14153_v3 = vld [vmem:[#allocation10 + $0xc0] ss:$16 sps:$4 sm:$0xff]  }
 0x6c3   :  { %v9841_v31 = vpop.f32.mrf.mxu0 }
 0x6c4   :  { %v9983_v19 = vmax.f32 %v17251_v24, %v17415_v46  ;;  %v9976_v11 = vadd.f32 %v9883_v37, %v9787_v47  ;;  %v9885_v35 = vadd.f32 %v9884_v51, %v9841_v31  ;;  %v9886_v33 = vpop.f32.mrf.mxu1  ;;  %v9256_v24 = vadd.f32 %v17324_v62, %v17322_v14  ;;  %v17753_v37 = vld [vmem:[#allocation26_spill] sm:$0xff] }
 0x6c5   :  { %v9843_v58 = vpop.f32.mrf.mxu0  ;;  %v9778_v14 = vadd.f32 %v9777_v48, %v17388_v18  ;;  %v17749_v48 = vld [vmem:[#allocation37_spill] sm:$0xff] }
 0x6c6   :  { %v9984_v9 = vmax.f32 %v17255_v26, %v9976_v11  ;;  %v9979_v5 = vadd.f32 %v9885_v35, %v9790_v7  ;;  %v9887_v49 = vadd.f32 %v9886_v33, %v9843_v58  ;;  %v9385_v26 = vadd.f32 %v17354_v57, %v9256_v24  ;;  %v17754_v35 = vld [vmem:[#allocation33_spill] sm:$0xff]  ;;  %v17756_v24 = vld [vmem:[#allocation32_spill] sm:$0xff] }
 0x6c7   :  { %v9602_v57 = vadd.f32 %v17382_v42, %v17380_v15  ;;  %v10000_v33 = vrot.slane %v9995_v39, %v17754_v35  ;;  %v10004_v36 = vrot.slane %v9995_v39, %v17756_v24  ;;  %v14170_v39 = vld [vmem:[#allocation10 + $0x8c] ss:$16 sps:$4 sm:$0xff]  }
 0x6c8   :  { %v9987_v61 = vmax.f32 %v17258_v53, %v9979_v5  ;;  %v9980_v20 = vadd.f32 %v9887_v49, %v9791_v29  ;;  %v9598_v53 = vadd.f32 %v17374_v4, %v17372_v0  ;;  %v9428_v25 = vadd.f32 %v17356_v30, %v9385_v26  ;;  %v17744_v0 = vld [vmem:[#allocation24_spill] sm:$0xff]  ;;  %v17751_v30 = vld [vmem:[#allocation25_spill] sm:$0xff]  ;;  %v17755_v29 = vld [vmem:[#allocation42_spill] sm:$0xff] }
 0x6c9   :  { %v9430_v4 = vadd.f32 %v17746_v6, %v9387_v59  ;;  %v17758_v59 = vld [vmem:[#allocation28_spill] sm:$0xff] }
 0x6ca   :  { %v9988_v50 = vmax.f32 %v17261_v56, %v9980_v20  ;;  %v9260_v56 = vadd.f32 %v17332_v40, %v17330_v16  ;;  %v9608_v28 = vadd.f32 %v9598_v53, %v9426_v45  ;;  %v17745_v16 = vld [vmem:[#allocation51_spill] sm:$0xff]  ;;  %v9609_v1 = vadd.f32 %v9600_v34, %v9428_v25 }
 0x6cb   :  { %v9780_v40 = vadd.f32 %v17745_v16, %v17744_v0  ;;  %v9612_v2 = vadd.f32 %v9602_v57, %v9430_v4 }
 0x6cc   :  { %v9389_v62 = vadd.f32 %v17362_v52, %v9260_v56  ;;  %v9788_v18 = vadd.f32 %v9778_v14, %v9608_v28  ;;  %v17750_v52 = vld [vmem:[#allocation43_spill] sm:$0xff] }
 0x6cd   :  { %v9782_v13 = vadd.f32 %v17750_v52, %v17749_v48  ;;  %v9789_v23 = vadd.f32 %v9780_v40, %v9609_v1  ;;  %v14150_v48 = vld [vmem:[#allocation10 + $0xe8] ss:$16 sps:$4 sm:$0xff]  }
 0x6ce   :  { %v9432_v17 = vadd.f32 %v17751_v30, %v9389_v62  ;;  %v14155_v30 = vld [vmem:[#allocation10 + $0xc4] ss:$16 sps:$4 sm:$0xff]  }
 0x6cf   :  { %v9792_v46 = vadd.f32 %v9782_v13, %v9612_v2  ;;  %v14159_v2 = vld [vmem:[#allocation10 + $0xa0] ss:$16 sps:$4 sm:$0xff]  }
 0x6d0   :  { %v9613_v47 = vadd.f32 %v9604_v12, %v9432_v17  ;;  %v14158_v17 = vld [vmem:[#allocation10 + $0xcc] ss:$16 sps:$4 sm:$0xff]  }
 0x6d2   :  { %v9793_v7 = vadd.f32 %v9784_v21, %v9613_v47  ;;  %v14156_v21 = vld [vmem:[#allocation10 + $0xc8] ss:$16 sps:$4 sm:$0xff]  }
 0x6d3   :  { %v14168_v47 = vld [vmem:[#allocation10 + $0x88] ss:$16 sps:$4 sm:$0xff]  }
 0x6df   :  { %v9966_v60 = vpop.f32.mrf.mxu0 }
 0x6e1   :  { %v9968_v55 = vpop.f32.mrf.mxu0 }
 0x6e3   :  { %v9970_v15 = vpop.f32.mrf.mxu0 }
 0x6e5   :  { %v9972_v11 = vpop.f32.mrf.mxu0 }
 0x6fe   :  { %v9923_v27 = vpop.f32.mrf.mxu1 }
 0x6ff   :  { %v9967_v32 = vadd.f32 %v9966_v60, %v9923_v27 }
 0x700   :  { %v9925_v42 = vpop.f32.mrf.mxu1 }
 0x701   :  { %v9977_v43 = vadd.f32 %v9967_v32, %v9788_v18  ;;  %v9969_v54 = vadd.f32 %v9968_v55, %v9925_v42  ;;  %v14147_v18 = vld [vmem:[#allocation10 + $0xe0] ss:$16 sps:$4 sm:$0xff]   ;;  %v14164_v42 = vld [vmem:[#allocation10 + $0xac] ss:$16 sps:$4 sm:$0xff]  }
 0x702   :  { %v9927_v22 = vpop.f32.mrf.mxu1 }
 0x703   :  { %v9985_v51 = vmax.f32 %v17753_v37, %v9977_v43  ;;  %v9978_v63 = vadd.f32 %v9969_v54, %v9789_v23  ;;  %v9971_v31 = vadd.f32 %v9970_v15, %v9927_v22  ;;  %v14161_v15 = vld [vmem:[#allocation10 + $0xa4] ss:$16 sps:$4 sm:$0xff]   ;;  %v14162_v23 = vld [vmem:[#allocation10 + $0xa8] ss:$16 sps:$4 sm:$0xff]   ;;  %v14165_v54 = vld [vmem:[#allocation10 + $0x80] ss:$16 sps:$4 sm:$0xff]  }
 0x704   :  { %v9929_v58 = vpop.f32.mrf.mxu1  ;;  %v14167_v43 = vld [vmem:[#allocation10 + $0x84] ss:$16 sps:$4 sm:$0xff]   ;;  %v14171_v37 = vld [vmem:[#allocation10 + $0x60] ss:$16 sps:$4 sm:$0xff]  }
 0x705   :  { %v9991_v8 = vmax.f32 %v9983_v19, %v9985_v51  ;;  %v9986_v5 = vmax.f32 %v17755_v29, %v9978_v63  ;;  %v9981_v49 = vadd.f32 %v9971_v31, %v9792_v46  ;;  %v9973_v20 = vadd.f32 %v9972_v11, %v9929_v58  ;;  %v14173_v22 = vld [vmem:[#allocation10 + $0x64] ss:$16 sps:$4 sm:$0xff]   ;;  %v14176_v46 = vld [vmem:[#allocation10 + $0x6c] ss:$16 sps:$4 sm:$0xff]   ;;  %v14174_v51 = vld [vmem:[#allocation10 + $0x68] ss:$16 sps:$4 sm:$0xff]  }
 0x706   :  { %v14179_v63 = vld [vmem:[#allocation10 + $0x44] ss:$16 sps:$4 sm:$0xff]   ;;  %v14182_v31 = vld [vmem:[#allocation10 + $0x4c] ss:$16 sps:$4 sm:$0xff]   ;;  %v14180_v11 = vld [vmem:[#allocation10 + $0x48] ss:$16 sps:$4 sm:$0xff]  }
 0x707   :  { %v9992_v44 = vmax.f32 %v9984_v9, %v9986_v5  ;;  %v9989_v60 = vmax.f32 %v17757_v10, %v9981_v49  ;;  %v9982_v26 = vadd.f32 %v9973_v20, %v9793_v7  ;;  %v10007_v53 = vadd.f32 %v10000_v33, %v9991_v8  ;;  %v14177_v7 = vld [vmem:[#allocation10 + $0x40] ss:$16 sps:$4 sm:$0xff]   ;;  %v14188_v58 = vld [vmem:[#allocation10 + $0x2c] ss:$16 sps:$4 sm:$0xff]   ;;  %v14186_v29 = vld [vmem:[#allocation10 + $0x28] ss:$16 sps:$4 sm:$0xff]  }
 0x708   :  { %v14183_v8 = vld [vmem:[#allocation10 + $0x20] ss:$16 sps:$4 sm:$0xff]   ;;  %v14191_v5 = vld [vmem:[#allocation10 + $0x4] ss:$16 sps:$4 sm:$0xff]   ;;  %v14194_v49 = vld [vmem:[#allocation10 + $0xc] ss:$16 sps:$4 sm:$0xff]  }
 0x709   :  { %v9993_v56 = vmax.f32 %v9987_v61, %v9989_v60  ;;  %v9990_v45 = vmax.f32 %v17758_v59, %v9982_v26  ;;  %v10008_v34 = vadd.f32 %v10004_v36, %v9992_v44  ;;  %v10011_v55 = vmax.f32 %v10007_v53, 0.0  ;;  %v14189_v20 = vld [vmem:[#allocation10] ss:$16 sps:$4 sm:$0xff]   ;;  %v14192_v44 = vld [vmem:[#allocation10 + $0x8] ss:$16 sps:$4 sm:$0xff]  }
 0x70a   :  { %v14200_v10 = vld [vmem:[#allocation10 + $0x1ec] ss:$16 sps:$4 sm:$0xff]   ;;  %v14195_v60 = vld [vmem:[#allocation10 + $0x1e0] ss:$16 sps:$4 sm:$0xff]   ;;  %v14198_v26 = vld [vmem:[#allocation10 + $0x1e8] ss:$16 sps:$4 sm:$0xff]  }
 0x70b   :  { %v10009_v14 = vadd.f32 %v10000_v33, %v9993_v56  ;;  %v9994_v62 = vmax.f32 %v9988_v50, %v9990_v45  ;;  %v10012_v28 = vmax.f32 %v10008_v34, 0.0  ;;  %v14185_v33 = vld [vmem:[#allocation10 + $0x24] ss:$16 sps:$4 sm:$0xff]   ;;  %v14206_v56 = vld [vmem:[#allocation10 + $0x1cc] ss:$16 sps:$4 sm:$0xff]  }
 0x70c   :  { %v14203_v53 = vld [vmem:[#allocation10 + $0x1c4] ss:$16 sps:$4 sm:$0xff]   ;;  %v14201_v59 = vld [vmem:[#allocation10 + $0x1c0] ss:$16 sps:$4 sm:$0xff]   ;;  %v14204_v45 = vld [vmem:[#allocation10 + $0x1c8] ss:$16 sps:$4 sm:$0xff]  }
 0x70d   :  { %v10013_v25 = vmax.f32 %v10009_v14, 0.0  ;;  %v10010_v19 = vadd.f32 %v10004_v36, %v9994_v62  ;;  %v14197_v36 = vld [vmem:[#allocation10 + $0x1e4] ss:$16 sps:$4 sm:$0xff]   ;;  %v14212_v14 = vld [vmem:[#allocation10 + $0x1ac] ss:$16 sps:$4 sm:$0xff]  }
 0x70e   :  { %v14209_v34 = vld [vmem:[#allocation10 + $0x1a4] ss:$16 sps:$4 sm:$0xff]   ;;  %v14207_v62 = vld [vmem:[#allocation10 + $0x1a0] ss:$16 sps:$4 sm:$0xff]  }
 0x70f   :  { %v17458_v57 = vpack.c.bf16 %v10013_v25, %v10011_v55  ;;  %v10014_v0 = vmax.f32 %v10010_v19, 0.0  ;;  %v14210_v55 = vld [vmem:[#allocation10 + $0x1a8] ss:$16 sps:$4 sm:$0xff]   ;;  %v14215_v25 = vld [vmem:[#allocation10 + $0x184] ss:$16 sps:$4 sm:$0xff]  }
 0x710   :  { %v14218_v19 = vld [vmem:[#allocation10 + $0x18c] ss:$16 sps:$4 sm:$0xff]  }
 0x711   :  { %v17460_v9 = vpack.c.bf16 %v10014_v0, %v10012_v28  ;;  %v10149_v16 = vshll.u32 %v17458_v57, 16  ;;  %v10147_v40 = vshrl.u32 %v17458_v57, 16  ;;  %v14213_v28 = vld [vmem:[#allocation10 + $0x180] ss:$16 sps:$4 sm:$0xff]   ;;  %v14216_v0 = vld [vmem:[#allocation10 + $0x188] ss:$16 sps:$4 sm:$0xff]  }
 0x713   :  { %v10154_v61 = vshrl.u32 %v17460_v9, 16  ;;  %v10156_v6 = vshll.u32 %v17460_v9, 16  ;;  %v10151_v4 = vrot.slane %v10149_v16, 1  ;;  %v11524_v12 = vrot.slane %v10147_v40, 1 }
 0x714   :  { %v11525_v27 = vrot.slane %v10149_v16, 2  ;;  %v14221_v16 = vld [vmem:[#allocation10 + $0x164] ss:$16 sps:$4 sm:$0xff]  }
 0x715   :  { %v10158_v38 = vrot.slane %v10156_v6, 1  ;;  %v11527_v50 = vrot.slane %v10154_v61, 1  ;;  %v11528_v41 = vrot.slane %v10156_v6, 2  ;;  %v10152_v13 = vor.u32 %v10151_v4, %v10147_v40  ;;  %v14224_v40 = vld [vmem:[#allocation10 + $0x16c] ss:$16 sps:$4 sm:$0xff]  }
 0x716   :  { %v17468_v32 = vor.u32 %v11525_v27, %v11524_v12  ;;  %v14222_v6 = vld [vmem:[#allocation10 + $0x168] ss:$16 sps:$4 sm:$0xff]   ;;  %v14227_v4 = vld [vmem:[#allocation10 + $0x144] ss:$16 sps:$4 sm:$0xff]   ;;  %v14236_v27 = vld [vmem:[#allocation10 + $0x12c] ss:$16 sps:$4 sm:$0xff]  }
 0x717   :  { %v10159_v1 = vor.u32 %v10158_v38, %v10154_v61  ;;  %v17466_v52 = vor.u32 %v11528_v41, %v11527_v50  ;;  %v14219_v61 = vld [vmem:[#allocation10 + $0x160] ss:$16 sps:$4 sm:$0xff]   ;;  %v14230_v38 = vld [vmem:[#allocation10 + $0x14c] ss:$16 sps:$4 sm:$0xff]   ;;  %v14228_v41 = vld [vmem:[#allocation10 + $0x148] ss:$16 sps:$4 sm:$0xff]  }
 0x718   :  { %v14225_v50 = vld [vmem:[#allocation10 + $0x140] ss:$16 sps:$4 sm:$0xff]   ;;  %v14233_v12 = vld [vmem:[#allocation10 + $0x124] ss:$16 sps:$4 sm:$0xff]  }
 0x719   :  { %10514 = vmatprep.mubr.bf16.mxu0 %v10159_v1  ;;  %10557 = vmatprep.mubr.bf16.mxu1 %v10159_v1  ;;  %v14231_v1 = vld [vmem:[#allocation10 + $0x120] ss:$16 sps:$4 sm:$0xff]  }
 0x71a   :  { %10515 = vmatmul.mubr.bf16.vlgmr.msra.gmra.mxu0 %v10152_v13  ;;  %10558 = vmatmul.mubr.bf16.vlgmr.msra.gmra.mxu1 %v10152_v13  ;;  %v14242_v13 = vld [vmem:[#allocation10 + $0x10c] ss:$16 sps:$4 sm:$0xff]  }
 0x71b   :  { %10889 = vmatpush1.bf16.msra.mxu0 %v14147_v18  ;;  %10932 = vmatpush1.bf16.msra.mxu1 %v14150_v48  ;;  %v14234_v18 = vld [vmem:[#allocation10 + $0x128] ss:$16 sps:$4 sm:$0xff]   ;;  %v14239_v48 = vld [vmem:[#allocation10 + $0x104] ss:$16 sps:$4 sm:$0xff]  }
 0x71c   :  { %10920 = vmatprep.mubr.bf16.mxu0 %v17460_v9  ;;  %10963 = vmatprep.mubr.bf16.mxu1 %v17460_v9 }
 0x71d   :  { %10890 = vmatprep.subr.bf16.mxu0 %v14155_v30  ;;  %10933 = vmatprep.subr.bf16.mxu1 %v14158_v17  ;;  %v14237_v30 = vld [vmem:[#allocation10 + $0x100] ss:$16 sps:$4 sm:$0xff]   ;;  %v14240_v17 = vld [vmem:[#allocation10 + $0x108] ss:$16 sps:$4 sm:$0xff]  }
 0x71f   :  { %10891 = vmatpush1.bf16.msra.mxu0 %v14153_v3  ;;  %10934 = vmatpush1.bf16.msra.mxu1 %v14156_v21  ;;  %v14245_v3 = vld [vmem:[#allocation10 + $0x4e4] ss:$16 sps:$4 sm:$0xff]   ;;  %v14248_v21 = vld [vmem:[#allocation10 + $0x4ec] ss:$16 sps:$4 sm:$0xff]  }
 0x720   :  { %10892 = vmatprep.subr.bf16.mxu0 %v14161_v15  ;;  %10935 = vmatprep.subr.bf16.mxu1 %v14164_v42  ;;  %v14243_v15 = vld [vmem:[#allocation10 + $0x4e0] ss:$16 sps:$4 sm:$0xff]   ;;  %v14246_v42 = vld [vmem:[#allocation10 + $0x4e8] ss:$16 sps:$4 sm:$0xff]  }
 0x723   :  { %10893 = vmatpush1.bf16.msra.mxu0 %v14159_v2  ;;  %10936 = vmatpush1.bf16.msra.mxu1 %v14162_v23  ;;  %v11042_v2 = vrot.slane %v17460_v9, 1  ;;  %v14251_v23 = vld [vmem:[#allocation10 + $0x4c4] ss:$16 sps:$4 sm:$0xff]   ;;  %v14258_v9 = vld [vmem:[#allocation10 + $0x4a8] ss:$16 sps:$4 sm:$0xff]  }
 0x724   :  { %10894 = vmatprep.subr.bf16.mxu0 %v14167_v43  ;;  %10937 = vmatprep.subr.bf16.mxu1 %v14170_v39  ;;  %v14254_v43 = vld [vmem:[#allocation10 + $0x4cc] ss:$16 sps:$4 sm:$0xff]   ;;  %v14249_v39 = vld [vmem:[#allocation10 + $0x4c0] ss:$16 sps:$4 sm:$0xff]  }
 0x727   :  { %10895 = vmatpush1.bf16.msra.mxu0 %v14165_v54  ;;  %10938 = vmatpush1.bf16.msra.mxu1 %v14168_v47  ;;  %v14252_v54 = vld [vmem:[#allocation10 + $0x4c8] ss:$16 sps:$4 sm:$0xff]   ;;  %v14257_v47 = vld [vmem:[#allocation10 + $0x4a4] ss:$16 sps:$4 sm:$0xff]  }
 0x728   :  { %10896 = vmatprep.subr.bf16.mxu0 %v14173_v22  ;;  %10939 = vmatprep.subr.bf16.mxu1 %v14176_v46  ;;  %v14260_v22 = vld [vmem:[#allocation10 + $0x4ac] ss:$16 sps:$4 sm:$0xff]   ;;  %v14255_v46 = vld [vmem:[#allocation10 + $0x4a0] ss:$16 sps:$4 sm:$0xff]  }
 0x72b   :  { %10897 = vmatpush1.bf16.msra.mxu0 %v14171_v37  ;;  %10940 = vmatpush1.bf16.msra.mxu1 %v14174_v51  ;;  %v14263_v37 = vld [vmem:[#allocation10 + $0x484] ss:$16 sps:$4 sm:$0xff]   ;;  %v14266_v51 = vld [vmem:[#allocation10 + $0x48c] ss:$16 sps:$4 sm:$0xff]  }
 0x72c   :  { %10898 = vmatprep.subr.bf16.mxu0 %v14179_v63  ;;  %10941 = vmatprep.subr.bf16.mxu1 %v14182_v31  ;;  %v14261_v63 = vld [vmem:[#allocation10 + $0x480] ss:$16 sps:$4 sm:$0xff]   ;;  %v14264_v31 = vld [vmem:[#allocation10 + $0x488] ss:$16 sps:$4 sm:$0xff]  }
 0x72f   :  { %10899 = vmatpush1.bf16.msra.mxu0 %v14177_v7  ;;  %10942 = vmatpush1.bf16.msra.mxu1 %v14180_v11  ;;  %v14269_v7 = vld [vmem:[#allocation10 + $0x464] ss:$16 sps:$4 sm:$0xff]   ;;  %v14272_v11 = vld [vmem:[#allocation10 + $0x46c] ss:$16 sps:$4 sm:$0xff]  }
 0x730   :  { %10900 = vmatprep.subr.bf16.mxu0 %v14185_v33  ;;  %10943 = vmatprep.subr.bf16.mxu1 %v14188_v58  ;;  %v14267_v33 = vld [vmem:[#allocation10 + $0x460] ss:$16 sps:$4 sm:$0xff]   ;;  %v14270_v58 = vld [vmem:[#allocation10 + $0x468] ss:$16 sps:$4 sm:$0xff]  }
 0x733   :  { %10901 = vmatpush1.bf16.msra.mxu0 %v14183_v8  ;;  %10944 = vmatpush1.bf16.msra.mxu1 %v14186_v29  ;;  %v14275_v8 = vld [vmem:[#allocation10 + $0x444] ss:$16 sps:$4 sm:$0xff]   ;;  %v14278_v29 = vld [vmem:[#allocation10 + $0x44c] ss:$16 sps:$4 sm:$0xff]  }
 0x734   :  { %10902 = vmatprep.subr.bf16.mxu0 %v14191_v5  ;;  %10945 = vmatprep.subr.bf16.mxu1 %v14194_v49  ;;  %v14273_v5 = vld [vmem:[#allocation10 + $0x440] ss:$16 sps:$4 sm:$0xff]   ;;  %v14276_v49 = vld [vmem:[#allocation10 + $0x448] ss:$16 sps:$4 sm:$0xff]  }
 0x737   :  { %10903 = vmatpush1.bf16.msra.mxu0 %v14189_v20  ;;  %10946 = vmatpush1.bf16.msra.mxu1 %v14192_v44  ;;  %v14281_v20 = vld [vmem:[#allocation10 + $0x424] ss:$16 sps:$4 sm:$0xff]   ;;  %v14284_v44 = vld [vmem:[#allocation10 + $0x42c] ss:$16 sps:$4 sm:$0xff]  }
 0x738   :  { %10904 = vmatprep.subr.bf16.mxu0 %v14197_v36  ;;  %10947 = vmatprep.subr.bf16.mxu1 %v14200_v10  ;;  %v14279_v36 = vld [vmem:[#allocation10 + $0x420] ss:$16 sps:$4 sm:$0xff]   ;;  %v14282_v10 = vld [vmem:[#allocation10 + $0x428] ss:$16 sps:$4 sm:$0xff]  }
 0x73b   :  { %10905 = vmatpush2.bf16.msra.mxu0 %v14195_v60  ;;  %10948 = vmatpush2.bf16.msra.mxu1 %v14198_v26  ;;  %v14287_v60 = vld [vmem:[#allocation10 + $0x404] ss:$16 sps:$4 sm:$0xff]   ;;  %v14290_v26 = vld [vmem:[#allocation10 + $0x40c] ss:$16 sps:$4 sm:$0xff]  }
 0x73c   :  { %10906 = vmatprep.subr.bf16.mxu0 %v14203_v53  ;;  %10949 = vmatprep.subr.bf16.mxu1 %v14206_v56  ;;  %v14285_v53 = vld [vmem:[#allocation10 + $0x400] ss:$16 sps:$4 sm:$0xff]   ;;  %v14288_v56 = vld [vmem:[#allocation10 + $0x408] ss:$16 sps:$4 sm:$0xff]  }
 0x73f   :  { %10907 = vmatpush2.bf16.msra.mxu0 %v14201_v59  ;;  %10950 = vmatpush2.bf16.msra.mxu1 %v14204_v45  ;;  %v14293_v59 = vld [vmem:[#allocation10 + $0x5e4] ss:$16 sps:$4 sm:$0xff]   ;;  %v14296_v45 = vld [vmem:[#allocation10 + $0x5ec] ss:$16 sps:$4 sm:$0xff]  }
 0x740   :  { %10908 = vmatprep.subr.bf16.mxu0 %v14209_v34  ;;  %10951 = vmatprep.subr.bf16.mxu1 %v14212_v14  ;;  %v14291_v34 = vld [vmem:[#allocation10 + $0x5e0] ss:$16 sps:$4 sm:$0xff]   ;;  %v14294_v14 = vld [vmem:[#allocation10 + $0x5e8] ss:$16 sps:$4 sm:$0xff]  }
 0x743   :  { %10909 = vmatpush2.bf16.msra.mxu0 %v14207_v62  ;;  %10952 = vmatpush2.bf16.msra.mxu1 %v14210_v55  ;;  %v14299_v62 = vld [vmem:[#allocation10 + $0x5c4] ss:$16 sps:$4 sm:$0xff]   ;;  %v14302_v55 = vld [vmem:[#allocation10 + $0x5cc] ss:$16 sps:$4 sm:$0xff]  }
 0x744   :  { %10910 = vmatprep.subr.bf16.mxu0 %v14215_v25  ;;  %10953 = vmatprep.subr.bf16.mxu1 %v14218_v19  ;;  %v14297_v25 = vld [vmem:[#allocation10 + $0x5c0] ss:$16 sps:$4 sm:$0xff]   ;;  %v14300_v19 = vld [vmem:[#allocation10 + $0x5c8] ss:$16 sps:$4 sm:$0xff]  }
 0x747   :  { %10911 = vmatpush2.bf16.msra.mxu0 %v14213_v28  ;;  %10954 = vmatpush2.bf16.msra.mxu1 %v14216_v0  ;;  %v14305_v28 = vld [vmem:[#allocation10 + $0x5a4] ss:$16 sps:$4 sm:$0xff]   ;;  %v14308_v0 = vld [vmem:[#allocation10 + $0x5ac] ss:$16 sps:$4 sm:$0xff]  }
 0x748   :  { %10912 = vmatprep.subr.bf16.mxu0 %v14221_v16  ;;  %10955 = vmatprep.subr.bf16.mxu1 %v14224_v40  ;;  %v14303_v16 = vld [vmem:[#allocation10 + $0x5a0] ss:$16 sps:$4 sm:$0xff]   ;;  %v14306_v40 = vld [vmem:[#allocation10 + $0x5a8] ss:$16 sps:$4 sm:$0xff]  }
 0x74b   :  { %10913 = vmatpush2.bf16.msra.mxu0 %v14219_v61  ;;  %10956 = vmatpush2.bf16.msra.mxu1 %v14222_v6  ;;  %v14311_v61 = vld [vmem:[#allocation10 + $0x584] ss:$16 sps:$4 sm:$0xff]   ;;  %v14314_v6 = vld [vmem:[#allocation10 + $0x58c] ss:$16 sps:$4 sm:$0xff]  }
 0x74c   :  { %10914 = vmatprep.subr.bf16.mxu0 %v14227_v4  ;;  %10957 = vmatprep.subr.bf16.mxu1 %v14230_v38  ;;  %v14309_v4 = vld [vmem:[#allocation10 + $0x580] ss:$16 sps:$4 sm:$0xff]   ;;  %v14312_v38 = vld [vmem:[#allocation10 + $0x588] ss:$16 sps:$4 sm:$0xff]  }
 0x74f   :  { %10915 = vmatpush2.bf16.msra.mxu0 %v14225_v50  ;;  %10958 = vmatpush2.bf16.msra.mxu1 %v14228_v41  ;;  %v14317_v50 = vld [vmem:[#allocation10 + $0x564] ss:$16 sps:$4 sm:$0xff]   ;;  %v14320_v41 = vld [vmem:[#allocation10 + $0x56c] ss:$16 sps:$4 sm:$0xff]  }
 0x750   :  { %10916 = vmatprep.subr.bf16.mxu0 %v14233_v12  ;;  %10959 = vmatprep.subr.bf16.mxu1 %v14236_v27  ;;  %v14315_v12 = vld [vmem:[#allocation10 + $0x560] ss:$16 sps:$4 sm:$0xff]   ;;  %v14318_v27 = vld [vmem:[#allocation10 + $0x568] ss:$16 sps:$4 sm:$0xff]  }
 0x753   :  { %10917 = vmatpush2.bf16.msra.mxu0 %v14231_v1  ;;  %10960 = vmatpush2.bf16.msra.mxu1 %v14234_v18  ;;  %v14323_v1 = vld [vmem:[#allocation10 + $0x544] ss:$16 sps:$4 sm:$0xff]   ;;  %v14326_v18 = vld [vmem:[#allocation10 + $0x54c] ss:$16 sps:$4 sm:$0xff]  }
 0x754   :  { %10918 = vmatprep.subr.bf16.mxu0 %v14239_v48  ;;  %10961 = vmatprep.subr.bf16.mxu1 %v14242_v13  ;;  %v14321_v48 = vld [vmem:[#allocation10 + $0x540] ss:$16 sps:$4 sm:$0xff]   ;;  %v14324_v13 = vld [vmem:[#allocation10 + $0x548] ss:$16 sps:$4 sm:$0xff]  }
 0x757   :  { %10919 = vmatpush2.bf16.msra.mxu0 %v14237_v30  ;;  %10962 = vmatpush2.bf16.msra.mxu1 %v14240_v17  ;;  %v14329_v30 = vld [vmem:[#allocation10 + $0x524] ss:$16 sps:$4 sm:$0xff]   ;;  %v14332_v17 = vld [vmem:[#allocation10 + $0x52c] ss:$16 sps:$4 sm:$0xff]  }
 0x758   :  { %11365 = vmatprep.subr.bf16.mxu0 %v14245_v3  ;;  %11408 = vmatprep.subr.bf16.mxu1 %v14248_v21  ;;  %v14327_v3 = vld [vmem:[#allocation10 + $0x520] ss:$16 sps:$4 sm:$0xff]   ;;  %v14330_v21 = vld [vmem:[#allocation10 + $0x528] ss:$16 sps:$4 sm:$0xff]  }
 0x75a   :  { %10921 = vmatmul.mubr.bf16.vlgmr.msra.gmra.mxu0 %v17458_v57  ;;  %10964 = vmatmul.mubr.bf16.vlgmr.msra.gmra.mxu1 %v17458_v57 }
 0x75b   :  { %11366 = vmatpush1.bf16.msra.mxu0 %v14243_v15  ;;  %11397 = vmatprep.mubr.bf16.mxu0 %v11042_v2  ;;  %v14335_v15 = vld [vmem:[#allocation10 + $0x504] ss:$16 sps:$4 sm:$0xff]  }
 0x75c   :  { %11409 = vmatpush1.bf16.msra.mxu1 %v14246_v42  ;;  %11440 = vmatprep.mubr.bf16.mxu1 %v11042_v2  ;;  %v14338_v42 = vld [vmem:[#allocation10 + $0x50c] ss:$16 sps:$4 sm:$0xff]   ;;  %v14333_v2 = vld [vmem:[#allocation10 + $0x500] ss:$16 sps:$4 sm:$0xff]  }
 0x75d   :  { %11367 = vmatprep.subr.bf16.mxu0 %v14251_v23  ;;  %11410 = vmatprep.subr.bf16.mxu1 %v14254_v43  ;;  %v14336_v23 = vld [vmem:[#allocation10 + $0x508] ss:$16 sps:$4 sm:$0xff]   ;;  %v14341_v43 = vld [vmem:[#allocation10 + $0x6e4] ss:$16 sps:$4 sm:$0xff]  }
 0x75f   :  { %11368 = vmatpush1.bf16.msra.mxu0 %v14249_v39  ;;  %v14344_v39 = vld [vmem:[#allocation10 + $0x6ec] ss:$16 sps:$4 sm:$0xff]  }
 0x760   :  { %11411 = vmatpush1.bf16.msra.mxu1 %v14252_v54  ;;  %11369 = vmatprep.subr.bf16.mxu0 %v14257_v47  ;;  %v14339_v54 = vld [vmem:[#allocation10 + $0x6e0] ss:$16 sps:$4 sm:$0xff]   ;;  %v11041_v47 = vrot.slane %v17458_v57, 1 }
 0x761   :  { %11412 = vmatprep.subr.bf16.mxu1 %v14260_v22  ;;  %v14342_v22 = vld [vmem:[#allocation10 + $0x6e8] ss:$16 sps:$4 sm:$0xff]   ;;  %v14351_v57 = vld [vmem:[#allocation10 + $0x6a0] ss:$16 sps:$4 sm:$0xff]  }
 0x763   :  { %11370 = vmatpush1.bf16.msra.mxu0 %v14255_v46  ;;  %v14347_v46 = vld [vmem:[#allocation10 + $0x6c4] ss:$16 sps:$4 sm:$0xff]  }
 0x764   :  { %11413 = vmatpush1.bf16.msra.mxu1 %v14258_v9  ;;  %11371 = vmatprep.subr.bf16.mxu0 %v14263_v37  ;;  %v14350_v9 = vld [vmem:[#allocation10 + $0x6cc] ss:$16 sps:$4 sm:$0xff]   ;;  %v14345_v37 = vld [vmem:[#allocation10 + $0x6c0] ss:$16 sps:$4 sm:$0xff]  }
 0x765   :  { %11414 = vmatprep.subr.bf16.mxu1 %v14266_v51  ;;  %v14348_v51 = vld [vmem:[#allocation10 + $0x6c8] ss:$16 sps:$4 sm:$0xff]  }
 0x767   :  { %11372 = vmatpush1.bf16.msra.mxu0 %v14261_v63  ;;  %v14353_v63 = vld [vmem:[#allocation10 + $0x6a4] ss:$16 sps:$4 sm:$0xff]  }
 0x768   :  { %11415 = vmatpush1.bf16.msra.mxu1 %v14264_v31  ;;  %11373 = vmatprep.subr.bf16.mxu0 %v14269_v7  ;;  %v14356_v31 = vld [vmem:[#allocation10 + $0x6ac] ss:$16 sps:$4 sm:$0xff]   ;;  %v14354_v7 = vld [vmem:[#allocation10 + $0x6a8] ss:$16 sps:$4 sm:$0xff]  }
 0x769   :  { %11416 = vmatprep.subr.bf16.mxu1 %v14272_v11  ;;  %v14359_v11 = vld [vmem:[#allocation10 + $0x684] ss:$16 sps:$4 sm:$0xff]  }
 0x76b   :  { %11374 = vmatpush1.bf16.msra.mxu0 %v14267_v33  ;;  %v14362_v33 = vld [vmem:[#allocation10 + $0x68c] ss:$16 sps:$4 sm:$0xff]  }
 0x76c   :  { %11417 = vmatpush1.bf16.msra.mxu1 %v14270_v58  ;;  %11375 = vmatprep.subr.bf16.mxu0 %v14275_v8  ;;  %v14357_v58 = vld [vmem:[#allocation10 + $0x680] ss:$16 sps:$4 sm:$0xff]   ;;  %v14360_v8 = vld [vmem:[#allocation10 + $0x688] ss:$16 sps:$4 sm:$0xff]  }
 0x76d   :  { %11418 = vmatprep.subr.bf16.mxu1 %v14278_v29  ;;  %v14365_v29 = vld [vmem:[#allocation10 + $0x664] ss:$16 sps:$4 sm:$0xff]  }
 0x76f   :  { %11376 = vmatpush1.bf16.msra.mxu0 %v14273_v5  ;;  %v14368_v5 = vld [vmem:[#allocation10 + $0x66c] ss:$16 sps:$4 sm:$0xff]  }
 0x770   :  { %11419 = vmatpush1.bf16.msra.mxu1 %v14276_v49  ;;  %11377 = vmatprep.subr.bf16.mxu0 %v14281_v20  ;;  %v14366_v49 = vld [vmem:[#allocation10 + $0x668] ss:$16 sps:$4 sm:$0xff]   ;;  %v14371_v20 = vld [vmem:[#allocation10 + $0x644] ss:$16 sps:$4 sm:$0xff]  }
 0x771   :  { %11420 = vmatprep.subr.bf16.mxu1 %v14284_v44  ;;  %v14374_v44 = vld [vmem:[#allocation10 + $0x64c] ss:$16 sps:$4 sm:$0xff]  }
 0x773   :  { %11378 = vmatpush1.bf16.msra.mxu0 %v14279_v36  ;;  %v14369_v36 = vld [vmem:[#allocation10 + $0x640] ss:$16 sps:$4 sm:$0xff]  }
 0x774   :  { %11421 = vmatpush1.bf16.msra.mxu1 %v14282_v10  ;;  %11379 = vmatprep.subr.bf16.mxu0 %v14287_v60  ;;  %v14372_v10 = vld [vmem:[#allocation10 + $0x648] ss:$16 sps:$4 sm:$0xff]   ;;  %v14377_v60 = vld [vmem:[#allocation10 + $0x624] ss:$16 sps:$4 sm:$0xff]  }
 0x775   :  { %11422 = vmatprep.subr.bf16.mxu1 %v14290_v26  ;;  %v14380_v26 = vld [vmem:[#allocation10 + $0x62c] ss:$16 sps:$4 sm:$0xff]  }
 0x777   :  { %11380 = vmatpush1.bf16.msra.mxu0 %v14285_v53  ;;  %v14375_v53 = vld [vmem:[#allocation10 + $0x620] ss:$16 sps:$4 sm:$0xff]  }
 0x778   :  { %11423 = vmatpush1.bf16.msra.mxu1 %v14288_v56  ;;  %11381 = vmatprep.subr.bf16.mxu0 %v14293_v59  ;;  %v14378_v56 = vld [vmem:[#allocation10 + $0x628] ss:$16 sps:$4 sm:$0xff]   ;;  %v14383_v59 = vld [vmem:[#allocation10 + $0x604] ss:$16 sps:$4 sm:$0xff]  }
 0x779   :  { %11424 = vmatprep.subr.bf16.mxu1 %v14296_v45  ;;  %v14386_v45 = vld [vmem:[#allocation10 + $0x60c] ss:$16 sps:$4 sm:$0xff]  }
 0x77b   :  { %11382 = vmatpush2.bf16.msra.mxu0 %v14291_v34  ;;  %v14381_v34 = vld [vmem:[#allocation10 + $0x600] ss:$16 sps:$4 sm:$0xff]  }
 0x77c   :  { %11425 = vmatpush2.bf16.msra.mxu1 %v14294_v14  ;;  %11383 = vmatprep.subr.bf16.mxu0 %v14299_v62  ;;  %v14384_v14 = vld [vmem:[#allocation10 + $0x608] ss:$16 sps:$4 sm:$0xff]   ;;  %v14389_v62 = vld [vmem:[#allocation10 + $0x7e4] ss:$16 sps:$4 sm:$0xff]  }
 0x77d   :  { %11426 = vmatprep.subr.bf16.mxu1 %v14302_v55  ;;  %v14392_v55 = vld [vmem:[#allocation10 + $0x7ec] ss:$16 sps:$4 sm:$0xff]  }
 0x77f   :  { %11384 = vmatpush2.bf16.msra.mxu0 %v14297_v25  ;;  %v14387_v25 = vld [vmem:[#allocation10 + $0x7e0] ss:$16 sps:$4 sm:$0xff]  }
 0x780   :  { %11427 = vmatpush2.bf16.msra.mxu1 %v14300_v19  ;;  %11385 = vmatprep.subr.bf16.mxu0 %v14305_v28  ;;  %v14390_v19 = vld [vmem:[#allocation10 + $0x7e8] ss:$16 sps:$4 sm:$0xff]   ;;  %v14395_v28 = vld [vmem:[#allocation10 + $0x7c4] ss:$16 sps:$4 sm:$0xff]  }
 0x781   :  { %11428 = vmatprep.subr.bf16.mxu1 %v14308_v0  ;;  %v14398_v0 = vld [vmem:[#allocation10 + $0x7cc] ss:$16 sps:$4 sm:$0xff]  }
 0x783   :  { %11386 = vmatpush2.bf16.msra.mxu0 %v14303_v16  ;;  %v14393_v16 = vld [vmem:[#allocation10 + $0x7c0] ss:$16 sps:$4 sm:$0xff]  }
 0x784   :  { %11429 = vmatpush2.bf16.msra.mxu1 %v14306_v40  ;;  %11387 = vmatprep.subr.bf16.mxu0 %v14311_v61  ;;  %v14396_v40 = vld [vmem:[#allocation10 + $0x7c8] ss:$16 sps:$4 sm:$0xff]   ;;  %v14401_v61 = vld [vmem:[#allocation10 + $0x7a4] ss:$16 sps:$4 sm:$0xff]  }
 0x785   :  { %11430 = vmatprep.subr.bf16.mxu1 %v14314_v6  ;;  %v14404_v6 = vld [vmem:[#allocation10 + $0x7ac] ss:$16 sps:$4 sm:$0xff]  }
 0x787   :  { %11388 = vmatpush2.bf16.msra.mxu0 %v14309_v4  ;;  %v14399_v4 = vld [vmem:[#allocation10 + $0x7a0] ss:$16 sps:$4 sm:$0xff]  }
 0x788   :  { %11431 = vmatpush2.bf16.msra.mxu1 %v14312_v38  ;;  %11389 = vmatprep.subr.bf16.mxu0 %v14317_v50  ;;  %v14402_v38 = vld [vmem:[#allocation10 + $0x7a8] ss:$16 sps:$4 sm:$0xff]   ;;  %v14407_v50 = vld [vmem:[#allocation10 + $0x784] ss:$16 sps:$4 sm:$0xff]  }
 0x789   :  { %11432 = vmatprep.subr.bf16.mxu1 %v14320_v41  ;;  %v14410_v41 = vld [vmem:[#allocation10 + $0x78c] ss:$16 sps:$4 sm:$0xff]  }
 0x78b   :  { %11390 = vmatpush2.bf16.msra.mxu0 %v14315_v12  ;;  %v14405_v12 = vld [vmem:[#allocation10 + $0x780] ss:$16 sps:$4 sm:$0xff]  }
 0x78c   :  { %11433 = vmatpush2.bf16.msra.mxu1 %v14318_v27  ;;  %11391 = vmatprep.subr.bf16.mxu0 %v14323_v1  ;;  %v14408_v27 = vld [vmem:[#allocation10 + $0x788] ss:$16 sps:$4 sm:$0xff]   ;;  %v14413_v1 = vld [vmem:[#allocation10 + $0x764] ss:$16 sps:$4 sm:$0xff]  }
 0x78d   :  { %11434 = vmatprep.subr.bf16.mxu1 %v14326_v18  ;;  %v14416_v18 = vld [vmem:[#allocation10 + $0x76c] ss:$16 sps:$4 sm:$0xff]  }
 0x78f   :  { %11392 = vmatpush2.bf16.msra.mxu0 %v14321_v48  ;;  %v14411_v48 = vld [vmem:[#allocation10 + $0x760] ss:$16 sps:$4 sm:$0xff]  }
 0x790   :  { %11435 = vmatpush2.bf16.msra.mxu1 %v14324_v13  ;;  %11393 = vmatprep.subr.bf16.mxu0 %v14329_v30  ;;  %v14414_v13 = vld [vmem:[#allocation10 + $0x768] ss:$16 sps:$4 sm:$0xff]   ;;  %v14419_v30 = vld [vmem:[#allocation10 + $0x744] ss:$16 sps:$4 sm:$0xff]  }
 0x791   :  { %11436 = vmatprep.subr.bf16.mxu1 %v14332_v17  ;;  %v14422_v17 = vld [vmem:[#allocation10 + $0x74c] ss:$16 sps:$4 sm:$0xff]  }
 0x793   :  { %11394 = vmatpush2.bf16.msra.mxu0 %v14327_v3  ;;  %v14417_v3 = vld [vmem:[#allocation10 + $0x740] ss:$16 sps:$4 sm:$0xff]  }
 0x794   :  { %11437 = vmatpush2.bf16.msra.mxu1 %v14330_v21  ;;  %11395 = vmatprep.subr.bf16.mxu0 %v14335_v15  ;;  %v14420_v21 = vld [vmem:[#allocation10 + $0x748] ss:$16 sps:$4 sm:$0xff]   ;;  %v14425_v15 = vld [vmem:[#allocation10 + $0x724] ss:$16 sps:$4 sm:$0xff]  }
 0x795   :  { %11438 = vmatprep.subr.bf16.mxu1 %v14338_v42  ;;  %v14428_v42 = vld [vmem:[#allocation10 + $0x72c] ss:$16 sps:$4 sm:$0xff]  }
 0x797   :  { %11396 = vmatpush2.bf16.msra.mxu0 %v14333_v2  ;;  %v14423_v2 = vld [vmem:[#allocation10 + $0x720] ss:$16 sps:$4 sm:$0xff]  }
 0x798   :  { %11439 = vmatpush2.bf16.msra.mxu1 %v14336_v23  ;;  %11852 = vmatprep.subr.bf16.mxu0 %v14341_v43  ;;  %v14426_v23 = vld [vmem:[#allocation10 + $0x728] ss:$16 sps:$4 sm:$0xff]   ;;  %v14431_v43 = vld [vmem:[#allocation10 + $0x704] ss:$16 sps:$4 sm:$0xff]  }
 0x799   :  { %11895 = vmatprep.subr.bf16.mxu1 %v14344_v39  ;;  %v14434_v39 = vld [vmem:[#allocation10 + $0x70c] ss:$16 sps:$4 sm:$0xff]  }
 0x79a   :  { %11398 = vmatmul.mubr.bf16.vlgmr.msra.gmra.mxu0 %v11041_v47 }
 0x79b   :  { %11441 = vmatmul.mubr.bf16.vlgmr.msra.gmra.mxu1 %v11041_v47  ;;  %11853 = vmatpush1.bf16.msra.mxu0 %v14339_v54  ;;  %v14429_v54 = vld [vmem:[#allocation10 + $0x700] ss:$16 sps:$4 sm:$0xff]   ;;  %v14432_v47 = vld [vmem:[#allocation10 + $0x708] ss:$16 sps:$4 sm:$0xff]  }
 0x79c   :  { %11884 = vmatprep.mubr.bf16.mxu0 %v17466_v52  ;;  %11896 = vmatpush1.bf16.msra.mxu1 %v14342_v22  ;;  %v12015_v22 = vld [vmem:[#allocation13 + $0xf8] sm:$0xff] }
 0x79d   :  { %11927 = vmatprep.mubr.bf16.mxu1 %v17466_v52  ;;  %11854 = vmatprep.subr.bf16.mxu0 %v14347_v46  ;;  %v14363_v52 = vld [vmem:[#allocation10 + $0x660] ss:$16 sps:$4 sm:$0xff]  }
 0x79e   :  { %11897 = vmatprep.subr.bf16.mxu1 %v14350_v9  ;;  %v12047_v46 = vld [vmem:[#allocation13 + $0x1f8] sm:$0xff] }
 0x79f   :  { %11855 = vmatpush1.bf16.msra.mxu0 %v14345_v37  ;;  %v11999_v9 = vld [vmem:[#allocation13 + $0x78] sm:$0xff] }
 0x7a0   :  { %11898 = vmatpush1.bf16.msra.mxu1 %v14348_v51  ;;  %11856 = vmatprep.subr.bf16.mxu0 %v14353_v63  ;;  %v12031_v37 = vld [vmem:[#allocation13 + $0x178] sm:$0xff]  ;;  %v12014_v51 = vld [vmem:[#allocation13 + $0xf0] sm:$0xff] }
 0x7a1   :  { %11899 = vmatprep.subr.bf16.mxu1 %v14356_v31  ;;  %v12046_v63 = vld [vmem:[#allocation13 + $0x1f0] sm:$0xff] }
 0x7a2   :  { %v11998_v31 = vld [vmem:[#allocation13 + $0x70] sm:$0xff] }
 0x7a3   :  { %11857 = vmatpush1.bf16.msra.mxu0 %v14351_v57  ;;  %v12030_v57 = vld [vmem:[#allocation13 + $0x170] sm:$0xff] }
 0x7a4   :  { %11900 = vmatpush1.bf16.msra.mxu1 %v14354_v7  ;;  %11858 = vmatprep.subr.bf16.mxu0 %v14359_v11  ;;  %v12013_v7 = vld [vmem:[#allocation13 + $0xe8] sm:$0xff] }
 0x7a5   :  { %11901 = vmatprep.subr.bf16.mxu1 %v14362_v33  ;;  %v12045_v11 = vld [vmem:[#allocation13 + $0x1e8] sm:$0xff] }
 0x7a6   :  { %v11997_v33 = vld [vmem:[#allocation13 + $0x68] sm:$0xff] }
 0x7a7   :  { %11859 = vmatpush1.bf16.msra.mxu0 %v14357_v58  ;;  %v12029_v58 = vld [vmem:[#allocation13 + $0x168] sm:$0xff] }
 0x7a8   :  { %11902 = vmatpush1.bf16.msra.mxu1 %v14360_v8  ;;  %11860 = vmatprep.subr.bf16.mxu0 %v14365_v29  ;;  %v12044_v8 = vld [vmem:[#allocation13 + $0x1e0] sm:$0xff] }
 0x7a9   :  { %11903 = vmatprep.subr.bf16.mxu1 %v14368_v5  ;;  %v11996_v29 = vld [vmem:[#allocation13 + $0x60] sm:$0xff] }
 0x7aa   :  { %v12028_v5 = vld [vmem:[#allocation13 + $0x160] sm:$0xff] }
 0x7ab   :  { %11861 = vmatpush1.bf16.msra.mxu0 %v14363_v52  ;;  %v12011_v52 = vld [vmem:[#allocation13 + $0xd8] sm:$0xff] }
 0x7ac   :  { %11904 = vmatpush1.bf16.msra.mxu1 %v14366_v49  ;;  %11862 = vmatprep.subr.bf16.mxu0 %v14371_v20  ;;  %v12043_v49 = vld [vmem:[#allocation13 + $0x1d8] sm:$0xff] }
 0x7ad   :  { %11905 = vmatprep.subr.bf16.mxu1 %v14374_v44  ;;  %v11995_v20 = vld [vmem:[#allocation13 + $0x58] sm:$0xff] }
 0x7ae   :  { %v12027_v44 = vld [vmem:[#allocation13 + $0x158] sm:$0xff] }
 0x7af   :  { %11863 = vmatpush1.bf16.msra.mxu0 %v14369_v36  ;;  %v12010_v36 = vld [vmem:[#allocation13 + $0xd0] sm:$0xff] }
 0x7b0   :  { %11906 = vmatpush1.bf16.msra.mxu1 %v14372_v10  ;;  %11864 = vmatprep.subr.bf16.mxu0 %v14377_v60  ;;  %v12042_v10 = vld [vmem:[#allocation13 + $0x1d0] sm:$0xff] }
 0x7b1   :  { %11907 = vmatprep.subr.bf16.mxu1 %v14380_v26  ;;  %v11994_v60 = vld [vmem:[#allocation13 + $0x50] sm:$0xff] }
 0x7b2   :  { %v12026_v26 = vld [vmem:[#allocation13 + $0x150] sm:$0xff] }
 0x7b3   :  { %11865 = vmatpush1.bf16.msra.mxu0 %v14375_v53  ;;  %v12009_v53 = vld [vmem:[#allocation13 + $0xc8] sm:$0xff] }
 0x7b4   :  { %11908 = vmatpush1.bf16.msra.mxu1 %v14378_v56  ;;  %11866 = vmatprep.subr.bf16.mxu0 %v14383_v59  ;;  %v12041_v56 = vld [vmem:[#allocation13 + $0x1c8] sm:$0xff] }
 0x7b5   :  { %11909 = vmatprep.subr.bf16.mxu1 %v14386_v45  ;;  %v11993_v59 = vld [vmem:[#allocation13 + $0x48] sm:$0xff] }
 0x7b6   :  { %v12025_v45 = vld [vmem:[#allocation13 + $0x148] sm:$0xff] }
 0x7b7   :  { %11867 = vmatpush1.bf16.msra.mxu0 %v14381_v34  ;;  %v12008_v34 = vld [vmem:[#allocation13 + $0xc0] sm:$0xff] }
 0x7b8   :  { %11910 = vmatpush1.bf16.msra.mxu1 %v14384_v14  ;;  %11868 = vmatprep.subr.bf16.mxu0 %v14389_v62  ;;  %v12040_v14 = vld [vmem:[#allocation13 + $0x1c0] sm:$0xff] }
 0x7b9   :  { %11911 = vmatprep.subr.bf16.mxu1 %v14392_v55  ;;  %v11992_v62 = vld [vmem:[#allocation13 + $0x40] sm:$0xff] }
 0x7ba   :  { %v12024_v55 = vld [vmem:[#allocation13 + $0x140] sm:$0xff] }
 0x7bb   :  { %11869 = vmatpush2.bf16.msra.mxu0 %v14387_v25  ;;  %v12007_v25 = vld [vmem:[#allocation13 + $0xb8] sm:$0xff] }
 0x7bc   :  { %11912 = vmatpush2.bf16.msra.mxu1 %v14390_v19  ;;  %11870 = vmatprep.subr.bf16.mxu0 %v14395_v28  ;;  %v12039_v19 = vld [vmem:[#allocation13 + $0x1b8] sm:$0xff] }
 0x7bd   :  { %11913 = vmatprep.subr.bf16.mxu1 %v14398_v0  ;;  %v11991_v28 = vld [vmem:[#allocation13 + $0x38] sm:$0xff] }
 0x7be   :  { %v12023_v0 = vld [vmem:[#allocation13 + $0x138] sm:$0xff] }
 0x7bf   :  { %11871 = vmatpush2.bf16.msra.mxu0 %v14393_v16  ;;  %v12006_v16 = vld [vmem:[#allocation13 + $0xb0] sm:$0xff] }
 0x7c0   :  { %11914 = vmatpush2.bf16.msra.mxu1 %v14396_v40  ;;  %11872 = vmatprep.subr.bf16.mxu0 %v14401_v61  ;;  %v12038_v40 = vld [vmem:[#allocation13 + $0x1b0] sm:$0xff] }
 0x7c1   :  { %11915 = vmatprep.subr.bf16.mxu1 %v14404_v6  ;;  %v11990_v61 = vld [vmem:[#allocation13 + $0x30] sm:$0xff] }
 0x7c2   :  { %v12022_v6 = vld [vmem:[#allocation13 + $0x130] sm:$0xff] }
 0x7c3   :  { %11873 = vmatpush2.bf16.msra.mxu0 %v14399_v4  ;;  %v12005_v4 = vld [vmem:[#allocation13 + $0xa8] sm:$0xff] }
 0x7c4   :  { %11916 = vmatpush2.bf16.msra.mxu1 %v14402_v38  ;;  %11874 = vmatprep.subr.bf16.mxu0 %v14407_v50  ;;  %v12037_v38 = vld [vmem:[#allocation13 + $0x1a8] sm:$0xff] }
 0x7c5   :  { %11917 = vmatprep.subr.bf16.mxu1 %v14410_v41  ;;  %v11989_v50 = vld [vmem:[#allocation13 + $0x28] sm:$0xff] }
 0x7c6   :  { %v12021_v41 = vld [vmem:[#allocation13 + $0x128] sm:$0xff] }
 0x7c7   :  { %11875 = vmatpush2.bf16.msra.mxu0 %v14405_v12  ;;  %v12004_v12 = vld [vmem:[#allocation13 + $0xa0] sm:$0xff] }
 0x7c8   :  { %11918 = vmatpush2.bf16.msra.mxu1 %v14408_v27  ;;  %11876 = vmatprep.subr.bf16.mxu0 %v14413_v1  ;;  %v12036_v27 = vld [vmem:[#allocation13 + $0x1a0] sm:$0xff] }
 0x7c9   :  { %11919 = vmatprep.subr.bf16.mxu1 %v14416_v18  ;;  %v11988_v1 = vld [vmem:[#allocation13 + $0x20] sm:$0xff] }
 0x7ca   :  { %v12020_v18 = vld [vmem:[#allocation13 + $0x120] sm:$0xff] }
 0x7cb   :  { %11877 = vmatpush2.bf16.msra.mxu0 %v14411_v48  ;;  %v12003_v48 = vld [vmem:[#allocation13 + $0x98] sm:$0xff] }
 0x7cc   :  { %11920 = vmatpush2.bf16.msra.mxu1 %v14414_v13  ;;  %11878 = vmatprep.subr.bf16.mxu0 %v14419_v30  ;;  %v12035_v13 = vld [vmem:[#allocation13 + $0x198] sm:$0xff] }
 0x7cd   :  { %11921 = vmatprep.subr.bf16.mxu1 %v14422_v17  ;;  %v11987_v30 = vld [vmem:[#allocation13 + $0x18] sm:$0xff] }
 0x7ce   :  { %v12019_v17 = vld [vmem:[#allocation13 + $0x118] sm:$0xff] }
 0x7cf   :  { %11879 = vmatpush2.bf16.msra.mxu0 %v14417_v3  ;;  %v12002_v3 = vld [vmem:[#allocation13 + $0x90] sm:$0xff] }
 0x7d0   :  { %11922 = vmatpush2.bf16.msra.mxu1 %v14420_v21  ;;  %11880 = vmatprep.subr.bf16.mxu0 %v14425_v15  ;;  %v12034_v21 = vld [vmem:[#allocation13 + $0x190] sm:$0xff] }
 0x7d1   :  { %11923 = vmatprep.subr.bf16.mxu1 %v14428_v42  ;;  %v11986_v15 = vld [vmem:[#allocation13 + $0x10] sm:$0xff] }
 0x7d2   :  { %v12018_v42 = vld [vmem:[#allocation13 + $0x110] sm:$0xff] }
 0x7d3   :  { %11881 = vmatpush2.bf16.msra.mxu0 %v14423_v2  ;;  %v12001_v2 = vld [vmem:[#allocation13 + $0x88] sm:$0xff] }
 0x7d4   :  { %11924 = vmatpush2.bf16.msra.mxu1 %v14426_v23  ;;  %11882 = vmatprep.subr.bf16.mxu0 %v14431_v43  ;;  %v12033_v23 = vld [vmem:[#allocation13 + $0x188] sm:$0xff] }
 0x7d5   :  { %11925 = vmatprep.subr.bf16.mxu1 %v14434_v39  ;;  %v11985_v43 = vld [vmem:[#allocation13 + $0x8] sm:$0xff] }
 0x7d6   :  { %v12017_v39 = vld [vmem:[#allocation13 + $0x108] sm:$0xff] }
 0x7d7   :  { %11883 = vmatpush2.bf16.msra.mxu0 %v14429_v54  ;;  %v12000_v54 = vld [vmem:[#allocation13 + $0x80] sm:$0xff] }
 0x7d8   :  { %11926 = vmatpush2.bf16.msra.mxu1 %v14432_v47  ;;  %13238 = vmatprep.subr.mxu0 %v12015_v22  ;;  %v12032_v47 = vld [vmem:[#allocation13 + $0x180] sm:$0xff] }
 0x7d9   :  { %13276 = vmatprep.subr.mxu1 %v12047_v46  ;;  %v11984_v22 = vld [vmem:[#allocation13] sm:$0xff] }
 0x7da   :  { %11885 = vmatmul.mubr.bf16.vlgmr.msra.gmra.mxu0 %v17468_v32  ;;  %v12016_v46 = vld [vmem:[#allocation13 + $0x100] sm:$0xff] }
 0x7db   :  { %11928 = vmatmul.mubr.bf16.vlgmr.msra.gmra.mxu1 %v17468_v32  ;;  %13239 = vmatpush3.msra.mxu0 %v11999_v9  ;;  %v12012_v32 = vld [vmem:[#allocation13 + $0xe0] sm:$0xff]  ;;  %v10516_v9 = vpop.f32.mrf.mxu0 }
 0x7dc   :  { %13277 = vmatpush3.msra.mxu1 %v12031_v37  ;;  %13240 = vmatprep.subr.mxu0 %v12014_v51  ;;  %v10559_v37 = vpop.f32.mrf.mxu1 }
 0x7dd   :  { %13278 = vmatprep.subr.mxu1 %v12046_v63  ;;  %13241 = vmatpush3.msra.mxu0 %v11998_v31  ;;  %v10518_v51 = vpop.f32.mrf.mxu0 }
 0x7de   :  { %13279 = vmatpush3.msra.mxu1 %v12030_v57  ;;  %13242 = vmatprep.subr.mxu0 %v12013_v7  ;;  %v10561_v63 = vpop.f32.mrf.mxu1 }
 0x7df   :  { %13280 = vmatprep.subr.mxu1 %v12045_v11  ;;  %13243 = vmatpush3.msra.mxu0 %v11997_v33  ;;  %v10520_v31 = vpop.f32.mrf.mxu0 }
 0x7e0   :  { %13281 = vmatpush3.msra.mxu1 %v12029_v58  ;;  %13244 = vmatprep.subr.mxu0 %v12012_v32  ;;  %v10563_v57 = vpop.f32.mrf.mxu1 }
 0x7e1   :  { %13282 = vmatprep.subr.mxu1 %v12044_v8  ;;  %13245 = vmatpush3.msra.mxu0 %v11996_v29  ;;  %v10522_v7 = vpop.f32.mrf.mxu0 }
 0x7e2   :  { %13283 = vmatpush3.msra.mxu1 %v12028_v5  ;;  %13246 = vmatprep.subr.mxu0 %v12011_v52  ;;  %v10565_v11 = vpop.f32.mrf.mxu1 }
 0x7e3   :  { %13284 = vmatprep.subr.mxu1 %v12043_v49  ;;  %13247 = vmatpush3.msra.mxu0 %v11995_v20 }
 0x7e4   :  { %13285 = vmatpush3.msra.mxu1 %v12027_v44  ;;  %13248 = vmatprep.subr.mxu0 %v12010_v36 }
 0x7e5   :  { %13286 = vmatprep.subr.mxu1 %v12042_v10  ;;  %13249 = vmatpush3.msra.mxu0 %v11994_v60 }
 0x7e6   :  { %13287 = vmatpush3.msra.mxu1 %v12026_v26  ;;  %13250 = vmatprep.subr.mxu0 %v12009_v53 }
 0x7e7   :  { %13288 = vmatprep.subr.mxu1 %v12041_v56  ;;  %13251 = vmatpush3.msra.mxu0 %v11993_v59  ;;  %v11946_v56 = vld [vmem:[#allocation11] sm:$0xf] }
 0x7e8   :  { %13289 = vmatpush3.msra.mxu1 %v12025_v45  ;;  %13252 = vmatprep.subr.mxu0 %v12008_v34  ;;  %v17759_v34 = vld [vmem:[#allocation29_spill] sm:$0xff] }
 0x7e9   :  { %13290 = vmatprep.subr.mxu1 %v12040_v14  ;;  %13253 = vmatpush3.msra.mxu0 %v11992_v62  ;;  %v11962_v14 = vsub.s32 3, %v17759_v34 }
 0x7ea   :  { %13291 = vmatpush3.msra.mxu1 %v12024_v55  ;;  %13254 = vmatprep.subr.mxu0 %v12007_v25 }
 0x7eb   :  { %13292 = vmatprep.subr.mxu1 %v12039_v19  ;;  %13255 = vmatpush3.msra.mxu0 %v11991_v28 }
 0x7ec   :  { %13293 = vmatpush3.msra.mxu1 %v12023_v0  ;;  %13256 = vmatprep.subr.mxu0 %v12006_v16  ;;  %v11951_v16 = vrot.slane %v11946_v56, %v17754_v35 }
 0x7ed   :  { %13294 = vmatprep.subr.mxu1 %v12038_v40  ;;  %13257 = vmatpush3.msra.mxu0 %v11990_v61  ;;  %v17760_v40 = vsub.s32 2, %v17759_v34 }
 0x7ee   :  { %13295 = vmatpush3.msra.mxu1 %v12022_v6  ;;  %13258 = vmatprep.subr.mxu0 %v12005_v4 }
 0x7ef   :  { %13296 = vmatprep.subr.mxu1 %v12037_v38  ;;  %13259 = vmatpush3.msra.mxu0 %v11989_v50  ;;  %v11959_v61 = vrot.slane %v11946_v56, %v17760_v40 }
 0x7f0   :  { %13297 = vmatpush3.msra.mxu1 %v12021_v41  ;;  %13260 = vmatprep.subr.mxu0 %v12004_v12  ;;  %v11955_v41 = vrot.slane %v11946_v56, %v17756_v24 }
 0x7f1   :  { %13298 = vmatprep.subr.mxu1 %v12036_v27  ;;  %13261 = vmatpush3.msra.mxu0 %v11988_v1 }
 0x7f2   :  { %13299 = vmatpush3.msra.mxu1 %v12020_v18  ;;  %13262 = vmatprep.subr.mxu0 %v12003_v48  ;;  %v11963_v48 = vrot.slane %v11946_v56, %v11962_v14 }
 0x7f3   :  { %13300 = vmatprep.subr.mxu1 %v12035_v13  ;;  %13263 = vmatpush3.msra.mxu0 %v11987_v30 }
 0x7f4   :  { %13301 = vmatpush3.msra.mxu1 %v12019_v17  ;;  %13264 = vmatprep.subr.mxu0 %v12002_v3 }
 0x7f5   :  { %13302 = vmatprep.subr.mxu1 %v12034_v21  ;;  %13265 = vmatpush3.msra.mxu0 %v11986_v15 }
 0x7f6   :  { %13303 = vmatpush3.msra.mxu1 %v12018_v42  ;;  %13266 = vmatprep.subr.mxu0 %v12001_v2 }
 0x7f7   :  { %13304 = vmatprep.subr.mxu1 %v12033_v23  ;;  %13267 = vmatpush3.msra.mxu0 %v11985_v43 }
 0x7f8   :  { %13305 = vmatpush3.msra.mxu1 %v12017_v39  ;;  %13268 = vmatprep.subr.mxu0 %v12000_v54 }
 0x7f9   :  { %13306 = vmatprep.subr.mxu1 %v12032_v47  ;;  %13269 = vmatpush3.msra.mxu0 %v11984_v22 }
 0x7fa   :  { %13307 = vmatpush3.msra.mxu1 %v12016_v46 }
 0x81a   :  { %v10922_v33 = vpop.f32.mrf.mxu0  ;;  %v10965_v58 = vpop.f32.mrf.mxu1 }
 0x81b   :  { %v10923_v53 = vadd.f32 %v10922_v33, %v10516_v9  ;;  %v10966_v59 = vadd.f32 %v10965_v58, %v10559_v37 }
 0x81c   :  { %v10924_v32 = vpop.f32.mrf.mxu0  ;;  %v10967_v8 = vpop.f32.mrf.mxu1 }
 0x81d   :  { %v10925_v62 = vadd.f32 %v10924_v32, %v10518_v51  ;;  %v10968_v19 = vadd.f32 %v10967_v8, %v10561_v63 }
 0x81e   :  { %v10926_v29 = vpop.f32.mrf.mxu0  ;;  %v10969_v5 = vpop.f32.mrf.mxu1 }
 0x81f   :  { %v10927_v6 = vadd.f32 %v10926_v29, %v10520_v31  ;;  %v10970_v12 = vadd.f32 %v10969_v5, %v10563_v57 }
 0x820   :  { %v10928_v52 = vpop.f32.mrf.mxu0  ;;  %v10971_v49 = vpop.f32.mrf.mxu1 }
 0x821   :  { %v10929_v13 = vadd.f32 %v10928_v52, %v10522_v7  ;;  %v10972_v21 = vadd.f32 %v10971_v49, %v10565_v11 }
 0x85a   :  { %v11399_v20 = vpop.f32.mrf.mxu0 }
 0x85b   :  { %v11442_v44 = vpop.f32.mrf.mxu1  ;;  %v11451_v55 = vadd.f32 %v11399_v20, %v10923_v53 }
 0x85c   :  { %v11401_v36 = vpop.f32.mrf.mxu0  ;;  %v11453_v28 = vadd.f32 %v11442_v44, %v10966_v59 }
 0x85d   :  { %v11444_v10 = vpop.f32.mrf.mxu1  ;;  %v11452_v4 = vadd.f32 %v11401_v36, %v10925_v62 }
 0x85e   :  { %v11403_v60 = vpop.f32.mrf.mxu0  ;;  %v11454_v27 = vadd.f32 %v11444_v10, %v10968_v19 }
 0x85f   :  { %v11446_v26 = vpop.f32.mrf.mxu1  ;;  %v11455_v30 = vadd.f32 %v11403_v60, %v10927_v6 }
 0x860   :  { %v11405_v45 = vpop.f32.mrf.mxu0  ;;  %v11457_v35 = vadd.f32 %v11446_v26, %v10970_v12 }
 0x861   :  { %v11448_v25 = vpop.f32.mrf.mxu1  ;;  %v11456_v23 = vadd.f32 %v11405_v45, %v10929_v13  ;;  %v13237_v45 = vld [vmem:[#allocation14] ss:$0 sm:$0xff] }
 0x862   :  { %v11458_v24 = vadd.f32 %v11448_v25, %v10972_v21 }
 0x89a   :  { %v11886_v0 = vpop.f32.mrf.mxu0 }
 0x89b   :  { %v11938_v38 = vadd.f32 %v11886_v0, %v11451_v55  ;;  %v11929_v50 = vpop.f32.mrf.mxu1 }
 0x89c   :  { %v11940_v1 = vadd.f32 %v11929_v50, %v11453_v28  ;;  %v11888_v18 = vpop.f32.mrf.mxu0 }
 0x89d   :  { %v11939_v17 = vadd.f32 %v11888_v18, %v11452_v4  ;;  %v11931_v3 = vpop.f32.mrf.mxu1  ;;  %v11968_v15 = vadd.f32 %v11951_v16, %v11938_v38 }
 0x89e   :  { %v11941_v42 = vadd.f32 %v11931_v3, %v11454_v27  ;;  %v11890_v2 = vpop.f32.mrf.mxu0  ;;  %v11970_v43 = vadd.f32 %v11959_v61, %v11940_v1 }
 0x89f   :  { %v11969_v39 = vadd.f32 %v11955_v41, %v11939_v17  ;;  %v11942_v54 = vadd.f32 %v11890_v2, %v11455_v30  ;;  %v11933_v47 = vpop.f32.mrf.mxu1  ;;  %v11976_v31 = vmax.f32 %v11968_v15, 0.0 }
 0x8a0   :  { %v11971_v22 = vadd.f32 %v11963_v48, %v11941_v42  ;;  %v11944_v46 = vadd.f32 %v11933_v47, %v11457_v35  ;;  %v11892_v9 = vpop.f32.mrf.mxu0  ;;  %v11978_v33 = vmax.f32 %v11970_v43, 0.0 }
 0x8a1   :  { %v11977_v37 = vmax.f32 %v11969_v39, 0.0  ;;  %v11943_v51 = vadd.f32 %v11892_v9, %v11456_v23  ;;  %v11935_v63 = vpop.f32.mrf.mxu1  ;;  %v11972_v7 = vadd.f32 %v11951_v16, %v11942_v54 }
 0x8a2   :  { %v11979_v57 = vmax.f32 %v11971_v22, 0.0  ;;  %v11945_v11 = vadd.f32 %v11935_v63, %v11458_v24  ;;  %v11974_v58 = vadd.f32 %v11959_v61, %v11944_v46 }
 0x8a3   :  { %v11973_v32 = vadd.f32 %v11955_v41, %v11943_v51  ;;  %12119 = vmatprep.mubr.f32.mxu0 %v11977_v37  ;;  %v11980_v5 = vmax.f32 %v11972_v7, 0.0 }
 0x8a4   :  { %v11975_v8 = vadd.f32 %v11963_v48, %v11945_v11  ;;  %12194 = vmatprep.mubr.f32.mxu1 %v11979_v57  ;;  %12120 = vmatmul.mubr.f32.vlgmr.msra.gmra.mxu0 %v11976_v31  ;;  %v11982_v49 = vmax.f32 %v11974_v58, 0.0 }
 0x8a5   :  { %v11981_v29 = vmax.f32 %v11973_v32, 0.0  ;;  %12195 = vmatmul.mubr.f32.vlgmr.msra.gmra.mxu1 %v11978_v33 }
 0x8a6   :  { %v11983_v52 = vmax.f32 %v11975_v8, 0.0 }
 0x8a7   :  { %12124 = vmatprep.mubr.f32.mxu0 %v11981_v29 }
 0x8a8   :  { %12199 = vmatprep.mubr.f32.mxu1 %v11983_v52  ;;  %12125 = vmatmul.mubr.f32.gmra.mxu0 %v11980_v5 }
 0x8a9   :  { %12200 = vmatmul.mubr.f32.gmra.mxu1 %v11982_v49 }
 0x964   :  { %v13270_v20 = vpop.f32.mrf.mxu0 }
 0x965   :  { %v13308_v44 = vpop.f32.mrf.mxu1 }
 0x966   :  { %v13271_v36 = vpop.f32.mrf.mxu0 }
 0x967   :  { %v13309_v10 = vpop.f32.mrf.mxu1  ;;  %v13272_v34 = vadd.f32 %v13271_v36, %v13270_v20 }
 0x968   :  { %v13273_v60 = vpop.f32.mrf.mxu0  ;;  %v13310_v28 = vadd.f32 %v13309_v10, %v13308_v44 }
 0x969   :  { %v13311_v26 = vpop.f32.mrf.mxu1  ;;  %v12122_v25 = vadd.f32 %v13272_v34, %v13237_v45 }
 0x96a   :  { %v13274_v53 = vpop.f32.mrf.mxu0 }
 0x96b   :  { %v13275_v56 = vadd.f32 %v13274_v53, %v13273_v60  ;;  %v13312_v59 = vpop.f32.mrf.mxu1  ;;  %v12197_v0 = vadd.f32 %v13310_v28, %v12122_v25 }
 0x96c   :  { %v13313_v62 = vadd.f32 %v13312_v59, %v13311_v26 }
 0x96d   :  { %v12127_v14 = vadd.f32 %v13275_v56, %v13237_v45 }
 0x96f   :  { %v12202_v55 = vadd.f32 %v13313_v62, %v12127_v14 }
 0x971   :  { %v12208_v19 = vsel %vm12207_vm2, %v12202_v55, -inf }
 0x972   :  { %12209 = vmax.xlane.f32.xlu0 %v12208_v19 }
 0x976   :  { %12205 = vmax.xlane.f32.xlu0 %v12197_v0 }
 0x9fb   :  { %v12210_v16 = vpop.xlane.xlu0 %12209 }
 0x9fc   :  { %v12212_v40 = vsub.f32 %v12202_v55, %v12210_v16 }
 0x9fe   :  { %v12215_v4 = vmul.f32 1.442695, %v12212_v40 }
 0x9ff   :  { %v12206_v61 = vpop.xlane.xlu0 %12205 }
 0xa00   :  { %v12211_v6 = vsub.f32 %v12197_v0, %v12206_v61 }
 0xa02   :  { %v12213_v38 = vmul.f32 1.442695, %v12211_v6 }
 0xa04   :  { %14435 = vpow2.f32 %v12213_v38 }
 0xa05   :  { %14437 = vpow2.f32 %v12215_v4 }
 0xa11   :  { %v14436_v50 = vpop.eup %14435 }
 0xa12   :  { %v14438_v41 = vpop.eup %14437  ;;  %12217 = vadd.xlane.f32.xlu1 %v14436_v50 }
 0xa13   :  { %v12219_v12 = vsel %vm12207_vm2, %v14438_v41, 0.0 }
 0xa16   :  { %12220 = vadd.xlane.f32.xlu1 %v12219_v12 }
 0xa9b   :  { %v12218_v27 = vpop.xlane.xlu1 %12217 }
 0xa9c   :  { %14439 = vlog2.f32 %v12218_v27 }
 0xa9f   :  { %v12221_v1 = vpop.xlane.xlu1 %12220 }
 0xaa0   :  { %14441 = vlog2.f32 %v12221_v1 }
 0xaa9   :  { %v14440_v18 = vpop.eup %14439 }
 0xaaa   :  { %v12223_v48 = vmul.f32 0.6931472, %v14440_v18 }
 0xaac   :  { %v12226_v13 = vsub.f32 %v12211_v6, %v12223_v48 }
 0xaad   :  { %v14442_v30 = vpop.eup %14441 }
 0xaae   :  { %v12225_v17 = vmul.f32 0.6931472, %v14442_v30  ;;  %12228 = vst [vmem:[#allocation16] sm:$0x1] %v12226_v13 }
 0xab0   :  { %v12227_v3 = vsub.f32 %v12212_v40, %v12225_v17 }
 0xab2   :  { %12229 = vst [vmem:[#allocation16 + $0x1] sm:$0x1] %v12227_v3 }
 0xab3   :  { %15282 = shalt.err (!%p15279_p2)
}
 0xab4   :  { %12239 = dma.vmem_to_hbm [thread:$0]  %s12237_s4, 32, %s17499_s9, [#allocation4]  }
 0xab5   :  { %15301 = dma.done.wait [#allocation4], 32  }
 0xab6   :  { %15302 = vsyncadd [#allocation4], 4294967264 }
 0xab7   :  { %12243 = vsyncpa [#allocation3], 1 }
 0xab8   :  { %12244 = vsyncpa [#allocation6], 1 }
 0xab9   :  { %12245 = vsyncpa [#allocation9], 1 }
 0xaba   :  { %12246 = vsyncpa [#allocation12], 1 }
 0xabb   :  { %12247 = vsyncpa [#allocation15], 1 }
 0xabc   :  { %12248 = vsyncpa [#allocation4], 1 }

</bundles_post_ra>
